<compile_context>
chip_gen: v7x
topology: tpu7x:2x2x1
jax: 0.10.0
libtpu: 0.0.40
codegen_flags: <defaults>
</compile_context>

<pallas_src>
import math

import jax
import jax.numpy as jnp
from jax.experimental import pallas as pl
from jax.experimental.pallas import tpu as pltpu


# ----------------------------------------------------------------------------
# token_hasher replacement (original lives elsewhere in SourceCodeTools):
# deterministic FNV-1a string hash -> bucket index.  Host-side / Python only.
# ----------------------------------------------------------------------------
def token_hasher(token: str, num_buckets: int) -> int:
    h = 2166136261
    for c in token.encode("utf-8"):
        h = ((h ^ c) * 16777619) & 0xFFFFFFFF
    return h % num_buckets


def _round_up(x: int, m: int) -> int:
    return ((x + m - 1) // m) * m


# ----------------------------------------------------------------------------
# Kernel factory: S (number of stacked inputs) is a trace-time Python constant,
# so the S refs are simply unrolled in the body.
#
#   args = (kv_0 ... kv_{S-1}, qk, wvo_t, bvo, out)
#     kv_s  : (TN, E)  s-th input tile (key == value; each streamed once)
#     qk    : (1, E)   folded query  scale * Wk^T (Wq q + bq)            [f32]
#     wvo_t : (E, E)   fused value/output weight, pre-transposed (Wo@Wv)^T
#     bvo   : (1, E)   fused bias    bv @ Wo^T + bo                      [f32]
#     out   : (TN, E)
# ----------------------------------------------------------------------------
def _make_kernel(S):
    def kernel(*args):
        kv = args[:S]
        qk_ref, wvo_ref, bvo_ref, out_ref = args[S], args[S + 1], args[S + 2], args[S + 3]
        qk = qk_ref[...]                                            # (1, E) f32

        # Per-input scores in lane-size-1 layout (TN, 1); bf16*f32 promotes per
        # element, so the sums (and everything after) are f32.
        scores = [jnp.sum(kv[s][...] * qk, axis=-1, keepdims=True)  # (TN, 1)
                  for s in range(S)]

        # softmax over the S stacked inputs (S is tiny; unrolled reductions).
        m = scores[0]
        for s in range(1, S):
            m = jnp.maximum(m, scores[s])
        p = [jnp.exp(scores[s] - m) for s in range(S)]
        l = p[0]
        for s in range(1, S):
            l = l + p[s]
        inv_l = pl.reciprocal(l, approx=False)                      # exact (correctness fix)

        # Weighted sum over RAW values; bias/projection fold happens after the
        # reduction (valid because softmax weights sum to 1, num_heads == 1).
        ctx = (p[0] * inv_l) * kv[0][...]
        for s in range(1, S):
            ctx = ctx + (p[s] * inv_l) * kv[s][...]                 # (TN, E) f32

        # One fused (Wo @ Wv) projection per tile on the MXU: operands in the
        # stream dtype (bf16 on the fast path), f32 accumulation.
        out = jnp.dot(ctx.astype(wvo_ref.dtype), wvo_ref[...],
                      preferred_element_type=jnp.float32) + bvo_ref[...]
        out_ref[...] = out.astype(out_ref.dtype)

    return kernel


# ----------------------------------------------------------------------------
# Wrapper: embedding lookup, weight folding, tile selection, pallas_call.
# ----------------------------------------------------------------------------
def attentive_aggregator_forward(list_inputs, dsttype, params, *,
                                 tn=None, stream_dtype=jnp.bfloat16,
                                 out_dtype=jnp.float32):
    if len(list_inputs) == 1:
        return list_inputs[0]          # mirrors the PyTorch early-return path

    S = len(list_inputs)
    N, E = list_inputs[0].shape

    # Stream each input separately (no jnp.stack materialization).
    if stream_dtype is not None:
        kv_list = [x.astype(stream_dtype) for x in list_inputs]
    else:
        kv_list = list(list_inputs)
    elt = jnp.dtype(kv_list[0].dtype).itemsize

    idx = token_hasher(dsttype, params["num_query_buckets"])
    q_emb = params["query_emb"][idx]                                  # (E,)

    # --- fold projections outside the kernel (tiny (E,E) work, done once) ---
    # NOTE: exact only for num_heads == 1 with a query shared across S.
    scale = 1.0 / math.sqrt(E)
    qp = q_emb @ params["wq"].T + params["bq"][0]                     # (E,)
    qk = ((qp @ params["wk"]) * scale)[None, :].astype(jnp.float32)   # (1, E)
    wvo_t = (params["wv"].T @ params["wo"].T).astype(kv_list[0].dtype)  # (E, E)
    bvo = (params["bv"] @ params["wo"].T + params["bo"]).astype(jnp.float32)  # (1, E)

    # --- node-axis tile selection -------------------------------------------
    # target 512-1024 rows per tile but keep >= 2 grid steps (v7x megacore),
    # and cap the double-buffered VMEM footprint at ~12 MiB (v5e default scoped
    # VMEM is 16 MiB; v7x physical VMEM is 64 MiB).
    if tn is None:
        tn = min(1024, _round_up(max(pl.cdiv(N, 2), 8), 8))
    vmem_budget = 12 * 1024 * 1024
    per_row = 2 * S * E * elt + 2 * E * jnp.dtype(out_dtype).itemsize
    tn_cap = max(8, (vmem_budget // per_row) // 8 * 8)
    tn = max(8, min(_round_up(tn, 8), tn_cap))
    grid = (pl.cdiv(N, tn),)   # ragged last tile: reads undefined rows, writes masked
                               # -> no jnp.pad copy of the big tensors

    row_tile = lambda i: (i, 0)
    full = lambda i: (0, 0)

    out = pl.pallas_call(
        _make_kernel(S),
        out_shape=jax.ShapeDtypeStruct((N, E), out_dtype),
        grid_spec=pltpu.PrefetchScalarGridSpec(
            num_scalar_prefetch=0,
            grid=grid,
            in_specs=[pl.BlockSpec((tn, E), row_tile) for _ in range(S)]   # S inputs
                     + [pl.BlockSpec((1, E), full),     # folded query (f32)
                        pl.BlockSpec((E, E), full),     # fused (Wo@Wv)^T
                        pl.BlockSpec((1, E), full)],    # fused bias (f32)
            out_specs=pl.BlockSpec((tn, E), row_tile),
        ),
        compiler_params=pltpu.CompilerParams(
            dimension_semantics=("parallel",)),          # megacore-shardable on v7x
    )(*kv_list, qk, wvo_t, bvo)

    # att_out has seq-len 1, so mean(0).unsqueeze(1) == (N, 1, E)
    return out[:, None, :]


# ----------------------------------------------------------------------------
# Pure-JAX reference (mirrors torch.nn.MultiheadAttention, num_heads=1, unfolded).
# ----------------------------------------------------------------------------
def reference_forward(list_inputs, dsttype, params):
    if len(list_inputs) == 1:
        return list_inputs[0]
    key = jnp.stack(list_inputs)                     # (S, N, E)
    S, N, E = key.shape
    idx = token_hasher(dsttype, params["num_query_buckets"])
    q = params["query_emb"][idx]                     # (E,)
    qp = q @ params["wq"].T + params["bq"][0]        # (E,)
    kp = jnp.einsum('sne,fe->snf', key, params["wk"]) + params["bk"][0]
    vp = jnp.einsum('sne,fe->snf', key, params["wv"]) + params["bv"][0]
    scores = jnp.einsum('snf,f->ns', kp, qp) / math.sqrt(E)   # (N, S)
    w = jax.nn.softmax(scores, axis=-1)
    attn = jnp.einsum('ns,sne->ne', w, vp)                    # (N, E)
    out = attn @ params["wo"].T + params["bo"][0]             # (N, E)
    return out[:, None, :]


# ----------------------------------------------------------------------------
# Deterministic parameter construction (shapes from the module __init__).
# ----------------------------------------------------------------------------
def make_params(emb_dim, num_dst_embeddings, key):
    ks = jax.random.split(key, 6)
    scale = 1.0 / math.sqrt(emb_dim)
    in_proj_w = jax.random.normal(ks[0], (3 * emb_dim, emb_dim), jnp.float32) * scale
    out_proj_w = jax.random.normal(ks[1], (emb_dim, emb_dim), jnp.float32) * scale
    query_emb = jax.random.normal(ks[2], (num_dst_embeddings, emb_dim), jnp.float32)
    bq = jax.random.normal(ks[3], (1, emb_dim), jnp.float32) * 0.01
    bk = jax.random.normal(ks[4], (1, emb_dim), jnp.float32) * 0.01
    bv = jax.random.normal(ks[5], (1, emb_dim), jnp.float32) * 0.01
    bo = jnp.zeros((1, emb_dim), jnp.float32)
    return {
        "wq": in_proj_w[0 * emb_dim:1 * emb_dim],
        "wk": in_proj_w[1 * emb_dim:2 * emb_dim],
        "wv": in_proj_w[2 * emb_dim:3 * emb_dim],
        "wo": out_proj_w,
        "bq": bq, "bk": bk, "bv": bv, "bo": bo,
        "query_emb": query_emb,
        "num_query_buckets": num_dst_embeddings,
    }


if __name__ == "__main__":
    EMB = 128          # emb_dim
    N_NODES = 1000     # deliberately NOT a multiple of the tile -> ragged last tile
    N_INPUTS = 4       # len(list_inputs) (S) -- must be > 1 to hit attention path
    N_BUCKETS = 64     # num_dst_embeddings (kept small; only one row is read)

    root = jax.random.PRNGKey(0)
    pkey, dkey = jax.random.split(root)
    params = make_params(EMB, N_BUCKETS, pkey)

    ikeys = jax.random.split(dkey, N_INPUTS)
    list_inputs = [jax.random.normal(k, (N_NODES, EMB), jnp.float32) for k in ikeys]

    ref = reference_forward(list_inputs, "function", params)

    # f32-streaming path: tolerance budgets for the MXU's reduced-precision f32
    # passes (the folding itself is algebraically exact, reciprocal is exact).
    out32 = attentive_aggregator_forward(list_inputs, "function", params,
                                         stream_dtype=jnp.float32)
    out32 = jax.block_until_ready(out32)
    assert out32.shape == (N_NODES, 1, EMB), out32.shape
    assert jnp.allclose(out32, ref, atol=2e-2, rtol=2e-2), \
        float(jnp.max(jnp.abs(out32 - ref)))

    # default fast path (bf16 streaming, halves HBM traffic): bf16-level tolerance
    out16 = attentive_aggregator_forward(list_inputs, "function", params)
    out16 = jax.block_until_ready(out16)
    assert out16.shape == (N_NODES, 1, EMB), out16.shape
    assert jnp.allclose(out16, ref, atol=1e-1, rtol=1e-1), \
        float(jnp.max(jnp.abs(out16 - ref)))

    # single-input early-return path (no kernel needed; matches PyTorch which
    # returns (N, E) -- pre-existing API inconsistency of the module itself)
    single = attentive_aggregator_forward([list_inputs[0]], "function", params)
    assert single.shape == (N_NODES, EMB)

    print("KERNEL_OK")
</pallas_src>

<mosaic_0001>
module attributes {stable_mosaic.version = 11 : i64} {
  func.func @kernel(%arg0: i32, %arg1: memref<504x128xf32, #tpu.memory_space<vmem>>, %arg2: memref<504x128xf32, #tpu.memory_space<vmem>>, %arg3: memref<504x128xf32, #tpu.memory_space<vmem>>, %arg4: memref<504x128xf32, #tpu.memory_space<vmem>>, %arg5: memref<1x128xf32, #tpu.memory_space<vmem>>, %arg6: memref<128x128xf32, #tpu.memory_space<vmem>>, %arg7: memref<1x128xf32, #tpu.memory_space<vmem>>, %arg8: memref<504x128xf32, #tpu.memory_space<vmem>>) attributes {dimension_semantics = [#tpu.dimension_semantics<parallel>], iteration_bounds = array<i64: 2>, scalar_prefetch = 0 : i64, scratch_operands = 0 : i64, tpu.core_type = #tpu.core_type<tc>, window_params = [{transform_indices = @transform_0, window_bounds = array<i64: 504, 128>}, {transform_indices = @transform_1, window_bounds = array<i64: 504, 128>}, {transform_indices = @transform_2, window_bounds = array<i64: 504, 128>}, {transform_indices = @transform_3, window_bounds = array<i64: 504, 128>}, {pipeline_mode = #tpu.pipeline_mode<synchronous>, transform_indices = @transform_4, window_bounds = array<i64: 1, 128>}, {pipeline_mode = #tpu.pipeline_mode<synchronous>, transform_indices = @transform_5, window_bounds = array<i64: 128, 128>}, {pipeline_mode = #tpu.pipeline_mode<synchronous>, transform_indices = @transform_6, window_bounds = array<i64: 1, 128>}, {transform_indices = @transform_7, window_bounds = array<i64: 504, 128>}]} {
    %c0 = arith.constant 0 : index
    %c0_0 = arith.constant 0 : index
    %0 = vector.load %arg5[%c0, %c0_0] : memref<1x128xf32, #tpu.memory_space<vmem>>, vector<1x128xf32>
    %c0_1 = arith.constant 0 : index
    %c0_2 = arith.constant 0 : index
    %1 = vector.load %arg1[%c0_1, %c0_2] : memref<504x128xf32, #tpu.memory_space<vmem>>, vector<504x128xf32>
    %2 = vector.broadcast %0 : vector<1x128xf32> to vector<504x128xf32>
    %3 = arith.mulf %1, %2 : vector<504x128xf32>
    %cst = arith.constant dense<0.000000e+00> : vector<504xf32>
    %4 = vector.multi_reduction <add>, %3, %cst [1] : vector<504x128xf32> to vector<504xf32>
    %5 = vector.shape_cast %4 : vector<504xf32> to vector<504x1xf32>
    %c0_3 = arith.constant 0 : index
    %c0_4 = arith.constant 0 : index
    %6 = vector.load %arg2[%c0_3, %c0_4] : memref<504x128xf32, #tpu.memory_space<vmem>>, vector<504x128xf32>
    %7 = vector.broadcast %0 : vector<1x128xf32> to vector<504x128xf32>
    %8 = arith.mulf %6, %7 : vector<504x128xf32>
    %cst_5 = arith.constant dense<0.000000e+00> : vector<504xf32>
    %9 = vector.multi_reduction <add>, %8, %cst_5 [1] : vector<504x128xf32> to vector<504xf32>
    %10 = vector.shape_cast %9 : vector<504xf32> to vector<504x1xf32>
    %c0_6 = arith.constant 0 : index
    %c0_7 = arith.constant 0 : index
    %11 = vector.load %arg3[%c0_6, %c0_7] : memref<504x128xf32, #tpu.memory_space<vmem>>, vector<504x128xf32>
    %12 = vector.broadcast %0 : vector<1x128xf32> to vector<504x128xf32>
    %13 = arith.mulf %11, %12 : vector<504x128xf32>
    %cst_8 = arith.constant dense<0.000000e+00> : vector<504xf32>
    %14 = vector.multi_reduction <add>, %13, %cst_8 [1] : vector<504x128xf32> to vector<504xf32>
    %15 = vector.shape_cast %14 : vector<504xf32> to vector<504x1xf32>
    %c0_9 = arith.constant 0 : index
    %c0_10 = arith.constant 0 : index
    %16 = vector.load %arg4[%c0_9, %c0_10] : memref<504x128xf32, #tpu.memory_space<vmem>>, vector<504x128xf32>
    %17 = vector.broadcast %0 : vector<1x128xf32> to vector<504x128xf32>
    %18 = arith.mulf %16, %17 : vector<504x128xf32>
    %cst_11 = arith.constant dense<0.000000e+00> : vector<504xf32>
    %19 = vector.multi_reduction <add>, %18, %cst_11 [1] : vector<504x128xf32> to vector<504xf32>
    %20 = vector.shape_cast %19 : vector<504xf32> to vector<504x1xf32>
    %21 = arith.maximumf %5, %10 : vector<504x1xf32>
    %22 = arith.maximumf %21, %15 : vector<504x1xf32>
    %23 = arith.maximumf %22, %20 : vector<504x1xf32>
    %24 = arith.subf %5, %23 : vector<504x1xf32>
    %25 = math.exp %24 : vector<504x1xf32>
    %26 = arith.subf %10, %23 : vector<504x1xf32>
    %27 = math.exp %26 : vector<504x1xf32>
    %28 = arith.subf %15, %23 : vector<504x1xf32>
    %29 = math.exp %28 : vector<504x1xf32>
    %30 = arith.subf %20, %23 : vector<504x1xf32>
    %31 = math.exp %30 : vector<504x1xf32>
    %32 = arith.addf %25, %27 : vector<504x1xf32>
    %33 = arith.addf %32, %29 : vector<504x1xf32>
    %34 = arith.addf %33, %31 : vector<504x1xf32>
    %35 = tpu.reciprocal %34 : vector<504x1xf32> -> vector<504x1xf32>
    %36 = arith.mulf %25, %35 : vector<504x1xf32>
    %c0_12 = arith.constant 0 : index
    %c0_13 = arith.constant 0 : index
    %37 = vector.load %arg1[%c0_12, %c0_13] : memref<504x128xf32, #tpu.memory_space<vmem>>, vector<504x128xf32>
    %38 = vector.broadcast %36 : vector<504x1xf32> to vector<504x128xf32>
    %39 = arith.mulf %38, %37 : vector<504x128xf32>
    %40 = arith.mulf %27, %35 : vector<504x1xf32>
    %c0_14 = arith.constant 0 : index
    %c0_15 = arith.constant 0 : index
    %41 = vector.load %arg2[%c0_14, %c0_15] : memref<504x128xf32, #tpu.memory_space<vmem>>, vector<504x128xf32>
    %42 = vector.broadcast %40 : vector<504x1xf32> to vector<504x128xf32>
    %43 = arith.mulf %42, %41 : vector<504x128xf32>
    %44 = arith.addf %39, %43 : vector<504x128xf32>
    %45 = arith.mulf %29, %35 : vector<504x1xf32>
    %c0_16 = arith.constant 0 : index
    %c0_17 = arith.constant 0 : index
    %46 = vector.load %arg3[%c0_16, %c0_17] : memref<504x128xf32, #tpu.memory_space<vmem>>, vector<504x128xf32>
    %47 = vector.broadcast %45 : vector<504x1xf32> to vector<504x128xf32>
    %48 = arith.mulf %47, %46 : vector<504x128xf32>
    %49 = arith.addf %44, %48 : vector<504x128xf32>
    %50 = arith.mulf %31, %35 : vector<504x1xf32>
    %c0_18 = arith.constant 0 : index
    %c0_19 = arith.constant 0 : index
    %51 = vector.load %arg4[%c0_18, %c0_19] : memref<504x128xf32, #tpu.memory_space<vmem>>, vector<504x128xf32>
    %52 = vector.broadcast %50 : vector<504x1xf32> to vector<504x128xf32>
    %53 = arith.mulf %52, %51 : vector<504x128xf32>
    %54 = arith.addf %49, %53 : vector<504x128xf32>
    %c0_20 = arith.constant 0 : index
    %c0_21 = arith.constant 0 : index
    %55 = vector.load %arg6[%c0_20, %c0_21] : memref<128x128xf32, #tpu.memory_space<vmem>>, vector<128x128xf32>
    %cst_22 = arith.constant dense<0.000000e+00> : vector<504x128xf32>
    %56 = tpu.matmul %54, %55, %cst_22 {dimension_numbers = #tpu.dot_dimension_numbers<[1], [0], [0], [1], [0, 0, 1, 1], [], []>} : vector<504x128xf32>, vector<128x128xf32>, vector<504x128xf32> -> vector<504x128xf32>
    %c0_23 = arith.constant 0 : index
    %c0_24 = arith.constant 0 : index
    %57 = vector.load %arg7[%c0_23, %c0_24] : memref<1x128xf32, #tpu.memory_space<vmem>>, vector<1x128xf32>
    %58 = vector.broadcast %57 : vector<1x128xf32> to vector<504x128xf32>
    %59 = arith.addf %56, %58 : vector<504x128xf32>
    %c0_25 = arith.constant 0 : index
    %c0_26 = arith.constant 0 : index
    %60 = vector.load %arg8[%c0_25, %c0_26] : memref<504x128xf32, #tpu.memory_space<vmem>>, vector<504x128xf32>
    tpu.vector_store %arg8[%c0_25, %c0_26], %59 {strides = array<i32>} : memref<504x128xf32, #tpu.memory_space<vmem>>, vector<504x128xf32>,
    return
  }
  func.func @transform_0(%arg0: i32) -> (i32, i32) {
    %c0_i32 = arith.constant 0 : i32
    %c0_i32_0 = arith.constant 0 : i32
    return %arg0, %c0_i32 : i32, i32
  }
  func.func @transform_1(%arg0: i32) -> (i32, i32) {
    %c0_i32 = arith.constant 0 : i32
    %c0_i32_0 = arith.constant 0 : i32
    return %arg0, %c0_i32 : i32, i32
  }
  func.func @transform_2(%arg0: i32) -> (i32, i32) {
    %c0_i32 = arith.constant 0 : i32
    %c0_i32_0 = arith.constant 0 : i32
    return %arg0, %c0_i32 : i32, i32
  }
  func.func @transform_3(%arg0: i32) -> (i32, i32) {
    %c0_i32 = arith.constant 0 : i32
    %c0_i32_0 = arith.constant 0 : i32
    return %arg0, %c0_i32 : i32, i32
  }
  func.func @transform_4(%arg0: i32) -> (i32, i32) {
    %c0_i32 = arith.constant 0 : i32
    %c0_i32_0 = arith.constant 0 : i32
    %c0_i32_1 = arith.constant 0 : i32
    return %c0_i32, %c0_i32_0 : i32, i32
  }
  func.func @transform_5(%arg0: i32) -> (i32, i32) {
    %c0_i32 = arith.constant 0 : i32
    %c0_i32_0 = arith.constant 0 : i32
    %c0_i32_1 = arith.constant 0 : i32
    return %c0_i32, %c0_i32_0 : i32, i32
  }
  func.func @transform_6(%arg0: i32) -> (i32, i32) {
    %c0_i32 = arith.constant 0 : i32
    %c0_i32_0 = arith.constant 0 : i32
    %c0_i32_1 = arith.constant 0 : i32
    return %c0_i32, %c0_i32_0 : i32, i32
  }
  func.func @transform_7(%arg0: i32) -> (i32, i32) {
    %c0_i32 = arith.constant 0 : i32
    %c0_i32_0 = arith.constant 0 : i32
    return %arg0, %c0_i32 : i32, i32
  }
}

</mosaic_0001>

<bundles_post_ra>
// kernel: tpu_custom_call.1
= control target key start
LH: loop header
LB: loop body
LE: loop exit
PB: predicated region body
PF: predicated region fallthrough
CT: control target
= control target key end

     0   :  { %s9655_s0 = inlined_call_operand.hbm [shape: f32[1000,128], index: 0, kind: input, shape index: {}]   ;;  %s9656_s1 = inlined_call_operand.hbm [shape: f32[1000,128], index: 1, kind: input, shape index: {}]   ;;  %s9657_s2 = inlined_call_operand.hbm [shape: f32[1000,128], index: 2, kind: input, shape index: {}]   ;;  %s9658_s3 = inlined_call_operand.hbm [shape: f32[1000,128], index: 3, kind: input, shape index: {}]   ;;  %s9659_s4 = inlined_call_operand.vmem [shape: f32[1,128], index: 4, kind: input, shape index: {}]   ;;  %s9660_s5 = inlined_call_operand.hbm [shape: f32[128,128], index: 5, kind: input, shape index: {}]   ;;  %s9661_s6 = inlined_call_operand.vmem [shape: f32[1,128], index: 6, kind: input, shape index: {}]   ;;  %s9662_s7 = inlined_call_operand.hbm [shape: f32[1000,128], index: 7, kind: output, shape index: {}]  }
   0x1   :  { %9701 = sst [smem:[#allocation69_spill]] %s9655_s0 }
   0x2   :  { %9702 = sst [smem:[#allocation70_spill]] %s9660_s5 }
   0x3   :  { %12 = vsyncpa [#allocation3], 0 }
   0x4   :  { %14 = vsyncpa [#allocation3 + $0x1], 0 }
   0x5   :  { %15 = vsyncpa [#allocation6], 0 }
   0x6   :  { %17 = vsyncpa [#allocation6 + $0x1], 0 }
   0x7   :  { %18 = vsyncpa [#allocation9], 0 }
   0x8   :  { %20 = vsyncpa [#allocation9 + $0x1], 0 }
   0x9   :  { %21 = vsyncpa [#allocation4], 0 }
   0xa   :  { %23 = vsyncpa [#allocation4 + $0x1], 0  ;;  %s5638_s24 = smov 0   ;;  %s5640_s25 = smov 0  }
   0xb   :  { %s5642_s26 = smov 0   ;;  %s5644_s27 = smov 0  }
   0xc LB: > { %s5659_s28 = sadd.s32 4294967295, %s5575_s27   ;;  %s4016_s29 = sadd.s32 4294967294, %s5575_s27   ;;  %s5575_s27 = sphi %s5644_s27, %s9871_s27   ;;  %s5571_s26 = sphi %s5642_s26, %s9870_s26   ;;  %s5567_s25 = sphi %s5640_s25, %s9869_s25   ;;  %s5563_s24 = sphi %s5638_s24, %s9868_s24  }
   0xd   : > { %s5663_s30 = sadd.s32 1, %s5575_s27   ;;  %s36_s8 = sadd.s32 1, %s5571_s26 }
   0xe   : > { %s33_s9 = ssub.s32 %s5575_s27, %s5663_s30  ;;  %p43_p0 = scmp.ne.s32.totalorder %s5571_s26, %s5567_s25 }
   0xf   : > { %p34_p1 = scmp.eq.s32.totalorder %s33_s9, 0  ;;  %p44_p2 = scmp.eq.s32.totalorder %s5575_s27, 0 }
  0x10   : > { %p49_p3 = scmp.ne.s32.totalorder %s5567_s25, %s5563_s24  ;;  %p9663_p4 = scmp.eq.s32.totalorder %s5659_s28, 0 }
  0x11   : > { %s5675_s10 = scalar_select %p34_p1, %s5571_s26, %s36_s8  }
  0x12   : > { %p5677_p5 = por %p44_p2, %p43_p0  ;;  %p5683_p6 = por %p9663_p4, %p49_p3 }
  0x13   : > { %9703 = sst [smem:[#allocation17_spill]] %s5675_s10  ;;  %p214_p7 = scmp.eq.s32.totalorder %s5659_s28, 1 }
  0x14   : > { %s9704_s11 = scalar_select %p5677_p5, 1, 0 }
  0x15   : > { %s9705_s12 = scalar_select %p5683_p6, 1, 0 }
  0x16   : > { %p220_p8 = scmp.eq.s32.totalorder %s4016_s29, 1  ;;  %p4017_p9 = scmp.ge.s32.totalorder %s5575_s27, 1 }
  0x17   : > { %p227_p10 = scmp.lt.s32.totalorder %s5575_s27, 3  ;;  %p5690_p11 = por %p214_p7, %p43_p0 }
  0x18   : > { %p5694_p12 = por %p220_p8, %p49_p3  ;;  %s5577_s16 = smov [#allocation10]  }
  0x19   : > { %s9706_s13 = scalar_select %p5690_p11, 1, 0 }
  0x1a   : > { %s9707_s14 = scalar_select %p5694_p12, 1, 0 }
  0x1b   : > { %p5698_p13 = pnand %p4017_p9, %p227_p10  ;;  %s242_s17 = sshll.u32 %s5577_s16, 4  ;;  %s243_s17 = int_to_ptr.vmem [resolvable:$true] %s242_s17 }
  0x1c   : > { %s9710_s5 = sld [smem:[#allocation70_spill]] }
  0x1d   : > { %s9708_s15 = scalar_select %p5698_p13, 1, 0 }
  0x1e   : > { %p4410_p1 = pneg %p5698_p13 }
  0x20   : > { %p5706_p2 = pnand %p4410_p1, %p9663_p4 }
  0x22   : > { %s5357_s21 = scalar_lea.hbm %s9710_s5, 2048  ;;  %p5359_p3 = pneg %p5706_p2 }
  0x23   : > { %p5358_p0 = scmp.ne.s32.totalorder %s9710_s5, %s5357_s21  ;;  %p5364_p9 = scmp.lt.u32.totalorder %s5357_s21, %s9710_s5 }
  0x25   : > { %p5360_p7 = pnand %p5359_p3, %p5358_p0 }
  0x27   : > { %p5361_p8 = pneg %p5360_p7 }
  0x29   : > { %p5366_p10 = pnand %p5364_p9, %p5361_p8 }
  0x2b   : > { %5369 = shalt.err (!%p5366_p10)
}
  0x2c   : > { %s5370_s9 = scalar_lea.vmem %s243_s17, 2048  ;;  %p5378_p11 = scmp.lt.s32.totalorder %s243_s17, %s243_s17 }
  0x2d   : > { %p5371_p1 = scmp.ne.s32.totalorder %s243_s17, %s5370_s9  ;;  %p5379_p6 = scmp.lt.s32.totalorder %s5370_s9, %s5370_s9 }
  0x2f   : > { %p5373_p4 = pnand %p5371_p1, %p5359_p3  ;;  %p5380_p13 = por %p5379_p6, %p5378_p11 }
  0x31   : > { %p5374_p12 = pneg %p5373_p4 }
  0x33   : > { %p5381_p5 = pnand %p5380_p13, %p5374_p12 }
  0x35   : > { %5384 = shalt.err (!%p5381_p5)
}
  0x36   : > { %s5578_s16 = smov 128   ;;  %s5579_s19 = smov 8  }
  0x37   : > { %4413 = dma.hbm_to_vmem [thread:$0]  (!%p5706_p2), %s9710_s5, 2048, %s243_s17, [#allocation9], %s5578_s16, %s5578_s16, %s5579_s19  }
  0x38   : > { %p4019_p0 = scmp.ge.s32.totalorder %s5575_s27, 2 }
  0x39   : > { %p9711_p4 = scmp.ne.s32.totalorder (!%p4019_p0), %s9704_s11, 0 }
  0x3a   : > { %255 = sbr.rel (%p4019_p0) target bundleno = 216 (0xd8), region = 28 }
  0x41   : > { %258 = sbr.rel (!%p9711_p4) target bundleno = 105 (0x69), region = 32  ;;  %s259_s21 = sand.u32 (%p9711_p4), 1, %s5571_s26  }
  0x42   : > { %s264_s23 = smul.u32 (%p9711_p4), 63, %s5575_s27  ;;  %s5736_s9 = scalar_lea.sflag (%p9711_p4), [#allocation3], %s259_s21 }
  0x43   : > { %s4396_s29 = smul.u32 (%p9711_p4), 504, %s259_s21 }
  0x44   : > { %s265_s8 = ssub.s32 (%p9711_p4), 125, %s264_s23 }
  0x45   : > { %p266_p5 = scmp.lt.s32.totalorder (%p9711_p4), %s265_s8, 63  ;;  %s263_s16 = scalar_lea.vmem (%p9711_p4), [#allocation2], %s4396_s29 }
  0x48   : > { %s9873_s8 = smov (!%p266_p5, %s265_s8), 63 }
  0x49   : > { %s5733_s18 = sshll.u32 %s9873_s8, 7 }
  0x4a   : > { %s270_s17 = ssub.s32 8064, %s5733_s18 }
  0x4b   : > { %271 = vsyncadd %s5736_s9, %s270_s17  ;;  %p4021_p6 = scmp.ne.s32.totalorder %s5733_s18, 0  ;;  %s4051_s19 = smul.u32 8064, %s5575_s27 }
  0x4c   : > { %s276_s20 = sshll.u32 %s263_s16, 4  ;;  %s9712_s0 = sld [smem:[#allocation69_spill]]  ;;  %s5746_s20 = int_to_ptr.vmem [resolvable:$true] %s276_s20 }
  0x52   : > { %s5744_s5 = scalar_lea.hbm %s9712_s0, %s4051_s19  ;;  %s5389_s17 = scalar_lea.hbm %s9712_s0, 16000 }
  0x53   : > { %s5385_s21 = scalar_lea.hbm %s5744_s5, %s5733_s18  ;;  %p5390_p2 = scmp.lt.u32.totalorder %s5744_s5, %s9712_s0 }
  0x54   : > { %p5386_p11 = scmp.ne.s32.totalorder %s5744_s5, %s5385_s21  ;;  %p5391_p3 = scmp.lt.u32.totalorder %s5389_s17, %s5385_s21 }
  0x55   : > { %p5393_p8 = scmp.lt.u32.totalorder %s5385_s21, %s5744_s5 }
  0x56   : > { %p5387_p12 = pnand %p5386_p11, %p4021_p6  ;;  %p5392_p7 = por %p5391_p3, %p5390_p2 }
  0x58   : > { %p5388_p13 = pneg %p5387_p12  ;;  %p5394_p9 = por %p5393_p8, %p5392_p7 }
  0x5a   : > { %p5395_p10 = pnand %p5394_p9, %p5388_p13 }
  0x5c   : > { %5398 = shalt.err (!%p5395_p10)
}
  0x5d   : > { %s5399_s19 = scalar_lea.vmem %s5746_s20, %s5733_s18  ;;  %s5580_s22 = smov [#allocation2]  }
  0x5e   : > { %p5400_p1 = scmp.ne.s32.totalorder %s5746_s20, %s5399_s19  ;;  %s5403_s23 = sshll.u32 %s5580_s22, 4  ;;  %s5404_s23 = int_to_ptr.vmem [resolvable:$false] %s5403_s23 }
  0x5f   : > { %s5405_s10 = scalar_lea.vmem %s5404_s23, 16128  ;;  %p5406_p11 = scmp.lt.s32.totalorder %s5746_s20, %s5404_s23 }
  0x60   : > { %p5401_p4 = pnand %p5400_p1, %p4021_p6  ;;  %p5407_p12 = scmp.lt.s32.totalorder %s5405_s10, %s5399_s19 }
  0x62   : > { %p5402_p5 = pneg %p5401_p4  ;;  %p5408_p2 = por %p5407_p12, %p5406_p11 }
  0x64   : > { %p5409_p3 = pnand %p5408_p2, %p5402_p5 }
  0x66   : > { %5412 = shalt.err (!%p5409_p3)
}
  0x67   : > { %s5581_s21 = smov 128   ;;  %s5582_s29 = smov 8  }
  0x68   : > { %282 = dma.hbm_to_vmem [thread:$0]  (%p4021_p6), %s5744_s5, %s5733_s18, %s5746_s20, %s5736_s9, %s5581_s21, %s5581_s21, %s5582_s29  }
  0x69 PF: > { %p9713_p13 = scmp.ne.s32.totalorder %s9704_s11, 0 }
  0x6a   : > { %s286_s8 = sand.u32 (%p9713_p13), 1, %s5575_s27   ;;  %s288_s17 = sand.u32 (%p9713_p13), 1, %s5571_s26  }
  0x6b   : > { %285 = sbr.rel (!%p9713_p13) target bundleno = 142 (0x8e), region = 36  ;;  %s5781_s0 = scalar_lea.sflag (%p9713_p13), [#allocation6], %s286_s8 }
  0x6c   : > { %s4397_s16 = smul.u32 (%p9713_p13), 504, %s288_s17 }
  0x6d   : > { %s291_s19 = smul.u32 (%p9713_p13), 63, %s5575_s27 }
  0x6e   : > { %s290_s5 = scalar_lea.vmem (%p9713_p13), [#allocation5], %s4397_s16 }
  0x6f   : > { %s292_s22 = ssub.s32 (%p9713_p13), 125, %s291_s19 }
  0x70   : > { %p293_p7 = scmp.lt.s32.totalorder (%p9713_p13), %s292_s22, 63 }
  0x72   : > { %s9875_s22 = smov (!%p293_p7, %s292_s22), 63 }
  0x73   : > { %s5778_s23 = sshll.u32 %s9875_s22, 7 }
  0x74   : > { %s297_s10 = ssub.s32 8064, %s5778_s23 }
  0x75   : > { %298 = vsyncadd %s5781_s0, %s297_s10  ;;  %p4026_p6 = scmp.ne.s32.totalorder %s5778_s23, 0  ;;  %s4052_s18 = smul.u32 8064, %s5575_s27 }
  0x76   : > { %s303_s9 = sshll.u32 %s290_s5, 4  ;;  %s5417_s19 = scalar_lea.hbm %s9656_s1, 16000  ;;  %s5791_s9 = int_to_ptr.vmem [resolvable:$true] %s303_s9 }
  0x77   : > { %s5789_s29 = scalar_lea.hbm %s9656_s1, %s4052_s18 }
  0x78   : > { %s5413_s8 = scalar_lea.hbm %s5789_s29, %s5778_s23  ;;  %p5418_p1 = scmp.lt.u32.totalorder %s5789_s29, %s9656_s1 }
  0x79   : > { %p5414_p8 = scmp.ne.s32.totalorder %s5789_s29, %s5413_s8  ;;  %p5419_p4 = scmp.lt.u32.totalorder %s5417_s19, %s5413_s8 }
  0x7a   : > { %p5421_p11 = scmp.lt.u32.totalorder %s5413_s8, %s5789_s29 }
  0x7b   : > { %p5415_p9 = pnand %p5414_p8, %p4026_p6  ;;  %p5420_p5 = por %p5419_p4, %p5418_p1 }
  0x7d   : > { %p5416_p10 = pneg %p5415_p9  ;;  %p5422_p12 = por %p5421_p11, %p5420_p5 }
  0x7f   : > { %p5423_p2 = pnand %p5422_p12, %p5416_p10 }
  0x81   : > { %5426 = shalt.err (!%p5423_p2)
}
  0x82   : > { %s5427_s5 = scalar_lea.vmem %s5791_s9, %s5778_s23  ;;  %s5583_s18 = smov [#allocation5]  }
  0x83   : > { %p5428_p3 = scmp.ne.s32.totalorder %s5791_s9, %s5427_s5  ;;  %s5431_s20 = sshll.u32 %s5583_s18, 4  ;;  %s5432_s20 = int_to_ptr.vmem [resolvable:$false] %s5431_s20 }
  0x84   : > { %s5433_s21 = scalar_lea.vmem %s5432_s20, 16128  ;;  %p5434_p8 = scmp.lt.s32.totalorder %s5791_s9, %s5432_s20 }
  0x85   : > { %p5429_p13 = pnand %p5428_p3, %p4026_p6  ;;  %p5435_p9 = scmp.lt.s32.totalorder %s5433_s21, %s5427_s5 }
  0x87   : > { %p5430_p7 = pneg %p5429_p13  ;;  %p5436_p1 = por %p5435_p9, %p5434_p8 }
  0x89   : > { %p5437_p4 = pnand %p5436_p1, %p5430_p7 }
  0x8b   : > { %5440 = shalt.err (!%p5437_p4)
}
  0x8c   : > { %s5584_s8 = smov 128   ;;  %s5585_s17 = smov 8  }
  0x8d   : > { %309 = dma.hbm_to_vmem [thread:$0]  (%p4026_p6), %s5789_s29, %s5778_s23, %s5791_s9, %s5781_s0, %s5584_s8, %s5584_s8, %s5585_s17  }
  0x8e PF: > { %p9714_p10 = scmp.ne.s32.totalorder %s9704_s11, 0 }
  0x8f   : > { %s313_s16 = sand.u32 (%p9714_p10), 1, %s5575_s27   ;;  %s315_s19 = sand.u32 (%p9714_p10), 1, %s5571_s26  }
  0x90   : > { %312 = sbr.rel (!%p9714_p10) target bundleno = 179 (0xb3), region = 40  ;;  %s5826_s21 = scalar_lea.sflag (%p9714_p10), [#allocation6], %s313_s16 }
  0x91   : > { %s4398_s22 = smul.u32 (%p9714_p10), 504, %s315_s19 }
  0x92   : > { %s318_s10 = smul.u32 (%p9714_p10), 63, %s5575_s27 }
  0x93   : > { %s317_s0 = scalar_lea.vmem (%p9714_p10), [#allocation7], %s4398_s22 }
  0x94   : > { %s319_s5 = ssub.s32 (%p9714_p10), 125, %s318_s10 }
  0x95   : > { %p320_p5 = scmp.lt.s32.totalorder (%p9714_p10), %s319_s5, 63 }
  0x97   : > { %s9877_s5 = smov (!%p320_p5, %s319_s5), 63 }
  0x98   : > { %s5823_s18 = sshll.u32 %s9877_s5, 7 }
  0x99   : > { %s324_s20 = ssub.s32 8064, %s5823_s18 }
  0x9a   : > { %325 = vsyncadd %s5826_s21, %s324_s20  ;;  %p4031_p6 = scmp.ne.s32.totalorder %s5823_s18, 0  ;;  %s4053_s23 = smul.u32 8064, %s5575_s27 }
  0x9b   : > { %s330_s9 = sshll.u32 %s317_s0, 4  ;;  %s5445_s10 = scalar_lea.hbm %s9657_s2, 16000  ;;  %s5836_s9 = int_to_ptr.vmem [resolvable:$true] %s330_s9 }
  0x9c   : > { %s5834_s17 = scalar_lea.hbm %s9657_s2, %s4053_s23 }
  0x9d   : > { %s5441_s16 = scalar_lea.hbm %s5834_s17, %s5823_s18  ;;  %p5446_p3 = scmp.lt.u32.totalorder %s5834_s17, %s9657_s2 }
  0x9e   : > { %p5442_p11 = scmp.ne.s32.totalorder %s5834_s17, %s5441_s16  ;;  %p5447_p13 = scmp.lt.u32.totalorder %s5445_s10, %s5441_s16 }
  0x9f   : > { %p5449_p8 = scmp.lt.u32.totalorder %s5441_s16, %s5834_s17 }
  0xa0   : > { %p5443_p12 = pnand %p5442_p11, %p4031_p6  ;;  %p5448_p7 = por %p5447_p13, %p5446_p3 }
  0xa2   : > { %p5444_p2 = pneg %p5443_p12  ;;  %p5450_p9 = por %p5449_p8, %p5448_p7 }
  0xa4   : > { %p5451_p1 = pnand %p5450_p9, %p5444_p2 }
  0xa6   : > { %5454 = shalt.err (!%p5451_p1)
}
  0xa7   : > { %s5455_s0 = scalar_lea.vmem %s5836_s9, %s5823_s18  ;;  %s5586_s23 = smov [#allocation7]  }
  0xa8   : > { %p5456_p4 = scmp.ne.s32.totalorder %s5836_s9, %s5455_s0  ;;  %s5459_s29 = sshll.u32 %s5586_s23, 4  ;;  %s5460_s29 = int_to_ptr.vmem [resolvable:$false] %s5459_s29 }
  0xa9   : > { %s5461_s8 = scalar_lea.vmem %s5460_s29, 16128  ;;  %p5462_p11 = scmp.lt.s32.totalorder %s5836_s9, %s5460_s29 }
  0xaa   : > { %p5457_p10 = pnand %p5456_p4, %p4031_p6  ;;  %p5463_p12 = scmp.lt.s32.totalorder %s5461_s8, %s5455_s0 }
  0xac   : > { %p5458_p5 = pneg %p5457_p10  ;;  %p5464_p3 = por %p5463_p12, %p5462_p11 }
  0xae   : > { %p5465_p13 = pnand %p5464_p3, %p5458_p5 }
  0xb0   : > { %5468 = shalt.err (!%p5465_p13)
}
  0xb1   : > { %s5587_s16 = smov 128   ;;  %s5588_s19 = smov 8  }
  0xb2   : > { %336 = dma.hbm_to_vmem [thread:$0]  (%p4031_p6), %s5834_s17, %s5823_s18, %s5836_s9, %s5826_s21, %s5587_s16, %s5587_s16, %s5588_s19  }
  0xb3 PF: > { %p9715_p2 = scmp.ne.s32.totalorder %s9704_s11, 0 }
  0xb4   : > { %s340_s22 = sand.u32 (%p9715_p2), 1, %s5575_s27   ;;  %s342_s10 = sand.u32 (%p9715_p2), 1, %s5571_s26  }
  0xb5   : > { %339 = sbr.rel (!%p9715_p2) target bundleno = 216 (0xd8), region = 44  ;;  %s5871_s8 = scalar_lea.sflag (%p9715_p2), [#allocation9], %s340_s22 }
  0xb6   : > { %s4399_s5 = smul.u32 (%p9715_p2), 504, %s342_s10 }
  0xb7   : > { %s345_s20 = smul.u32 (%p9715_p2), 63, %s5575_s27 }
  0xb8   : > { %s344_s18 = scalar_lea.vmem (%p9715_p2), [#allocation8], %s4399_s5 }
  0xb9   : > { %s346_s0 = ssub.s32 (%p9715_p2), 125, %s345_s20 }
  0xba   : > { %p347_p7 = scmp.lt.s32.totalorder (%p9715_p2), %s346_s0, 63 }
  0xbc   : > { %s9879_s0 = smov (!%p347_p7, %s346_s0), 63 }
  0xbd   : > { %s5868_s23 = sshll.u32 %s9879_s0, 7 }
  0xbe   : > { %s351_s29 = ssub.s32 8064, %s5868_s23 }
  0xbf   : > { %352 = vsyncadd %s5871_s8, %s351_s29  ;;  %p4036_p6 = scmp.ne.s32.totalorder %s5868_s23, 0  ;;  %s4054_s11 = smul.u32 8064, %s5575_s27 }
  0xc0   : > { %s357_s21 = sshll.u32 %s344_s18, 4  ;;  %s5473_s5 = scalar_lea.hbm %s9658_s3, 16000  ;;  %s5881_s21 = int_to_ptr.vmem [resolvable:$true] %s357_s21 }
  0xc1   : > { %s5879_s16 = scalar_lea.hbm %s9658_s3, %s4054_s11 }
  0xc2   : > { %s5469_s19 = scalar_lea.hbm %s5879_s16, %s5868_s23  ;;  %p5474_p4 = scmp.lt.u32.totalorder %s5879_s16, %s9658_s3 }
  0xc3   : > { %p5470_p8 = scmp.ne.s32.totalorder %s5879_s16, %s5469_s19  ;;  %p5475_p10 = scmp.lt.u32.totalorder %s5473_s5, %s5469_s19 }
  0xc4   : > { %p5477_p11 = scmp.lt.u32.totalorder %s5469_s19, %s5879_s16 }
  0xc5   : > { %p5471_p9 = pnand %p5470_p8, %p4036_p6  ;;  %p5476_p5 = por %p5475_p10, %p5474_p4 }
  0xc7   : > { %p5472_p1 = pneg %p5471_p9  ;;  %p5478_p12 = por %p5477_p11, %p5476_p5 }
  0xc9   : > { %p5479_p3 = pnand %p5478_p12, %p5472_p1 }
  0xcb   : > { %5482 = shalt.err (!%p5479_p3)
}
  0xcc   : > { %s5483_s29 = scalar_lea.vmem %s5881_s21, %s5868_s23  ;;  %s5589_s18 = smov [#allocation8]  }
  0xcd   : > { %p5484_p13 = scmp.ne.s32.totalorder %s5881_s21, %s5483_s29  ;;  %s5487_s11 = sshll.u32 %s5589_s18, 4  ;;  %s5488_s11 = int_to_ptr.vmem [resolvable:$false] %s5487_s11 }
  0xce   : > { %s5489_s9 = scalar_lea.vmem %s5488_s11, 16128  ;;  %p5490_p8 = scmp.lt.s32.totalorder %s5881_s21, %s5488_s11 }
  0xcf   : > { %p5485_p2 = pnand %p5484_p13, %p4036_p6  ;;  %p5491_p9 = scmp.lt.s32.totalorder %s5489_s9, %s5483_s29 }
  0xd1   : > { %p5486_p7 = pneg %p5485_p2  ;;  %p5492_p4 = por %p5491_p9, %p5490_p8 }
  0xd3   : > { %p5493_p10 = pnand %p5492_p4, %p5486_p7 }
  0xd5   : > { %5496 = shalt.err (!%p5493_p10)
}
  0xd6   : > { %s5590_s17 = smov 128   ;;  %s5591_s19 = smov 8  }
  0xd7   : > { %363 = dma.hbm_to_vmem [thread:$0]  (%p4036_p6), %s5879_s16, %s5868_s23, %s5881_s21, %s5871_s8, %s5590_s17, %s5590_s17, %s5591_s19  }
  0xd8 PF: > { %p9716_p1 = scmp.ne.s32.totalorder %s9708_s15, 0 }
  0xda   : > { %369 = sbr.rel (%p9716_p1) target bundleno = 1227 (0x4cb), region = 48 }
  0xe1   : > { %s5911_s22 = sand.u32 1, %s5567_s25   ;;  %p9717_p5 = scmp.ne.s32.totalorder %s9705_s12, 0 }
  0xe2   : > { %s5914_s10 = smul.u32 504, %s5911_s22  ;;  %s372_s5 = scalar_lea.sflag [#allocation3], %s5911_s22 }
  0xe4   : > { %s5918_s20 = scalar_lea.vmem [#allocation2], %s5914_s10 }
  0xe5   : > { %5542 = dma.done.wait (%p9717_p5), %s372_s5, 8064  }
  0xe6   : > { %5544 = vsyncadd (%p9717_p5), %s372_s5, 4294959232  ;;  %s380_s15 = sand.u32 1, %s5659_s28   ;;  %s5926_s8 = scalar_lea.vmem [#allocation5], %s5914_s10 }
  0xe7   : > { %s381_s23 = scalar_lea.sflag [#allocation6], %s380_s15 }
  0xe8   : > { %5546 = dma.done.wait (%p9717_p5), %s381_s23, 16128  }
  0xe9   : > { %5548 = vsyncadd (%p9717_p5), %s381_s23, 4294951168  ;;  %s5933_s21 = scalar_lea.vmem [#allocation7], %s5914_s10  ;;  %s399_s16 = scalar_lea.sflag [#allocation9], %s380_s15 }
  0xea   : > { %s5936_s0 = scalar_lea.vmem [#allocation8], %s5914_s10 }
  0xeb   : > { %5550 = dma.done.wait (%p9717_p5), %s399_s16, 8064  }
  0xec   : > { %5552 = vsyncadd (%p9717_p5), %s399_s16, 4294959232  ;;  %p9718_p6 = scmp.eq.s32.totalorder %s5659_s28, 0 }
  0xee   : > { %5554 = dma.done.wait (%p9718_p6), [#allocation9], 2048   ;;  %p9719_p11 = pmov %p9718_p6 }
  0xef   : > { %v5949_v0 = vld [vmem:[%s9659_s4] ss:$0 sm:$0xff]  ;;  %v480_v1 = vld [vmem:[%s5918_s20 + $0x10] sm:$0xff]  ;;  %v481_v5 = vld [vmem:[%s5918_s20 + $0x18] sm:$0xff]  ;;  %vm5593_vm0 = vmmov 0   ;;  %s8233_s16 = scalar_lea.vmem [#allocation11], %s5914_s10 }
  0xf0   : > { %5556 = vsyncadd (%p9719_p11), [#allocation9], 4294965248  ;;  %v478_v2 = vld [vmem:[%s5918_s20] sm:$0xff]  ;;  %v549_v3 = vmul.f32 %v5949_v0, %v480_v1  ;;  %v479_v6 = vld [vmem:[%s5918_s20 + $0x8] sm:$0xff]  ;;  %v550_v7 = vmul.f32 %v5949_v0, %v481_v5  ;;  %p9865_p12 = scmp.ne.s32.totalorder %s9706_s13, 0 }
  0xf1   : > { %v547_v4 = vmul.f32 %v5949_v0, %v478_v2  ;;  %v548_v8 = vmul.f32 %v5949_v0, %v479_v6  ;;  %v483_v9 = vld [vmem:[%s5918_s20 + $0x28] sm:$0xff]  ;;  %v482_v10 = vld [vmem:[%s5918_s20 + $0x20] sm:$0xff]  ;;  %v485_v13 = vld [vmem:[%s5918_s20 + $0x38] sm:$0xff] }
  0xf2   : > { %614 = vadd.xlane.f32.xlu1 %v549_v3  ;;  %v552_v11 = vmul.f32 %v5949_v0, %v483_v9  ;;  %v551_v12 = vmul.f32 %v5949_v0, %v482_v10  ;;  %v484_v14 = vld [vmem:[%s5918_s20 + $0x30] sm:$0xff]  ;;  %v554_v15 = vmul.f32 %v5949_v0, %v485_v13  ;;  %v487_v17 = vld [vmem:[%s5918_s20 + $0x48] sm:$0xff]  ;;  %v486_v18 = vld [vmem:[%s5918_s20 + $0x40] sm:$0xff] }
  0xf3   : > { %610 = vadd.xlane.f32.xlu0 %v547_v4  ;;  %v553_v16 = vmul.f32 %v5949_v0, %v484_v14  ;;  %v556_v19 = vmul.f32 %v5949_v0, %v487_v17  ;;  %v555_v20 = vmul.f32 %v5949_v0, %v486_v18  ;;  %v489_v21 = vld [vmem:[%s5918_s20 + $0x58] sm:$0xff]  ;;  %v488_v22 = vld [vmem:[%s5918_s20 + $0x50] sm:$0xff]  ;;  %v491_v25 = vld [vmem:[%s5918_s20 + $0x68] sm:$0xff] }
  0xf4   : > { %v558_v23 = vmul.f32 %v5949_v0, %v489_v21  ;;  %v557_v24 = vmul.f32 %v5949_v0, %v488_v22  ;;  %v490_v26 = vld [vmem:[%s5918_s20 + $0x60] sm:$0xff]  ;;  %v560_v27 = vmul.f32 %v5949_v0, %v491_v25  ;;  %v493_v29 = vld [vmem:[%s5918_s20 + $0x78] sm:$0xff]  ;;  %v492_v30 = vld [vmem:[%s5918_s20 + $0x70] sm:$0xff] }
  0xf5   : > { %v559_v28 = vmul.f32 %v5949_v0, %v490_v26  ;;  %v562_v31 = vmul.f32 %v5949_v0, %v493_v29  ;;  %v561_v32 = vmul.f32 %v5949_v0, %v492_v30  ;;  %v495_v33 = vld [vmem:[%s5918_s20 + $0x88] sm:$0xff]  ;;  %v494_v34 = vld [vmem:[%s5918_s20 + $0x80] sm:$0xff]  ;;  %v497_v37 = vld [vmem:[%s5918_s20 + $0x98] sm:$0xff] }
  0xf6   : > { %616 = vadd.xlane.f32.xlu1 %v550_v7  ;;  %v564_v35 = vmul.f32 %v5949_v0, %v495_v33  ;;  %v563_v36 = vmul.f32 %v5949_v0, %v494_v34  ;;  %v496_v38 = vld [vmem:[%s5918_s20 + $0x90] sm:$0xff]  ;;  %v566_v39 = vmul.f32 %v5949_v0, %v497_v37  ;;  %v499_v41 = vld [vmem:[%s5918_s20 + $0xa8] sm:$0xff]  ;;  %v498_v42 = vld [vmem:[%s5918_s20 + $0xa0] sm:$0xff] }
  0xf7   : > { %612 = vadd.xlane.f32.xlu0 %v548_v8  ;;  %v565_v40 = vmul.f32 %v5949_v0, %v496_v38  ;;  %v568_v43 = vmul.f32 %v5949_v0, %v499_v41  ;;  %v567_v44 = vmul.f32 %v5949_v0, %v498_v42  ;;  %v736_v45 = vld [vmem:[%s5926_s8] sm:$0xff]  ;;  %v510_v49 = vld [vmem:[%s5918_s20 + $0x100] sm:$0xff]  ;;  %v737_v54 = vld [vmem:[%s5926_s8 + $0x8] sm:$0xff] }
  0xf8   : > { %v500_v46 = vld [vmem:[%s5918_s20 + $0xb0] sm:$0xff]  ;;  %v799_v47 = vmul.f32 %v5949_v0, %v736_v45  ;;  %v988_v50 = vld [vmem:[%s5933_s21] sm:$0xff]  ;;  %v579_v51 = vmul.f32 %v5949_v0, %v510_v49  ;;  %v800_v56 = vmul.f32 %v5949_v0, %v737_v54  ;;  %v989_v57 = vld [vmem:[%s5933_s21 + $0x8] sm:$0xff] }
  0xf9   : > { %v569_v48 = vmul.f32 %v5949_v0, %v500_v46  ;;  %v1051_v52 = vmul.f32 %v5949_v0, %v988_v50  ;;  %v768_v53 = vld [vmem:[%s5926_s8 + $0x100] sm:$0xff]  ;;  %v1052_v59 = vmul.f32 %v5949_v0, %v989_v57  ;;  %v511_v61 = vld [vmem:[%s5918_s20 + $0x108] sm:$0xff]  ;;  %v1020_v62 = vld [vmem:[%s5933_s21 + $0x100] sm:$0xff] }
  0xfa   : > { %620 = vadd.xlane.f32.xlu1 %v552_v11  ;;  %v831_v55 = vmul.f32 %v5949_v0, %v768_v53  ;;  %v1240_v58 = vld [vmem:[%s5936_s0] sm:$0xff]  ;;  %v580_v63 = vmul.f32 %v5949_v0, %v511_v61  ;;  %v1083_v1 = vmul.f32 %v5949_v0, %v1020_v62  ;;  %v769_v2 = vld [vmem:[%s5926_s8 + $0x108] sm:$0xff]  ;;  %v738_v3 = vld [vmem:[%s5926_s8 + $0x10] sm:$0xff] }
  0xfb   : > { %618 = vadd.xlane.f32.xlu0 %v551_v12  ;;  %v1303_v60 = vmul.f32 %v5949_v0, %v1240_v58  ;;  %v832_v4 = vmul.f32 %v5949_v0, %v769_v2  ;;  %v801_v5 = vmul.f32 %v5949_v0, %v738_v3  ;;  %v1272_v6 = vld [vmem:[%s5936_s0 + $0x100] sm:$0xff]  ;;  %v1241_v7 = vld [vmem:[%s5936_s0 + $0x8] sm:$0xff]  ;;  %v1021_v10 = vld [vmem:[%s5933_s21 + $0x108] sm:$0xff] }
  0xfc   : > { %v1335_v8 = vmul.f32 %v5949_v0, %v1272_v6  ;;  %v1304_v9 = vmul.f32 %v5949_v0, %v1241_v7  ;;  %v990_v11 = vld [vmem:[%s5933_s21 + $0x10] sm:$0xff]  ;;  %v1084_v12 = vmul.f32 %v5949_v0, %v1021_v10  ;;  %v739_v14 = vld [vmem:[%s5926_s8 + $0x18] sm:$0xff]  ;;  %v1242_v18 = vld [vmem:[%s5936_s0 + $0x10] sm:$0xff] }
  0xfd   : > { %v1053_v13 = vmul.f32 %v5949_v0, %v990_v11  ;;  %v991_v22 = vld [vmem:[%s5933_s21 + $0x18] sm:$0xff]  ;;  %v771_v30 = vld [vmem:[%s5926_s8 + $0x118] sm:$0xff]  ;;  %v992_v45 = vld [vmem:[%s5933_s21 + $0x20] sm:$0xff] }
  0xfe   : > { %624 = vadd.xlane.f32.xlu1 %v554_v15  ;;  %v512_v15 = vld [vmem:[%s5918_s20 + $0x110] sm:$0xff]  ;;  %v513_v26 = vld [vmem:[%s5918_s20 + $0x118] sm:$0xff]  ;;  %v3382_v34 = vld [vmem:[#allocation10] sm:$0xff] }
  0xff   : > { %622 = vadd.xlane.f32.xlu0 %v553_v16  ;;  %v802_v16 = vmul.f32 %v5949_v0, %v739_v14  ;;  %v581_v17 = vmul.f32 %v5949_v0, %v512_v15  ;;  %v1243_v37 = vld [vmem:[%s5936_s0 + $0x18] sm:$0xff]  ;;  %v3384_v42 = vld [vmem:[#allocation10 + $0x10] sm:$0xff]  ;;  %v3389_v57 = vld [vmem:[#allocation10 + $0x38] sm:$0xff] }
 0x100   : > { %v1306_v41 = vmul.f32 %v5949_v0, %v1243_v37  ;;  %v3386_v49 = vld [vmem:[#allocation10 + $0x20] sm:$0xff]  ;;  %v3387_v50 = vld [vmem:[#allocation10 + $0x28] sm:$0xff]  ;;  %v3392_v7 = vld [vmem:[#allocation10 + $0x50] sm:$0xff] }
 0x101   : > { %v4363_v53 = vpack.c.bf16 %v3387_v50, %v3386_v49  ;;  %v1244_v58 = vld [vmem:[%s5936_s0 + $0x20] sm:$0xff]  ;;  %v993_v2 = vld [vmem:[%s5933_s21 + $0x28] sm:$0xff]  ;;  %v1024_v10 = vld [vmem:[%s5933_s21 + $0x120] sm:$0xff] }
 0x102   : > { %628 = vadd.xlane.f32.xlu1 %v556_v19  ;;  %v770_v19 = vld [vmem:[%s5926_s8 + $0x110] sm:$0xff]  ;;  %v1307_v61 = vmul.f32 %v5949_v0, %v1244_v58  ;;  %v1275_v3 = vld [vmem:[%s5936_s0 + $0x118] sm:$0xff] }
 0x103   : > { %626 = vadd.xlane.f32.xlu0 %v555_v20  ;;  %v1305_v20 = vmul.f32 %v5949_v0, %v1242_v18  ;;  %v833_v21 = vmul.f32 %v5949_v0, %v770_v19  ;;  %v1338_v6 = vmul.f32 %v5949_v0, %v1275_v3  ;;  %v3394_v14 = vld [vmem:[#allocation10 + $0x60] sm:$0xff]  ;;  %v3395_v15 = vld [vmem:[#allocation10 + $0x68] sm:$0xff] }
 0x104   : > { %v4375_v18 = vpack.c.bf16 %v3395_v15, %v3394_v14  ;;  %v1246_v37 = vld [vmem:[%s5936_s0 + $0x30] sm:$0xff]  ;;  %v1247_v58 = vld [vmem:[%s5936_s0 + $0x38] sm:$0xff] }
 0x106   : > { %632 = vadd.xlane.f32.xlu1 %v558_v23  ;;  %v1273_v23 = vld [vmem:[%s5936_s0 + $0x108] sm:$0xff] }
 0x107   : > { %630 = vadd.xlane.f32.xlu0 %v557_v24  ;;  %v1054_v24 = vmul.f32 %v5949_v0, %v991_v22  ;;  %v1336_v25 = vmul.f32 %v5949_v0, %v1273_v23  ;;  %v1245_v22 = vld [vmem:[%s5936_s0 + $0x28] sm:$0xff] }
 0x108   : > { %v3396_v23 = vld [vmem:[#allocation10 + $0x70] sm:$0xff] }
 0x10a   : > { %636 = vadd.xlane.f32.xlu1 %v560_v27  ;;  %v1022_v27 = vld [vmem:[%s5933_s21 + $0x110] sm:$0xff] }
 0x10b   : > { %634 = vadd.xlane.f32.xlu0 %v559_v28  ;;  %v582_v28 = vmul.f32 %v5949_v0, %v513_v26  ;;  %v1085_v29 = vmul.f32 %v5949_v0, %v1022_v27  ;;  %v1308_v27 = vmul.f32 %v5949_v0, %v1245_v22 }
 0x10e   : > { %640 = vadd.xlane.f32.xlu1 %v562_v31  ;;  %v740_v31 = vld [vmem:[%s5926_s8 + $0x20] sm:$0xff] }
 0x10f   : > { %638 = vadd.xlane.f32.xlu0 %v561_v32  ;;  %v834_v32 = vmul.f32 %v5949_v0, %v771_v30  ;;  %v803_v33 = vmul.f32 %v5949_v0, %v740_v31  ;;  %v9666_v30 = vmov 0.0  }
 0x110   : > { %4167 = vmatprep.mubr.msk.f32.mxu0 %vm5593_vm0, %v9666_v30  ;;  %4263 = vmatprep.mubr.msk.f32.mxu1 %vm5593_vm0, %v9666_v30 }
 0x112   : > { %644 = vadd.xlane.f32.xlu1 %v564_v35  ;;  %v3383_v35 = vld [vmem:[#allocation10 + $0x8] sm:$0xff] }
 0x113   : > { %642 = vadd.xlane.f32.xlu0 %v563_v36  ;;  %v1274_v36 = vld [vmem:[%s5936_s0 + $0x110] sm:$0xff]  ;;  %v4357_v38 = vpack.c.bf16 %v3383_v35, %v3382_v34  ;;  %v516_v34 = vld [vmem:[%s5918_s20 + $0x130] sm:$0xff] }
 0x116   : > { %648 = vadd.xlane.f32.xlu1 %v566_v39  ;;  %v5592_v39 = vmov 0.0|0.0  }
 0x117   : > { %646 = vadd.xlane.f32.xlu0 %v565_v40  ;;  %4356 = vmatprep.subr.bf16.mxu0 %v5592_v39  ;;  %v1337_v40 = vmul.f32 %v5949_v0, %v1274_v36  ;;  %v585_v36 = vmul.f32 %v5949_v0, %v516_v34 }
 0x118   : > { %4380 = vmatprep.subr.bf16.mxu1 %v5592_v39  ;;  %4358 = vmatpush3.bf16.msra.mxu0 %v4357_v38 }
 0x119   : > { %4388 = vmatpush3.bf16.msra.mxu1 %v4357_v38  ;;  %4359 = vmatprep.subr.bf16.mxu0 %v5592_v39  ;;  %v774_v38 = vld [vmem:[%s5926_s8 + $0x130] sm:$0xff] }
 0x11a   : > { %652 = vadd.xlane.f32.xlu1 %v568_v43  ;;  %v3385_v43 = vld [vmem:[#allocation10 + $0x18] sm:$0xff]  ;;  %4381 = vmatprep.subr.bf16.mxu1 %v5592_v39 }
 0x11b   : > { %650 = vadd.xlane.f32.xlu0 %v567_v44  ;;  %v1023_v44 = vld [vmem:[%s5933_s21 + $0x118] sm:$0xff]  ;;  %v4360_v46 = vpack.c.bf16 %v3385_v43, %v3384_v42 }
 0x11c   : > { %v1277_v42 = vld [vmem:[%s5936_s0 + $0x128] sm:$0xff] }
 0x11d   : > { %4361 = vmatpush3.bf16.msra.mxu0 %v4360_v46  ;;  %4389 = vmatpush3.bf16.msra.mxu1 %v4360_v46  ;;  %v1026_v46 = vld [vmem:[%s5933_s21 + $0x130] sm:$0xff] }
 0x11e   : > { %862 = vadd.xlane.f32.xlu1 %v799_v47  ;;  %v1086_v47 = vmul.f32 %v5949_v0, %v1023_v44  ;;  %4362 = vmatprep.subr.bf16.mxu0 %v5592_v39  ;;  %v1340_v44 = vmul.f32 %v5949_v0, %v1277_v42 }
 0x11f   : > { %654 = vadd.xlane.f32.xlu0 %v569_v48  ;;  %v1055_v48 = vmul.f32 %v5949_v0, %v992_v45  ;;  %4382 = vmatprep.subr.bf16.mxu1 %v5592_v39  ;;  %v517_v45 = vld [vmem:[%s5918_s20 + $0x138] sm:$0xff] }
 0x121   : > { %4364 = vmatpush3.bf16.msra.mxu0 %v4363_v53  ;;  %4390 = vmatpush3.bf16.msra.mxu1 %v4363_v53 }
 0x122   : > { %674 = vadd.xlane.f32.xlu1 %v579_v51  ;;  %v741_v51 = vld [vmem:[%s5926_s8 + $0x28] sm:$0xff]  ;;  %4365 = vmatprep.subr.bf16.mxu0 %v5592_v39 }
 0x123   : > { %1114 = vadd.xlane.f32.xlu0 %v1051_v52  ;;  %v514_v52 = vld [vmem:[%s5918_s20 + $0x120] sm:$0xff]  ;;  %v804_v54 = vmul.f32 %v5949_v0, %v741_v51  ;;  %4383 = vmatprep.subr.bf16.mxu1 %v5592_v39  ;;  %v775_v51 = vld [vmem:[%s5926_s8 + $0x138] sm:$0xff] }
 0x124   : > { %v838_v53 = vmul.f32 %v5949_v0, %v775_v51  ;;  %v747_v51 = vld [vmem:[%s5926_s8 + $0x58] sm:$0xff] }
 0x126   : > { %926 = vadd.xlane.f32.xlu1 %v831_v55  ;;  %v583_v55 = vmul.f32 %v5949_v0, %v514_v52  ;;  %v744_v52 = vld [vmem:[%s5926_s8 + $0x40] sm:$0xff] }
 0x127   : > { %864 = vadd.xlane.f32.xlu0 %v800_v56  ;;  %v3388_v56 = vld [vmem:[#allocation10 + $0x30] sm:$0xff] }
 0x12a   : > { %1116 = vadd.xlane.f32.xlu1 %v1052_v59  ;;  %v772_v59 = vld [vmem:[%s5926_s8 + $0x120] sm:$0xff] }
 0x12b   : > { %1366 = vadd.xlane.f32.xlu0 %v1303_v60  ;;  %v4366_v60 = vpack.c.bf16 %v3389_v57, %v3388_v56  ;;  %v835_v62 = vmul.f32 %v5949_v0, %v772_v59  ;;  %v1278_v57 = vld [vmem:[%s5936_s0 + $0x130] sm:$0xff] }
 0x12c   : > { %v1341_v59 = vmul.f32 %v5949_v0, %v1278_v57 }
 0x12d   : > { %4367 = vmatpush3.bf16.msra.mxu0 %v4366_v60  ;;  %4391 = vmatpush3.bf16.msra.mxu1 %v4366_v60  ;;  %v1310_v60 = vmul.f32 %v5949_v0, %v1247_v58 }
 0x12e   : > { %676 = vadd.xlane.f32.xlu1 %v580_v63  ;;  %v3390_v63 = vld [vmem:[#allocation10 + $0x40] sm:$0xff]  ;;  %4368 = vmatprep.subr.bf16.mxu0 %v5592_v39 }
 0x12f   : > { %1178 = vadd.xlane.f32.xlu0 %v1083_v1  ;;  %v3391_v1 = vld [vmem:[#allocation10 + $0x48] sm:$0xff]  ;;  %4384 = vmatprep.subr.bf16.mxu1 %v5592_v39 }
 0x132   : > { %928 = vadd.xlane.f32.xlu1 %v832_v4  ;;  %v4369_v4 = vpack.c.bf16 %v3391_v1, %v3390_v63  ;;  %v1027_v63 = vld [vmem:[%s5933_s21 + $0x138] sm:$0xff]  ;;  %v996_v1 = vld [vmem:[%s5933_s21 + $0x40] sm:$0xff] }
 0x133   : > { %866 = vadd.xlane.f32.xlu0 %v801_v5  ;;  %v1056_v5 = vmul.f32 %v5949_v0, %v993_v2  ;;  %v1090_v2 = vmul.f32 %v5949_v0, %v1027_v63  ;;  %v1059_v3 = vmul.f32 %v5949_v0, %v996_v1 }
 0x134   : > { %4370 = vmatpush3.bf16.msra.mxu0 %v4369_v4  ;;  %4392 = vmatpush3.bf16.msra.mxu1 %v4369_v4 }
 0x135   : > { %4371 = vmatprep.subr.bf16.mxu0 %v5592_v39  ;;  %4385 = vmatprep.subr.bf16.mxu1 %v5592_v39 }
 0x136   : > { %1430 = vadd.xlane.f32.xlu1 %v1335_v8  ;;  %v3393_v8 = vld [vmem:[#allocation10 + $0x58] sm:$0xff] }
 0x137   : > { %1368 = vadd.xlane.f32.xlu0 %v1304_v9  ;;  %v515_v9 = vld [vmem:[%s5918_s20 + $0x128] sm:$0xff]  ;;  %v4372_v11 = vpack.c.bf16 %v3393_v8, %v3392_v7  ;;  %v518_v7 = vld [vmem:[%s5918_s20 + $0x140] sm:$0xff] }
 0x139   : > { %4373 = vmatpush3.bf16.msra.mxu0 %v4372_v11  ;;  %4393 = vmatpush3.bf16.msra.mxu1 %v4372_v11 }
 0x13a   : > { %1180 = vadd.xlane.f32.xlu1 %v1084_v12  ;;  %v584_v12 = vmul.f32 %v5949_v0, %v515_v9  ;;  %4374 = vmatprep.subr.bf16.mxu0 %v5592_v39  ;;  %v587_v9 = vmul.f32 %v5949_v0, %v518_v7  ;;  %v1281_v7 = vld [vmem:[%s5936_s0 + $0x148] sm:$0xff] }
 0x13b   : > { %1118 = vadd.xlane.f32.xlu0 %v1053_v13  ;;  %v1087_v13 = vmul.f32 %v5949_v0, %v1024_v10  ;;  %4386 = vmatprep.subr.bf16.mxu1 %v5592_v39 }
 0x13d   : > { %4376 = vmatpush3.bf16.msra.mxu0 %v4375_v18  ;;  %4394 = vmatpush3.bf16.msra.mxu1 %v4375_v18  ;;  %v997_v18 = vld [vmem:[%s5933_s21 + $0x48] sm:$0xff] }
 0x13e   : > { %868 = vadd.xlane.f32.xlu1 %v802_v16  ;;  %v773_v16 = vld [vmem:[%s5926_s8 + $0x128] sm:$0xff]  ;;  %4377 = vmatprep.subr.bf16.mxu0 %v5592_v39 }
 0x13f   : > { %678 = vadd.xlane.f32.xlu0 %v581_v17  ;;  %v742_v17 = vld [vmem:[%s5926_s8 + $0x30] sm:$0xff]  ;;  %v836_v19 = vmul.f32 %v5949_v0, %v773_v16  ;;  %4387 = vmatprep.subr.bf16.mxu1 %v5592_v39  ;;  %v1309_v39 = vmul.f32 %v5949_v0, %v1246_v37  ;;  %v1280_v37 = vld [vmem:[%s5936_s0 + $0x140] sm:$0xff] }
 0x142   : > { %1370 = vadd.xlane.f32.xlu1 %v1305_v20  ;;  %v805_v20 = vmul.f32 %v5949_v0, %v742_v17 }
 0x143   : > { %930 = vadd.xlane.f32.xlu0 %v833_v21  ;;  %v1276_v21 = vld [vmem:[%s5936_s0 + $0x120] sm:$0xff] }
 0x144   : > { %v1339_v26 = vmul.f32 %v5949_v0, %v1276_v21 }
 0x146   : > { %1120 = vadd.xlane.f32.xlu1 %v1054_v24  ;;  %v3397_v24 = vld [vmem:[#allocation10 + $0x78] sm:$0xff] }
 0x147   : > { %1432 = vadd.xlane.f32.xlu0 %v1336_v25  ;;  %v4378_v25 = vpack.c.bf16 %v3397_v24, %v3396_v23  ;;  %v519_v24 = vld [vmem:[%s5918_s20 + $0x148] sm:$0xff] }
 0x149   : > { %4379 = vmatpush3.bf16.msra.mxu0 %v4378_v25  ;;  %4395 = vmatpush3.bf16.msra.mxu1 %v4378_v25  ;;  %v1028_v25 = vld [vmem:[%s5933_s21 + $0x140] sm:$0xff] }
 0x14a   : > { %680 = vadd.xlane.f32.xlu1 %v582_v28  ;;  %v1025_v28 = vld [vmem:[%s5933_s21 + $0x128] sm:$0xff] }
 0x14b   : > { %1182 = vadd.xlane.f32.xlu0 %v1085_v29  ;;  %v994_v29 = vld [vmem:[%s5933_s21 + $0x30] sm:$0xff]  ;;  %v1088_v31 = vmul.f32 %v5949_v0, %v1025_v28 }
 0x14e   : > { %932 = vadd.xlane.f32.xlu1 %v834_v32  ;;  %v1057_v32 = vmul.f32 %v5949_v0, %v994_v29 }
 0x14f   : > { %870 = vadd.xlane.f32.xlu0 %v803_v33  ;;  %v743_v33 = vld [vmem:[%s5926_s8 + $0x38] sm:$0xff] }
 0x150   : > { %v806_v35 = vmul.f32 %v5949_v0, %v743_v33 }
 0x152   : > { %1434 = vadd.xlane.f32.xlu1 %v1337_v40  ;;  %v837_v40 = vmul.f32 %v5949_v0, %v774_v38  ;;  %v1249_v38 = vld [vmem:[%s5936_s0 + $0x48] sm:$0xff] }
 0x153   : > { %1372 = vadd.xlane.f32.xlu0 %v1306_v41  ;;  %v995_v41 = vld [vmem:[%s5933_s21 + $0x38] sm:$0xff] }
 0x154   : > { %v1058_v43 = vmul.f32 %v5949_v0, %v995_v41 }
 0x156   : > { %1184 = vadd.xlane.f32.xlu1 %v1086_v47  ;;  %v586_v47 = vmul.f32 %v5949_v0, %v517_v45 }
 0x157   : > { %1122 = vadd.xlane.f32.xlu0 %v1055_v48  ;;  %v1089_v48 = vmul.f32 %v5949_v0, %v1026_v46 }
 0x15a   : > { %872 = vadd.xlane.f32.xlu1 %v804_v54  ;;  %v807_v54 = vmul.f32 %v5949_v0, %v744_v52  ;;  %v520_v52 = vld [vmem:[%s5918_s20 + $0x150] sm:$0xff] }
 0x15b   : > { %682 = vadd.xlane.f32.xlu0 %v583_v55 }
 0x15e   : > { %1374 = vadd.xlane.f32.xlu1 %v1307_v61 }
 0x15f   : > { %934 = vadd.xlane.f32.xlu0 %v835_v62 }
 0x162   : > { %1124 = vadd.xlane.f32.xlu1 %v1056_v5 }
 0x163   : > { %1436 = vadd.xlane.f32.xlu0 %v1338_v6  ;;  %v745_v6 = vld [vmem:[%s5926_s8 + $0x48] sm:$0xff] }
 0x164   : > { %v808_v8 = vmul.f32 %v5949_v0, %v745_v6  ;;  %v999_v6 = vld [vmem:[%s5933_s21 + $0x58] sm:$0xff] }
 0x166   : > { %684 = vadd.xlane.f32.xlu1 %v584_v12  ;;  %v1248_v12 = vld [vmem:[%s5936_s0 + $0x40] sm:$0xff] }
 0x167   : > { %1186 = vadd.xlane.f32.xlu0 %v1087_v13  ;;  %v776_v13 = vld [vmem:[%s5926_s8 + $0x140] sm:$0xff]  ;;  %v1311_v14 = vmul.f32 %v5949_v0, %v1248_v12 }
 0x168   : > { %v839_v15 = vmul.f32 %v5949_v0, %v776_v13 }
 0x16a   : > { %936 = vadd.xlane.f32.xlu1 %v836_v19  ;;  %v1279_v19 = vld [vmem:[%s5936_s0 + $0x138] sm:$0xff] }
 0x16b   : > { %874 = vadd.xlane.f32.xlu0 %v805_v20  ;;  %v1060_v20 = vmul.f32 %v5949_v0, %v997_v18  ;;  %v1342_v21 = vmul.f32 %v5949_v0, %v1279_v19  ;;  %v779_v18 = vld [vmem:[%s5926_s8 + $0x158] sm:$0xff] }
 0x16e   : > { %1438 = vadd.xlane.f32.xlu1 %v1339_v26  ;;  %v588_v26 = vmul.f32 %v5949_v0, %v519_v24  ;;  %v1251_v24 = vld [vmem:[%s5936_s0 + $0x58] sm:$0xff] }
 0x16f   : > { %1376 = vadd.xlane.f32.xlu0 %v1308_v27  ;;  %v1091_v27 = vmul.f32 %v5949_v0, %v1028_v25  ;;  %v1031_v25 = vld [vmem:[%s5933_s21 + $0x158] sm:$0xff] }
 0x172   : > { %1188 = vadd.xlane.f32.xlu1 %v1088_v31  ;;  %v777_v31 = vld [vmem:[%s5926_s8 + $0x148] sm:$0xff] }
 0x173   : > { %1126 = vadd.xlane.f32.xlu0 %v1057_v32  ;;  %v746_v32 = vld [vmem:[%s5926_s8 + $0x50] sm:$0xff]  ;;  %v840_v33 = vmul.f32 %v5949_v0, %v777_v31 }
 0x174   : > { %v809_v34 = vmul.f32 %v5949_v0, %v746_v32 }
 0x176   : > { %876 = vadd.xlane.f32.xlu1 %v806_v35 }
 0x177   : > { %686 = vadd.xlane.f32.xlu0 %v585_v36 }
 0x17a   : > { %1378 = vadd.xlane.f32.xlu1 %v1309_v39  ;;  %v1343_v39 = vmul.f32 %v5949_v0, %v1280_v37  ;;  %v780_v37 = vld [vmem:[%s5926_s8 + $0x160] sm:$0xff] }
 0x17b   : > { %938 = vadd.xlane.f32.xlu0 %v837_v40  ;;  %v1312_v40 = vmul.f32 %v5949_v0, %v1249_v38 }
 0x17e   : > { %1128 = vadd.xlane.f32.xlu1 %v1058_v43  ;;  %v1029_v43 = vld [vmem:[%s5933_s21 + $0x148] sm:$0xff] }
 0x17f   : > { %1440 = vadd.xlane.f32.xlu0 %v1340_v44  ;;  %v6119_v49 = vpop.xlane.xlu1 %614  ;;  %v998_v44 = vld [vmem:[%s5933_s21 + $0x50] sm:$0xff]  ;;  %v1092_v45 = vmul.f32 %v5949_v0, %v1029_v43  ;;  %v842_v43 = vmul.f32 %v5949_v0, %v779_v18 }
 0x180   : > { %v6121_v50 = vpop.xlane.xlu0 %610  ;;  %v1061_v46 = vmul.f32 %v5949_v0, %v998_v44 }
 0x182   : > { %688 = vadd.xlane.f32.xlu1 %v586_v47 }
 0x183   : > { %1190 = vadd.xlane.f32.xlu0 %v1089_v48  ;;  %v6127_v55 = vpop.xlane.xlu1 %616 }
 0x184   : > { %v6129_v56 = vpop.xlane.xlu0 %612 }
 0x186   : > { %940 = vadd.xlane.f32.xlu1 %v838_v53  ;;  %v810_v53 = vmul.f32 %v5949_v0, %v747_v51 }
 0x187   : > { %878 = vadd.xlane.f32.xlu0 %v807_v54  ;;  %v6135_v61 = vpop.xlane.xlu1 %620  ;;  %v589_v54 = vmul.f32 %v5949_v0, %v520_v52  ;;  %v6253_v52 = vmul.f32 %v5949_v0, %v1251_v24  ;;  %v1253_v24 = vld [vmem:[%s5936_s0 + $0x68] sm:$0xff] }
 0x188   : > { %v6137_v62 = vpop.xlane.xlu0 %618  ;;  %v6315_v30 = vmul.f32 %v5949_v0, %v1253_v24  ;;  %v525_v24 = vld [vmem:[%s5918_s20 + $0x178] sm:$0xff] }
 0x18a   : > { %1442 = vadd.xlane.f32.xlu1 %v1341_v59  ;;  %v1250_v59 = vld [vmem:[%s5936_s0 + $0x50] sm:$0xff] }
 0x18b   : > { %1380 = vadd.xlane.f32.xlu0 %v1310_v60  ;;  %v6143_v4 = vpop.xlane.xlu1 %624  ;;  %v778_v60 = vld [vmem:[%s5926_s8 + $0x150] sm:$0xff]  ;;  %v1313_v63 = vmul.f32 %v5949_v0, %v1250_v59  ;;  %v1283_v59 = vld [vmem:[%s5936_s0 + $0x158] sm:$0xff] }
 0x18c   : > { %9720 = vst [vmem:[#allocation18_spill] sm:$0xff] %v6143_v4  ;;  %v6145_v5 = vpop.xlane.xlu0 %622  ;;  %v841_v1 = vmul.f32 %v5949_v0, %v778_v60  ;;  %v523_v60 = vld [vmem:[%s5918_s20 + $0x168] sm:$0xff]  ;;  %v785_v4 = vld [vmem:[%s5926_s8 + $0x188] sm:$0xff] }
 0x18e   : > { %1192 = vadd.xlane.f32.xlu1 %v1090_v2 }
 0x18f   : > { %1130 = vadd.xlane.f32.xlu0 %v1059_v3  ;;  %v6151_v10 = vpop.xlane.xlu1 %628 }
 0x190   : > { %9721 = vst [vmem:[#allocation19_spill] sm:$0xff] %v6151_v10  ;;  %v6153_v11 = vpop.xlane.xlu0 %626 }
 0x191   : > { %9722 = vst [vmem:[#allocation20_spill] sm:$0xff] %v6153_v11  ;;  %v1036_v11 = vld [vmem:[%s5933_s21 + $0x180] sm:$0xff] }
 0x192   : > { %880 = vadd.xlane.f32.xlu1 %v808_v8  ;;  %v1062_v8 = vmul.f32 %v5949_v0, %v999_v6 }
 0x193   : > { %690 = vadd.xlane.f32.xlu0 %v587_v9  ;;  %v6159_v16 = vpop.xlane.xlu1 %632  ;;  %v1344_v9 = vmul.f32 %v5949_v0, %v1281_v7 }
 0x194   : > { %9723 = vst [vmem:[#allocation21_spill] sm:$0xff] %v6159_v16  ;;  %v6161_v17 = vpop.xlane.xlu0 %630  ;;  %v1287_v16 = vld [vmem:[%s5936_s0 + $0x178] sm:$0xff] }
 0x195   : > { %9724 = vst [vmem:[#allocation22_spill] sm:$0xff] %v6161_v17 }
 0x196   : > { %1382 = vadd.xlane.f32.xlu1 %v1311_v14  ;;  %v521_v14 = vld [vmem:[%s5918_s20 + $0x158] sm:$0xff] }
 0x197   : > { %942 = vadd.xlane.f32.xlu0 %v839_v15  ;;  %v6167_v22 = vpop.xlane.xlu1 %636  ;;  %v1030_v15 = vld [vmem:[%s5933_s21 + $0x150] sm:$0xff]  ;;  %v590_v32 = vmul.f32 %v5949_v0, %v521_v14  ;;  %v750_v14 = vld [vmem:[%s5926_s8 + $0x70] sm:$0xff] }
 0x198   : > { %9725 = vst [vmem:[#allocation23_spill] sm:$0xff] %v6167_v22  ;;  %v6169_v23 = vpop.xlane.xlu0 %634 }
 0x199   : > { %9726 = vst [vmem:[#allocation24_spill] sm:$0xff] %v6169_v23 }
 0x19a   : > { %1132 = vadd.xlane.f32.xlu1 %v1060_v20  ;;  %v748_v20 = vld [vmem:[%s5926_s8 + $0x60] sm:$0xff] }
 0x19b   : > { %1444 = vadd.xlane.f32.xlu0 %v1342_v21  ;;  %v6175_v28 = vpop.xlane.xlu1 %640  ;;  %v1282_v21 = vld [vmem:[%s5936_s0 + $0x150] sm:$0xff]  ;;  %v811_v44 = vmul.f32 %v5949_v0, %v748_v20 }
 0x19c   : > { %9727 = vst [vmem:[#allocation25_spill] sm:$0xff] %v6175_v28  ;;  %v6177_v29 = vpop.xlane.xlu0 %638 }
 0x19d   : > { %9728 = vst [vmem:[#allocation26_spill] sm:$0xff] %v6177_v29  ;;  %v526_v29 = vld [vmem:[%s5918_s20 + $0x180] sm:$0xff] }
 0x19e   : > { %692 = vadd.xlane.f32.xlu1 %v588_v26  ;;  %v1000_v26 = vld [vmem:[%s5933_s21 + $0x60] sm:$0xff] }
 0x19f   : > { %1194 = vadd.xlane.f32.xlu0 %v1091_v27  ;;  %v6183_v35 = vpop.xlane.xlu1 %644  ;;  %v749_v27 = vld [vmem:[%s5926_s8 + $0x68] sm:$0xff] }
 0x1a0   : > { %9729 = vst [vmem:[#allocation27_spill] sm:$0xff] %v6183_v35  ;;  %v6185_v36 = vpop.xlane.xlu0 %642  ;;  %v6360_v35 = vmul.f32 %v5949_v0, %v525_v24 }
 0x1a1   : > { %9730 = vst [vmem:[#allocation28_spill] sm:$0xff] %v6185_v36 }
 0x1a2   : > { %944 = vadd.xlane.f32.xlu1 %v840_v33  ;;  %v522_v33 = vld [vmem:[%s5918_s20 + $0x160] sm:$0xff] }
 0x1a3   : > { %882 = vadd.xlane.f32.xlu0 %v809_v34  ;;  %v6191_v41 = vpop.xlane.xlu1 %648  ;;  %v1252_v34 = vld [vmem:[%s5936_s0 + $0x60] sm:$0xff]  ;;  %v6268_v6 = vmul.f32 %v5949_v0, %v522_v33  ;;  %v751_v33 = vld [vmem:[%s5926_s8 + $0x78] sm:$0xff] }
 0x1a4   : > { %9731 = vst [vmem:[#allocation29_spill] sm:$0xff] %v6191_v41  ;;  %v6193_v42 = vpop.xlane.xlu0 %646  ;;  %v6271_v7 = vmul.f32 %v5949_v0, %v1252_v34  ;;  %v524_v34 = vld [vmem:[%s5918_s20 + $0x170] sm:$0xff] }
 0x1a5   : > { %9732 = vst [vmem:[#allocation30_spill] sm:$0xff] %v6193_v42  ;;  %v1004_v42 = vld [vmem:[%s5933_s21 + $0x80] sm:$0xff] }
 0x1a6   : > { %1446 = vadd.xlane.f32.xlu1 %v1343_v39 }
 0x1a7   : > { %1384 = vadd.xlane.f32.xlu0 %v1312_v40  ;;  %v6199_v47 = vpop.xlane.xlu1 %652  ;;  %v1093_v40 = vmul.f32 %v5949_v0, %v1030_v15 }
 0x1a8   : > { %9733 = vst [vmem:[#allocation31_spill] sm:$0xff] %v6199_v47  ;;  %v6201_v48 = vpop.xlane.xlu0 %650 }
 0x1a9   : > { %9734 = vst [vmem:[#allocation32_spill] sm:$0xff] %v6201_v48  ;;  %v1286_v48 = vld [vmem:[%s5936_s0 + $0x170] sm:$0xff] }
 0x1aa   : > { %1196 = vadd.xlane.f32.xlu1 %v1092_v45  ;;  %v6249_v45 = vmul.f32 %v5949_v0, %v1282_v21  ;;  %v1284_v21 = vld [vmem:[%s5936_s0 + $0x160] sm:$0xff]  ;;  %v6378_v24 = vmul.f32 %v5949_v0, %v1286_v48  ;;  %v6393_v48 = vmul.f32 %v5949_v0, %v1004_v42 }
 0x1ab   : > { %1134 = vadd.xlane.f32.xlu0 %v1061_v46  ;;  %v6207_v57 = vpop.xlane.xlu1 %862  ;;  %v1001_v46 = vld [vmem:[%s5933_s21 + $0x68] sm:$0xff] }
 0x1ac   : > { %v6209_v58 = vpop.xlane.xlu0 %654  ;;  %v1492_v19 = vmax.f32 %v6121_v50, %v6207_v57  ;;  %v6282_v20 = vmul.f32 %v5949_v0, %v1001_v46  ;;  %v6307_v46 = vmul.f32 %v5949_v0, %v750_v14 }
 0x1ad   : > { %9735 = vst [vmem:[#allocation33_spill] sm:$0xff] %v6209_v58  ;;  %v1034_v58 = vld [vmem:[%s5933_s21 + $0x170] sm:$0xff] }
 0x1ae   : > { %884 = vadd.xlane.f32.xlu1 %v810_v53  ;;  %v6256_v53 = vmul.f32 %v5949_v0, %v1031_v25  ;;  %v1033_v25 = vld [vmem:[%s5933_s21 + $0x168] sm:$0xff]  ;;  %v6363_v36 = vmul.f32 %v5949_v0, %v1034_v58  ;;  %v784_v58 = vld [vmem:[%s5926_s8 + $0x180] sm:$0xff] }
 0x1af   : > { %694 = vadd.xlane.f32.xlu0 %v589_v54  ;;  %v6215_v2 = vpop.xlane.xlu1 %674  ;;  %v6259_v54 = vmul.f32 %v5949_v0, %v1000_v26  ;;  %v6410_v42 = vmul.f32 %v5949_v0, %v784_v58  ;;  %v754_v58 = vld [vmem:[%s5926_s8 + $0x90] sm:$0xff] }
 0x1b0   : > { %v6217_v3 = vpop.xlane.xlu0 %1114 }
 0x1b1   : > { %v1555_v31 = vmax.f32 %v1492_v19, %v6217_v3  ;;  %9739 = vst [vmem:[#allocation37_spill] sm:$0xff] %v6410_v42  ;;  %v1288_v42 = vld [vmem:[%s5936_s0 + $0x180] sm:$0xff] }
 0x1b2   : > { %1386 = vadd.xlane.f32.xlu1 %v1313_v63  ;;  %v1032_v63 = vld [vmem:[%s5933_s21 + $0x160] sm:$0xff] }
 0x1b3   : > { %946 = vadd.xlane.f32.xlu0 %v841_v1  ;;  %v6223_v12 = vpop.xlane.xlu1 %926  ;;  %v6265_v1 = vmul.f32 %v5949_v0, %v749_v27 }
 0x1b4   : > { %v6225_v13 = vpop.xlane.xlu0 %864 }
 0x1b6   : > { %1136 = vadd.xlane.f32.xlu1 %v1062_v8  ;;  %v6274_v8 = vmul.f32 %v5949_v0, %v780_v37 }
 0x1b7   : > { %1448 = vadd.xlane.f32.xlu0 %v1344_v9  ;;  %v6243_v38 = vpop.xlane.xlu1 %1116  ;;  %v781_v9 = vld [vmem:[%s5926_s8 + $0x168] sm:$0xff] }
 0x1b8   : > { %v1367_v39 = vpop.xlane.xlu0 %1366 }
 0x1b9   : > { %v1618_v51 = vmax.f32 %v1555_v31, %v1367_v39  ;;  %v6298_v31 = vmul.f32 %v5949_v0, %v1032_v63  ;;  %v6312_v63 = vmul.f32 %v5949_v0, %v1284_v21  ;;  %v6329_v21 = vmul.f32 %v5949_v0, %v524_v34  ;;  %v752_v34 = vld [vmem:[%s5926_s8 + $0x80] sm:$0xff] }
 0x1ba   : > { %696 = vadd.xlane.f32.xlu1 %v590_v32  ;;  %v1002_v32 = vld [vmem:[%s5933_s21 + $0x70] sm:$0xff] }
 0x1bb   : > { %v1681_v15 = vsub.f32 %v6121_v50, %v1618_v51  ;;  %v1870_v18 = vsub.f32 %v6207_v57, %v1618_v51  ;;  %v2059_v19 = vsub.f32 %v6217_v3, %v1618_v51  ;;  %v2248_v26 = vsub.f32 %v1367_v39, %v1618_v51  ;;  %1198 = vadd.xlane.f32.xlu0 %v1093_v40  ;;  %v6287_v27 = vpop.xlane.xlu1 %676  ;;  %v1254_v51 = vld [vmem:[%s5936_s0 + $0x70] sm:$0xff] }
 0x1bc   : > { %v6289_v50 = vpop.xlane.xlu0 %1178  ;;  %v6292_v57 = vmul.f32 %v5949_v0, %v1283_v59  ;;  %v6295_v3 = vmul.f32 %v5949_v0, %v523_v60  ;;  %v6304_v40 = vmul.f32 %v5949_v0, %v781_v9  ;;  %v782_v59 = vld [vmem:[%s5926_s8 + $0x170] sm:$0xff]  ;;  %v1285_v9 = vld [vmem:[%s5936_s0 + $0x168] sm:$0xff]  ;;  %v6323_v14 = vmul.f32 %v5949_v0, %v1002_v32 }
 0x1bd   : > { %v1744_v37 = vmul.f32 1.442695, %v1681_v15  ;;  %v1933_v39 = vmul.f32 1.442695, %v1870_v18  ;;  %v2122_v60 = vmul.f32 1.442695, %v2059_v19  ;;  %v6318_v15 = vmul.f32 %v5949_v0, %v1033_v25 }
 0x1be   : > { %v1003_v18 = vld [vmem:[%s5933_s21 + $0x78] sm:$0xff]  ;;  %948 = vadd.xlane.f32.xlu1 %v842_v43  ;;  %v6326_v19 = vmul.f32 %v5949_v0, %v751_v33  ;;  %v783_v25 = vld [vmem:[%s5926_s8 + $0x178] sm:$0xff]  ;;  %v2311_v47 = vmul.f32 1.442695, %v2248_v26  ;;  %v6339_v32 = vmul.f32 %v5949_v0, %v1254_v51  ;;  %v6342_v33 = vmul.f32 %v5949_v0, %v782_v59 }
 0x1bf   : > { %4469 = vpow2.f32 %v1744_v37  ;;  %886 = vadd.xlane.f32.xlu0 %v811_v44  ;;  %v6334_v37 = vpop.xlane.xlu1 %928  ;;  %v1493_v44 = vmax.f32 %v6129_v56, %v6225_v13  ;;  %v6351_v26 = vmul.f32 %v5949_v0, %v1003_v18  ;;  %v6354_v41 = vmul.f32 %v5949_v0, %v1285_v9  ;;  %v1255_v51 = vld [vmem:[%s5936_s0 + $0x78] sm:$0xff]  ;;  %v1035_v59 = vld [vmem:[%s5933_s21 + $0x178] sm:$0xff]  ;;  %v1256_v9 = vld [vmem:[%s5936_s0 + $0x80] sm:$0xff] }
 0x1c0   : > { %4471 = vpow2.f32 %v1933_v39  ;;  %v6336_v43 = vpop.xlane.xlu0 %866  ;;  %v1524_v39 = vmax.f32 %v6215_v2, %v6223_v12  ;;  %v6366_v28 = vmul.f32 %v5949_v0, %v783_v25  ;;  %v753_v18 = vld [vmem:[%s5926_s8 + $0x88] sm:$0xff]  ;;  %v1005_v25 = vld [vmem:[%s5933_s21 + $0x88] sm:$0xff] }
 0x1c1   : > { %4473 = vpow2.f32 %v2122_v60  ;;  %v1556_v22 = vmax.f32 %v1493_v44, %v6243_v38  ;;  %v6375_v60 = vmul.f32 %v5949_v0, %v752_v34  ;;  %v6390_v34 = vmul.f32 %v5949_v0, %v1035_v59 }
 0x1c2   : > { %v1587_v23 = vmax.f32 %v1524_v39, %v6289_v50  ;;  %1450 = vadd.xlane.f32.xlu1 %v6249_v45  ;;  %4475 = vpow2.f32 %v2311_v47  ;;  %v6387_v45 = vmul.f32 %v5949_v0, %v1255_v51  ;;  %v6399_v47 = vmul.f32 %v5949_v0, %v753_v18  ;;  %v527_v51 = vld [vmem:[%s5918_s20 + $0x188] sm:$0xff] }
 0x1c3   : > { %1388 = vadd.xlane.f32.xlu0 %v6253_v52  ;;  %v1431_v44 = vpop.xlane.xlu1 %1430  ;;  %v6402_v52 = vmul.f32 %v5949_v0, %v526_v29  ;;  %v6407_v59 = vmul.f32 %v5949_v0, %v1256_v9 }
 0x1c4   : > { %v6384_v17 = vpop.xlane.xlu0 %1368  ;;  %v1650_v39 = vmax.f32 %v1587_v23, %v1431_v44  ;;  %9736 = vst [vmem:[#allocation34_spill] sm:$0xff] %v6399_v47  ;;  %v6413_v23 = vmul.f32 %v5949_v0, %v1005_v25 }
 0x1c5   : > { %v6396_v10 = vmax.f32 %v1556_v22, %v6384_v17  ;;  %9737 = vst [vmem:[#allocation35_spill] sm:$0xff] %v6402_v52  ;;  %9738 = vst [vmem:[#allocation36_spill] sm:$0xff] %v6407_v59  ;;  %v6416_v22 = vmul.f32 %v5949_v0, %v1287_v16 }
 0x1c6   : > { %9740 = vst [vmem:[#allocation38_spill] sm:$0xff] %v6413_v23  ;;  %v1713_v18 = vsub.f32 %v6215_v2, %v1650_v39  ;;  %v1902_v29 = vsub.f32 %v6223_v12, %v1650_v39  ;;  %v2091_v52 = vsub.f32 %v6289_v50, %v1650_v39  ;;  %v2280_v9 = vsub.f32 %v1431_v44, %v1650_v39  ;;  %v6437_v12 = vld [vmem:[%s9659_s4] ss:$0 sm:$0xff]  ;;  %v1257_v50 = vld [vmem:[%s5936_s0 + $0x88] sm:$0xff] }
 0x1c7   : > { %9741 = vst [vmem:[#allocation39_spill] sm:$0xff] %v6416_v22  ;;  %1200 = vadd.xlane.f32.xlu1 %v6256_v53  ;;  %v1682_v25 = vsub.f32 %v6129_v56, %v6396_v10  ;;  %v1871_v0 = vsub.f32 %v6225_v13, %v6396_v10  ;;  %1138 = vadd.xlane.f32.xlu0 %v6259_v54  ;;  %v6430_v16 = vpop.xlane.xlu1 %1180  ;;  %v1037_v13 = vld [vmem:[%s5933_s21 + $0x188] sm:$0xff] }
 0x1c8   : > { %v6432_v2 = vpop.xlane.xlu0 %1118  ;;  %v6440_v53 = vmul.f32 %v6437_v12, %v527_v51  ;;  %v6443_v56 = vmul.f32 %v6437_v12, %v1036_v11  ;;  %v1808_v54 = vmul.f32 1.442695, %v1713_v18  ;;  %v1997_v39 = vmul.f32 1.442695, %v1902_v29  ;;  %v528_v29 = vld [vmem:[%s5918_s20 + $0x190] sm:$0xff] }
 0x1c9   : > { %v6447_v44 = vpop.eup %4469  ;;  %v2186_v22 = vmul.f32 1.442695, %v2091_v52  ;;  %v6450_v23 = vmul.f32 %v6437_v12, %v785_v4  ;;  %v2375_v47 = vmul.f32 1.442695, %v2280_v9  ;;  %v2060_v51 = vsub.f32 %v6243_v38, %v6396_v10  ;;  %v755_v38 = vld [vmem:[%s5926_s8 + $0x98] sm:$0xff] }
 0x1ca   : > { %9742 = vst [vmem:[#allocation40_spill] sm:$0xff] %v6440_v53  ;;  %9743 = vst [vmem:[#allocation41_spill] sm:$0xff] %v6443_v56  ;;  %v6452_v59 = vpop.eup %4471  ;;  %v6457_v11 = vmul.f32 %v6437_v12, %v754_v58  ;;  %v6460_v56 = vmul.f32 %v6437_v12, %v1288_v42  ;;  %v1006_v53 = vld [vmem:[%s5933_s21 + $0x90] sm:$0xff]  ;;  %4477 = vpow2.f32 %v1808_v54  ;;  %v1746_v4 = vmul.f32 1.442695, %v1682_v25  ;;  %v1258_v54 = vld [vmem:[%s5936_s0 + $0x90] sm:$0xff] }
 0x1cb   : > { %9744 = vst [vmem:[#allocation42_spill] sm:$0xff] %v6450_v23  ;;  %v2437_v52 = vadd.f32 %v6452_v59, %v6447_v44  ;;  %888 = vadd.xlane.f32.xlu1 %v6265_v1  ;;  %v6467_v18 = vmul.f32 %v6437_v12, %v1257_v50  ;;  %v6471_v9 = vpop.eup %4473  ;;  %4479 = vpow2.f32 %v1997_v39  ;;  %v1935_v42 = vmul.f32 1.442695, %v1871_v0  ;;  %698 = vadd.xlane.f32.xlu0 %v6268_v6  ;;  %v6476_v25 = vpop.xlane.xlu1 %868  ;;  %v1007_v6 = vld [vmem:[%s5933_s21 + $0x98] sm:$0xff] }
 0x1cc   : > { %9745 = vst [vmem:[#allocation43_spill] sm:$0xff] %v6457_v11  ;;  %9746 = vst [vmem:[#allocation44_spill] sm:$0xff] %v6460_v56  ;;  %v2249_v58 = vsub.f32 %v6384_v17, %v6396_v10  ;;  %v6478_v1 = vpop.xlane.xlu0 %678  ;;  %v6481_v50 = vmul.f32 %v6437_v12, %v1037_v13  ;;  %v1494_v0 = vmax.f32 %v6119_v49, %v6336_v43  ;;  %4481 = vpow2.f32 %v2186_v22  ;;  %v786_v17 = vld [vmem:[%s5926_s8 + $0x190] sm:$0xff]  ;;  %v6492_v39 = vpop.eup %4475  ;;  %v529_v22 = vld [vmem:[%s5918_s20 + $0x198] sm:$0xff] }
 0x1cd   : > { %9747 = vst [vmem:[#allocation45_spill] sm:$0xff] %v6467_v18  ;;  %v2500_v18 = vadd.f32 %v6471_v9, %v2437_v52  ;;  %v6488_v10 = vmul.f32 %v6437_v12, %v1006_v53  ;;  %4483 = vpow2.f32 %v2375_v47  ;;  %v2124_v56 = vmul.f32 1.442695, %v2060_v51  ;;  %v1038_v51 = vld [vmem:[%s5933_s21 + $0x190] sm:$0xff] }
 0x1ce   : > { %9748 = vst [vmem:[#allocation46_spill] sm:$0xff] %v6481_v50  ;;  %v6495_v13 = vmul.f32 %v6437_v12, %v755_v38  ;;  %v6498_v52 = vmul.f32 %v6437_v12, %v528_v29  ;;  %v1289_v50 = vld [vmem:[%s5936_s0 + $0x188] sm:$0xff]  ;;  %4485 = vpow2.f32 %v1746_v4  ;;  %v1557_v53 = vmax.f32 %v1494_v0, %v6432_v2  ;;  %v787_v38 = vld [vmem:[%s5926_s8 + $0x198] sm:$0xff] }
 0x1cf   : > { %9749 = vst [vmem:[#allocation47_spill] sm:$0xff] %v6488_v10  ;;  %v2563_v11 = vadd.f32 %v6492_v39, %v2500_v18  ;;  %1390 = vadd.xlane.f32.xlu1 %v6271_v7  ;;  %v6506_v47 = vmul.f32 %v6437_v12, %v1258_v54  ;;  %4487 = vpow2.f32 %v1935_v42  ;;  %950 = vadd.xlane.f32.xlu0 %v6274_v8  ;;  %v1371_v29 = vpop.xlane.xlu1 %1370  ;;  %v756_v18 = vld [vmem:[%s5926_s8 + $0xa0] sm:$0xff]  ;;  %v1290_v8 = vld [vmem:[%s5936_s0 + $0x190] sm:$0xff] }
 0x1d0   : > { %9750 = vst [vmem:[#allocation48_spill] sm:$0xff] %v6495_v13  ;;  %9751 = vst [vmem:[#allocation49_spill] sm:$0xff] %v6498_v52  ;;  %v2313_v13 = vmul.f32 1.442695, %v2249_v58  ;;  %v6511_v52 = vpop.xlane.xlu0 %930  ;;  %v6514_v4 = vmul.f32 %v6437_v12, %v786_v17  ;;  %v6517_v7 = vmul.f32 %v6437_v12, %v1007_v6  ;;  %v1620_v54 = vmax.f32 %v1557_v53, %v1371_v29  ;;  %v1039_v53 = vld [vmem:[%s5933_s21 + $0x198] sm:$0xff] }
 0x1d1   : > { %9752 = vst [vmem:[#allocation50_spill] sm:$0xff] %v6506_v47  ;;  %4489 = vrcp.f32 %v2563_v11  ;;  %v6521_v42 = vmul.f32 %v6437_v12, %v1289_v50  ;;  %v6524_v58 = vmul.f32 %v6437_v12, %v529_v22  ;;  %v1525_v0 = vmax.f32 %v6287_v27, %v6334_v37  ;;  %v1259_v11 = vld [vmem:[%s5936_s0 + $0x98] sm:$0xff] }
 0x1d2   : > { %9753 = vst [vmem:[#allocation51_spill] sm:$0xff] %v6514_v4  ;;  %9754 = vst [vmem:[#allocation52_spill] sm:$0xff] %v6517_v7  ;;  %4491 = vpow2.f32 %v2124_v56  ;;  %v6530_v17 = vmul.f32 %v6437_v12, %v1038_v51  ;;  %v6533_v6 = vmul.f32 %v6437_v12, %v787_v38  ;;  %v1683_v50 = vsub.f32 %v6119_v49, %v1620_v54  ;;  %v1008_v56 = vld [vmem:[%s5933_s21 + $0xa0] sm:$0xff]  ;;  %v1260_v7 = vld [vmem:[%s5936_s0 + $0xa0] sm:$0xff] }
 0x1d3   : > { %9755 = vst [vmem:[#allocation53_spill] sm:$0xff] %v6521_v42  ;;  %9756 = vst [vmem:[#allocation54_spill] sm:$0xff] %v6524_v58  ;;  %v1872_v42 = vsub.f32 %v6336_v43, %v1620_v54  ;;  %v2061_v22 = vsub.f32 %v6432_v2, %v1620_v54  ;;  %1140 = vadd.xlane.f32.xlu1 %v6282_v20  ;;  %v6542_v58 = vmul.f32 %v6437_v12, %v756_v18  ;;  %v757_v2 = vld [vmem:[%s5926_s8 + $0xa8] sm:$0xff] }
 0x1d4   : > { %9757 = vst [vmem:[#allocation55_spill] sm:$0xff] %v6530_v17  ;;  %9758 = vst [vmem:[#allocation56_spill] sm:$0xff] %v6533_v6  ;;  %4493 = vpow2.f32 %v2313_v13  ;;  %v1588_v51 = vmax.f32 %v1525_v0, %v6430_v16  ;;  %v2250_v38 = vsub.f32 %v1371_v29, %v1620_v54  ;;  %1452 = vadd.xlane.f32.xlu0 %v6292_v57  ;;  %v6547_v6 = vpop.xlane.xlu1 %1120  ;;  %v1433_v49 = vpop.xlane.xlu0 %1432  ;;  %v1748_v18 = vmul.f32 1.442695, %v1683_v50 }
 0x1d5   : > { %9759 = vst [vmem:[#allocation57_spill] sm:$0xff] %v6542_v58  ;;  %v6550_v43 = vmul.f32 %v6437_v12, %v1290_v8  ;;  %v6553_v20 = vpop.eup %4477  ;;  %v1937_v58 = vmul.f32 1.442695, %v1872_v42  ;;  %v6556_v13 = vmul.f32 %v6437_v12, %v1259_v11  ;;  %v6559_v29 = vmul.f32 %v6437_v12, %v1039_v53 }
 0x1d6   : > { %v6561_v54 = vpop.eup %4479  ;;  %v1495_v57 = vmax.f32 %v6127_v55, %v6476_v25  ;;  %v2126_v0 = vmul.f32 1.442695, %v2061_v22  ;;  %v1651_v17 = vmax.f32 %v1588_v51, %v1433_v49  ;;  %v6566_v8 = vmul.f32 %v6437_v12, %v1008_v56 }
 0x1d7   : > { %9760 = vst [vmem:[#allocation58_spill] sm:$0xff] %v6550_v43  ;;  %9761 = vst [vmem:[#allocation59_spill] sm:$0xff] %v6556_v13  ;;  %v530_v43 = vld [vmem:[%s5918_s20 + $0x1a0] sm:$0xff]  ;;  %v6570_v50 = vpop.eup %4481  ;;  %v2469_v42 = vadd.f32 %v6561_v54, %v6553_v20  ;;  %4495 = vpow2.f32 %v1748_v18  ;;  %v2315_v11 = vmul.f32 1.442695, %v2250_v38  ;;  %700 = vadd.xlane.f32.xlu1 %v6295_v3  ;;  %v6576_v53 = vmul.f32 %v6437_v12, %v757_v2  ;;  %v788_v13 = vld [vmem:[%s5926_s8 + $0x1a0] sm:$0xff] }
 0x1d8   : > { %9762 = vst [vmem:[#allocation60_spill] sm:$0xff] %v6559_v29  ;;  %9763 = vst [vmem:[#allocation61_spill] sm:$0xff] %v6566_v8  ;;  %v6578_v29 = vpop.eup %4483  ;;  %4497 = vpow2.f32 %v1937_v58  ;;  %v1714_v22 = vsub.f32 %v6287_v27, %v1651_v17  ;;  %v1903_v56 = vsub.f32 %v6334_v37, %v1651_v17  ;;  %v2092_v51 = vsub.f32 %v6430_v16, %v1651_v17  ;;  %v6584_v8 = vpop.xlane.xlu1 %680 }
 0x1d9   : > { %9764 = vst [vmem:[#allocation62_spill] sm:$0xff] %v6576_v53  ;;  %1202 = vadd.xlane.f32.xlu0 %v6298_v31  ;;  %v6586_v38 = vpop.xlane.xlu0 %1182  ;;  %v6588_v3 = vpop.eup %4485  ;;  %v2532_v2 = vadd.f32 %v6570_v50, %v2469_v42  ;;  %v1526_v58 = vmax.f32 %v6478_v1, %v6511_v52  ;;  %v6594_v27 = vmul.f32 %v6437_v12, %v530_v43  ;;  %4499 = vpow2.f32 %v2126_v0 }
 0x1da   : > { %v6597_v37 = vmul.f32 %v6437_v12, %v1260_v7  ;;  %v6599_v16 = vpop.eup %4487  ;;  %v1810_v31 = vmul.f32 1.442695, %v1714_v22  ;;  %v1999_v18 = vmul.f32 1.442695, %v1903_v56  ;;  %v2281_v53 = vsub.f32 %v1433_v49, %v1651_v17  ;;  %v1009_v56 = vld [vmem:[%s5933_s21 + $0xa8] sm:$0xff] }
 0x1db   : > { %9765 = vst [vmem:[#allocation63_spill] sm:$0xff] %v6594_v27  ;;  %v4490_v4 = vpop.eup %4489  ;;  %v2595_v42 = vadd.f32 %v6578_v29, %v2532_v2  ;;  %v2438_v47 = vadd.f32 %v6599_v16, %v6588_v3  ;;  %4501 = vpow2.f32 %v2315_v11  ;;  %v2188_v43 = vmul.f32 1.442695, %v2092_v51  ;;  %952 = vadd.xlane.f32.xlu1 %v6304_v40  ;;  %v1291_v51 = vld [vmem:[%s5936_s0 + $0x198] sm:$0xff]  ;;  %v5101_v27 = vld [vmem:[%s5926_s8] sm:$0xff] }
 0x1dc   : > { %9766 = vst [vmem:[#allocation64_spill] sm:$0xff] %v6597_v37  ;;  %v6606_v7 = vpop.eup %4491  ;;  %4503 = vpow2.f32 %v1810_v31  ;;  %v6609_v17 = vpop.xlane.xlu1 %932  ;;  %v2689_v0 = vmul.f32 %v4490_v4, %v6447_v44  ;;  %v2815_v22 = vmul.f32 %v4490_v4, %v6452_v59  ;;  %v3004_v11 = vmul.f32 %v4490_v4, %v6471_v9  ;;  %v5100_v44 = vld [vmem:[%s5918_s20] sm:$0xff] }
 0x1dd   : > { %890 = vadd.xlane.f32.xlu0 %v6307_v46  ;;  %v6611_v49 = vpop.xlane.xlu0 %870  ;;  %4505 = vrcp.f32 %v2595_v42  ;;  %v2501_v40 = vadd.f32 %v6606_v7, %v2438_v47  ;;  %v1558_v2 = vmax.f32 %v1495_v57, %v6547_v6  ;;  %v6621_v46 = vmul.f32 %v6437_v12, %v788_v13  ;;  %v531_v57 = vld [vmem:[%s5918_s20 + $0x1a8] sm:$0xff] }
 0x1de   : > { %v6623_v31 = vpop.eup %4493  ;;  %4507 = vpow2.f32 %v1999_v18  ;;  %v2377_v37 = vmul.f32 1.442695, %v2281_v53  ;;  %v2752_v59 = vmul.f32 %v5100_v44, %v2689_v0  ;;  %v2878_v9 = vmul.f32 %v5101_v27, %v2815_v22 }
 0x1df   : > { %9767 = vst [vmem:[#allocation65_spill] sm:$0xff] %v6621_v46  ;;  %v2564_v10 = vadd.f32 %v6623_v31, %v2501_v40  ;;  %v1589_v42 = vmax.f32 %v1526_v58, %v6586_v38  ;;  %1454 = vadd.xlane.f32.xlu1 %v6312_v63  ;;  %v6631_v47 = vmul.f32 %v6437_v12, %v1009_v56  ;;  %4509 = vpow2.f32 %v2188_v43  ;;  %v5102_v58 = vld [vmem:[%s5933_s21] sm:$0xff] }
 0x1e0   : > { %v6634_v13 = vmul.f32 %v6437_v12, %v1291_v51  ;;  %v1527_v53 = vmax.f32 %v6584_v8, %v6609_v17  ;;  %v1435_v27 = vpop.xlane.xlu1 %1434  ;;  %v2941_v0 = vadd.f32 %v2878_v9, %v2752_v59  ;;  %v3067_v22 = vmul.f32 %v5102_v58, %v3004_v11  ;;  %v1040_v59 = vld [vmem:[%s5933_s21 + $0x1a0] sm:$0xff] }
 0x1e1   : > { %9768 = vst [vmem:[#allocation66_spill] sm:$0xff] %v6631_v47  ;;  %1392 = vadd.xlane.f32.xlu0 %v6315_v30  ;;  %v1373_v18 = vpop.xlane.xlu0 %1372  ;;  %v6641_v63 = vpop.eup %4495  ;;  %4511 = vrcp.f32 %v2564_v10  ;;  %v1496_v56 = vmax.f32 %v6137_v62, %v6611_v49  ;;  %v1652_v51 = vmax.f32 %v1589_v42, %v1435_v27  ;;  %v3193_v30 = vmul.f32 %v4490_v4, %v6492_v39 }
 0x1e2   : > { %9769 = vst [vmem:[#allocation67_spill] sm:$0xff] %v6634_v13  ;;  %v1621_v40 = vmax.f32 %v1558_v2, %v1373_v18  ;;  %v6645_v43 = vpop.eup %4497  ;;  %4513 = vpow2.f32 %v2377_v37  ;;  %v3130_v44 = vadd.f32 %v3067_v22, %v2941_v0  ;;  %v6649_v13 = vmul.f32 %v6437_v12, %v531_v57 }
 0x1e3   : > { %v2439_v11 = vadd.f32 %v6645_v43, %v6641_v63  ;;  %v1715_v10 = vsub.f32 %v6478_v1, %v1652_v51  ;;  %v1904_v9 = vsub.f32 %v6511_v52, %v1652_v51  ;;  %v2093_v42 = vsub.f32 %v6586_v38, %v1652_v51  ;;  %1204 = vadd.xlane.f32.xlu1 %v6318_v15  ;;  %v6658_v2 = vpop.eup %4499 }
 0x1e4   : > { %9770 = vst [vmem:[#allocation68_spill] sm:$0xff] %v6649_v13  ;;  %v2282_v37 = vsub.f32 %v1435_v27, %v1652_v51  ;;  %v1684_v39 = vsub.f32 %v6127_v55, %v1621_v40  ;;  %v1873_v4 = vsub.f32 %v6476_v25, %v1621_v40  ;;  %v2062_v57 = vsub.f32 %v6547_v6, %v1621_v40  ;;  %v6664_v0 = vpop.xlane.xlu1 %1184  ;;  %v5103_v51 = vld [vmem:[%s5936_s0] sm:$0xff] }
 0x1e5   : > { %1142 = vadd.xlane.f32.xlu0 %v6323_v14  ;;  %v6666_v1 = vpop.xlane.xlu0 %1122  ;;  %v6668_v52 = vpop.eup %4501  ;;  %v2502_v15 = vadd.f32 %v6658_v2, %v2439_v11  ;;  %v1812_v38 = vmul.f32 1.442695, %v1715_v10  ;;  %v2001_v58 = vmul.f32 1.442695, %v1904_v9  ;;  %v6672_v27 = vmul.f32 %v6437_v12, %v1040_v59 }
 0x1e6   : > { %v6674_v55 = vpop.eup %4503  ;;  %v2190_v25 = vmul.f32 1.442695, %v2093_v42  ;;  %v2379_v22 = vmul.f32 1.442695, %v2282_v37  ;;  %v2251_v6 = vsub.f32 %v1373_v18, %v1621_v40  ;;  %v3256_v14 = vmul.f32 %v5103_v51, %v3193_v30 }
 0x1e7   : > { %v4506_v13 = vpop.eup %4505  ;;  %v2565_v47 = vadd.f32 %v6668_v52, %v2502_v15  ;;  %4515 = vpow2.f32 %v1812_v38  ;;  %v1750_v46 = vmul.f32 1.442695, %v1684_v39  ;;  %v1939_v23 = vmul.f32 1.442695, %v1873_v4  ;;  %892 = vadd.xlane.f32.xlu1 %v6326_v19 }
 0x1e8   : > { %v6679_v11 = vpop.eup %4507  ;;  %4517 = vpow2.f32 %v2001_v58  ;;  %v2128_v12 = vmul.f32 1.442695, %v2062_v57  ;;  %v1590_v59 = vmax.f32 %v1527_v53, %v6664_v0  ;;  %v3319_v10 = vadd.f32 %v3256_v14, %v3130_v44  ;;  %v6683_v18 = vpop.xlane.xlu1 %872 }
 0x1e9   : > { %702 = vadd.xlane.f32.xlu0 %v6329_v21  ;;  %v6685_v40 = vpop.xlane.xlu0 %682  ;;  %4519 = vrcp.f32 %v2565_v47  ;;  %v2470_v30 = vadd.f32 %v6679_v11, %v6674_v55  ;;  %v2317_v9 = vmul.f32 1.442695, %v2251_v6  ;;  %v2721_v19 = vmul.f32 %v4506_v13, %v6553_v20  ;;  %v6690_v42 = vpop.eup %4509 }
 0x1ea   : > { %4521 = vpow2.f32 %v2190_v25  ;;  %v1559_v37 = vmax.f32 %v1496_v56, %v6666_v1  ;;  %4168 = vmatmul.mubr.f32.vlgmr.msra.gmra.mrb[0].mxu0 %v3319_v10  ;;  %v1497_v21 = vmax.f32 %v6135_v61, %v6683_v18  ;;  %v2847_v53 = vmul.f32 %v4506_v13, %v6561_v54  ;;  %v5107_v10 = vld [vmem:[%s5933_s21 + $0x8] sm:$0xff] }
 0x1eb   : > { %v4512_v44 = vpop.eup %4511  ;;  %v2533_v47 = vadd.f32 %v6690_v42, %v2470_v30  ;;  %4523 = vpow2.f32 %v2379_v22  ;;  %1394 = vadd.xlane.f32.xlu1 %v6339_v32  ;;  %v9771_v39 = vmov 0.0   ;;  %v6701_v20 = vmul.f32 %v4506_v13, %v6570_v50  ;;  %v5106_v22 = vld [vmem:[%s5926_s8 + $0x8] sm:$0xff] }
 0x1ec   : > { %4170 = vmatprep.mubr.msk.f32.mxu0 %vm5593_vm0, %v9771_v39  ;;  %v6704_v56 = vmul.f32 %v4506_v13, %v6578_v29  ;;  %v6706_v4 = vpop.eup %4513  ;;  %4525 = vpow2.f32 %v1750_v46  ;;  %v1375_v54 = vpop.xlane.xlu1 %1374  ;;  %v2690_v32 = vmul.f32 %v4512_v44, %v6588_v3  ;;  %v2816_v15 = vmul.f32 %v4512_v44, %v6599_v16  ;;  %v5104_v13 = vld [vmem:[%s5918_s20 + $0x100] sm:$0xff]  ;;  %v5105_v46 = vld [vmem:[%s5918_s20 + $0x8] sm:$0xff] }
 0x1ed   : > { %954 = vadd.xlane.f32.xlu0 %v6342_v33  ;;  %v6709_v57 = vpop.xlane.xlu0 %934  ;;  %v3005_v50 = vmul.f32 %v4512_v44, %v6606_v7  ;;  %v2596_v38 = vadd.f32 %v6706_v4, %v2533_v47  ;;  %4527 = vpow2.f32 %v1939_v23  ;;  %v1622_v29 = vmax.f32 %v1559_v37, %v1375_v54 }
 0x1ee   : > { %v2784_v58 = vmul.f32 %v5104_v13, %v2721_v19  ;;  %4529 = vpow2.f32 %v2128_v12  ;;  %v1528_v33 = vmax.f32 %v6685_v40, %v6709_v57  ;;  %v2753_v25 = vmul.f32 %v5105_v46, %v2690_v32 }
 0x1ef   : > { %v2879_v6 = vmul.f32 %v5106_v22, %v2816_v15  ;;  %4531 = vrcp.f32 %v2596_v38  ;;  %v1685_v3 = vsub.f32 %v6137_v62, %v1622_v29  ;;  %v1874_v16 = vsub.f32 %v6611_v49, %v1622_v29  ;;  %1144 = vadd.xlane.f32.xlu1 %v6351_v26  ;;  %v5109_v38 = vld [vmem:[%s5926_s8 + $0x100] sm:$0xff] }
 0x1f0   : > { %v2063_v7 = vsub.f32 %v6666_v1, %v1622_v29  ;;  %v2252_v23 = vsub.f32 %v1375_v54, %v1622_v29  ;;  %v6725_v51 = vpop.xlane.xlu1 %1124  ;;  %v3068_v30 = vmul.f32 %v5107_v10, %v3005_v50  ;;  %v3194_v19 = vmul.f32 %v4512_v44, %v6623_v31  ;;  %v5108_v31 = vld [vmem:[%s5936_s0 + $0x8] sm:$0xff] }
 0x1f1   : > { %1456 = vadd.xlane.f32.xlu0 %v6354_v41  ;;  %v1437_v14 = vpop.xlane.xlu0 %1436  ;;  %v2942_v12 = vadd.f32 %v2879_v6, %v2753_v25  ;;  %v6729_v62 = vpop.eup %4515  ;;  %4533 = vpow2.f32 %v2317_v9  ;;  %v1752_v49 = vmul.f32 1.442695, %v1685_v3  ;;  %v1941_v1 = vmul.f32 1.442695, %v1874_v16 }
 0x1f2   : > { %v2130_v37 = vmul.f32 1.442695, %v2063_v7  ;;  %v6731_v26 = vpop.eup %4517  ;;  %v2319_v47 = vmul.f32 1.442695, %v2252_v23  ;;  %v6734_v41 = vmax.f32 %v1497_v21, %v6725_v51  ;;  %v1653_v54 = vmax.f32 %v1590_v59, %v1437_v14 }
 0x1f3   : > { %v3131_v32 = vadd.f32 %v3068_v30, %v2942_v12  ;;  %v4520_v15 = vpop.eup %4519  ;;  %v2471_v50 = vadd.f32 %v6731_v26, %v6729_v62  ;;  %4535 = vpow2.f32 %v1752_v49  ;;  %v3257_v44 = vmul.f32 %v5108_v31, %v3194_v19  ;;  %704 = vadd.xlane.f32.xlu1 %v6360_v35  ;;  %v5111_v19 = vld [vmem:[%s5936_s0 + $0x100] sm:$0xff] }
 0x1f4   : > { %v2910_v9 = vmul.f32 %v5109_v38, %v2847_v53  ;;  %v6741_v29 = vpop.eup %4521  ;;  %4537 = vpow2.f32 %v1941_v1  ;;  %v1716_v21 = vsub.f32 %v6584_v8, %v1653_v54  ;;  %v1905_v59 = vsub.f32 %v6609_v17, %v1653_v54  ;;  %v6747_v46 = vpop.xlane.xlu1 %684 }
 0x1f5   : > { %v2094_v13 = vsub.f32 %v6664_v0, %v1653_v54  ;;  %1206 = vadd.xlane.f32.xlu0 %v6363_v36  ;;  %v6749_v25 = vpop.xlane.xlu0 %1186  ;;  %v6751_v22 = vpop.eup %4523  ;;  %v2534_v35 = vadd.f32 %v6741_v29, %v2471_v50  ;;  %4539 = vpow2.f32 %v2130_v37  ;;  %v2283_v53 = vsub.f32 %v1437_v14, %v1653_v54  ;;  %v5110_v0 = vld [vmem:[%s5933_s21 + $0x100] sm:$0xff]  ;;  %v5112_v54 = vld [vmem:[%s5918_s20 + $0x10] sm:$0xff] }
 0x1f6   : > { %v3320_v6 = vadd.f32 %v3257_v44, %v3131_v32  ;;  %v6754_v3 = vpop.eup %4525  ;;  %4541 = vpow2.f32 %v2319_v47  ;;  %v1814_v8 = vmul.f32 1.442695, %v1716_v21  ;;  %v2003_v17 = vmul.f32 1.442695, %v1905_v59  ;;  %v5113_v59 = vld [vmem:[%s5926_s8 + $0x10] sm:$0xff] }
 0x1f7   : > { %v3099_v36 = vmul.f32 %v5110_v0, %v6701_v20  ;;  %v6758_v16 = vpop.eup %4527  ;;  %v2597_v7 = vadd.f32 %v6751_v22, %v2534_v35  ;;  %v2192_v23 = vmul.f32 1.442695, %v2094_v13  ;;  %v2381_v12 = vmul.f32 1.442695, %v2283_v53  ;;  %956 = vadd.xlane.f32.xlu1 %v6366_v28  ;;  %v5116_v0 = vld [vmem:[%s5918_s20 + $0x108] sm:$0xff] }
 0x1f8   : > { %4171 = vmatmul.mubr.f32.gmra.mrb[2].mxu0 %v3320_v6  ;;  %v2973_v10 = vadd.f32 %v2910_v9, %v2784_v58  ;;  %v6762_v14 = vpop.eup %4529  ;;  %v2440_v30 = vadd.f32 %v6758_v16, %v6754_v3  ;;  %4543 = vpow2.f32 %v1814_v8  ;;  %v3288_v20 = vmul.f32 %v5111_v19, %v6704_v56  ;;  %v6769_v49 = vpop.xlane.xlu1 %936  ;;  %v5115_v8 = vld [vmem:[%s5936_s0 + $0x10] sm:$0xff] }
 0x1f9   : > { %894 = vadd.xlane.f32.xlu0 %v6375_v60  ;;  %v6771_v1 = vpop.xlane.xlu0 %874  ;;  %4173 = vmatprep.mubr.msk.f32.mxu0 %vm5593_vm0, %v9771_v39  ;;  %v2691_v28 = vmul.f32 %v4520_v15, %v6641_v63  ;;  %v6776_v58 = vpop.eup %4531  ;;  %4545 = vrcp.f32 %v2597_v7  ;;  %v1591_v56 = vmax.f32 %v1528_v33, %v6749_v25  ;;  %v1529_v60 = vmax.f32 %v6747_v46, %v6769_v49 }
 0x1fa   : > { %v3162_v37 = vadd.f32 %v3099_v36, %v2973_v10  ;;  %v2503_v47 = vadd.f32 %v6762_v14, %v2440_v30  ;;  %4547 = vpow2.f32 %v2003_v17  ;;  %v2817_v63 = vmul.f32 %v4520_v15, %v6645_v43 }
 0x1fb   : > { %v2754_v32 = vmul.f32 %v5112_v54, %v2691_v28  ;;  %v6787_v50 = vpop.eup %4533  ;;  %v1498_v44 = vmax.f32 %v6145_v5, %v6771_v1  ;;  %1458 = vadd.xlane.f32.xlu1 %v6378_v24  ;;  %v3006_v33 = vmul.f32 %v4520_v15, %v6658_v2  ;;  %v3195_v38 = vmul.f32 %v4520_v15, %v6668_v52  ;;  %v5114_v15 = vld [vmem:[%s5933_s21 + $0x10] sm:$0xff] }
 0x1fc   : > { %v3351_v31 = vadd.f32 %v3288_v20, %v3162_v37  ;;  %v2566_v9 = vadd.f32 %v6787_v50, %v2503_v47  ;;  %4549 = vpow2.f32 %v2192_v23  ;;  %v1439_v43 = vpop.xlane.xlu1 %1438  ;;  %v2880_v13 = vmul.f32 %v5113_v59, %v2817_v63 }
 0x1fd   : > { %1396 = vadd.xlane.f32.xlu0 %v6387_v45  ;;  %v1377_v21 = vpop.xlane.xlu0 %1376  ;;  %v2722_v35 = vmul.f32 %v6776_v58, %v6674_v55  ;;  %v6799_v24 = vpop.eup %4535  ;;  %4551 = vpow2.f32 %v2381_v12  ;;  %v1654_v2 = vmax.f32 %v1591_v56, %v1439_v43  ;;  %v3069_v53 = vmul.f32 %v5114_v15, %v3006_v33  ;;  %v9772_v33 = vld [vmem:[#allocation34_spill] sm:$0xff] }
 0x1fe   : > { %4264 = vmatmul.mubr.f32.vlgmr.msra.gmra.mrb[0].mxu1 %v3351_v31  ;;  %v1623_v52 = vmax.f32 %v6734_v41, %v1377_v21  ;;  %v6803_v6 = vpop.eup %4537  ;;  %4553 = vrcp.f32 %v2566_v9  ;;  %v2943_v45 = vadd.f32 %v2880_v13, %v2754_v32  ;;  %v3258_v17 = vmul.f32 %v5115_v8, %v3195_v38 }
 0x1ff   : > { %4266 = vmatprep.mubr.msk.f32.mxu1 %vm5593_vm0, %v9771_v39  ;;  %v2785_v55 = vmul.f32 %v5116_v0, %v2722_v35  ;;  %v6809_v36 = vpop.eup %4539  ;;  %v2441_v7 = vadd.f32 %v6803_v6, %v6799_v24  ;;  %v1717_v41 = vsub.f32 %v6685_v40, %v1654_v2  ;;  %v1906_v23 = vsub.f32 %v6709_v57, %v1654_v2 }
 0x200   : > { %v2095_v12 = vsub.f32 %v6749_v25, %v1654_v2  ;;  %1208 = vadd.xlane.f32.xlu1 %v6390_v34  ;;  %v6817_v10 = vpop.eup %4541  ;;  %v2284_v30 = vsub.f32 %v1439_v43, %v1654_v2  ;;  %v1686_v19 = vsub.f32 %v6135_v61, %v1623_v52  ;;  %v1875_v20 = vsub.f32 %v6683_v18, %v1623_v52  ;;  %v6823_v37 = vpop.xlane.xlu1 %1188 }
 0x201   : > { %v2064_v28 = vsub.f32 %v6725_v51, %v1623_v52  ;;  %1146 = vadd.xlane.f32.xlu0 %v6393_v48  ;;  %v6825_v40 = vpop.xlane.xlu0 %1126  ;;  %v2504_v57 = vadd.f32 %v6809_v36, %v2441_v7  ;;  %v1816_v25 = vmul.f32 1.442695, %v1717_v41  ;;  %v2005_v56 = vmul.f32 1.442695, %v1906_v23  ;;  %v9774_v41 = vld [vmem:[#allocation18_spill] sm:$0xff] }
 0x202   : > { %v2848_v34 = vmul.f32 %v6776_v58, %v6679_v11  ;;  %v6830_v47 = vpop.eup %4543  ;;  %v2194_v61 = vmul.f32 1.442695, %v2095_v12  ;;  %v2383_v54 = vmul.f32 1.442695, %v2284_v30  ;;  %v1754_v18 = vmul.f32 1.442695, %v1686_v19 }
 0x203   : > { %v2253_v32 = vsub.f32 %v1377_v21, %v1623_v52  ;;  %v6832_v51 = vpop.eup %4545  ;;  %v2567_v48 = vadd.f32 %v6817_v10, %v2504_v57  ;;  %4555 = vpow2.f32 %v1816_v25  ;;  %v1943_v63 = vmul.f32 1.442695, %v1875_v20  ;;  %v9773_v21 = vld [vmem:[#allocation35_spill] sm:$0xff]  ;;  %v9775_v12 = vld [vmem:[#allocation36_spill] sm:$0xff] }
 0x204   : > { %v3132_v31 = vadd.f32 %v3069_v53, %v2943_v45  ;;  %896 = vadd.xlane.f32.xlu1 %v9772_v33  ;;  %v6836_v38 = vpop.eup %4547  ;;  %4557 = vpow2.f32 %v2005_v56  ;;  %v2132_v11 = vmul.f32 1.442695, %v2064_v28  ;;  %v1592_v43 = vmax.f32 %v1529_v60, %v6823_v37  ;;  %v6843_v59 = vpop.xlane.xlu1 %876  ;;  %v5117_v52 = vld [vmem:[%s5926_s8 + $0x108] sm:$0xff]  ;;  %v9776_v28 = vld [vmem:[#allocation37_spill] sm:$0xff] }
 0x205   : > { %v2321_v9 = vmul.f32 1.442695, %v2253_v32  ;;  %706 = vadd.xlane.f32.xlu0 %v9773_v21  ;;  %v6845_v13 = vpop.xlane.xlu0 %686  ;;  %4559 = vrcp.f32 %v2567_v48  ;;  %v2472_v35 = vadd.f32 %v6836_v38, %v6830_v47  ;;  %v2911_v15 = vmul.f32 %v5117_v52, %v2848_v34  ;;  %v9777_v48 = vld [vmem:[#allocation38_spill] sm:$0xff] }
 0x206   : > { %v3321_v2 = vadd.f32 %v3258_v17, %v3132_v31  ;;  %v6850_v53 = vpop.eup %4549  ;;  %4561 = vpow2.f32 %v2194_v61  ;;  %v1561_v60 = vmax.f32 %v1498_v44, %v6825_v40  ;;  %v3037_v45 = vmul.f32 %v6776_v58, %v6690_v42  ;;  %v5118_v44 = vld [vmem:[%s5933_s21 + $0x108] sm:$0xff]  ;;  %v5119_v42 = vld [vmem:[%s5936_s0 + $0x108] sm:$0xff] }
 0x207   : > { %v3226_v8 = vmul.f32 %v6776_v58, %v6706_v4  ;;  %v6860_v0 = vpop.eup %4551  ;;  %v2535_v17 = vadd.f32 %v6850_v53, %v2472_v35  ;;  %4563 = vpow2.f32 %v2383_v54  ;;  %v2974_v7 = vadd.f32 %v2911_v15, %v2785_v55 }
 0x208   : > { %4174 = vmatmul.mubr.f32.gmra.mrb[4].mxu0 %v3321_v2  ;;  %v1499_v23 = vmax.f32 %v9774_v41, %v6843_v59  ;;  %1398 = vadd.xlane.f32.xlu1 %v9775_v12  ;;  %v4554_v30 = vpop.eup %4553  ;;  %4565 = vpow2.f32 %v1754_v18  ;;  %v3100_v19 = vmul.f32 %v5118_v44, %v3037_v45  ;;  %v1379_v4 = vpop.xlane.xlu1 %1378  ;;  %v2723_v55 = vmul.f32 %v6832_v51, %v6729_v62  ;;  %v9779_v44 = vld [vmem:[#allocation40_spill] sm:$0xff] }
 0x209   : > { %v3289_v20 = vmul.f32 %v5119_v42, %v3226_v8  ;;  %958 = vadd.xlane.f32.xlu0 %v9776_v28  ;;  %v6869_v58 = vpop.xlane.xlu0 %938  ;;  %4176 = vmatprep.mubr.msk.f32.mxu0 %vm5593_vm0, %v9771_v39  ;;  %v2598_v57 = vadd.f32 %v6860_v0, %v2535_v17  ;;  %4567 = vpow2.f32 %v1943_v63  ;;  %v1624_v25 = vmax.f32 %v1561_v60, %v1379_v4  ;;  %v5121_v60 = vld [vmem:[%s5926_s8 + $0x18] sm:$0xff] }
 0x20a   : > { %v6878_v56 = vmul.f32 %v6832_v51, %v6731_v26  ;;  %4569 = vpow2.f32 %v2132_v11  ;;  %v3163_v34 = vadd.f32 %v3100_v19, %v2974_v7  ;;  %v2692_v61 = vmul.f32 %v4554_v30, %v6754_v3  ;;  %v9778_v3 = vld [vmem:[#allocation39_spill] sm:$0xff] }
 0x20b   : > { %v2818_v54 = vmul.f32 %v4554_v30, %v6758_v16  ;;  %4571 = vrcp.f32 %v2598_v57  ;;  %v1687_v18 = vsub.f32 %v6145_v5, %v1624_v25  ;;  %v1876_v62 = vsub.f32 %v6771_v1, %v1624_v25 }
 0x20c   : > { %v2065_v32 = vsub.f32 %v6825_v40, %v1624_v25  ;;  %1148 = vadd.xlane.f32.xlu1 %v9777_v48  ;;  %4573 = vpow2.f32 %v2321_v9  ;;  %v3352_v63 = vadd.f32 %v3289_v20, %v3163_v34  ;;  %v2254_v26 = vsub.f32 %v1379_v4, %v1624_v25  ;;  %v6889_v16 = vpop.xlane.xlu1 %1128  ;;  %v5120_v40 = vld [vmem:[%s5918_s20 + $0x18] sm:$0xff]  ;;  %v9780_v20 = vld [vmem:[#allocation41_spill] sm:$0xff] }
 0x20d   : > { %v1530_v31 = vmax.f32 %v6845_v13, %v6869_v58  ;;  %1460 = vadd.xlane.f32.xlu0 %v9778_v3  ;;  %v1441_v33 = vpop.xlane.xlu0 %1440  ;;  %v6891_v11 = vpop.eup %4555  ;;  %v1756_v5 = vmul.f32 1.442695, %v1687_v18  ;;  %v1945_v1 = vmul.f32 1.442695, %v1876_v62  ;;  %v2755_v35 = vmul.f32 %v5120_v40, %v2692_v61 }
 0x20e   : > { %v2134_v21 = vmul.f32 1.442695, %v2065_v32  ;;  %v6894_v2 = vpop.eup %4557  ;;  %4267 = vmatmul.mubr.f32.gmra.mrb[2].mxu1 %v3352_v63  ;;  %v2323_v9 = vmul.f32 1.442695, %v2254_v26  ;;  %v6897_v52 = vmax.f32 %v1499_v23, %v6889_v16  ;;  %v1655_v15 = vmax.f32 %v1592_v43, %v1441_v33  ;;  %v5123_v32 = vld [vmem:[%s5933_s21 + $0x18] sm:$0xff] }
 0x20f   : > { %v2881_v45 = vmul.f32 %v5121_v60, %v2818_v54  ;;  %v6900_v8 = vpop.eup %4559  ;;  %v2473_v17 = vadd.f32 %v6894_v2, %v6891_v11  ;;  %4575 = vpow2.f32 %v1756_v5  ;;  %4269 = vmatprep.mubr.msk.f32.mxu1 %vm5593_vm0, %v9771_v39  ;;  %v3007_v7 = vmul.f32 %v4554_v30, %v6762_v14  ;;  %v9781_v63 = vld [vmem:[#allocation42_spill] sm:$0xff] }
 0x210   : > { %v3196_v12 = vmul.f32 %v4554_v30, %v6787_v50  ;;  %708 = vadd.xlane.f32.xlu1 %v9779_v44  ;;  %v6909_v23 = vpop.eup %4561  ;;  %4577 = vpow2.f32 %v1945_v1  ;;  %v1718_v43 = vsub.f32 %v6747_v46, %v1655_v15  ;;  %v1907_v19 = vsub.f32 %v6769_v49, %v1655_v15  ;;  %v6915_v28 = vpop.xlane.xlu1 %688  ;;  %v9782_v1 = vld [vmem:[#allocation43_spill] sm:$0xff] }
 0x211   : > { %v2096_v42 = vsub.f32 %v6823_v37, %v1655_v15  ;;  %1210 = vadd.xlane.f32.xlu0 %v9780_v20  ;;  %v6917_v4 = vpop.xlane.xlu0 %1190  ;;  %v6919_v14 = vpop.eup %4563  ;;  %v2536_v50 = vadd.f32 %v6909_v23, %v2473_v17  ;;  %4579 = vpow2.f32 %v2134_v21  ;;  %v2285_v30 = vsub.f32 %v1441_v33, %v1655_v15  ;;  %v5122_v37 = vld [vmem:[%s5918_s20 + $0x110] sm:$0xff]  ;;  %v5124_v33 = vld [vmem:[%s5926_s8 + $0x110] sm:$0xff]  ;;  %v5125_v15 = vld [vmem:[%s5936_s0 + $0x18] sm:$0xff] }
 0x212   : > { %v2944_v57 = vadd.f32 %v2881_v45, %v2755_v35  ;;  %v6922_v25 = vpop.eup %4565  ;;  %4581 = vpow2.f32 %v2323_v9  ;;  %v1818_v46 = vmul.f32 1.442695, %v1718_v43  ;;  %v2007_v49 = vmul.f32 1.442695, %v1907_v19  ;;  %v5127_v19 = vld [vmem:[%s5936_s0 + $0x110] sm:$0xff] }
 0x213   : > { %v2786_v34 = vmul.f32 %v5122_v37, %v2723_v55  ;;  %v6925_v61 = vpop.eup %4567  ;;  %v2599_v54 = vadd.f32 %v6919_v14, %v2536_v50  ;;  %v2196_v18 = vmul.f32 1.442695, %v2096_v42  ;;  %v2385_v62 = vmul.f32 1.442695, %v2285_v30  ;;  %v9783_v20 = vld [vmem:[#allocation44_spill] sm:$0xff]  ;;  %v9784_v30 = vld [vmem:[#allocation45_spill] sm:$0xff] }
 0x214   : > { %v3070_v48 = vmul.f32 %v5123_v32, %v3007_v7  ;;  %960 = vadd.xlane.f32.xlu1 %v9781_v63  ;;  %v6930_v26 = vpop.eup %4569  ;;  %v2442_v3 = vadd.f32 %v6925_v61, %v6922_v25  ;;  %4583 = vpow2.f32 %v1818_v46  ;;  %v2912_v55 = vmul.f32 %v5124_v33, %v6878_v56  ;;  %v6939_v21 = vpop.xlane.xlu1 %940  ;;  %v5126_v7 = vld [vmem:[%s5933_s21 + $0x110] sm:$0xff]  ;;  %v9785_v37 = vld [vmem:[#allocation20_spill] sm:$0xff] }
 0x215   : > { %v3038_v5 = vmul.f32 %v6832_v51, %v6741_v29  ;;  %898 = vadd.xlane.f32.xlu0 %v9782_v1  ;;  %v6941_v40 = vpop.xlane.xlu0 %878  ;;  %v6943_v35 = vpop.eup %4571  ;;  %4585 = vrcp.f32 %v2599_v54  ;;  %v3259_v60 = vmul.f32 %v5125_v15, %v3196_v12  ;;  %v3227_v45 = vmul.f32 %v6832_v51, %v6751_v22 }
 0x216   : > { %v3133_v9 = vadd.f32 %v3070_v48, %v2944_v57  ;;  %v6948_v56 = vpop.eup %4573  ;;  %v2505_v29 = vadd.f32 %v6930_v26, %v2442_v3  ;;  %4587 = vpow2.f32 %v2007_v49  ;;  %v2975_v17 = vadd.f32 %v2912_v55, %v2786_v34 }
 0x217   : > { %v3101_v44 = vmul.f32 %v5126_v7, %v3038_v5  ;;  %4589 = vpow2.f32 %v2196_v18  ;;  %v3290_v42 = vmul.f32 %v5127_v19, %v3227_v45  ;;  %v1593_v12 = vmax.f32 %v1530_v31, %v6917_v4  ;;  %v9786_v5 = vld [vmem:[#allocation46_spill] sm:$0xff] }
 0x218   : > { %v3322_v43 = vadd.f32 %v3259_v60, %v3133_v9  ;;  %1462 = vadd.xlane.f32.xlu1 %v9783_v20  ;;  %v2568_v22 = vadd.f32 %v6948_v56, %v2505_v29  ;;  %4591 = vpow2.f32 %v2385_v62  ;;  %v1531_v50 = vmax.f32 %v6915_v28, %v6939_v21  ;;  %v1443_v57 = vpop.xlane.xlu1 %1442 }
 0x219   : > { %v3164_v51 = vadd.f32 %v3101_v44, %v2975_v17  ;;  %1400 = vadd.xlane.f32.xlu0 %v9784_v30  ;;  %v1381_v46 = vpop.xlane.xlu0 %1380  ;;  %v6962_v49 = vpop.eup %4575  ;;  %v1500_v34 = vmax.f32 %v9785_v37, %v6941_v40  ;;  %v1656_v31 = vmax.f32 %v1593_v12, %v1443_v57  ;;  %v2693_v18 = vmul.f32 %v6900_v8, %v6799_v24  ;;  %v9787_v17 = vld [vmem:[#allocation47_spill] sm:$0xff]  ;;  %v9788_v12 = vld [vmem:[#allocation48_spill] sm:$0xff]  ;;  %v5129_v30 = vld [vmem:[%s5926_s8 + $0x20] sm:$0xff] }
 0x21a   : > { %4177 = vmatmul.mubr.f32.gmra.mrb[6].mxu0 %v3322_v43  ;;  %v1625_v54 = vmax.f32 %v6897_v52, %v1381_v46  ;;  %v6969_v62 = vpop.eup %4577  ;;  %4593 = vrcp.f32 %v2568_v22  ;;  %v2819_v48 = vmul.f32 %v6900_v8, %v6803_v6  ;;  %v3008_v63 = vmul.f32 %v6900_v8, %v6809_v36 }
 0x21b   : > { %v3353_v32 = vadd.f32 %v3290_v42, %v3164_v51  ;;  %4179 = vmatprep.mubr.msk.f32.mxu0 %vm5593_vm0, %v9771_v39  ;;  %v6977_v3 = vpop.eup %4579  ;;  %v2443_v52 = vadd.f32 %v6969_v62, %v6962_v49  ;;  %v1719_v24 = vsub.f32 %v6845_v13, %v1656_v31  ;;  %v1908_v33 = vsub.f32 %v6869_v58, %v1656_v31 }
 0x21c   : > { %v2097_v55 = vsub.f32 %v6917_v4, %v1656_v31  ;;  %1212 = vadd.xlane.f32.xlu1 %v9786_v5  ;;  %v6985_v1 = vpop.eup %4581  ;;  %v2286_v6 = vsub.f32 %v1443_v57, %v1656_v31  ;;  %v1688_v9 = vsub.f32 %v9774_v41, %v1625_v54  ;;  %v1877_v36 = vsub.f32 %v6843_v59, %v1625_v54  ;;  %v6990_v60 = vpop.xlane.xlu1 %1192 }
 0x21d   : > { %4270 = vmatmul.mubr.f32.gmra.mrb[4].mxu1 %v3353_v32  ;;  %v2066_v15 = vsub.f32 %v6889_v16, %v1625_v54  ;;  %v6992_v45 = vpop.xlane.xlu0 %1130  ;;  %v2506_v13 = vadd.f32 %v6977_v3, %v2443_v52  ;;  %v1820_v58 = vmul.f32 1.442695, %v1719_v24  ;;  %v2009_v4 = vmul.f32 1.442695, %v1908_v33  ;;  %1150 = vadd.xlane.f32.xlu0 %v9787_v17  ;;  %v5131_v24 = vld [vmem:[%s5936_s0 + $0x20] sm:$0xff] }
 0x21e   : > { %v3197_v29 = vmul.f32 %v6900_v8, %v6817_v10  ;;  %4272 = vmatprep.mubr.msk.f32.mxu1 %vm5593_vm0, %v9771_v39  ;;  %v7000_v59 = vpop.eup %4583  ;;  %v2198_v41 = vmul.f32 1.442695, %v2097_v55  ;;  %v2387_v16 = vmul.f32 1.442695, %v2286_v6  ;;  %v1758_v7 = vmul.f32 1.442695, %v1688_v9 }
 0x21f   : > { %v2255_v44 = vsub.f32 %v1381_v46, %v1625_v54  ;;  %v7002_v43 = vpop.eup %4585  ;;  %v2569_v19 = vadd.f32 %v6985_v1, %v2506_v13  ;;  %4595 = vpow2.f32 %v1820_v58  ;;  %v1947_v42 = vmul.f32 1.442695, %v1877_v36  ;;  %v5128_v10 = vld [vmem:[%s5918_s20 + $0x20] sm:$0xff]  ;;  %v9789_v55 = vld [vmem:[#allocation49_spill] sm:$0xff]  ;;  %v9790_v13 = vld [vmem:[#allocation50_spill] sm:$0xff] }
 0x220   : > { %v2756_v8 = vmul.f32 %v5128_v10, %v2693_v18  ;;  %900 = vadd.xlane.f32.xlu1 %v9788_v12  ;;  %v7007_v20 = vpop.eup %4587  ;;  %4597 = vpow2.f32 %v2009_v4  ;;  %v2136_v22 = vmul.f32 1.442695, %v2066_v15  ;;  %v2882_v57 = vmul.f32 %v5129_v30, %v2819_v48  ;;  %v7010_v46 = vpop.xlane.xlu1 %880  ;;  %v5130_v18 = vld [vmem:[%s5933_s21 + $0x20] sm:$0xff]  ;;  %v5132_v4 = vld [vmem:[%s5918_s20 + $0x118] sm:$0xff] }
 0x221   : > { %v2325_v51 = vmul.f32 1.442695, %v2255_v44  ;;  %v7012_v31 = vpop.xlane.xlu0 %690  ;;  %v7014_v54 = vpop.eup %4589  ;;  %4599 = vrcp.f32 %v2569_v19  ;;  %v2474_v32 = vadd.f32 %v7007_v20, %v7000_v59  ;;  %v3071_v52 = vmul.f32 %v5130_v18, %v3008_v63  ;;  %710 = vadd.xlane.f32.xlu0 %v9789_v55  ;;  %v9791_v44 = vld [vmem:[#allocation51_spill] sm:$0xff] }
 0x222   : > { %v3260_v33 = vmul.f32 %v5131_v24, %v3197_v29  ;;  %v7021_v5 = vpop.eup %4591  ;;  %4601 = vpow2.f32 %v2198_v41  ;;  %v2945_v48 = vadd.f32 %v2882_v57, %v2756_v8  ;;  %v1594_v6 = vmax.f32 %v1531_v50, %v6990_v60  ;;  %v5134_v10 = vld [vmem:[%s5933_s21 + $0x118] sm:$0xff] }
 0x223   : > { %v2724_v9 = vmul.f32 %v6943_v35, %v6830_v47  ;;  %v2537_v36 = vadd.f32 %v7014_v54, %v2474_v32  ;;  %4603 = vpow2.f32 %v2387_v16  ;;  %v2850_v63 = vmul.f32 %v6943_v35, %v6836_v38  ;;  %v5133_v16 = vld [vmem:[%s5926_s8 + $0x118] sm:$0xff]  ;;  %v9792_v30 = vld [vmem:[#allocation19_spill] sm:$0xff] }
 0x224   : > { %v3039_v15 = vmul.f32 %v6943_v35, %v6850_v53  ;;  %1402 = vadd.xlane.f32.xlu1 %v9790_v13  ;;  %v7035_v58 = vpop.eup %4593  ;;  %4605 = vpow2.f32 %v1758_v7  ;;  %v3134_v50 = vadd.f32 %v3071_v52, %v2945_v48  ;;  %v3228_v29 = vmul.f32 %v6943_v35, %v6860_v0  ;;  %v1383_v17 = vpop.xlane.xlu1 %1382  ;;  %v5135_v0 = vld [vmem:[%s5936_s0 + $0x118] sm:$0xff] }
 0x225   : > { %v2787_v47 = vmul.f32 %v5132_v4, %v2724_v9  ;;  %v7040_v41 = vpop.xlane.xlu0 %942  ;;  %v2600_v38 = vadd.f32 %v7021_v5, %v2537_v36  ;;  %4607 = vpow2.f32 %v1947_v42  ;;  %v1563_v53 = vmax.f32 %v1500_v34, %v6992_v45  ;;  %962 = vadd.xlane.f32.xlu0 %v9791_v44  ;;  %v9793_v32 = vld [vmem:[#allocation52_spill] sm:$0xff]  ;;  %v9794_v36 = vld [vmem:[#allocation53_spill] sm:$0xff] }
 0x226   : > { %v2913_v7 = vmul.f32 %v5133_v16, %v2850_v63  ;;  %4609 = vpow2.f32 %v2136_v22  ;;  %v3323_v19 = vadd.f32 %v3260_v33, %v3134_v50  ;;  %v3102_v8 = vmul.f32 %v5134_v10, %v3039_v15  ;;  %v5136_v13 = vld [vmem:[%s5918_s20 + $0x28] sm:$0xff] }
 0x227   : > { %v3291_v35 = vmul.f32 %v5135_v0, %v3228_v29  ;;  %4611 = vrcp.f32 %v2600_v38  ;;  %v1501_v42 = vmax.f32 %v9792_v30, %v7010_v46  ;;  %v1626_v57 = vmax.f32 %v1563_v53, %v1383_v17  ;;  %v9795_v29 = vld [vmem:[#allocation54_spill] sm:$0xff]  ;;  %v9796_v0 = vld [vmem:[#allocation55_spill] sm:$0xff] }
 0x228   : > { %v2976_v12 = vadd.f32 %v2913_v7, %v2787_v47  ;;  %1152 = vadd.xlane.f32.xlu1 %v9793_v32  ;;  %4613 = vpow2.f32 %v2325_v51  ;;  %4180 = vmatmul.mubr.f32.gmra.mrb[8].mxu0 %v3323_v19  ;;  %v1532_v34 = vmax.f32 %v7012_v31, %v7040_v41  ;;  %v7056_v22 = vpop.xlane.xlu1 %1132  ;;  %v2694_v52 = vmul.f32 %v7035_v58, %v6922_v25 }
 0x229   : > { %v1445_v18 = vpop.xlane.xlu0 %1444  ;;  %v2820_v24 = vmul.f32 %v7035_v58, %v6925_v61  ;;  %v7062_v33 = vpop.eup %4595  ;;  %v1689_v48 = vsub.f32 %v9785_v37, %v1626_v57  ;;  %v1878_v51 = vsub.f32 %v6941_v40, %v1626_v57  ;;  %v2067_v9 = vsub.f32 %v6992_v45, %v1626_v57  ;;  %1464 = vadd.xlane.f32.xlu0 %v9794_v36  ;;  %v5138_v36 = vld [vmem:[%s5933_s21 + $0x28] sm:$0xff] }
 0x22a   : > { %v3165_v55 = vadd.f32 %v3102_v8, %v2976_v12  ;;  %v7068_v63 = vpop.eup %4597  ;;  %v2256_v15 = vsub.f32 %v1383_v17, %v1626_v57  ;;  %4182 = vmatprep.mubr.msk.f32.mxu0 %vm5593_vm0, %v9771_v39  ;;  %v1657_v25 = vmax.f32 %v1594_v6, %v1445_v18  ;;  %v2757_v61 = vmul.f32 %v5136_v13, %v2694_v52  ;;  %v5137_v12 = vld [vmem:[%s5926_s8 + $0x28] sm:$0xff] }
 0x22b   : > { %v3009_v50 = vmul.f32 %v7035_v58, %v6930_v26  ;;  %v7075_v4 = vpop.eup %4599  ;;  %v2475_v40 = vadd.f32 %v7068_v63, %v7062_v33  ;;  %v1760_v45 = vmul.f32 1.442695, %v1689_v48  ;;  %v1949_v47 = vmul.f32 1.442695, %v1878_v51 }
 0x22c   : > { %v3354_v37 = vadd.f32 %v3291_v35, %v3165_v55  ;;  %712 = vadd.xlane.f32.xlu1 %v9795_v29  ;;  %v7080_v17 = vpop.eup %4601  ;;  %v2138_v38 = vmul.f32 1.442695, %v2067_v9  ;;  %v2327_v53 = vmul.f32 1.442695, %v2256_v15  ;;  %v1720_v6 = vsub.f32 %v6915_v28, %v1657_v25  ;;  %v7084_v26 = vpop.xlane.xlu1 %692  ;;  %v9797_v55 = vld [vmem:[#allocation56_spill] sm:$0xff] }
 0x22d   : > { %v1909_v16 = vsub.f32 %v6939_v21, %v1657_v25  ;;  %v7086_v7 = vpop.xlane.xlu0 %1194  ;;  %v7088_v44 = vpop.eup %4603  ;;  %v2538_v19 = vadd.f32 %v7080_v17, %v2475_v40  ;;  %4615 = vpow2.f32 %v1760_v45  ;;  %v2098_v10 = vsub.f32 %v6990_v60, %v1657_v25  ;;  %1214 = vadd.xlane.f32.xlu0 %v9796_v0 }
 0x22e   : > { %4273 = vmatmul.mubr.f32.gmra.mrb[6].mxu1 %v3354_v37  ;;  %v2287_v8 = vsub.f32 %v1445_v18, %v1657_v25  ;;  %v7093_v35 = vpop.eup %4605  ;;  %4617 = vpow2.f32 %v1949_v47  ;;  %v1822_v28 = vmul.f32 1.442695, %v1720_v6  ;;  %v2883_v57 = vmul.f32 %v5137_v12, %v2820_v24  ;;  %v5141_v6 = vld [vmem:[%s5926_s8 + $0x120] sm:$0xff] }
 0x22f   : > { %4275 = vmatprep.mubr.msk.f32.mxu1 %vm5593_vm0, %v9771_v39  ;;  %v2011_v21 = vmul.f32 1.442695, %v1909_v16  ;;  %v7098_v32 = vpop.eup %4607  ;;  %v2601_v52 = vadd.f32 %v7088_v44, %v2538_v19  ;;  %4619 = vpow2.f32 %v2138_v38  ;;  %v2200_v60 = vmul.f32 1.442695, %v2098_v10  ;;  %v789_v19 = vld [vmem:[%s5926_s8 + $0x1a8] sm:$0xff] }
 0x230   : > { %v2389_v18 = vmul.f32 1.442695, %v2287_v8  ;;  %964 = vadd.xlane.f32.xlu1 %v9797_v55  ;;  %v7102_v48 = vpop.eup %4609  ;;  %v2444_v51 = vadd.f32 %v7098_v32, %v7093_v35  ;;  %4621 = vpow2.f32 %v2327_v53  ;;  %v2946_v9 = vadd.f32 %v2883_v57, %v2757_v61  ;;  %v7107_v24 = vpop.xlane.xlu1 %944  ;;  %v5142_v57 = vld [vmem:[%s5933_s21 + $0x120] sm:$0xff] }
 0x231   : > { %v3072_v15 = vmul.f32 %v5138_v36, %v3009_v50  ;;  %v7109_v25 = vpop.xlane.xlu0 %882  ;;  %v7111_v13 = vpop.eup %4611  ;;  %4623 = vrcp.f32 %v2601_v52  ;;  %v3198_v40 = vmul.f32 %v7035_v58, %v6948_v56  ;;  %v2725_v37 = vmul.f32 %v7002_v43, %v6891_v11  ;;  %v9798_v50 = vld [vmem:[#allocation57_spill] sm:$0xff]  ;;  %v5139_v56 = vld [vmem:[%s5936_s0 + $0x28] sm:$0xff]  ;;  %v5140_v11 = vld [vmem:[%s5918_s20 + $0x120] sm:$0xff] }
 0x232   : > { %v2851_v61 = vmul.f32 %v7002_v43, %v6894_v2  ;;  %902 = vadd.xlane.f32.xlu0 %v9798_v50  ;;  %v7120_v45 = vpop.eup %4613  ;;  %v2507_v47 = vadd.f32 %v7102_v48, %v2444_v51  ;;  %4625 = vpow2.f32 %v1822_v28  ;;  %v3040_v38 = vmul.f32 %v7002_v43, %v6909_v23  ;;  %v9799_v2 = vld [vmem:[#allocation58_spill] sm:$0xff]  ;;  %v9800_v51 = vld [vmem:[#allocation59_spill] sm:$0xff] }
 0x233   : > { %v3135_v29 = vadd.f32 %v3072_v15, %v2946_v9  ;;  %4627 = vpow2.f32 %v2011_v21  ;;  %v3261_v58 = vmul.f32 %v5139_v56, %v3198_v40  ;;  %v2788_v53 = vmul.f32 %v5140_v11, %v2725_v37  ;;  %v9801_v15 = vld [vmem:[#allocation22_spill] sm:$0xff] }
 0x234   : > { %v2914_v16 = vmul.f32 %v5141_v6, %v2851_v61  ;;  %1466 = vadd.xlane.f32.xlu1 %v9799_v2  ;;  %v2570_v10 = vadd.f32 %v7120_v45, %v2507_v47  ;;  %v1564_v8 = vmax.f32 %v1501_v42, %v7056_v22  ;;  %4629 = vpow2.f32 %v2200_v60  ;;  %v1447_v0 = vpop.xlane.xlu1 %1446  ;;  %v5143_v42 = vld [vmem:[%s5936_s0 + $0x120] sm:$0xff] }
 0x235   : > { %v3229_v23 = vmul.f32 %v7002_v43, %v6919_v14  ;;  %v7137_v28 = vpop.xlane.xlu0 %1384  ;;  %v3324_v21 = vadd.f32 %v3261_v58, %v3135_v29  ;;  %v3103_v52 = vmul.f32 %v5142_v57, %v3040_v38  ;;  %v1595_v55 = vmax.f32 %v1532_v34, %v7086_v7  ;;  %v7151_v43 = vld [vmem:[%s9659_s4] ss:$0 sm:$0xff] }
 0x236   : > { %v2977_v12 = vadd.f32 %v2914_v16, %v2788_v53  ;;  %1404 = vadd.xlane.f32.xlu0 %v9800_v51  ;;  %4631 = vpow2.f32 %v2389_v18  ;;  %v1533_v14 = vmax.f32 %v7084_v26, %v7107_v24  ;;  %v7154_v9 = vmul.f32 %v7151_v43, %v789_v19  ;;  %v9802_v38 = vld [vmem:[#allocation60_spill] sm:$0xff] }
 0x237   : > { %v3292_v60 = vmul.f32 %v5143_v42, %v3229_v23  ;;  %v7156_v36 = vpop.eup %4615  ;;  %4183 = vmatmul.mubr.f32.gmra.mrb[10].mxu0 %v3324_v21  ;;  %v1502_v18 = vmax.f32 %v9801_v15, %v7109_v25  ;;  %v1658_v40 = vmax.f32 %v1595_v55, %v1447_v0  ;;  %v1627_v37 = vmax.f32 %v1564_v8, %v7137_v28 }
 0x238   : > { %v3166_v34 = vadd.f32 %v3103_v52, %v2977_v12  ;;  %v7161_v61 = vpop.eup %4617  ;;  %4633 = vrcp.f32 %v2570_v10  ;;  %4185 = vmatprep.mubr.msk.f32.mxu0 %vm5593_vm0, %v9771_v39  ;;  %v2695_v50 = vmul.f32 %v7075_v4, %v6962_v49  ;;  %v2821_v47 = vmul.f32 %v7075_v4, %v6969_v62  ;;  %1216 = vadd.xlane.f32.xlu1 %v9802_v38  ;;  %v7172_v56 = vpop.xlane.xlu1 %1196  ;;  %v9803_v62 = vld [vmem:[#allocation61_spill] sm:$0xff] }
 0x239   : > { %v3010_v29 = vmul.f32 %v7075_v4, %v6977_v3  ;;  %v7174_v58 = vpop.xlane.xlu0 %1134  ;;  %v7176_v11 = vpop.eup %4619  ;;  %v2445_v53 = vadd.f32 %v7161_v61, %v7156_v36  ;;  %v1721_v49 = vsub.f32 %v7012_v31, %v1658_v40  ;;  %v1910_v16 = vsub.f32 %v7040_v41, %v1658_v40 }
 0x23a   : > { %v3355_v6 = vadd.f32 %v3292_v60, %v3166_v34  ;;  %1154 = vadd.xlane.f32.xlu0 %v9803_v62  ;;  %v7183_v2 = vpop.eup %4621  ;;  %v2099_v3 = vsub.f32 %v7086_v7, %v1658_v40  ;;  %v2288_v19 = vsub.f32 %v1447_v0, %v1658_v40  ;;  %v1690_v10 = vsub.f32 %v9792_v30, %v1627_v37  ;;  %v9805_v34 = vld [vmem:[#allocation63_spill] sm:$0xff] }
 0x23b   : > { %v1879_v8 = vsub.f32 %v7010_v46, %v1627_v37  ;;  %v7188_v23 = vpop.eup %4623  ;;  %v2508_v21 = vadd.f32 %v7176_v11, %v2445_v53  ;;  %v1824_v12 = vmul.f32 1.442695, %v1721_v49  ;;  %v2013_v31 = vmul.f32 1.442695, %v1910_v16  ;;  %v9804_v46 = vld [vmem:[#allocation62_spill] sm:$0xff] }
 0x23c   : > { %4276 = vmatmul.mubr.f32.gmra.mrb[8].mxu1 %v3355_v6  ;;  %v2068_v41 = vsub.f32 %v7056_v22, %v1627_v37  ;;  %v7192_v57 = vpop.eup %4625  ;;  %v2202_v52 = vmul.f32 1.442695, %v2099_v3  ;;  %v2391_v55 = vmul.f32 1.442695, %v2288_v19  ;;  %v2257_v7 = vsub.f32 %v7137_v28, %v1627_v37  ;;  %904 = vadd.xlane.f32.xlu1 %v9804_v46  ;;  %v7200_v0 = vpop.xlane.xlu1 %884  ;;  %v5145_v37 = vld [vmem:[%s5918_s20 + $0x30] sm:$0xff]  ;;  %v5146_v6 = vld [vmem:[%s5926_s8 + $0x30] sm:$0xff] }
 0x23d   : > { %v3199_v30 = vmul.f32 %v7075_v4, %v6985_v1  ;;  %4278 = vmatprep.mubr.msk.f32.mxu1 %vm5593_vm0, %v9771_v39  ;;  %v7202_v51 = vpop.xlane.xlu0 %694  ;;  %v7204_v22 = vpop.eup %4627  ;;  %v2571_v42 = vadd.f32 %v7183_v2, %v2508_v21  ;;  %4635 = vpow2.f32 %v1824_v12  ;;  %v1762_v28 = vmul.f32 1.442695, %v1690_v10  ;;  %v5147_v16 = vld [vmem:[%s5933_s21 + $0x30] sm:$0xff]  ;;  %v5148_v10 = vld [vmem:[%s5936_s0 + $0x30] sm:$0xff] }
 0x23e   : > { %v1951_v60 = vmul.f32 1.442695, %v1879_v8  ;;  %714 = vadd.xlane.f32.xlu0 %v9805_v34  ;;  %v7208_v1 = vpop.eup %4629  ;;  %v2476_v4 = vadd.f32 %v7204_v22, %v7192_v57  ;;  %4637 = vpow2.f32 %v2013_v31  ;;  %v2140_v40 = vmul.f32 1.442695, %v2068_v41  ;;  %v9806_v12 = vld [vmem:[#allocation64_spill] sm:$0xff] }
 0x23f   : > { %v2758_v38 = vmul.f32 %v5145_v37, %v2695_v50  ;;  %4639 = vrcp.f32 %v2571_v42  ;;  %v2329_v53 = vmul.f32 1.442695, %v2257_v7  ;;  %v2884_v49 = vmul.f32 %v5146_v6, %v2821_v47  ;;  %v5149_v42 = vld [vmem:[%s5918_s20 + $0x128] sm:$0xff]  ;;  %v1292_v37 = vld [vmem:[%s5936_s0 + $0x1a0] sm:$0xff] }
 0x240   : > { %v3073_v62 = vmul.f32 %v5147_v16, %v3010_v29  ;;  %v7215_v3 = vpop.eup %4631  ;;  %v2539_v19 = vadd.f32 %v7208_v1, %v2476_v4  ;;  %4641 = vpow2.f32 %v2202_v52  ;;  %v3262_v8 = vmul.f32 %v5148_v10, %v3199_v30  ;;  %1406 = vadd.xlane.f32.xlu1 %v9806_v12  ;;  %v7221_v50 = vpop.xlane.xlu1 %1386  ;;  %v9807_v52 = vld [vmem:[#allocation65_spill] sm:$0xff]  ;;  %v5152_v10 = vld [vmem:[%s5936_s0 + $0x128] sm:$0xff] }
 0x241   : > { %v1565_v21 = vmax.f32 %v1502_v18, %v7174_v58  ;;  %v7223_v31 = vpop.xlane.xlu0 %946  ;;  %4643 = vpow2.f32 %v2391_v55  ;;  %v2947_v47 = vadd.f32 %v2884_v49, %v2758_v38  ;;  %v2726_v29 = vmul.f32 %v7111_v13, %v7000_v59  ;;  %v758_v18 = vld [vmem:[%s5926_s8 + $0xb0] sm:$0xff]  ;;  %v5151_v38 = vld [vmem:[%s5933_s21 + $0x128] sm:$0xff] }
 0x242   : > { %v2852_v41 = vmul.f32 %v7111_v13, %v7007_v20  ;;  %966 = vadd.xlane.f32.xlu0 %v9807_v52  ;;  %v7231_v7 = vpop.eup %4633  ;;  %v2602_v30 = vadd.f32 %v7215_v3, %v2539_v19  ;;  %4645 = vpow2.f32 %v1762_v28  ;;  %v3041_v55 = vmul.f32 %v7111_v13, %v7014_v54  ;;  %v5150_v20 = vld [vmem:[%s5926_s8 + $0x128] sm:$0xff] }
 0x243   : > { %v3230_v46 = vmul.f32 %v7111_v13, %v7021_v5  ;;  %4647 = vpow2.f32 %v1951_v60  ;;  %v3136_v59 = vadd.f32 %v3073_v62, %v2947_v47  ;;  %v2789_v34 = vmul.f32 %v5149_v42, %v2726_v29  ;;  %v9808_v54 = vld [vmem:[#allocation66_spill] sm:$0xff]  ;;  %v9809_v19 = vld [vmem:[#allocation67_spill] sm:$0xff] }
 0x244   : > { %v2915_v4 = vmul.f32 %v5150_v20, %v2852_v41  ;;  %4649 = vrcp.f32 %v2602_v30  ;;  %v1596_v28 = vmax.f32 %v1533_v14, %v7172_v56  ;;  %v3104_v6 = vmul.f32 %v5151_v38, %v3041_v55  ;;  %1156 = vadd.xlane.f32.xlu1 %v9808_v54  ;;  %v7247_v49 = vpop.xlane.xlu1 %1136 }
 0x245   : > { %v1449_v5 = vpop.xlane.xlu0 %1448  ;;  %v821_v13 = vmul.f32 %v7151_v43, %v758_v18  ;;  %4651 = vpow2.f32 %v2140_v40  ;;  %v3325_v60 = vadd.f32 %v3262_v8, %v3136_v59  ;;  %v1628_v62 = vmax.f32 %v1565_v21, %v7221_v50 }
 0x246   : > { %v2978_v16 = vadd.f32 %v2915_v4, %v2789_v34  ;;  %1468 = vadd.xlane.f32.xlu0 %v9809_v19  ;;  %4653 = vpow2.f32 %v2329_v53  ;;  %v3293_v12 = vmul.f32 %v5152_v10, %v3230_v46  ;;  %v1659_v14 = vmax.f32 %v1596_v28, %v1449_v5 }
 0x247   : > { %v7254_v47 = vmul.f32 %v7151_v43, %v1292_v37  ;;  %v7256_v29 = vpop.eup %4635  ;;  %4186 = vmatmul.mubr.f32.gmra.mrb[12].mxu0 %v3325_v60  ;;  %v1691_v52 = vsub.f32 %v9801_v15, %v1628_v62  ;;  %v1880_v40 = vsub.f32 %v7109_v25, %v1628_v62  ;;  %v2069_v8 = vsub.f32 %v7174_v58, %v1628_v62 }
 0x248   : > { %v3167_v41 = vadd.f32 %v3104_v6, %v2978_v16  ;;  %v7261_v21 = vpop.eup %4637  ;;  %v2258_v53 = vsub.f32 %v7221_v50, %v1628_v62  ;;  %4188 = vmatprep.mubr.msk.f32.mxu0 %vm5593_vm0, %v9771_v39  ;;  %v1722_v18 = vsub.f32 %v7084_v26, %v1659_v14  ;;  %v1911_v30 = vsub.f32 %v7107_v24, %v1659_v14  ;;  %v7269_v46 = vpop.xlane.xlu1 %696  ;;  %v9810_v50 = vld [vmem:[#allocation68_spill] sm:$0xff]  ;;  %v9811_v24 = vld [vmem:[#allocation21_spill] sm:$0xff] }
 0x249   : > { %v2100_v55 = vsub.f32 %v7172_v56, %v1659_v14  ;;  %v7271_v15 = vpop.eup %4639  ;;  %v2477_v25 = vadd.f32 %v7261_v21, %v7256_v29  ;;  %v1764_v59 = vmul.f32 1.442695, %v1691_v52  ;;  %v1953_v42 = vmul.f32 1.442695, %v1880_v40  ;;  %716 = vadd.xlane.f32.xlu1 %v9810_v50  ;;  %v7277_v34 = vpop.xlane.xlu0 %1198  ;;  %v5153_v40 = vld [vmem:[%s5918_s20 + $0x38] sm:$0xff] }
 0x24a   : > { %v3356_v58 = vadd.f32 %v3293_v12, %v3167_v41  ;;  %1218 = vadd.xlane.f32.xlu0 %v6672_v27  ;;  %v7279_v26 = vpop.eup %4641  ;;  %v1503_v56 = vmax.f32 %v9811_v24, %v7200_v0  ;;  %v2142_v20 = vmul.f32 1.442695, %v2069_v8  ;;  %v1534_v4 = vmax.f32 %v7202_v51, %v7223_v31 }
 0x24b   : > { %v2289_v37 = vsub.f32 %v1449_v5, %v1659_v14  ;;  %v7285_v28 = vpop.eup %4643  ;;  %v2540_v38 = vadd.f32 %v7279_v26, %v2477_v25  ;;  %4655 = vpow2.f32 %v1764_v59  ;;  %v2331_v6 = vmul.f32 1.442695, %v2258_v53  ;;  %v5154_v53 = vld [vmem:[%s5926_s8 + $0x38] sm:$0xff] }
 0x24c   : > { %4279 = vmatmul.mubr.f32.gmra.mrb[10].mxu1 %v3356_v58  ;;  %v1826_v27 = vmul.f32 1.442695, %v1722_v18  ;;  %v7288_v54 = vpop.eup %4645  ;;  %4657 = vpow2.f32 %v1953_v42  ;;  %v2015_v60 = vmul.f32 1.442695, %v1911_v30  ;;  %v2696_v16 = vmul.f32 %v7231_v7, %v7093_v35  ;;  %v7296_v62 = vpop.xlane.xlu1 %948  ;;  %v5156_v42 = vld [vmem:[%s5936_s0 + $0x38] sm:$0xff] }
 0x24d   : > { %4281 = vmatprep.mubr.msk.f32.mxu1 %vm5593_vm0, %v9771_v39  ;;  %v2822_v5 = vmul.f32 %v7231_v7, %v7098_v32  ;;  %v7298_v19 = vpop.eup %4647  ;;  %v2204_v10 = vmul.f32 1.442695, %v2100_v55  ;;  %v2393_v12 = vmul.f32 1.442695, %v2289_v37  ;;  %v3011_v14 = vmul.f32 %v7231_v7, %v7102_v48  ;;  %968 = vadd.xlane.f32.xlu1 %v7154_v9  ;;  %v7305_v35 = vpop.xlane.xlu0 %886  ;;  %v5155_v9 = vld [vmem:[%s5933_s21 + $0x38] sm:$0xff] }
 0x24e   : > { %v3200_v41 = vmul.f32 %v7231_v7, %v7120_v45  ;;  %906 = vadd.xlane.f32.xlu0 %v821_v13  ;;  %v7307_v52 = vpop.eup %4649  ;;  %v2446_v32 = vadd.f32 %v7298_v19, %v7288_v54  ;;  %4659 = vpow2.f32 %v2142_v20  ;;  %v2759_v8 = vmul.f32 %v5153_v40, %v2696_v16  ;;  %v5157_v20 = vld [vmem:[%s5918_s20 + $0x130] sm:$0xff]  ;;  %v5158_v16 = vld [vmem:[%s5926_s8 + $0x130] sm:$0xff] }
 0x24f   : > { %v2885_v18 = vmul.f32 %v5154_v53, %v2822_v5  ;;  %v7313_v48 = vpop.eup %4651  ;;  %v2603_v45 = vadd.f32 %v7285_v28, %v2540_v38  ;;  %4661 = vpow2.f32 %v2331_v6  ;;  %v3074_v7 = vmul.f32 %v5155_v9, %v3011_v14  ;;  %v1261_v5 = vld [vmem:[%s5936_s0 + $0xa8] sm:$0xff] }
 0x250   : > { %v2727_v13 = vmul.f32 %v7188_v23, %v7062_v33  ;;  %v7319_v30 = vpop.eup %4653  ;;  %v2509_v55 = vadd.f32 %v7313_v48, %v2446_v32  ;;  %4663 = vpow2.f32 %v1826_v27  ;;  %v2853_v58 = vmul.f32 %v7188_v23, %v7068_v63  ;;  %v7324_v59 = vpop.xlane.xlu1 %1450  ;;  %v5159_v32 = vld [vmem:[%s5933_s21 + $0x130] sm:$0xff] }
 0x251   : > { %v2948_v25 = vadd.f32 %v2885_v18, %v2759_v8  ;;  %4665 = vpow2.f32 %v2015_v60  ;;  %v3263_v50 = vmul.f32 %v5156_v42, %v3200_v41  ;;  %v3042_v33 = vmul.f32 %v7188_v23, %v7080_v17  ;;  %1470 = vadd.xlane.f32.xlu1 %v7254_v47  ;;  %v7331_v38 = vpop.xlane.xlu0 %1388 }
 0x252   : > { %v2790_v37 = vmul.f32 %v5157_v20, %v2727_v13  ;;  %v2572_v6 = vadd.f32 %v7319_v30, %v2509_v55  ;;  %v2916_v63 = vmul.f32 %v5158_v16, %v2853_v58  ;;  %v3231_v60 = vmul.f32 %v7188_v23, %v7088_v44 }
 0x253   : > { %v3137_v27 = vadd.f32 %v3074_v7, %v2948_v25  ;;  %4667 = vrcp.f32 %v2603_v45  ;;  %v1566_v14 = vmax.f32 %v1503_v56, %v7247_v49  ;;  %v1597_v41 = vmax.f32 %v1534_v4, %v7277_v34  ;;  %v5160_v45 = vld [vmem:[%s5936_s0 + $0x130] sm:$0xff] }
 0x254   : > { %4669 = vpow2.f32 %v2204_v10  ;;  %v2979_v47 = vadd.f32 %v2916_v63, %v2790_v37  ;;  %v3105_v40 = vmul.f32 %v5159_v32, %v3042_v33  ;;  %v7341_v8 = vpop.xlane.xlu1 %1200  ;;  %v1324_v18 = vmul.f32 %v7151_v43, %v1261_v5  ;;  %v1010_v32 = vld [vmem:[%s5933_s21 + $0xb0] sm:$0xff] }
 0x255   : > { %v3326_v17 = vadd.f32 %v3263_v50, %v3137_v27  ;;  %v7343_v53 = vpop.eup %4655  ;;  %4671 = vpow2.f32 %v2393_v12  ;;  %v1660_v44 = vmax.f32 %v1597_v41, %v7324_v59  ;;  %v1629_v23 = vmax.f32 %v1566_v14, %v7331_v38  ;;  %v7348_v56 = vpop.xlane.xlu0 %1138  ;;  %v5161_v14 = vld [vmem:[%s5918_s20 + $0x40] sm:$0xff] }
 0x256   : > { %v7350_v4 = vpop.eup %4657  ;;  %4673 = vrcp.f32 %v2572_v6  ;;  %v3168_v10 = vadd.f32 %v3105_v40, %v2979_v47  ;;  %v3294_v9 = vmul.f32 %v5160_v45, %v3231_v60  ;;  %1408 = vadd.xlane.f32.xlu0 %v1324_v18  ;;  %v2697_v55 = vmul.f32 %v7271_v15, %v7156_v36 }
 0x257   : > { %4189 = vmatmul.mubr.f32.gmra.mrb[14].mxu0 %v3326_v17  ;;  %v2447_v7 = vadd.f32 %v7350_v4, %v7343_v53  ;;  %v1723_v12 = vsub.f32 %v7202_v51, %v1660_v44  ;;  %v1912_v13 = vsub.f32 %v7223_v31, %v1660_v44  ;;  %v2101_v42 = vsub.f32 %v7277_v34, %v1660_v44  ;;  %v1041_v17 = vld [vmem:[%s5933_s21 + $0x1a8] sm:$0xff] }
 0x258   : > { %v7359_v25 = vpop.eup %4659  ;;  %v3357_v58 = vadd.f32 %v3294_v9, %v3168_v10  ;;  %4191 = vmatprep.mubr.msk.f32.mxu0 %vm5593_vm0, %v9771_v39  ;;  %v1692_v50 = vsub.f32 %v9811_v24, %v1629_v23  ;;  %v2823_v20 = vmul.f32 %v7271_v15, %v7161_v61  ;;  %v7367_v37 = vpop.xlane.xlu1 %888  ;;  %v1881_v34 = vsub.f32 %v7200_v0, %v1629_v23 }
 0x259   : > { %v7369_v51 = vpop.eup %4661  ;;  %v2510_v36 = vadd.f32 %v7359_v25, %v2447_v7  ;;  %v1828_v31 = vmul.f32 1.442695, %v1723_v12  ;;  %v2017_v33 = vmul.f32 1.442695, %v1912_v13  ;;  %v7373_v6 = vpop.xlane.xlu0 %698  ;;  %v1535_v61 = vmax.f32 %v7269_v46, %v7296_v62 }
 0x25a   : > { %v7375_v27 = vpop.eup %4663  ;;  %4282 = vmatmul.mubr.f32.gmra.mrb[12].mxu1 %v3357_v58  ;;  %v2290_v24 = vsub.f32 %v7324_v59, %v1660_v44  ;;  %v2070_v16 = vsub.f32 %v7247_v49, %v1629_v23  ;;  %v3012_v63 = vmul.f32 %v7271_v15, %v7176_v11  ;;  %v2259_v5 = vsub.f32 %v7331_v38, %v1629_v23  ;;  %v5162_v11 = vld [vmem:[%s5926_s8 + $0x40] sm:$0xff]  ;;  %v9812_v38 = vld [vmem:[#allocation24_spill] sm:$0xff] }
 0x25b   : > { %v7383_v60 = vpop.eup %4665  ;;  %v2573_v0 = vadd.f32 %v7369_v51, %v2510_v36  ;;  %4675 = vpow2.f32 %v1828_v31  ;;  %v2760_v41 = vmul.f32 %v5161_v14, %v2697_v55  ;;  %4284 = vmatprep.mubr.msk.f32.mxu1 %vm5593_vm0, %v9771_v39  ;;  %v1766_v49 = vmul.f32 1.442695, %v1692_v50  ;;  %v5163_v55 = vld [vmem:[%s5933_s21 + $0x40] sm:$0xff] }
 0x25c   : > { %v2478_v59 = vadd.f32 %v7383_v60, %v7375_v27  ;;  %4677 = vpow2.f32 %v2017_v33  ;;  %v2886_v47 = vmul.f32 %v5162_v11, %v2823_v20  ;;  %v7395_v40 = vpop.xlane.xlu1 %1390  ;;  %v1504_v44 = vmax.f32 %v9812_v38, %v7305_v35 }
 0x25d   : > { %v7397_v18 = vpop.eup %4667  ;;  %v2206_v23 = vmul.f32 1.442695, %v2101_v42  ;;  %v1955_v10 = vmul.f32 1.442695, %v1881_v34  ;;  %v3201_v45 = vmul.f32 %v7271_v15, %v7183_v2  ;;  %v7403_v9 = vpop.xlane.xlu0 %950  ;;  %v2395_v12 = vmul.f32 1.442695, %v2290_v24 }
 0x25e   : > { %v7405_v7 = vpop.eup %4669  ;;  %v2949_v13 = vadd.f32 %v2886_v47, %v2760_v41  ;;  %v3075_v58 = vmul.f32 %v5163_v55, %v3012_v63  ;;  %v1104_v50 = vmul.f32 %v7151_v43, %v1041_v17  ;;  %4679 = vrcp.f32 %v2573_v0  ;;  %v532_v2 = vld [vmem:[%s5918_s20 + $0x1b0] sm:$0xff]  ;;  %v501_v41 = vld [vmem:[%s5918_s20 + $0xb8] sm:$0xff]  ;;  %v790_v47 = vld [vmem:[%s5926_s8 + $0x1b0] sm:$0xff] }
 0x25f   : > { %v7409_v20 = vpop.eup %4671  ;;  %v2144_v36 = vmul.f32 1.442695, %v2070_v16  ;;  %v2333_v42 = vmul.f32 1.442695, %v2259_v5  ;;  %v1073_v31 = vmul.f32 %v7151_v43, %v1010_v32  ;;  %v2541_v33 = vadd.f32 %v7405_v7, %v2478_v59  ;;  %v5164_v24 = vld [vmem:[%s5936_s0 + $0x40] sm:$0xff]  ;;  %v5167_v55 = vld [vmem:[%s5933_s21 + $0x138] sm:$0xff] }
 0x260   : > { %v7413_v15 = vpop.eup %4673  ;;  %4681 = vpow2.f32 %v1766_v49  ;;  %v3138_v34 = vadd.f32 %v3075_v58, %v2949_v13  ;;  %v3264_v63 = vmul.f32 %v5164_v24, %v3201_v45  ;;  %1220 = vadd.xlane.f32.xlu1 %v1104_v50  ;;  %v7417_v14 = vpop.xlane.xlu1 %1140  ;;  %v2728_v16 = vmul.f32 %v7307_v52, %v7192_v57  ;;  %v759_v45 = vld [vmem:[%s5926_s8 + $0xb8] sm:$0xff] }
 0x261   : > { %4683 = vpow2.f32 %v1955_v10  ;;  %1158 = vadd.xlane.f32.xlu0 %v1073_v31  ;;  %v2854_v0 = vmul.f32 %v7307_v52, %v7204_v22  ;;  %v3043_v5 = vmul.f32 %v7307_v52, %v7208_v1  ;;  %v7426_v17 = vpop.xlane.xlu0 %1452  ;;  %v3232_v49 = vmul.f32 %v7307_v52, %v7215_v3  ;;  %v5165_v22 = vld [vmem:[%s5918_s20 + $0x138] sm:$0xff]  ;;  %v5166_v10 = vld [vmem:[%s5926_s8 + $0x138] sm:$0xff]  ;;  %v1262_v31 = vld [vmem:[%s5936_s0 + $0xb0] sm:$0xff] }
 0x262   : > { %4685 = vpow2.f32 %v2206_v23  ;;  %v3327_v59 = vadd.f32 %v3264_v63, %v3138_v34  ;;  %v601_v11 = vmul.f32 %v7151_v43, %v532_v2  ;;  %v1567_v57 = vmax.f32 %v1504_v44, %v7348_v56  ;;  %v1293_v23 = vld [vmem:[%s5936_s0 + $0x1a8] sm:$0xff]  ;;  %v5168_v24 = vld [vmem:[%s5936_s0 + $0x138] sm:$0xff] }
 0x263   : > { %4687 = vpow2.f32 %v2395_v12  ;;  %v2791_v32 = vmul.f32 %v5165_v22, %v2728_v16  ;;  %v2917_v1 = vmul.f32 %v5166_v10, %v2854_v0  ;;  %v1598_v3 = vmax.f32 %v1535_v61, %v7341_v8 }
 0x264   : > { %4689 = vpow2.f32 %v2144_v36  ;;  %4192 = vmatmul.mubr.f32.gmra.mrb[16].mxu0 %v3327_v59  ;;  %718 = vadd.xlane.f32.xlu1 %v601_v11  ;;  %v570_v52 = vmul.f32 %v7151_v43, %v501_v41  ;;  %v7442_v12 = vpop.xlane.xlu1 %700  ;;  %v3106_v58 = vmul.f32 %v5167_v55, %v3043_v5  ;;  %v853_v50 = vmul.f32 %v7151_v43, %v790_v47 }
 0x265   : > { %v7444_v44 = vpop.eup %4675  ;;  %v2980_v13 = vadd.f32 %v2917_v1, %v2791_v32  ;;  %v1630_v36 = vmax.f32 %v1567_v57, %v7395_v40  ;;  %4194 = vmatprep.mubr.msk.f32.mxu0 %vm5593_vm0, %v9771_v39  ;;  %v7457_v34 = vadd.f32 %v7409_v20, %v2541_v33  ;;  %4691 = vpow2.f32 %v2333_v42 }
 0x266   : > { %v7452_v61 = vpop.xlane.xlu0 %1202  ;;  %v7454_v2 = vpop.eup %4677  ;;  %v3295_v63 = vmul.f32 %v5168_v24, %v3232_v49  ;;  %656 = vadd.xlane.f32.xlu0 %v570_v52  ;;  %v822_v16 = vmul.f32 %v7151_v43, %v759_v45  ;;  %v1356_v59 = vmul.f32 %v7151_v43, %v1293_v23  ;;  %v1325_v33 = vmul.f32 %v7151_v43, %v1262_v31  ;;  %v9813_v23 = vld [vmem:[#allocation23_spill] sm:$0xff] }
 0x267   : > { %v3169_v0 = vadd.f32 %v3106_v58, %v2980_v13  ;;  %v1693_v5 = vsub.f32 %v9812_v38, %v1630_v36  ;;  %v1882_v41 = vsub.f32 %v7305_v35, %v1630_v36  ;;  %v2071_v11 = vsub.f32 %v7348_v56, %v1630_v36 }
 0x268   : > { %970 = vadd.xlane.f32.xlu1 %v853_v50  ;;  %v2260_v47 = vsub.f32 %v7395_v40, %v1630_v36  ;;  %v1661_v42 = vmax.f32 %v1598_v3, %v7426_v17  ;;  %v7468_v49 = vpop.xlane.xlu1 %952  ;;  %v7470_v57 = vpop.eup %4679  ;;  %v2479_v38 = vadd.f32 %v7454_v2, %v7444_v44  ;;  %v2698_v3 = vmul.f32 %v7413_v15, %v7288_v54 }
 0x269   : > { %v3358_v22 = vadd.f32 %v3295_v63, %v3169_v0  ;;  %v1768_v35 = vmul.f32 1.442695, %v1693_v5  ;;  %v1957_v32 = vmul.f32 1.442695, %v1882_v41  ;;  %v2146_v56 = vmul.f32 1.442695, %v2071_v11 }
 0x26a   : > { %v7474_v10 = vpop.xlane.xlu0 %890  ;;  %v7476_v1 = vpop.eup %4681  ;;  %908 = vadd.xlane.f32.xlu0 %v822_v16  ;;  %v1724_v40 = vsub.f32 %v7269_v46, %v1661_v42  ;;  %v1913_v45 = vsub.f32 %v7296_v62, %v1661_v42  ;;  %v1505_v13 = vmax.f32 %v9813_v23, %v7367_v37  ;;  %v2335_v55 = vmul.f32 1.442695, %v2260_v47 }
 0x26b   : > { %v7482_v52 = vpop.eup %4683  ;;  %4285 = vmatmul.mubr.f32.gmra.mrb[14].mxu1 %v3358_v22  ;;  %4693 = vpow2.f32 %v1768_v35  ;;  %v2102_v58 = vsub.f32 %v7341_v8, %v1661_v42  ;;  %v1536_v46 = vmax.f32 %v7373_v6, %v7403_v9  ;;  %v2291_v62 = vsub.f32 %v7426_v17, %v1661_v42  ;;  %v5169_v17 = vld [vmem:[%s5918_s20 + $0x48] sm:$0xff]  ;;  %v5170_v35 = vld [vmem:[%s5926_s8 + $0x48] sm:$0xff] }
 0x26c   : > { %v7487_v50 = vpop.eup %4685  ;;  %4695 = vpow2.f32 %v1957_v32  ;;  %1472 = vadd.xlane.f32.xlu1 %v1356_v59  ;;  %4287 = vmatprep.mubr.msk.f32.mxu1 %vm5593_vm0, %v9771_v39  ;;  %v1830_v54 = vmul.f32 1.442695, %v1724_v40  ;;  %v7494_v36 = vpop.xlane.xlu1 %1454  ;;  %v2448_v24 = vadd.f32 %v7482_v52, %v7476_v1  ;;  %v7502_v63 = vmax.f32 %v1505_v13, %v7417_v14  ;;  %v1042_v32 = vld [vmem:[%s5933_s21 + $0x1b0] sm:$0xff] }
 0x26d   : > { %v7496_v31 = vpop.eup %4687  ;;  %v2542_v8 = vadd.f32 %v7487_v50, %v2479_v38  ;;  %v2019_v16 = vmul.f32 1.442695, %v1913_v45  ;;  %4697 = vpow2.f32 %v2146_v56  ;;  %v2761_v41 = vmul.f32 %v5169_v17, %v2698_v3  ;;  %v1011_v56 = vld [vmem:[%s5933_s21 + $0xb8] sm:$0xff]  ;;  %v5172_v3 = vld [vmem:[%s5926_s8 + $0x140] sm:$0xff] }
 0x26e   : > { %v7504_v0 = vpop.xlane.xlu0 %1392  ;;  %v7506_v5 = vpop.eup %4689  ;;  %1410 = vadd.xlane.f32.xlu0 %v1325_v33  ;;  %v2824_v59 = vmul.f32 %v7413_v15, %v7298_v19  ;;  %v3013_v11 = vmul.f32 %v7413_v15, %v7313_v48  ;;  %4699 = vpow2.f32 %v2335_v55  ;;  %v2208_v47 = vmul.f32 1.442695, %v2102_v58  ;;  %v533_v17 = vld [vmem:[%s5918_s20 + $0x1b8] sm:$0xff] }
 0x26f   : > { %v2729_v42 = vmul.f32 %v7397_v18, %v7256_v29  ;;  %v2855_v38 = vmul.f32 %v7397_v18, %v7261_v21  ;;  %v7517_v33 = vpop.eup %4691  ;;  %4701 = vpow2.f32 %v1830_v54  ;;  %v2397_v22 = vmul.f32 1.442695, %v2291_v62  ;;  %v5171_v21 = vld [vmem:[%s5918_s20 + $0x140] sm:$0xff]  ;;  %v5173_v54 = vld [vmem:[%s5933_s21 + $0x48] sm:$0xff] }
 0x270   : > { %v2887_v19 = vmul.f32 %v5170_v35, %v2824_v59  ;;  %v3202_v48 = vmul.f32 %v7413_v15, %v7319_v30  ;;  %v7524_v40 = vpop.xlane.xlu1 %1204  ;;  %v2511_v29 = vadd.f32 %v7506_v5, %v2448_v24  ;;  %4703 = vpow2.f32 %v2019_v16  ;;  %v502_v24 = vld [vmem:[%s5918_s20 + $0xc0] sm:$0xff] }
 0x271   : > { %v2792_v45 = vmul.f32 %v5171_v21, %v2729_v42  ;;  %v2918_v13 = vmul.f32 %v5172_v3, %v2855_v38  ;;  %v3076_v30 = vmul.f32 %v5173_v54, %v3013_v11  ;;  %v3044_v15 = vmul.f32 %v7397_v18, %v7279_v26  ;;  %v5174_v11 = vld [vmem:[%s5936_s0 + $0x48] sm:$0xff]  ;;  %v5176_v54 = vld [vmem:[%s5936_s0 + $0x140] sm:$0xff] }
 0x272   : > { %v7529_v55 = vpop.xlane.xlu0 %1142  ;;  %v2950_v58 = vadd.f32 %v2887_v19, %v2761_v41  ;;  %v3233_v62 = vmul.f32 %v7397_v18, %v7285_v28  ;;  %4705 = vpow2.f32 %v2208_v47  ;;  %v1105_v59 = vmul.f32 %v7151_v43, %v1042_v32  ;;  %v5175_v19 = vld [vmem:[%s5933_s21 + $0x140] sm:$0xff]  ;;  %v791_v32 = vld [vmem:[%s5926_s8 + $0x1b8] sm:$0xff] }
 0x273   : > { %v2981_v16 = vadd.f32 %v2918_v13, %v2792_v45  ;;  %v1074_v42 = vmul.f32 %v7151_v43, %v1011_v56  ;;  %v2605_v41 = vadd.f32 %v7496_v31, %v2542_v8  ;;  %v3265_v35 = vmul.f32 %v5174_v11, %v3202_v48  ;;  %v760_v56 = vld [vmem:[%s5926_s8 + $0xc0] sm:$0xff] }
 0x274   : > { %v3139_v38 = vadd.f32 %v3076_v30, %v2950_v58  ;;  %v3107_v26 = vmul.f32 %v5175_v19, %v3044_v15  ;;  %v7543_v21 = vpop.xlane.xlu1 %892  ;;  %4707 = vrcp.f32 %v7457_v34  ;;  %1222 = vadd.xlane.f32.xlu1 %v1105_v59  ;;  %v1599_v18 = vmax.f32 %v1536_v46, %v7452_v61 }
 0x275   : > { %v7545_v28 = vpop.eup %4693  ;;  %1160 = vadd.xlane.f32.xlu0 %v1074_v42  ;;  %v602_v47 = vmul.f32 %v7151_v43, %v533_v17  ;;  %v571_v8 = vmul.f32 %v7151_v43, %v502_v24  ;;  %v2574_v3 = vadd.f32 %v7517_v33, %v2511_v29  ;;  %v3296_v34 = vmul.f32 %v5176_v54, %v3233_v62 }
 0x276   : > { %v7553_v48 = vpop.xlane.xlu0 %702  ;;  %v7555_v45 = vpop.eup %4695  ;;  %v3328_v13 = vadd.f32 %v3265_v35, %v3139_v38  ;;  %v3170_v58 = vadd.f32 %v3107_v26, %v2981_v16  ;;  %4709 = vpow2.f32 %v2397_v22  ;;  %v1662_v46 = vmax.f32 %v1599_v18, %v7494_v36 }
 0x277   : > { %v2449_v30 = vadd.f32 %v7555_v45, %v7545_v28  ;;  %v7562_v15 = vpop.eup %4697  ;;  %v854_v24 = vmul.f32 %v7151_v43, %v791_v32  ;;  %v823_v59 = vmul.f32 %v7151_v43, %v760_v56  ;;  %v7568_v29 = vmax.f32 %v7502_v63, %v7504_v0  ;;  %v9814_v32 = vld [vmem:[#allocation26_spill] sm:$0xff] }
 0x278   : > { %4195 = vmatmul.mubr.f32.gmra.mrb[18].mxu0 %v3328_v13  ;;  %v3359_v17 = vadd.f32 %v3296_v34, %v3170_v58  ;;  %v7570_v16 = vpop.xlane.xlu1 %1394  ;;  %v7572_v62 = vpop.eup %4699  ;;  %4711 = vrcp.f32 %v2605_v41  ;;  %720 = vadd.xlane.f32.xlu1 %v602_v47  ;;  %v1725_v42 = vsub.f32 %v7373_v6, %v1662_v46  ;;  %v1914_v38 = vsub.f32 %v7403_v9, %v1662_v46  ;;  %v5177_v34 = vld [vmem:[%s5918_s20 + $0x50] sm:$0xff] }
 0x279   : > { %v2512_v22 = vadd.f32 %v7562_v15, %v2449_v30  ;;  %658 = vadd.xlane.f32.xlu0 %v571_v8  ;;  %v7579_v35 = vpop.eup %4701  ;;  %4713 = vrcp.f32 %v2574_v3  ;;  %v2103_v63 = vsub.f32 %v7452_v61, %v1662_v46  ;;  %4197 = vmatprep.mubr.msk.f32.mxu0 %vm5593_vm0, %v9771_v39  ;;  %v2699_v41 = vmul.f32 %v7470_v57, %v7343_v53 }
 0x27a   : > { %v7577_v11 = vpop.xlane.xlu0 %954  ;;  %4288 = vmatmul.mubr.f32.gmra.mrb[16].mxu1 %v3359_v17  ;;  %v2825_v19 = vmul.f32 %v7470_v57, %v7350_v4  ;;  %v7588_v6 = vpop.eup %4703  ;;  %v1832_v9 = vmul.f32 1.442695, %v1725_v42  ;;  %v2021_v26 = vmul.f32 1.442695, %v1914_v38  ;;  %v2292_v18 = vsub.f32 %v7494_v36, %v1662_v46  ;;  %v5178_v46 = vld [vmem:[%s5926_s8 + $0x50] sm:$0xff] }
 0x27b   : > { %v1694_v47 = vsub.f32 %v9813_v23, %v7568_v29  ;;  %4290 = vmatprep.mubr.msk.f32.mxu1 %vm5593_vm0, %v9771_v39  ;;  %v2575_v61 = vadd.f32 %v7572_v62, %v2512_v22  ;;  %v2480_v53 = vadd.f32 %v7588_v6, %v7579_v35  ;;  %v1537_v4 = vmax.f32 %v7442_v12, %v7468_v49  ;;  %v1294_v22 = vld [vmem:[%s5936_s0 + $0x1b0] sm:$0xff] }
 0x27c   : > { %v1883_v8 = vsub.f32 %v7367_v37, %v7568_v29  ;;  %v7602_v36 = vpop.xlane.xlu1 %1144  ;;  %v7604_v23 = vpop.eup %4705  ;;  %v1506_v56 = vmax.f32 %v9814_v32, %v7474_v10  ;;  %972 = vadd.xlane.f32.xlu1 %v854_v24  ;;  %v2210_v3 = vmul.f32 1.442695, %v2103_v63  ;;  %v2072_v13 = vsub.f32 %v7417_v14, %v7568_v29  ;;  %v1263_v24 = vld [vmem:[%s5936_s0 + $0xb8] sm:$0xff] }
 0x27d   : > { %910 = vadd.xlane.f32.xlu0 %v823_v59  ;;  %v2261_v58 = vsub.f32 %v7504_v0, %v7568_v29  ;;  %v2543_v37 = vadd.f32 %v7604_v23, %v2480_v53  ;;  %4715 = vpow2.f32 %v1832_v9  ;;  %v2762_v30 = vmul.f32 %v5177_v34, %v2699_v41  ;;  %v5179_v9 = vld [vmem:[%s5933_s21 + $0x50] sm:$0xff] }
 0x27e   : > { %v7612_v54 = vpop.xlane.xlu0 %1456  ;;  %v2888_v17 = vmul.f32 %v5178_v46, %v2825_v19  ;;  %v4708_v59 = vpop.eup %4707  ;;  %4717 = vpow2.f32 %v2021_v26  ;;  %v2399_v42 = vmul.f32 1.442695, %v2292_v18  ;;  %v1770_v14 = vmul.f32 1.442695, %v1694_v47 }
 0x27f   : > { %v3014_v0 = vmul.f32 %v7470_v57, %v7359_v25  ;;  %4719 = vrcp.f32 %v2575_v61  ;;  %v1959_v29 = vmul.f32 1.442695, %v1883_v8  ;;  %v3203_v63 = vmul.f32 %v7470_v57, %v7369_v51  ;;  %v1043_v25 = vld [vmem:[%s5933_s21 + $0x1b8] sm:$0xff]  ;;  %v5180_v51 = vld [vmem:[%s5936_s0 + $0x50] sm:$0xff] }
 0x280   : > { %v2951_v38 = vadd.f32 %v2888_v17, %v2762_v30  ;;  %v7623_v41 = vpop.xlane.xlu1 %704  ;;  %v7625_v19 = vpop.eup %4709  ;;  %4721 = vpow2.f32 %v2210_v3  ;;  %v1357_v26 = vmul.f32 %v7151_v43, %v1294_v22  ;;  %v1326_v18 = vmul.f32 %v7151_v43, %v1263_v24  ;;  %v1012_v22 = vld [vmem:[%s5933_s21 + $0xc0] sm:$0xff] }
 0x281   : > { %v3077_v53 = vmul.f32 %v5179_v9, %v3014_v0  ;;  %v2606_v61 = vadd.f32 %v7625_v19, %v2543_v37  ;;  %v2148_v8 = vmul.f32 1.442695, %v2072_v13  ;;  %v2337_v34 = vmul.f32 1.442695, %v2261_v58 }
 0x282   : > { %v7631_v47 = vpop.xlane.xlu0 %1206  ;;  %v3266_v57 = vmul.f32 %v5180_v51, %v3203_v63  ;;  %v7635_v30 = vpop.eup %4711  ;;  %4723 = vpow2.f32 %v1770_v14  ;;  %1474 = vadd.xlane.f32.xlu1 %v1357_v26  ;;  %1412 = vadd.xlane.f32.xlu0 %v1326_v18  ;;  %v2730_v46 = vmul.f32 %v4708_v59, %v7375_v27  ;;  %v2856_v17 = vmul.f32 %v4708_v59, %v7383_v60  ;;  %v534_v14 = vld [vmem:[%s5918_s20 + $0x1c0] sm:$0xff]  ;;  %v5182_v60 = vld [vmem:[%s5926_s8 + $0x148] sm:$0xff]  ;;  %v5183_v18 = vld [vmem:[%s5933_s21 + $0x148] sm:$0xff] }
 0x283   : > { %v3140_v3 = vadd.f32 %v3077_v53, %v2951_v38  ;;  %v7640_v37 = vpop.eup %4713  ;;  %4725 = vpow2.f32 %v1959_v29  ;;  %v3045_v13 = vmul.f32 %v4708_v59, %v7405_v7  ;;  %v3234_v58 = vmul.f32 %v4708_v59, %v7409_v20  ;;  %v5181_v38 = vld [vmem:[%s5918_s20 + $0x148] sm:$0xff] }
 0x284   : > { %v1106_v24 = vmul.f32 %v7151_v43, %v1043_v25  ;;  %v7646_v0 = vpop.xlane.xlu1 %956  ;;  %4727 = vpow2.f32 %v2399_v42  ;;  %v2793_v63 = vmul.f32 %v5181_v38, %v2730_v46  ;;  %v2919_v9 = vmul.f32 %v5182_v60, %v2856_v17  ;;  %v503_v53 = vld [vmem:[%s5918_s20 + $0xc8] sm:$0xff]  ;;  %v792_v42 = vld [vmem:[%s5926_s8 + $0x1c0] sm:$0xff]  ;;  %v761_v46 = vld [vmem:[%s5926_s8 + $0xc8] sm:$0xff] }
 0x285   : > { %v3329_v27 = vadd.f32 %v3266_v57, %v3140_v3  ;;  %4729 = vrcp.f32 %v2606_v61  ;;  %v1600_v7 = vmax.f32 %v1537_v4, %v7524_v40  ;;  %v1569_v20 = vmax.f32 %v1506_v56, %v7529_v55  ;;  %v5184_v4 = vld [vmem:[%s5936_s0 + $0x148] sm:$0xff] }
 0x286   : > { %v7651_v29 = vpop.xlane.xlu0 %894  ;;  %v1075_v59 = vmul.f32 %v7151_v43, %v1012_v22  ;;  %4731 = vpow2.f32 %v2148_v8  ;;  %v2982_v26 = vadd.f32 %v2919_v9, %v2793_v63  ;;  %v3108_v25 = vmul.f32 %v5183_v18, %v3045_v13  ;;  %1224 = vadd.xlane.f32.xlu1 %v1106_v24  ;;  %v9815_v13 = vld [vmem:[#allocation25_spill] sm:$0xff] }
 0x287   : > { %4198 = vmatmul.mubr.f32.gmra.mrb[20].mxu0 %v3329_v27  ;;  %v603_v61 = vmul.f32 %v7151_v43, %v534_v14  ;;  %v7665_v51 = vpop.eup %4715  ;;  %4733 = vpow2.f32 %v2337_v34  ;;  %v3297_v57 = vmul.f32 %v5184_v4, %v3234_v58  ;;  %v572_v56 = vmul.f32 %v7151_v43, %v503_v53 }
 0x288   : > { %1162 = vadd.xlane.f32.xlu0 %v1075_v59  ;;  %v1632_v3 = vmax.f32 %v1569_v20, %v7570_v16  ;;  %v7671_v17 = vpop.xlane.xlu1 %1458  ;;  %v7673_v8 = vpop.eup %4717  ;;  %v3171_v22 = vadd.f32 %v3108_v25, %v2982_v26  ;;  %v1507_v24 = vmax.f32 %v9815_v13, %v7543_v21  ;;  %v855_v14 = vmul.f32 %v7151_v43, %v792_v42 }
 0x289   : > { %4200 = vmatprep.mubr.msk.f32.mxu0 %vm5593_vm0, %v9771_v39  ;;  %v1663_v34 = vmax.f32 %v1600_v7, %v7612_v54  ;;  %v7683_v27 = vpop.eup %4719  ;;  %v2481_v38 = vadd.f32 %v7673_v8, %v7665_v51  ;;  %v824_v7 = vmul.f32 %v7151_v43, %v761_v46 }
 0x28a   : > { %v7681_v58 = vpop.xlane.xlu0 %1396  ;;  %v1695_v63 = vsub.f32 %v9814_v32, %v1632_v3  ;;  %v1884_v60 = vsub.f32 %v7474_v10, %v1632_v3  ;;  %v2073_v9 = vsub.f32 %v7529_v55, %v1632_v3  ;;  %v7690_v53 = vpop.eup %4721  ;;  %v3360_v20 = vadd.f32 %v3297_v57, %v3171_v22  ;;  %722 = vadd.xlane.f32.xlu1 %v603_v61 }
 0x28b   : > { %v2262_v59 = vsub.f32 %v7570_v16, %v1632_v3  ;;  %v1726_v42 = vsub.f32 %v7442_v12, %v1663_v34  ;;  %v2544_v26 = vadd.f32 %v7690_v53, %v2481_v38  ;;  %v1915_v32 = vsub.f32 %v7468_v49, %v1663_v34 }
 0x28c   : > { %660 = vadd.xlane.f32.xlu0 %v572_v56  ;;  %v1772_v18 = vmul.f32 1.442695, %v1695_v63  ;;  %v1961_v25 = vmul.f32 1.442695, %v1884_v60  ;;  %v7699_v55 = vpop.eup %4723  ;;  %4291 = vmatmul.mubr.f32.gmra.mrb[18].mxu1 %v3360_v20  ;;  %v2150_v4 = vmul.f32 1.442695, %v2073_v9  ;;  %v1538_v16 = vmax.f32 %v7553_v48, %v7577_v11 }
 0x28d   : > { %v7697_v10 = vpop.xlane.xlu1 %1208  ;;  %v7704_v43 = vmax.f32 %v1507_v24, %v7602_v36  ;;  %v2104_v12 = vsub.f32 %v7524_v40, %v1663_v34  ;;  %v7709_v57 = vpop.eup %4725  ;;  %v2339_v49 = vmul.f32 1.442695, %v2262_v59  ;;  %4293 = vmatprep.mubr.msk.f32.mxu1 %vm5593_vm0, %v9771_v39  ;;  %v2293_v56 = vsub.f32 %v7612_v54, %v1663_v34  ;;  %v5185_v34 = vld [vmem:[%s5918_s20 + $0x58] sm:$0xff] }
 0x28e   : > { %v7707_v61 = vpop.xlane.xlu0 %1146  ;;  %4735 = vpow2.f32 %v1772_v18  ;;  %v2700_v3 = vmul.f32 %v7640_v37, %v7476_v1  ;;  %v7716_v46 = vpop.eup %4727  ;;  %v2450_v40 = vadd.f32 %v7709_v57, %v7699_v55  ;;  %974 = vadd.xlane.f32.xlu1 %v855_v14  ;;  %v1834_v22 = vmul.f32 1.442695, %v1726_v42 }
 0x28f   : > { %4737 = vpow2.f32 %v1961_v25  ;;  %v2826_v24 = vmul.f32 %v7640_v37, %v7482_v52  ;;  %v7722_v38 = vpop.eup %4729  ;;  %v2607_v63 = vadd.f32 %v7716_v46, %v2544_v26  ;;  %v2023_v54 = vmul.f32 1.442695, %v1915_v32  ;;  %v5186_v52 = vld [vmem:[%s5926_s8 + $0x58] sm:$0xff] }
 0x290   : > { %912 = vadd.xlane.f32.xlu0 %v824_v7  ;;  %v2763_v1 = vmul.f32 %v5185_v34, %v2700_v3  ;;  %v3015_v60 = vmul.f32 %v7640_v37, %v7506_v5  ;;  %v7730_v20 = vpop.eup %4731  ;;  %4739 = vpow2.f32 %v2150_v4  ;;  %v2212_v14 = vmul.f32 1.442695, %v2104_v12  ;;  %v1295_v32 = vld [vmem:[%s5936_s0 + $0x1b8] sm:$0xff]  ;;  %v1264_v3 = vld [vmem:[%s5936_s0 + $0xc0] sm:$0xff] }
 0x291   : > { %v7728_v9 = vpop.xlane.xlu1 %896  ;;  %v2889_v59 = vmul.f32 %v5186_v52, %v2826_v24  ;;  %v3204_v7 = vmul.f32 %v7640_v37, %v7517_v33  ;;  %v7737_v26 = vpop.eup %4733  ;;  %4741 = vpow2.f32 %v2339_v49  ;;  %v2401_v5 = vmul.f32 1.442695, %v2293_v56  ;;  %v5187_v33 = vld [vmem:[%s5933_s21 + $0x58] sm:$0xff]  ;;  %v5188_v49 = vld [vmem:[%s5918_s20 + $0x150] sm:$0xff]  ;;  %v5189_v24 = vld [vmem:[%s5926_s8 + $0x150] sm:$0xff] }
 0x292   : > { %v7735_v42 = vpop.xlane.xlu0 %706  ;;  %v2731_v18 = vmul.f32 %v7635_v30, %v7444_v44  ;;  %v2857_v25 = vmul.f32 %v7635_v30, %v7454_v2  ;;  %v2513_v4 = vadd.f32 %v7730_v20, %v2450_v40  ;;  %4743 = vpow2.f32 %v1834_v22  ;;  %v5190_v40 = vld [vmem:[%s5936_s0 + $0x58] sm:$0xff] }
 0x293   : > { %v2952_v12 = vadd.f32 %v2889_v59, %v2763_v1  ;;  %v3078_v37 = vmul.f32 %v5187_v33, %v3015_v60  ;;  %4745 = vpow2.f32 %v2023_v54  ;;  %v3046_v2 = vmul.f32 %v7635_v30, %v7487_v50  ;;  %v7759_v54 = vld [vmem:[%s9659_s4] ss:$0 sm:$0xff] }
 0x294   : > { %v2794_v56 = vmul.f32 %v5188_v49, %v2731_v18  ;;  %v2920_v44 = vmul.f32 %v5189_v24, %v2857_v25  ;;  %v3267_v22 = vmul.f32 %v5190_v40, %v3204_v7  ;;  %v3235_v1 = vmul.f32 %v7635_v30, %v7496_v31  ;;  %v1044_v59 = vld [vmem:[%s5933_s21 + $0x1c0] sm:$0xff]  ;;  %v1013_v18 = vld [vmem:[%s5933_s21 + $0xc8] sm:$0xff] }
 0x295   : > { %v7751_v34 = vpop.xlane.xlu1 %1398  ;;  %v3141_v52 = vadd.f32 %v3078_v37, %v2952_v12  ;;  %v1358_v60 = vmul.f32 %v7759_v54, %v1295_v32  ;;  %4747 = vpow2.f32 %v2212_v14  ;;  %v5192_v12 = vld [vmem:[%s5933_s21 + $0x150] sm:$0xff]  ;;  %v1327_v31 = vmul.f32 %v7759_v54, %v1264_v3  ;;  %v535_v37 = vld [vmem:[%s5918_s20 + $0x1c8] sm:$0xff] }
 0x296   : > { %v7764_v50 = vpop.xlane.xlu0 %958  ;;  %v2983_v25 = vadd.f32 %v2920_v44, %v2794_v56  ;;  %v3109_v7 = vmul.f32 %v5192_v12, %v3046_v2  ;;  %4749 = vrcp.f32 %v2607_v63  ;;  %v2576_v30 = vadd.f32 %v7737_v26, %v2513_v4  ;;  %v5193_v56 = vld [vmem:[%s5936_s0 + $0x150] sm:$0xff]  ;;  %v504_v3 = vld [vmem:[%s5918_s20 + $0xd0] sm:$0xff] }
 0x297   : > { %v3330_v33 = vadd.f32 %v3267_v22, %v3141_v52  ;;  %1476 = vadd.xlane.f32.xlu1 %v1358_v60  ;;  %v1601_v32 = vmax.f32 %v1538_v16, %v7631_v47  ;;  %v3298_v24 = vmul.f32 %v5193_v56, %v3235_v1  ;;  %1414 = vadd.xlane.f32.xlu0 %v1327_v31  ;;  %4751 = vpow2.f32 %v2401_v5  ;;  %v9816_v56 = vld [vmem:[#allocation28_spill] sm:$0xff] }
 0x298   : > { %v7774_v49 = vpop.eup %4735  ;;  %v3172_v14 = vadd.f32 %v3109_v7, %v2983_v25  ;;  %v1107_v44 = vmul.f32 %v7759_v54, %v1044_v59  ;;  %v1076_v63 = vmul.f32 %v7759_v54, %v1013_v18  ;;  %v604_v1 = vmul.f32 %v7759_v54, %v535_v37 }
 0x299   : > { %v7780_v4 = vpop.xlane.xlu1 %1148  ;;  %v7782_v2 = vpop.eup %4737  ;;  %4201 = vmatmul.mubr.f32.gmra.mrb[22].mxu0 %v3330_v33  ;;  %v1664_v16 = vmax.f32 %v1601_v32, %v7671_v17  ;;  %v1633_v60 = vmax.f32 %v7704_v43, %v7681_v58  ;;  %v573_v5 = vmul.f32 %v7759_v54, %v504_v3  ;;  %4753 = vrcp.f32 %v2576_v30 }
 0x29a   : > { %v7785_v52 = vpop.xlane.xlu0 %1460  ;;  %v2451_v40 = vadd.f32 %v7782_v2, %v7774_v49  ;;  %v3361_v22 = vadd.f32 %v3298_v24, %v3172_v14  ;;  %4203 = vmatprep.mubr.msk.f32.mxu0 %vm5593_vm0, %v9771_v39  ;;  %v7794_v59 = vpop.eup %4739  ;;  %v2701_v33 = vmul.f32 %v7683_v27, %v7545_v28 }
 0x29b   : > { %1226 = vadd.xlane.f32.xlu1 %v1107_v44  ;;  %v1727_v18 = vsub.f32 %v7553_v48, %v1664_v16  ;;  %v1916_v25 = vsub.f32 %v7577_v11, %v1664_v16  ;;  %v2105_v12 = vsub.f32 %v7631_v47, %v1664_v16  ;;  %v7800_v7 = vpop.eup %4741  ;;  %1164 = vadd.xlane.f32.xlu0 %v1076_v63 }
 0x29c   : > { %v2514_v31 = vadd.f32 %v7794_v59, %v2451_v40  ;;  %4294 = vmatmul.mubr.f32.gmra.mrb[20].mxu1 %v3361_v22  ;;  %v1696_v43 = vsub.f32 %v9815_v13, %v1633_v60  ;;  %v7808_v37 = vpop.eup %4743  ;;  %v2294_v30 = vsub.f32 %v7671_v17, %v1664_v16  ;;  %v1885_v63 = vsub.f32 %v7543_v21, %v1633_v60  ;;  %v793_v40 = vld [vmem:[%s5926_s8 + $0x1c8] sm:$0xff] }
 0x29d   : > { %v7806_v32 = vpop.xlane.xlu1 %708  ;;  %v1836_v11 = vmul.f32 1.442695, %v1727_v18  ;;  %v2025_v47 = vmul.f32 1.442695, %v1916_v25  ;;  %4296 = vmatprep.mubr.msk.f32.mxu1 %vm5593_vm0, %v9771_v39  ;;  %v7817_v14 = vpop.eup %4745  ;;  %v2214_v44 = vmul.f32 1.442695, %v2105_v12  ;;  %v2074_v3 = vsub.f32 %v7602_v36, %v1633_v60 }
 0x29e   : > { %v7815_v13 = vpop.xlane.xlu0 %1210  ;;  %v2577_v28 = vadd.f32 %v7800_v7, %v2514_v31  ;;  %v2482_v17 = vadd.f32 %v7817_v14, %v7808_v37  ;;  %v2263_v16 = vsub.f32 %v7681_v58, %v1633_v60  ;;  %v1774_v18 = vmul.f32 1.442695, %v1696_v43  ;;  %v5194_v25 = vld [vmem:[%s5918_s20 + $0x60] sm:$0xff] }
 0x29f   : > { %724 = vadd.xlane.f32.xlu1 %v604_v1  ;;  %4755 = vpow2.f32 %v1836_v11  ;;  %v7828_v22 = vpop.eup %4747  ;;  %662 = vadd.xlane.f32.xlu0 %v573_v5  ;;  %v2764_v31 = vmul.f32 %v5194_v25, %v2701_v33  ;;  %v2827_v21 = vmul.f32 %v7683_v27, %v7555_v45  ;;  %v3016_v12 = vmul.f32 %v7683_v27, %v7562_v15  ;;  %v762_v1 = vld [vmem:[%s5926_s8 + $0xd0] sm:$0xff]  ;;  %v5195_v33 = vld [vmem:[%s5926_s8 + $0x60] sm:$0xff] }
 0x2a0   : > { %v7838_v36 = vpop.eup %4749  ;;  %v2545_v58 = vadd.f32 %v7828_v22, %v2482_v17  ;;  %4757 = vpow2.f32 %v2025_v47  ;;  %v2403_v60 = vmul.f32 1.442695, %v2294_v30  ;;  %v3205_v5 = vmul.f32 %v7683_v27, %v7572_v62  ;;  %v1296_v30 = vld [vmem:[%s5936_s0 + $0x1c0] sm:$0xff] }
 0x2a1   : > { %v7836_v11 = vpop.xlane.xlu1 %960  ;;  %4759 = vrcp.f32 %v2577_v28  ;;  %v1963_v45 = vmul.f32 1.442695, %v1885_v63  ;;  %v2890_v15 = vmul.f32 %v5195_v33, %v2827_v21  ;;  %v856_v25 = vmul.f32 %v7759_v54, %v793_v40  ;;  %v7847_v24 = vpop.eup %4751  ;;  %v5196_v28 = vld [vmem:[%s5933_s21 + $0x60] sm:$0xff]  ;;  %v5197_v40 = vld [vmem:[%s5936_s0 + $0x60] sm:$0xff] }
 0x2a2   : > { %v7843_v43 = vpop.xlane.xlu0 %898  ;;  %4761 = vpow2.f32 %v2214_v44  ;;  %v2152_v48 = vmul.f32 1.442695, %v2074_v3  ;;  %v2341_v17 = vmul.f32 1.442695, %v2263_v16  ;;  %v825_v47 = vmul.f32 %v7759_v54, %v762_v1 }
 0x2a3   : > { %v2608_v62 = vadd.f32 %v7847_v24, %v2545_v58  ;;  %4763 = vpow2.f32 %v1774_v18  ;;  %v2953_v27 = vadd.f32 %v2890_v15, %v2764_v31  ;;  %v3079_v63 = vmul.f32 %v5196_v28, %v3016_v12  ;;  %976 = vadd.xlane.f32.xlu1 %v856_v25  ;;  %v1265_v18 = vld [vmem:[%s5936_s0 + $0xc8] sm:$0xff]  ;;  %v7865_v12 = vpop.eup %4753 }
 0x2a4   : > { %v3268_v33 = vmul.f32 %v5197_v40, %v3205_v5  ;;  %914 = vadd.xlane.f32.xlu0 %v825_v47  ;;  %v2732_v44 = vmul.f32 %v7722_v38, %v7579_v35  ;;  %v2858_v3 = vmul.f32 %v7722_v38, %v7588_v6  ;;  %v3047_v16 = vmul.f32 %v7722_v38, %v7604_v23  ;;  %v1045_v5 = vld [vmem:[%s5933_s21 + $0x1c8] sm:$0xff]  ;;  %v5198_v15 = vld [vmem:[%s5918_s20 + $0x158] sm:$0xff] }
 0x2a5   : > { %v7853_v21 = vpop.xlane.xlu1 %1462  ;;  %4765 = vpow2.f32 %v1963_v45  ;;  %v3142_v1 = vadd.f32 %v3079_v63, %v2953_v27  ;;  %v3236_v58 = vmul.f32 %v7722_v38, %v7625_v19  ;;  %v1359_v35 = vmul.f32 %v7759_v54, %v1296_v30  ;;  %v5199_v47 = vld [vmem:[%s5926_s8 + $0x158] sm:$0xff]  ;;  %v1014_v45 = vld [vmem:[%s5933_s21 + $0xd0] sm:$0xff] }
 0x2a6   : > { %v7863_v31 = vpop.xlane.xlu0 %1400  ;;  %4767 = vpow2.f32 %v2403_v60  ;;  %v9817_v6 = vmax.f32 %v7623_v41, %v7646_v0  ;;  %v2795_v25 = vmul.f32 %v5198_v15, %v2732_v44  ;;  %v2921_v28 = vmul.f32 %v5199_v47, %v2858_v3  ;;  %v536_v30 = vld [vmem:[%s5918_s20 + $0x1d0] sm:$0xff]  ;;  %v5200_v3 = vld [vmem:[%s5933_s21 + $0x158] sm:$0xff] }
 0x2a7   : > { %4769 = vrcp.f32 %v2608_v62  ;;  %v3331_v27 = vadd.f32 %v3268_v33, %v3142_v1  ;;  %v9818_v19 = vmax.f32 %v9816_v56, %v7651_v29  ;;  %1478 = vadd.xlane.f32.xlu1 %v1359_v35  ;;  %v1328_v60 = vmul.f32 %v7759_v54, %v1265_v18  ;;  %v5201_v33 = vld [vmem:[%s5936_s0 + $0x158] sm:$0xff]  ;;  %v505_v15 = vld [vmem:[%s5918_s20 + $0xd8] sm:$0xff] }
 0x2a8   : > { %v1602_v23 = vmax.f32 %v9817_v6, %v7697_v10  ;;  %4771 = vpow2.f32 %v2152_v48  ;;  %v2984_v44 = vadd.f32 %v2921_v28, %v2795_v25  ;;  %v3110_v6 = vmul.f32 %v5200_v3, %v3047_v16  ;;  %v9821_v25 = vld [vmem:[#allocation27_spill] sm:$0xff] }
 0x2a9   : > { %v1571_v38 = vmax.f32 %v9818_v19, %v7707_v61  ;;  %v7884_v63 = vpop.xlane.xlu1 %1212  ;;  %v7886_v40 = vpop.eup %4755  ;;  %v1108_v62 = vmul.f32 %v7759_v54, %v1045_v5  ;;  %4773 = vpow2.f32 %v2341_v17  ;;  %4204 = vmatmul.mubr.f32.gmra.mrb[24].mxu0 %v3331_v27  ;;  %v3299_v1 = vmul.f32 %v5201_v33, %v3236_v58  ;;  %1416 = vadd.xlane.f32.xlu0 %v1328_v60 }
 0x2aa   : > { %9819 = vst [vmem:[#allocation34_spill] sm:$0xff] %v7886_v40  ;;  %v1077_v35 = vmul.f32 %v7759_v54, %v1014_v45  ;;  %v7894_v47 = vpop.xlane.xlu0 %1150  ;;  %v7896_v19 = vpop.eup %4757  ;;  %v3173_v48 = vadd.f32 %v3110_v6, %v2984_v44  ;;  %v1509_v16 = vmax.f32 %v9821_v25, %v7728_v9  ;;  %v605_v5 = vmul.f32 %v7759_v54, %v536_v30 }
 0x2ab   : > { %v1634_v18 = vmax.f32 %v1571_v38, %v7751_v34  ;;  %9820 = vst [vmem:[#allocation35_spill] sm:$0xff] %v7896_v19  ;;  %4206 = vmatprep.mubr.msk.f32.mxu0 %vm5593_vm0, %v9771_v39  ;;  %v1665_v17 = vmax.f32 %v1602_v23, %v7785_v52  ;;  %v7904_v58 = vpop.eup %4759  ;;  %v2483_v28 = vadd.f32 %v7896_v19, %v7886_v40 }
 0x2ac   : > { %1228 = vadd.xlane.f32.xlu1 %v1108_v62  ;;  %v7913_v30 = vpop.eup %4761  ;;  %v3362_v44 = vadd.f32 %v3299_v1, %v3173_v48  ;;  %v574_v23 = vmul.f32 %v7759_v54, %v505_v15  ;;  %v7927_v1 = vmax.f32 %v1509_v16, %v7780_v4  ;;  %v2702_v15 = vmul.f32 %v7865_v12, %v7699_v55  ;;  %v5202_v55 = vld [vmem:[%s5918_s20 + $0x68] sm:$0xff] }
 0x2ad   : > { %v1697_v45 = vsub.f32 %v9816_v56, %v1634_v18  ;;  %v1886_v27 = vsub.f32 %v7651_v29, %v1634_v18  ;;  %v2075_v38 = vsub.f32 %v7707_v61, %v1634_v18  ;;  %v7911_v60 = vpop.xlane.xlu1 %900  ;;  %v2264_v3 = vsub.f32 %v7751_v34, %v1634_v18  ;;  %v7918_v33 = vpop.eup %4763  ;;  %1166 = vadd.xlane.f32.xlu0 %v1077_v35 }
 0x2ae   : > { %v1728_v6 = vsub.f32 %v7623_v41, %v1665_v17  ;;  %v2546_v62 = vadd.f32 %v7913_v30, %v2483_v28  ;;  %v1917_v61 = vsub.f32 %v7646_v0, %v1665_v17  ;;  %v7922_v19 = vpop.xlane.xlu0 %710  ;;  %4297 = vmatmul.mubr.f32.gmra.mrb[22].mxu1 %v3362_v44  ;;  %v2106_v41 = vsub.f32 %v7697_v10, %v1665_v17 }
 0x2af   : > { %v1776_v56 = vmul.f32 1.442695, %v1697_v45  ;;  %v1965_v29 = vmul.f32 1.442695, %v1886_v27  ;;  %v2154_v40 = vmul.f32 1.442695, %v2075_v38  ;;  %v7930_v18 = vpop.eup %4765  ;;  %4299 = vmatprep.mubr.msk.f32.mxu1 %vm5593_vm0, %v9771_v39  ;;  %v2295_v0 = vsub.f32 %v7785_v52, %v1665_v17 }
 0x2b0   : > { %v2343_v35 = vmul.f32 1.442695, %v2264_v3  ;;  %726 = vadd.xlane.f32.xlu1 %v605_v5  ;;  %v7939_v16 = vpop.eup %4767  ;;  %v2452_v10 = vadd.f32 %v7930_v18, %v7918_v33  ;;  %v1838_v28 = vmul.f32 1.442695, %v1728_v6  ;;  %v2828_v5 = vmul.f32 %v7865_v12, %v7709_v57  ;;  %v5203_v57 = vld [vmem:[%s5926_s8 + $0x68] sm:$0xff] }
 0x2b1   : > { %4775 = vpow2.f32 %v1776_v56  ;;  %v7937_v48 = vpop.xlane.xlu1 %1402  ;;  %9822 = vst [vmem:[#allocation18_spill] sm:$0xff] %v7939_v16  ;;  %v7945_v45 = vpop.eup %4769  ;;  %v2609_v52 = vadd.f32 %v7939_v16, %v2546_v62  ;;  %664 = vadd.xlane.f32.xlu0 %v574_v23  ;;  %v2027_v17 = vmul.f32 1.442695, %v1917_v61  ;;  %v2765_v27 = vmul.f32 %v5202_v55, %v2702_v15  ;;  %v5206_v55 = vld [vmem:[%s5926_s8 + $0x160] sm:$0xff] }
 0x2b2   : > { %4777 = vpow2.f32 %v1965_v29  ;;  %v3017_v38 = vmul.f32 %v7865_v12, %v7730_v20  ;;  %v7951_v44 = vpop.xlane.xlu0 %962  ;;  %v7953_v3 = vpop.eup %4771  ;;  %v2216_v6 = vmul.f32 1.442695, %v2106_v41  ;;  %v2891_v56 = vmul.f32 %v5203_v57, %v2828_v5 }
 0x2b3   : > { %4779 = vpow2.f32 %v2154_v40  ;;  %v3206_v23 = vmul.f32 %v7865_v12, %v7737_v26  ;;  %v7958_v62 = vpop.eup %4773  ;;  %v2405_v29 = vmul.f32 1.442695, %v2295_v0  ;;  %v2733_v20 = vmul.f32 %v7838_v36, %v7665_v51  ;;  %v794_v40 = vld [vmem:[%s5926_s8 + $0x1d0] sm:$0xff]  ;;  %v5204_v26 = vld [vmem:[%s5933_s21 + $0x68] sm:$0xff] }
 0x2b4   : > { %4781 = vpow2.f32 %v2343_v35  ;;  %v2859_v61 = vmul.f32 %v7838_v36, %v7673_v8  ;;  %v2515_v15 = vadd.f32 %v7953_v3, %v2452_v10  ;;  %v2954_v5 = vadd.f32 %v2891_v56, %v2765_v27  ;;  %v763_v35 = vld [vmem:[%s5926_s8 + $0xd8] sm:$0xff]  ;;  %v5205_v0 = vld [vmem:[%s5918_s20 + $0x160] sm:$0xff] }
 0x2b5   : > { %v7965_v41 = vpop.xlane.xlu1 %1152  ;;  %4783 = vpow2.f32 %v1838_v28  ;;  %v3080_v12 = vmul.f32 %v5204_v26, %v3017_v38  ;;  %v2796_v51 = vmul.f32 %v5205_v0, %v2733_v20  ;;  %v3048_v57 = vmul.f32 %v7838_v36, %v7690_v53  ;;  %v5207_v28 = vld [vmem:[%s5936_s0 + $0x68] sm:$0xff]  ;;  %v1266_v26 = vld [vmem:[%s5936_s0 + $0xd0] sm:$0xff] }
 0x2b6   : > { %4785 = vpow2.f32 %v2027_v17  ;;  %v2922_v8 = vmul.f32 %v5206_v55, %v2859_v61  ;;  %v7974_v34 = vpop.xlane.xlu0 %1464  ;;  %v3269_v27 = vmul.f32 %v5207_v28, %v3206_v23  ;;  %v3237_v56 = vmul.f32 %v7838_v36, %v7716_v46  ;;  %v1297_v38 = vld [vmem:[%s5936_s0 + $0x1c8] sm:$0xff]  ;;  %v5208_v61 = vld [vmem:[%s5933_s21 + $0x160] sm:$0xff]  ;;  %v1046_v55 = vld [vmem:[%s5933_s21 + $0x1d0] sm:$0xff] }
 0x2b7   : > { %v3143_v10 = vadd.f32 %v3080_v12, %v2954_v5  ;;  %v857_v17 = vmul.f32 %v7759_v54, %v794_v40  ;;  %4787 = vpow2.f32 %v2216_v6  ;;  %v3111_v0 = vmul.f32 %v5208_v61, %v3048_v57  ;;  %v1015_v40 = vld [vmem:[%s5933_s21 + $0xd8] sm:$0xff] }
 0x2b8   : > { %v2985_v20 = vadd.f32 %v2922_v8, %v2796_v51  ;;  %v826_v53 = vmul.f32 %v7759_v54, %v763_v35  ;;  %v2578_v23 = vadd.f32 %v7958_v62, %v2515_v15  ;;  %4789 = vpow2.f32 %v2405_v29  ;;  %v5209_v51 = vld [vmem:[%s5936_s0 + $0x160] sm:$0xff] }
 0x2b9   : > { %v7985_v16 = vpop.xlane.xlu1 %712  ;;  %v3332_v5 = vadd.f32 %v3269_v27, %v3143_v10  ;;  %978 = vadd.xlane.f32.xlu1 %v857_v17  ;;  %v9823_v46 = vmax.f32 %v7735_v42, %v7764_v50  ;;  %v3300_v8 = vmul.f32 %v5209_v51, %v3237_v56  ;;  %v1360_v35 = vmul.f32 %v7759_v54, %v1297_v38 }
 0x2ba   : > { %v3174_v12 = vadd.f32 %v3111_v0, %v2985_v20  ;;  %916 = vadd.xlane.f32.xlu0 %v826_v53  ;;  %v1329_v57 = vmul.f32 %v7759_v54, %v1266_v26  ;;  %v7998_v15 = vpop.xlane.xlu0 %1214  ;;  %4791 = vrcp.f32 %v2609_v52  ;;  %v1109_v10 = vmul.f32 %v7759_v54, %v1046_v55 }
 0x2bb   : > { %v1603_v36 = vmax.f32 %v9823_v46, %v7815_v13  ;;  %v7993_v6 = vpop.eup %4775  ;;  %4207 = vmatmul.mubr.f32.gmra.mrb[26].mxu0 %v3332_v5  ;;  %v1078_v56 = vmul.f32 %v7759_v54, %v1015_v40  ;;  %v8011_v38 = vmax.f32 %v7927_v1, %v7863_v31  ;;  %4793 = vrcp.f32 %v2578_v23 }
 0x2bc   : > { %v8000_v29 = vpop.eup %4777  ;;  %v3363_v17 = vadd.f32 %v3300_v8, %v3174_v12  ;;  %4209 = vmatprep.mubr.msk.f32.mxu0 %vm5593_vm0, %v9771_v39 }
 0x2bd   : > { %v1666_v28 = vmax.f32 %v1603_v36, %v7853_v21  ;;  %v2453_v27 = vadd.f32 %v8000_v29, %v7993_v6  ;;  %v8013_v26 = vpop.xlane.xlu1 %964  ;;  %v8015_v52 = vpop.eup %4779  ;;  %1480 = vadd.xlane.f32.xlu1 %v1360_v35  ;;  %v1698_v46 = vsub.f32 %v9821_v25, %v8011_v38  ;;  %v1887_v12 = vsub.f32 %v7728_v9, %v8011_v38 }
 0x2be   : > { %v8021_v55 = vpop.f32.mrb[0].mxu0  ;;  %v8023_v5 = vpop.eup %4781  ;;  %4300 = vmatmul.mubr.f32.gmra.mrb[24].mxu1 %v3363_v17  ;;  %1418 = vadd.xlane.f32.xlu0 %v1329_v57  ;;  %v2076_v35 = vsub.f32 %v7780_v4, %v8011_v38  ;;  %v537_v17 = vld [vmem:[%s5918_s20 + $0x1d8] sm:$0xff]  ;;  %v2829_v4 = vmul.f32 %v7904_v58, %v7782_v2 }
 0x2bf   : > { %v1729_v20 = vsub.f32 %v7735_v42, %v1666_v28  ;;  %v1918_v61 = vsub.f32 %v7764_v50, %v1666_v28  ;;  %v2107_v0 = vsub.f32 %v7815_v13, %v1666_v28  ;;  %v2296_v53 = vsub.f32 %v7853_v21, %v1666_v28  ;;  %v4169_v50 = vpop.f32.mrb[1].mxu0  ;;  %v8030_v36 = vpop.xlane.xlu0 %902  ;;  %4302 = vmatprep.mubr.msk.f32.mxu1 %vm5593_vm0, %v9771_v39 }
 0x2c0   : > { %v2516_v1 = vadd.f32 %v8015_v52, %v2453_v27  ;;  %v2703_v42 = vmul.f32 %v7904_v58, %v7774_v49  ;;  %v8032_v13 = vpop.eup %4783  ;;  %v1778_v9 = vmul.f32 1.442695, %v1698_v46  ;;  %v2265_v27 = vsub.f32 %v7863_v31, %v8011_v38  ;;  %v9825_v38 = vld [vmem:[#allocation30_spill] sm:$0xff] }
 0x2c1   : > { %v1840_v23 = vmul.f32 1.442695, %v1729_v20  ;;  %v2029_v40 = vmul.f32 1.442695, %v1918_v61  ;;  %v8040_v25 = vpop.eup %4785  ;;  %v2218_v51 = vmul.f32 1.442695, %v2107_v0  ;;  %v8045_v57 = vpop.xlane.xlu1 %1466  ;;  %1230 = vadd.xlane.f32.xlu1 %v1109_v10  ;;  %v1510_v50 = vmax.f32 %v9825_v38, %v7843_v43 }
 0x2c2   : > { %v2579_v49 = vadd.f32 %v8023_v5, %v2516_v1  ;;  %v2407_v8 = vmul.f32 1.442695, %v2296_v53  ;;  %v2484_v28 = vadd.f32 %v8040_v25, %v8032_v13  ;;  %v8052_v20 = vpop.eup %4787  ;;  %1168 = vadd.xlane.f32.xlu0 %v1078_v56  ;;  %v5210_v61 = vld [vmem:[%s5918_s20 + $0x70] sm:$0xff]  ;;  %v3018_v53 = vmul.f32 %v7904_v58, %v7794_v59  ;;  %v506_v10 = vld [vmem:[%s5918_s20 + $0xe0] sm:$0xff] }
 0x2c3   : > { %4795 = vpow2.f32 %v1840_v23  ;;  %9824 = vst [vmem:[#allocation36_spill] sm:$0xff] %v8052_v20  ;;  %v2766_v0 = vmul.f32 %v5210_v61, %v2703_v42  ;;  %v8060_v1 = vpop.xlane.xlu0 %1404  ;;  %v8062_v46 = vpop.eup %4789  ;;  %v3207_v56 = vmul.f32 %v7904_v58, %v7800_v7  ;;  %v1967_v2 = vmul.f32 1.442695, %v1887_v12  ;;  %v5211_v42 = vld [vmem:[%s5926_s8 + $0x70] sm:$0xff]  ;;  %v5212_v12 = vld [vmem:[%s5933_s21 + $0x70] sm:$0xff] }
 0x2c4   : > { %4797 = vrcp.f32 %v2579_v49  ;;  %v2547_v31 = vadd.f32 %v8052_v20, %v2484_v28  ;;  %v2892_v59 = vmul.f32 %v5211_v42, %v2829_v4  ;;  %v606_v23 = vmul.f32 %v7759_v54, %v537_v17  ;;  %v8071_v49 = vpop.eup %4791  ;;  %v5213_v4 = vld [vmem:[%s5936_s0 + $0x70] sm:$0xff]  ;;  %v5214_v42 = vld [vmem:[%s5918_s20 + $0x168] sm:$0xff] }
 0x2c5   : > { %4799 = vpow2.f32 %v2029_v40  ;;  %v2156_v28 = vmul.f32 1.442695, %v2076_v35  ;;  %v575_v21 = vmul.f32 %v7759_v54, %v506_v10  ;;  %v795_v40 = vld [vmem:[%s5926_s8 + $0x1d8] sm:$0xff]  ;;  %v8076_v20 = vpop.xlane.xlu1 %1216  ;;  %v2345_v7 = vmul.f32 1.442695, %v2265_v27  ;;  %v764_v27 = vld [vmem:[%s5926_s8 + $0xe0] sm:$0xff] }
 0x2c6   : > { %4801 = vpow2.f32 %v2218_v51  ;;  %v2610_v61 = vadd.f32 %v8062_v46, %v2547_v31  ;;  %v2955_v58 = vadd.f32 %v2892_v59, %v2766_v0  ;;  %v3081_v51 = vmul.f32 %v5212_v12, %v3018_v53  ;;  %728 = vadd.xlane.f32.xlu1 %v606_v23  ;;  %v8089_v0 = vpop.eup %4793  ;;  %v5215_v59 = vld [vmem:[%s5926_s8 + $0x168] sm:$0xff]  ;;  %v1267_v23 = vld [vmem:[%s5936_s0 + $0xd8] sm:$0xff] }
 0x2c7   : > { %4803 = vpow2.f32 %v2407_v8  ;;  %v8079_v17 = vpop.xlane.xlu0 %1154  ;;  %v3270_v31 = vmul.f32 %v5213_v4, %v3207_v56  ;;  %666 = vadd.xlane.f32.xlu0 %v575_v21  ;;  %v2734_v8 = vmul.f32 %v7945_v45, %v7808_v37  ;;  %v2860_v35 = vmul.f32 %v7945_v45, %v7817_v14  ;;  %v1298_v56 = vld [vmem:[%s5936_s0 + $0x1d0] sm:$0xff] }
 0x2c8   : > { %4805 = vpow2.f32 %v1778_v9  ;;  %v3049_v9 = vmul.f32 %v7945_v45, %v7828_v22  ;;  %v3144_v53 = vadd.f32 %v3081_v51, %v2955_v58  ;;  %v3238_v10 = vmul.f32 %v7945_v45, %v7847_v24 }
 0x2c9   : > { %4807 = vpow2.f32 %v1967_v2  ;;  %v858_v21 = vmul.f32 %v7759_v54, %v795_v40  ;;  %v9826_v37 = vmax.f32 %v7806_v32, %v7836_v11  ;;  %v2797_v22 = vmul.f32 %v5214_v42, %v2734_v8  ;;  %v8102_v58 = vpop.xlane.xlu1 %904  ;;  %v1047_v40 = vld [vmem:[%s5933_s21 + $0x1d8] sm:$0xff] }
 0x2ca   : > { %4809 = vrcp.f32 %v2610_v61  ;;  %v2923_v2 = vmul.f32 %v5215_v59, %v2860_v35  ;;  %v3333_v24 = vadd.f32 %v3270_v31, %v3144_v53  ;;  %v1573_v45 = vmax.f32 %v1510_v50, %v7894_v47  ;;  %v5216_v35 = vld [vmem:[%s5933_s21 + $0x168] sm:$0xff]  ;;  %v5217_v42 = vld [vmem:[%s5936_s0 + $0x168] sm:$0xff] }
 0x2cb   : > { %v1604_v14 = vmax.f32 %v9826_v37, %v7884_v63  ;;  %4811 = vpow2.f32 %v2156_v28  ;;  %980 = vadd.xlane.f32.xlu1 %v858_v21  ;;  %v827_v61 = vmul.f32 %v7759_v54, %v764_v27  ;;  %v8107_v12 = vpop.f32.mrb[2].mxu0  ;;  %v8109_v51 = vpop.xlane.xlu0 %714  ;;  %v3112_v37 = vmul.f32 %v5216_v35, %v3049_v9  ;;  %v9828_v27 = vld [vmem:[#allocation29_spill] sm:$0xff] }
 0x2cc   : > { %9827 = vst [vmem:[#allocation37_spill] sm:$0xff] %v8109_v51  ;;  %v2986_v8 = vadd.f32 %v2923_v2, %v2797_v22  ;;  %v3301_v59 = vmul.f32 %v5217_v42, %v3238_v10  ;;  %v1361_v28 = vmul.f32 %v7759_v54, %v1298_v56  ;;  %v4172_v31 = vpop.f32.mrb[3].mxu0  ;;  %4813 = vpow2.f32 %v2345_v7  ;;  %4210 = vmatmul.mubr.f32.gmra.mrb[28].mxu0 %v3333_v24  ;;  %v1016_v22 = vld [vmem:[%s5933_s21 + $0xe0] sm:$0xff] }
 0x2cd   : > { %v8111_v4 = vpop.eup %4795  ;;  %918 = vadd.xlane.f32.xlu0 %v827_v61  ;;  %v1511_v53 = vmax.f32 %v9828_v27, %v7911_v60  ;;  %v1330_v21 = vmul.f32 %v7759_v54, %v1267_v23  ;;  %v1636_v51 = vmax.f32 %v1573_v45, %v7937_v48  ;;  %v1110_v56 = vmul.f32 %v7759_v54, %v1047_v40  ;;  %v8143_v31 = vpop.xlane.xlu1 %1406 }
 0x2ce   : > { %v8116_v50 = vpop.eup %4797  ;;  %v3175_v9 = vadd.f32 %v3112_v37, %v2986_v8  ;;  %4212 = vmatprep.mubr.msk.f32.mxu0 %vm5593_vm0, %v9771_v39  ;;  %v1667_v7 = vmax.f32 %v1604_v14, %v7974_v34  ;;  %v1079_v42 = vmul.f32 %v7759_v54, %v1016_v22 }
 0x2cf   : > { %v8123_v2 = vpop.eup %4799  ;;  %1482 = vadd.xlane.f32.xlu1 %v1361_v28  ;;  %v1699_v45 = vsub.f32 %v9825_v38, %v1636_v51  ;;  %v1888_v61 = vsub.f32 %v7843_v43, %v1636_v51  ;;  %v2077_v8 = vsub.f32 %v7894_v47, %v1636_v51  ;;  %v2266_v37 = vsub.f32 %v7937_v48, %v1636_v51 }
 0x2d0   : > { %9829 = vst [vmem:[#allocation38_spill] sm:$0xff] %v8123_v2  ;;  %v8131_v24 = vpop.eup %4801  ;;  %v2485_v23 = vadd.f32 %v8123_v2, %v8111_v4  ;;  %v3364_v40 = vadd.f32 %v3301_v59, %v3175_v9  ;;  %v1730_v14 = vsub.f32 %v7806_v32, %v1667_v7  ;;  %v1919_v47 = vsub.f32 %v7836_v11, %v1667_v7  ;;  %v8149_v2 = vpop.xlane.xlu0 %966 }
 0x2d1   : > { %9830 = vst [vmem:[#allocation39_spill] sm:$0xff] %v8131_v24  ;;  %v8138_v35 = vpop.eup %4803  ;;  %1420 = vadd.xlane.f32.xlu0 %v1330_v21  ;;  %v1780_v38 = vmul.f32 1.442695, %v1699_v45  ;;  %v1969_v43 = vmul.f32 1.442695, %v1888_v61  ;;  %v8152_v51 = vmax.f32 %v1511_v53, %v7965_v41  ;;  %v2108_v32 = vsub.f32 %v7884_v63, %v1667_v7 }
 0x2d2   : > { %9831 = vst [vmem:[#allocation40_spill] sm:$0xff] %v8138_v35  ;;  %v8145_v10 = vpop.eup %4805  ;;  %v2548_v28 = vadd.f32 %v8131_v24, %v2485_v23  ;;  %4303 = vmatmul.mubr.f32.gmra.mrb[26].mxu1 %v3364_v40  ;;  %v2158_v59 = vmul.f32 1.442695, %v2077_v8  ;;  %v2347_v48 = vmul.f32 1.442695, %v2266_v37  ;;  %v2297_v11 = vsub.f32 %v7974_v34, %v1667_v7  ;;  %v8163_v23 = vpop.f32.mrb[0].mxu1 }
 0x2d3   : > { %v8155_v22 = vpop.eup %4807  ;;  %4815 = vpow2.f32 %v1780_v38  ;;  %1232 = vadd.xlane.f32.xlu1 %v1110_v56  ;;  %4305 = vmatprep.mubr.msk.f32.mxu1 %vm5593_vm0, %v9771_v39  ;;  %v2704_v21 = vmul.f32 %v8089_v0, %v7918_v33  ;;  %v1842_v45 = vmul.f32 1.442695, %v1730_v14  ;;  %v2830_v56 = vmul.f32 %v8089_v0, %v7930_v18  ;;  %v4265_v61 = vpop.f32.mrb[1].mxu1  ;;  %v5218_v34 = vld [vmem:[%s5918_s20 + $0x78] sm:$0xff] }
 0x2d4   : > { %v2611_v9 = vadd.f32 %v8138_v35, %v2548_v28  ;;  %v8165_v53 = vpop.eup %4809  ;;  %v2454_v63 = vadd.f32 %v8155_v22, %v8145_v10  ;;  %4817 = vpow2.f32 %v1969_v43  ;;  %v2031_v33 = vmul.f32 1.442695, %v1919_v47  ;;  %v5219_v28 = vld [vmem:[%s5926_s8 + $0x78] sm:$0xff]  ;;  %v8179_v38 = vpop.xlane.xlu1 %1156  ;;  %v9832_v47 = vld [vmem:[#allocation34_spill] sm:$0xff] }
 0x2d5   : > { %v8171_v8 = vpop.eup %4811  ;;  %1170 = vadd.xlane.f32.xlu0 %v1079_v42  ;;  %v2767_v7 = vmul.f32 %v5218_v34, %v2704_v21  ;;  %v3019_v40 = vmul.f32 %v8089_v0, %v7953_v3  ;;  %v2220_v37 = vmul.f32 1.442695, %v2108_v32  ;;  %v2893_v14 = vmul.f32 %v5219_v28, %v2830_v56  ;;  %v8188_v21 = vpop.xlane.xlu0 %1468  ;;  %v5220_v56 = vld [vmem:[%s5933_s21 + $0x78] sm:$0xff]  ;;  %v5222_v28 = vld [vmem:[%s5926_s8 + $0x170] sm:$0xff] }
 0x2d6   : > { %4819 = vrcp.f32 %v2611_v9  ;;  %v3208_v18 = vmul.f32 %v8089_v0, %v7958_v62  ;;  %v8181_v42 = vpop.eup %4813  ;;  %v2409_v43 = vmul.f32 1.442695, %v2297_v11  ;;  %v2735_v3 = vmul.f32 %v8071_v49, %v9832_v47  ;;  %v538_v9 = vld [vmem:[%s5918_s20 + $0x1e0] sm:$0xff]  ;;  %v5221_v11 = vld [vmem:[%s5918_s20 + $0x170] sm:$0xff] }
 0x2d7   : > { %4821 = vpow2.f32 %v2158_v59  ;;  %v9833_v59 = vld [vmem:[#allocation35_spill] sm:$0xff]  ;;  %v2517_v62 = vadd.f32 %v8171_v8, %v2454_v63  ;;  %v2956_v0 = vadd.f32 %v2893_v14, %v2767_v7  ;;  %v3082_v61 = vmul.f32 %v5220_v56, %v3019_v40  ;;  %v8200_v63 = vld [vmem:[%s9661_s6] ss:$0 sm:$0xff]  ;;  %v9834_v40 = vld [vmem:[#allocation18_spill] sm:$0xff] }
 0x2d8   : > { %4823 = vpow2.f32 %v2347_v48  ;;  %v2861_v32 = vmul.f32 %v8071_v49, %v9833_v59  ;;  %v507_v48 = vld [vmem:[%s5918_s20 + $0xe8] sm:$0xff]  ;;  %v2798_v34 = vmul.f32 %v5221_v11, %v2735_v3  ;;  %v3050_v59 = vmul.f32 %v8071_v49, %v7913_v30  ;;  %v796_v3 = vld [vmem:[%s5926_s8 + $0x1e0] sm:$0xff]  ;;  %v765_v11 = vld [vmem:[%s5926_s8 + $0xe8] sm:$0xff] }
 0x2d9   : > { %4825 = vpow2.f32 %v1842_v45  ;;  %v3145_v45 = vadd.f32 %v3082_v61, %v2956_v0  ;;  %v5223_v7 = vld [vmem:[%s5936_s0 + $0x78] sm:$0xff]  ;;  %v607_v56 = vmul.f32 %v7759_v54, %v538_v9  ;;  %v576_v35 = vmul.f32 %v7759_v54, %v507_v48  ;;  %v5225_v61 = vld [vmem:[%s5936_s0 + $0x170] sm:$0xff]  ;;  %v8216_v9 = vpop.xlane.xlu1 %716 }
 0x2da   : > { %4827 = vpow2.f32 %v2031_v33  ;;  %v2924_v47 = vmul.f32 %v5222_v28, %v2861_v32  ;;  %v3271_v14 = vmul.f32 %v5223_v7, %v3208_v18  ;;  %v3239_v33 = vmul.f32 %v8071_v49, %v9834_v40  ;;  %v5224_v28 = vld [vmem:[%s5933_s21 + $0x170] sm:$0xff] }
 0x2db   : > { %4829 = vpow2.f32 %v2220_v37  ;;  %v3113_v30 = vmul.f32 %v5224_v28, %v3050_v59  ;;  %v8210_v24 = vpop.f32.mrb[4].mxu0  ;;  %v2580_v0 = vadd.f32 %v8181_v42, %v2517_v62  ;;  %730 = vadd.xlane.f32.xlu1 %v607_v56  ;;  %v3472_v49 = vadd.f32 %v8200_v63, %v8021_v55  ;;  %668 = vadd.xlane.f32.xlu0 %v576_v35  ;;  %v1268_v40 = vld [vmem:[%s5936_s0 + $0xe0] sm:$0xff]  ;;  %v1048_v35 = vld [vmem:[%s5933_s21 + $0x1e0] sm:$0xff] }
 0x2dc   : > { %v2987_v32 = vadd.f32 %v2924_v47, %v2798_v34  ;;  %v3334_v18 = vadd.f32 %v3271_v14, %v3145_v45  ;;  %v3302_v7 = vmul.f32 %v5225_v61, %v3239_v33  ;;  %v4175_v37 = vpop.f32.mrb[5].mxu0  ;;  %v9835_v47 = vmax.f32 %v7922_v19, %v7951_v44  ;;  %v1299_v14 = vld [vmem:[%s5936_s0 + $0x1d8] sm:$0xff]  ;;  %v8228_v33 = vpop.xlane.xlu0 %1218 }
 0x2dd   : > { %v8218_v34 = vpop.eup %4815  ;;  %v859_v59 = vmul.f32 %v7759_v54, %v796_v3  ;;  %v828_v45 = vmul.f32 %v7759_v54, %v765_v11  ;;  %4831 = vpow2.f32 %v2409_v43  ;;  %3785 = vst [vmem:[%s8233_s16] sm:$0xff] %v3472_v49  ;;  %v1637_v43 = vmax.f32 %v8152_v51, %v8060_v1 }
 0x2de   : > { %v3176_v48 = vadd.f32 %v3113_v30, %v2987_v32  ;;  %v1605_v62 = vmax.f32 %v9835_v47, %v7998_v15  ;;  %v8230_v55 = vpop.eup %4817  ;;  %4213 = vmatmul.mubr.f32.gmra.mrb[30].mxu0 %v3334_v18  ;;  %v1362_v30 = vmul.f32 %v7759_v54, %v1299_v14  ;;  %v1331_v18 = vmul.f32 %v7759_v54, %v1268_v40 }
 0x2df   : > { %v2455_v3 = vadd.f32 %v8230_v55, %v8218_v34  ;;  %4215 = vmatprep.mubr.msk.f32.mxu0 %vm5593_vm0, %v9771_v39  ;;  %982 = vadd.xlane.f32.xlu1 %v859_v59  ;;  %v2705_v61 = vmul.f32 %v8116_v50, %v7993_v6  ;;  %4833 = vrcp.f32 %v2580_v0  ;;  %v1700_v59 = vsub.f32 %v9828_v27, %v1637_v43 }
 0x2e0   : > { %v8238_v56 = vpop.eup %4819  ;;  %v3365_v11 = vadd.f32 %v3302_v7, %v3176_v48  ;;  %v1668_v32 = vmax.f32 %v1605_v62, %v8045_v57  ;;  %v2831_v7 = vmul.f32 %v8116_v50, %v8000_v29  ;;  %920 = vadd.xlane.f32.xlu0 %v828_v45  ;;  %v1889_v29 = vsub.f32 %v7911_v60, %v1637_v43  ;;  %v8270_v45 = vpop.xlane.xlu1 %968 }
 0x2e1   : > { %v8247_v28 = vpop.eup %4821  ;;  %v8268_v0 = vpop.f32.mrb[2].mxu1 }
 0x2e2   : > { %9836 = vst [vmem:[#allocation41_spill] sm:$0xff] %v8247_v28  ;;  %v8255_v49 = vpop.eup %4823  ;;  %v2518_v37 = vadd.f32 %v8247_v28, %v2455_v3  ;;  %4306 = vmatmul.mubr.f32.gmra.mrb[28].mxu1 %v3365_v11  ;;  %v1731_v51 = vsub.f32 %v7922_v19, %v1668_v32  ;;  %v1920_v48 = vsub.f32 %v7951_v44, %v1668_v32  ;;  %v4268_v40 = vpop.f32.mrb[3].mxu1  ;;  %v9840_v3 = vld [vmem:[#allocation32_spill] sm:$0xff] }
 0x2e3   : > { %9837 = vst [vmem:[#allocation42_spill] sm:$0xff] %v8255_v49  ;;  %v8260_v47 = vpop.eup %4825  ;;  %v2109_v62 = vsub.f32 %v7998_v15, %v1668_v32  ;;  %v2298_v6 = vsub.f32 %v8045_v57, %v1668_v32  ;;  %4308 = vmatprep.mubr.msk.f32.mxu1 %vm5593_vm0, %v9771_v39  ;;  %v2078_v57 = vsub.f32 %v7965_v41, %v1637_v43  ;;  %v8276_v27 = vpop.xlane.xlu0 %906  ;;  %v1017_v28 = vld [vmem:[%s5933_s21 + $0xe8] sm:$0xff] }
 0x2e4   : > { %9838 = vst [vmem:[#allocation43_spill] sm:$0xff] %v8260_v47  ;;  %v8272_v19 = vpop.eup %4827  ;;  %v2581_v44 = vadd.f32 %v8255_v49, %v2518_v37  ;;  %v1844_v14 = vmul.f32 1.442695, %v1731_v51  ;;  %v2033_v15 = vmul.f32 1.442695, %v1920_v48  ;;  %v1512_v11 = vmax.f32 %v9840_v3, %v8030_v36  ;;  %1484 = vadd.xlane.f32.xlu1 %v1362_v30  ;;  %1422 = vadd.xlane.f32.xlu0 %v1331_v18  ;;  %v5226_v30 = vld [vmem:[%s5918_s20 + $0x80] sm:$0xff] }
 0x2e5   : > { %9839 = vst [vmem:[#allocation44_spill] sm:$0xff] %v8272_v19  ;;  %v2486_v60 = vadd.f32 %v8272_v19, %v8260_v47  ;;  %v3020_v32 = vmul.f32 %v8116_v50, %v8015_v52  ;;  %v3209_v37 = vmul.f32 %v8116_v50, %v8023_v5  ;;  %v8286_v41 = vpop.eup %4829  ;;  %v2222_v51 = vmul.f32 1.442695, %v2109_v62  ;;  %v5227_v49 = vld [vmem:[%s5926_s8 + $0x80] sm:$0xff] }
 0x2e6   : > { %4835 = vrcp.f32 %v2581_v44  ;;  %v2411_v48 = vmul.f32 1.442695, %v2298_v6  ;;  %v2267_v40 = vsub.f32 %v8060_v1, %v1637_v43  ;;  %v2768_v47 = vmul.f32 %v5226_v30, %v2705_v61  ;;  %v5228_v43 = vld [vmem:[%s5933_s21 + $0x80] sm:$0xff]  ;;  %v797_v30 = vld [vmem:[%s5926_s8 + $0x1e8] sm:$0xff] }
 0x2e7   : > { %v2549_v19 = vadd.f32 %v8286_v41, %v2486_v60  ;;  %4837 = vpow2.f32 %v1844_v14  ;;  %v2894_v52 = vmul.f32 %v5227_v49, %v2831_v7  ;;  %v1782_v5 = vmul.f32 1.442695, %v1700_v59  ;;  %v8294_v18 = vpop.eup %4831  ;;  %v8298_v14 = vpop.xlane.xlu1 %1470  ;;  %v8304_v7 = vld [vmem:[%s9659_s4] ss:$0 sm:$0xff] }
 0x2e8   : > { %4839 = vpow2.f32 %v2033_v15  ;;  %v1971_v50 = vmul.f32 1.442695, %v1889_v29  ;;  %v2160_v44 = vmul.f32 1.442695, %v2078_v57  ;;  %v2349_v62 = vmul.f32 1.442695, %v2267_v40  ;;  %v8310_v29 = vpop.xlane.xlu0 %1408 }
 0x2e9   : > { %v2957_v1 = vadd.f32 %v2894_v52, %v2768_v47  ;;  %v3083_v6 = vmul.f32 %v5228_v43, %v3020_v32  ;;  %v1111_v60 = vmul.f32 %v7759_v54, %v1048_v35  ;;  %v2612_v61 = vadd.f32 %v8294_v18, %v2549_v19  ;;  %v539_v59 = vld [vmem:[%s5918_s20 + $0x1e8] sm:$0xff]  ;;  %v5230_v35 = vld [vmem:[%s5936_s0 + $0x80] sm:$0xff]  ;;  %v8315_v57 = vpop.eup %4833  ;;  %v5231_v52 = vld [vmem:[%s5918_s20 + $0x178] sm:$0xff] }
 0x2ea   : > { %4841 = vpow2.f32 %v2222_v51  ;;  %v1080_v49 = vmul.f32 %v8304_v7, %v1017_v28  ;;  %v3477_v47 = vadd.f32 %v8200_v63, %v8107_v12  ;;  %v3272_v19 = vmul.f32 %v5230_v35, %v3209_v37  ;;  %v9841_v32 = vld [vmem:[#allocation36_spill] sm:$0xff]  ;;  %v508_v51 = vld [vmem:[%s5918_s20 + $0xf0] sm:$0xff] }
 0x2eb   : > { %4843 = vpow2.f32 %v2411_v48  ;;  %v3146_v54 = vadd.f32 %v3083_v6, %v2957_v1  ;;  %1234 = vadd.xlane.f32.xlu1 %v1111_v60  ;;  %v3632_v15 = vadd.f32 %v8200_v63, %v8163_v23  ;;  %v2736_v12 = vmul.f32 %v8165_v53, %v8032_v13  ;;  %v766_v43 = vld [vmem:[%s5926_s8 + $0xf0] sm:$0xff]  ;;  %v1300_v6 = vld [vmem:[%s5936_s0 + $0x1e0] sm:$0xff] }
 0x2ec   : > { %4845 = vpow2.f32 %v1782_v5  ;;  %1172 = vadd.xlane.f32.xlu0 %v1080_v49  ;;  %3786 = vst [vmem:[%s8233_s16 + $0x8] sm:$0xff] %v3477_v47  ;;  %v2862_v28 = vmul.f32 %v8165_v53, %v8040_v25  ;;  %v3051_v37 = vmul.f32 %v8165_v53, %v9841_v32  ;;  %v3240_v48 = vmul.f32 %v8165_v53, %v8062_v46  ;;  %v5232_v5 = vld [vmem:[%s5926_s8 + $0x178] sm:$0xff]  ;;  %v9843_v32 = vld [vmem:[#allocation31_spill] sm:$0xff] }
 0x2ed   : > { %4847 = vpow2.f32 %v1971_v50  ;;  %v3335_v23 = vadd.f32 %v3272_v19, %v3146_v54  ;;  %3817 = vst [vmem:[%s8233_s16 + $0x100] sm:$0xff] %v3632_v15  ;;  %v608_v40 = vmul.f32 %v8304_v7, %v539_v59  ;;  %v1575_v13 = vmax.f32 %v1512_v11, %v8079_v17  ;;  %v8335_v60 = vpop.f32.mrb[6].mxu0  ;;  %v5233_v50 = vld [vmem:[%s5933_s21 + $0x178] sm:$0xff]  ;;  %v8343_v49 = vpop.xlane.xlu1 %1220 }
 0x2ee   : > { %4849 = vrcp.f32 %v2612_v61  ;;  %v2799_v25 = vmul.f32 %v5231_v52, %v2736_v12  ;;  %v2925_v1 = vmul.f32 %v5232_v5, %v2862_v28  ;;  %v9842_v46 = vmax.f32 %v7985_v16, %v8013_v26  ;;  %v4178_v47 = vpop.f32.mrb[7].mxu0  ;;  %v8351_v19 = vpop.xlane.xlu0 %1158  ;;  %v5234_v12 = vld [vmem:[%s5936_s0 + $0x178] sm:$0xff] }
 0x2ef   : > { %4851 = vpow2.f32 %v2160_v44  ;;  %4216 = vmatmul.mubr.f32.gmra.mrb[32].mxu0 %v3335_v23  ;;  %v3114_v61 = vmul.f32 %v5233_v50, %v3051_v37  ;;  %732 = vadd.xlane.f32.xlu1 %v608_v40  ;;  %v577_v11 = vmul.f32 %v8304_v7, %v508_v51  ;;  %v860_v44 = vmul.f32 %v8304_v7, %v797_v30 }
 0x2f0   : > { %v1606_v53 = vmax.f32 %v9842_v46, %v8076_v20  ;;  %v8345_v59 = vpop.eup %4835  ;;  %4853 = vpow2.f32 %v2349_v62  ;;  %v2988_v54 = vadd.f32 %v2925_v1, %v2799_v25  ;;  %v1638_v35 = vmax.f32 %v1575_v13, %v8143_v31  ;;  %4218 = vmatprep.mubr.msk.f32.mxu0 %vm5593_vm0, %v9771_v39  ;;  %v8360_v23 = vpop.f32.mrb[4].mxu1 }
 0x2f1   : > { %v8353_v15 = vpop.eup %4837  ;;  %v3303_v28 = vmul.f32 %v5234_v12, %v3240_v48  ;;  %670 = vadd.xlane.f32.xlu0 %v577_v11  ;;  %v1513_v37 = vmax.f32 %v9843_v32, %v8102_v58  ;;  %v829_v62 = vmul.f32 %v8304_v7, %v766_v43  ;;  %v1363_v51 = vmul.f32 %v8304_v7, %v1300_v6  ;;  %v1269_v48 = vld [vmem:[%s5936_s0 + $0xe8] sm:$0xff]  ;;  %v4271_v5 = vpop.f32.mrb[5].mxu1 }
 0x2f2   : > { %v8362_v40 = vpop.eup %4839  ;;  %v3177_v30 = vadd.f32 %v3114_v61, %v2988_v54  ;;  %v1701_v13 = vsub.f32 %v9840_v3, %v1638_v35  ;;  %v1890_v52 = vsub.f32 %v8030_v36, %v1638_v35  ;;  %v2079_v25 = vsub.f32 %v8079_v17, %v1638_v35  ;;  %v8374_v50 = vpop.xlane.xlu1 %718 }
 0x2f3   : > { %v2487_v1 = vadd.f32 %v8362_v40, %v8353_v15  ;;  %984 = vadd.xlane.f32.xlu1 %v860_v44  ;;  %v2268_v43 = vsub.f32 %v8143_v31, %v1638_v35  ;;  %v3482_v6 = vadd.f32 %v8200_v63, %v8210_v24  ;;  %v1669_v46 = vmax.f32 %v1606_v53, %v8188_v21  ;;  %v8385_v44 = vpop.xlane.xlu0 %656 }
 0x2f4   : > { %v8376_v3 = vpop.eup %4841  ;;  %v3366_v36 = vadd.f32 %v3303_v28, %v3177_v30  ;;  %v1784_v17 = vmul.f32 1.442695, %v1701_v13  ;;  %v1973_v61 = vmul.f32 1.442695, %v1890_v52  ;;  %v2162_v11 = vmul.f32 1.442695, %v2079_v25 }
 0x2f5   : > { %v8378_v47 = vpop.eup %4843  ;;  %v2550_v54 = vadd.f32 %v8376_v3, %v2487_v1  ;;  %922 = vadd.xlane.f32.xlu0 %v829_v62  ;;  %v1332_v31 = vmul.f32 %v8304_v7, %v1269_v48  ;;  %3787 = vst [vmem:[%s8233_s16 + $0x10] sm:$0xff] %v3482_v6  ;;  %v1732_v24 = vsub.f32 %v7985_v16, %v1669_v46  ;;  %9845 = vst [vmem:[#allocation20_spill] sm:$0xff] %v8385_v44  ;;  %v9846_v28 = vld [vmem:[#allocation37_spill] sm:$0xff]  ;;  %v9849_v30 = vld [vmem:[#allocation39_spill] sm:$0xff] }
 0x2f6   : > { %9844 = vst [vmem:[#allocation45_spill] sm:$0xff] %v8378_v47  ;;  %v1921_v53 = vsub.f32 %v8013_v26, %v1669_v46  ;;  %v8387_v35 = vpop.eup %4845  ;;  %4309 = vmatmul.mubr.f32.gmra.mrb[30].mxu1 %v3366_v36  ;;  %4855 = vpow2.f32 %v1784_v17  ;;  %v2351_v12 = vmul.f32 1.442695, %v2268_v43  ;;  %v2706_v62 = vmul.f32 %v8315_v57, %v8145_v10  ;;  %v8399_v25 = vpop.xlane.xlu1 %970 }
 0x2f7   : > { %v8393_v13 = vpop.eup %4847  ;;  %v2613_v16 = vadd.f32 %v8378_v47, %v2550_v54  ;;  %4857 = vpow2.f32 %v1973_v61  ;;  %1486 = vadd.xlane.f32.xlu1 %v1363_v51  ;;  %4311 = vmatprep.mubr.msk.f32.mxu1 %vm5593_vm0, %v9771_v39  ;;  %v1846_v26 = vmul.f32 1.442695, %v1732_v24  ;;  %v2110_v52 = vsub.f32 %v8076_v20, %v1669_v46  ;;  %v5235_v51 = vld [vmem:[%s5918_s20 + $0x88] sm:$0xff]  ;;  %v8413_v17 = vpop.xlane.xlu0 %908 }
 0x2f8   : > { %v8401_v48 = vpop.eup %4849  ;;  %v2456_v10 = vadd.f32 %v8393_v13, %v8387_v35  ;;  %4859 = vpow2.f32 %v2162_v11  ;;  %v2035_v5 = vmul.f32 1.442695, %v1921_v53  ;;  %v2299_v1 = vsub.f32 %v8188_v21, %v1669_v46  ;;  %9847 = vst [vmem:[#allocation46_spill] sm:$0xff] %v8413_v17  ;;  %v1049_v53 = vld [vmem:[%s5933_s21 + $0x1e8] sm:$0xff]  ;;  %v5241_v17 = vld [vmem:[%s5933_s21 + $0x180] sm:$0xff] }
 0x2f9   : > { %v8406_v43 = vpop.eup %4851  ;;  %4861 = vrcp.f32 %v2613_v16  ;;  %1424 = vadd.xlane.f32.xlu0 %v1332_v31  ;;  %v2769_v20 = vmul.f32 %v5235_v51, %v2706_v62  ;;  %v2832_v6 = vmul.f32 %v8315_v57, %v8155_v22  ;;  %v3021_v36 = vmul.f32 %v8315_v57, %v8171_v8  ;;  %v5236_v22 = vld [vmem:[%s5926_s8 + $0x88] sm:$0xff]  ;;  %v1018_v62 = vld [vmem:[%s5933_s21 + $0xf0] sm:$0xff]  ;;  %v5238_v51 = vld [vmem:[%s5933_s21 + $0x88] sm:$0xff] }
 0x2fa   : > { %v8415_v61 = vpop.eup %4853  ;;  %v2519_v21 = vadd.f32 %v8406_v43, %v2456_v10  ;;  %4863 = vpow2.f32 %v2351_v12  ;;  %v1576_v46 = vmax.f32 %v1513_v37, %v8179_v38  ;;  %v2737_v11 = vmul.f32 %v8238_v56, %v8111_v4  ;;  %v9848_v31 = vld [vmem:[#allocation38_spill] sm:$0xff]  ;;  %v5237_v37 = vld [vmem:[%s5918_s20 + $0x180] sm:$0xff] }
 0x2fb   : > { %4865 = vpow2.f32 %v1846_v26  ;;  %v2895_v54 = vmul.f32 %v5236_v22, %v2832_v6  ;;  %v3210_v8 = vmul.f32 %v8315_v57, %v8181_v42  ;;  %v2863_v24 = vmul.f32 %v8238_v56, %v9848_v31  ;;  %v5239_v6 = vld [vmem:[%s5926_s8 + $0x180] sm:$0xff]  ;;  %v8433_v57 = vpop.xlane.xlu1 %1472  ;;  %v8435_v31 = vpop.f32.mrb[8].mxu0 }
 0x2fc   : > { %4867 = vpow2.f32 %v2035_v5  ;;  %v2224_v12 = vmul.f32 1.442695, %v2110_v52  ;;  %v2413_v16 = vmul.f32 1.442695, %v2299_v1  ;;  %v2800_v10 = vmul.f32 %v5237_v37, %v2737_v11  ;;  %v9850_v5 = vld [vmem:[#allocation40_spill] sm:$0xff]  ;;  %v540_v11 = vld [vmem:[%s5918_s20 + $0x1f0] sm:$0xff] }
 0x2fd   : > { %v2958_v4 = vadd.f32 %v2895_v54, %v2769_v20  ;;  %v3084_v26 = vmul.f32 %v5238_v51, %v3021_v36  ;;  %v2926_v22 = vmul.f32 %v5239_v6, %v2863_v24  ;;  %v3052_v42 = vmul.f32 %v8238_v56, %v9849_v30  ;;  %v509_v54 = vld [vmem:[%s5918_s20 + $0xf8] sm:$0xff]  ;;  %v8444_v24 = vpop.xlane.xlu0 %1410  ;;  %v4181_v30 = vpop.f32.mrb[9].mxu0 }
 0x2fe   : > { %v2582_v52 = vadd.f32 %v8415_v61, %v2519_v21  ;;  %v3241_v1 = vmul.f32 %v8238_v56, %v9850_v5  ;;  %v1112_v20 = vmul.f32 %v8304_v7, %v1049_v53  ;;  %v1081_v36 = vmul.f32 %v8304_v7, %v1018_v62  ;;  %v5240_v51 = vld [vmem:[%s5936_s0 + $0x88] sm:$0xff]  ;;  %v5242_v56 = vld [vmem:[%s5936_s0 + $0x180] sm:$0xff]  ;;  %v767_v5 = vld [vmem:[%s5926_s8 + $0xf8] sm:$0xff] }
 0x2ff   : > { %v3147_v37 = vadd.f32 %v3084_v26, %v2958_v4  ;;  %v3273_v6 = vmul.f32 %v5240_v51, %v3210_v8  ;;  %v2989_v44 = vadd.f32 %v2926_v22, %v2800_v10  ;;  %v3115_v21 = vmul.f32 %v5241_v17, %v3052_v42  ;;  %v798_v10 = vld [vmem:[%s5926_s8 + $0x1f0] sm:$0xff] }
 0x300   : > { %v8448_v47 = vpop.eup %4855  ;;  %4869 = vpow2.f32 %v2224_v12  ;;  %v3304_v53 = vmul.f32 %v5242_v56, %v3241_v1  ;;  %1236 = vadd.xlane.f32.xlu1 %v1112_v20  ;;  %1174 = vadd.xlane.f32.xlu0 %v1081_v36  ;;  %v3637_v62 = vadd.f32 %v8200_v63, %v8268_v0  ;;  %v9851_v4 = vmax.f32 %v9846_v28, %v8149_v2 }
 0x301   : > { %v8458_v26 = vpop.eup %4857  ;;  %v3336_v17 = vadd.f32 %v3273_v6, %v3147_v37  ;;  %v3178_v22 = vadd.f32 %v3115_v21, %v2989_v44  ;;  %v609_v12 = vmul.f32 %v8304_v7, %v540_v11  ;;  %v578_v42 = vmul.f32 %v8304_v7, %v509_v54  ;;  %v8468_v20 = vpop.f32.mrb[6].mxu1 }
 0x302   : > { %v1607_v8 = vmax.f32 %v9851_v4, %v8228_v33  ;;  %v8463_v1 = vpop.eup %4859  ;;  %4871 = vrcp.f32 %v2582_v52  ;;  %v2457_v0 = vadd.f32 %v8458_v26, %v8448_v47  ;;  %3818 = vst [vmem:[%s8233_s16 + $0x108] sm:$0xff] %v3637_v62  ;;  %v861_v44 = vmul.f32 %v8304_v7, %v798_v10  ;;  %v4274_v37 = vpop.f32.mrb[7].mxu1 }
 0x303   : > { %v8470_v36 = vpop.eup %4861  ;;  %4219 = vmatmul.mubr.f32.gmra.mrb[34].mxu0 %v3336_v17  ;;  %v3367_v30 = vadd.f32 %v3304_v53, %v3178_v22  ;;  %v1639_v54 = vmax.f32 %v1576_v46, %v8310_v29  ;;  %4873 = vpow2.f32 %v2413_v16  ;;  %v830_v6 = vmul.f32 %v8304_v7, %v767_v5  ;;  %v8481_v56 = vpop.xlane.xlu1 %1222  ;;  %v1301_v37 = vld [vmem:[%s5936_s0 + $0x1e8] sm:$0xff] }
 0x304   : > { %v1670_v11 = vmax.f32 %v1607_v8, %v8298_v14  ;;  %v8475_v51 = vpop.eup %4863  ;;  %v2520_v52 = vadd.f32 %v8463_v1, %v2457_v0  ;;  %734 = vadd.xlane.f32.xlu1 %v609_v12  ;;  %672 = vadd.xlane.f32.xlu0 %v578_v42  ;;  %v2707_v21 = vmul.f32 %v8345_v59, %v8218_v34  ;;  %v8483_v53 = vpop.xlane.xlu0 %1160 }
 0x305   : > { %v8485_v62 = vpop.eup %4865  ;;  %4312 = vmatmul.mubr.f32.gmra.mrb[32].mxu1 %v3367_v30  ;;  %4221 = vmatprep.mubr.msk.f32.mxu0 %vm5593_vm0, %v9771_v39  ;;  %v1702_v34 = vsub.f32 %v9843_v32, %v1639_v54  ;;  %v1891_v22 = vsub.f32 %v8102_v58, %v1639_v54  ;;  %v2080_v12 = vsub.f32 %v8179_v38, %v1639_v54  ;;  %v9853_v58 = vld [vmem:[#allocation33_spill] sm:$0xff] }
 0x306   : > { %v1733_v46 = vsub.f32 %v9846_v28, %v1670_v11  ;;  %v1922_v4 = vsub.f32 %v8149_v2, %v1670_v11  ;;  %v2111_v16 = vsub.f32 %v8228_v33, %v1670_v11  ;;  %v2300_v8 = vsub.f32 %v8298_v14, %v1670_v11  ;;  %v8491_v10 = vpop.eup %4867  ;;  %4314 = vmatprep.mubr.msk.f32.mxu1 %vm5593_vm0, %v9771_v39 }
 0x307   : > { %9852 = vst [vmem:[#allocation47_spill] sm:$0xff] %v8491_v10  ;;  %v2583_v17 = vadd.f32 %v8475_v51, %v2520_v52  ;;  %v2833_v28 = vmul.f32 %v8345_v59, %v8230_v55  ;;  %v2488_v2 = vadd.f32 %v8491_v10, %v8485_v62  ;;  %v1545_v32 = vmax.f32 %v8216_v9, %v8270_v45  ;;  %v8509_v5 = vpop.xlane.xlu1 %720  ;;  %v1270_v55 = vld [vmem:[%s5936_s0 + $0xf0] sm:$0xff]  ;;  %v9856_v10 = vld [vmem:[#allocation42_spill] sm:$0xff] }
 0x308   : > { %v1848_v33 = vmul.f32 1.442695, %v1733_v46  ;;  %v2037_v14 = vmul.f32 1.442695, %v1922_v4  ;;  %986 = vadd.xlane.f32.xlu1 %v861_v44  ;;  %924 = vadd.xlane.f32.xlu0 %v830_v6  ;;  %v2226_v42 = vmul.f32 1.442695, %v2111_v16  ;;  %v8511_v0 = vpop.xlane.xlu0 %658  ;;  %v2269_v11 = vsub.f32 %v8310_v29, %v1639_v54 }
 0x309   : > { %4875 = vrcp.f32 %v2583_v17  ;;  %9854 = vst [vmem:[#allocation48_spill] sm:$0xff] %v8511_v0  ;;  %v2415_v38 = vmul.f32 1.442695, %v2300_v8  ;;  %v1786_v30 = vmul.f32 1.442695, %v1702_v34  ;;  %v5243_v46 = vld [vmem:[%s5918_s20 + $0x90] sm:$0xff]  ;;  %v3211_v29 = vmul.f32 %v8345_v59, %v9856_v10 }
 0x30a   : > { %4877 = vpow2.f32 %v1848_v33  ;;  %v8515_v52 = vpop.eup %4869  ;;  %v2770_v4 = vmul.f32 %v5243_v46, %v2707_v21  ;;  %v5244_v44 = vld [vmem:[%s5926_s8 + $0x90] sm:$0xff]  ;;  %v9855_v17 = vld [vmem:[#allocation41_spill] sm:$0xff]  ;;  %v1975_v8 = vmul.f32 1.442695, %v1891_v22  ;;  %v2164_v34 = vmul.f32 1.442695, %v2080_v12 }
 0x30b   : > { %4879 = vpow2.f32 %v2037_v14  ;;  %v2896_v6 = vmul.f32 %v5244_v44, %v2833_v28  ;;  %v3022_v16 = vmul.f32 %v8345_v59, %v9855_v17  ;;  %v2551_v33 = vadd.f32 %v8515_v52, %v2488_v2  ;;  %v5245_v0 = vld [vmem:[%s5933_s21 + $0x90] sm:$0xff]  ;;  %v8529_v46 = vpop.xlane.xlu1 %972  ;;  %v5246_v22 = vld [vmem:[%s5936_s0 + $0x90] sm:$0xff]  ;;  %v8535_v10 = vpop.f32.mrb[10].mxu0 }
 0x30c   : > { %v8525_v54 = vpop.eup %4871  ;;  %4881 = vpow2.f32 %v2226_v42  ;;  %v1364_v28 = vmul.f32 %v8304_v7, %v1301_v37  ;;  %v8531_v44 = vpop.xlane.xlu0 %910  ;;  %v2353_v2 = vmul.f32 1.442695, %v2269_v11  ;;  %v3274_v12 = vmul.f32 %v5246_v22, %v3211_v29  ;;  %v1050_v11 = vld [vmem:[%s5933_s21 + $0x1f0] sm:$0xff]  ;;  %v9858_v17 = vld [vmem:[#allocation44_spill] sm:$0xff] }
 0x30d   : > { %v2959_v14 = vadd.f32 %v2896_v6, %v2770_v4  ;;  %v3085_v21 = vmul.f32 %v5245_v0, %v3022_v16  ;;  %4883 = vpow2.f32 %v2415_v38  ;;  %v1333_v59 = vmul.f32 %v8304_v7, %v1270_v55  ;;  %v8537_v42 = vpop.eup %4873  ;;  %v4184_v4 = vpop.f32.mrb[11].mxu0  ;;  %v9857_v6 = vld [vmem:[#allocation43_spill] sm:$0xff]  ;;  %v5247_v22 = vld [vmem:[%s5918_s20 + $0x188] sm:$0xff] }
 0x30e   : > { %4885 = vpow2.f32 %v1786_v30  ;;  %1488 = vadd.xlane.f32.xlu1 %v1364_v28  ;;  %v3487_v37 = vadd.f32 %v8200_v63, %v8335_v60  ;;  %v3642_v38 = vadd.f32 %v8200_v63, %v8360_v23  ;;  %v2614_v55 = vadd.f32 %v8537_v42, %v2551_v33  ;;  %v1019_v60 = vld [vmem:[%s5933_s21 + $0xf8] sm:$0xff] }
 0x30f   : > { %v3148_v0 = vadd.f32 %v3085_v21, %v2959_v14  ;;  %4887 = vpow2.f32 %v1975_v8  ;;  %1426 = vadd.xlane.f32.xlu0 %v1333_v59  ;;  %v2738_v30 = vmul.f32 %v8401_v48, %v9857_v6  ;;  %v2864_v16 = vmul.f32 %v8401_v48, %v9858_v17  ;;  %v1302_v8 = vld [vmem:[%s5936_s0 + $0x1f0] sm:$0xff]  ;;  %v1271_v21 = vld [vmem:[%s5936_s0 + $0xf8] sm:$0xff]  ;;  %v8559_v28 = vpop.f32.mrb[8].mxu1  ;;  %v8572_v6 = vpop.xlane.xlu1 %1474 }
 0x310   : > { %v1608_v14 = vmax.f32 %v1545_v32, %v8343_v49  ;;  %3788 = vst [vmem:[%s8233_s16 + $0x18] sm:$0xff] %v3487_v37  ;;  %3819 = vst [vmem:[%s8233_s16 + $0x110] sm:$0xff] %v3642_v38  ;;  %v3053_v23 = vmul.f32 %v8401_v48, %v8286_v41  ;;  %v3242_v33 = vmul.f32 %v8401_v48, %v8294_v18  ;;  %4889 = vpow2.f32 %v2164_v34  ;;  %v4277_v37 = vpop.f32.mrb[9].mxu1  ;;  %v5249_v48 = vld [vmem:[%s5933_s21 + $0x188] sm:$0xff] }
 0x311   : > { %v3337_v29 = vadd.f32 %v3274_v12, %v3148_v0  ;;  %v2801_v59 = vmul.f32 %v5247_v22, %v2738_v30  ;;  %v5248_v12 = vld [vmem:[%s5926_s8 + $0x188] sm:$0xff]  ;;  %v1113_v32 = vmul.f32 %v8304_v7, %v1050_v11  ;;  %4891 = vpow2.f32 %v2353_v2  ;;  %v8574_v30 = vpop.xlane.xlu0 %1412 }
 0x312   : > { %v2927_v0 = vmul.f32 %v5248_v12, %v2864_v16  ;;  %v9859_v41 = vmax.f32 %v9853_v58, %v8276_v27  ;;  %v3116_v4 = vmul.f32 %v5249_v48, %v3053_v23  ;;  %v1082_v34 = vmul.f32 %v8304_v7, %v1019_v60  ;;  %v5250_v16 = vld [vmem:[%s5936_s0 + $0x188] sm:$0xff] }
 0x313   : > { %v8564_v38 = vpop.eup %4875  ;;  %4222 = vmatmul.mubr.f32.gmra.mrb[36].mxu0 %v3337_v29  ;;  %v3305_v22 = vmul.f32 %v5250_v16, %v3242_v33  ;;  %1238 = vadd.xlane.f32.xlu1 %v1113_v32  ;;  %v1365_v2 = vmul.f32 %v8304_v7, %v1302_v8  ;;  %v1334_v29 = vmul.f32 %v8304_v7, %v1271_v21  ;;  %4893 = vrcp.f32 %v2614_v55  ;;  %v8602_v37 = vpop.xlane.xlu1 %1224 }
 0x314   : > { %v1577_v18 = vmax.f32 %v9859_v41, %v8351_v19  ;;  %v8576_v17 = vpop.eup %4877  ;;  %v2990_v11 = vadd.f32 %v2927_v0, %v2801_v59  ;;  %1176 = vadd.xlane.f32.xlu0 %v1082_v34  ;;  %v1671_v60 = vmax.f32 %v1608_v14, %v8433_v57  ;;  %v3492_v23 = vadd.f32 %v8200_v63, %v8435_v31 }
 0x315   : > { %v8581_v12 = vpop.eup %4879  ;;  %4224 = vmatprep.mubr.msk.f32.mxu0 %vm5593_vm0, %v9771_v39  ;;  %v2708_v7 = vmul.f32 %v8525_v54, %v8387_v35  ;;  %v2834_v55 = vmul.f32 %v8525_v54, %v8393_v13 }
 0x316   : > { %v1640_v33 = vmax.f32 %v1577_v18, %v8444_v24  ;;  %v2489_v8 = vadd.f32 %v8581_v12, %v8576_v17  ;;  %v3179_v59 = vadd.f32 %v3116_v4, %v2990_v11  ;;  %v8595_v21 = vpop.eup %4881  ;;  %v1734_v14 = vsub.f32 %v8216_v9, %v1671_v60  ;;  %3789 = vst [vmem:[%s8233_s16 + $0x20] sm:$0xff] %v3492_v23  ;;  %v8609_v9 = vpop.xlane.xlu0 %1162 }
 0x317   : > { %v1923_v31 = vsub.f32 %v8270_v45, %v1671_v60  ;;  %v2112_v0 = vsub.f32 %v8343_v49, %v1671_v60  ;;  %v2301_v32 = vsub.f32 %v8433_v57, %v1671_v60  ;;  %v8604_v41 = vpop.eup %4883  ;;  %1490 = vadd.xlane.f32.xlu1 %v1365_v2 }
 0x318   : > { %v2552_v35 = vadd.f32 %v8595_v21, %v2489_v8  ;;  %v3368_v18 = vadd.f32 %v3305_v22, %v3179_v59  ;;  %v1703_v13 = vsub.f32 %v9853_v58, %v1640_v33  ;;  %v1892_v48 = vsub.f32 %v8276_v27, %v1640_v33  ;;  %v8611_v45 = vpop.eup %4885  ;;  %1428 = vadd.xlane.f32.xlu0 %v1334_v29  ;;  %v5251_v8 = vld [vmem:[%s5918_s20 + $0x98] sm:$0xff] }
 0x319   : > { %v1850_v49 = vmul.f32 1.442695, %v1734_v14  ;;  %v2039_v57 = vmul.f32 1.442695, %v1923_v31  ;;  %v2228_v4 = vmul.f32 1.442695, %v2112_v0  ;;  %v2081_v34 = vsub.f32 %v8351_v19, %v1640_v33  ;;  %v8614_v11 = vpop.eup %4887  ;;  %v8622_v19 = vpop.xlane.xlu1 %722 }
 0x31a   : > { %v2615_v16 = vadd.f32 %v8604_v41, %v2552_v35  ;;  %4315 = vmatmul.mubr.f32.gmra.mrb[34].mxu1 %v3368_v18  ;;  %v2417_v58 = vmul.f32 1.442695, %v2301_v32  ;;  %v1788_v22 = vmul.f32 1.442695, %v1703_v13  ;;  %v1977_v27 = vmul.f32 1.442695, %v1892_v48  ;;  %v8624_v23 = vpop.eup %4889  ;;  %v8630_v32 = vpop.xlane.xlu0 %660 }
 0x31b   : > { %v2458_v2 = vadd.f32 %v8614_v11, %v8611_v45  ;;  %4895 = vpow2.f32 %v1850_v49  ;;  %4317 = vmatprep.mubr.msk.f32.mxu1 %vm5593_vm0, %v9771_v39  ;;  %v2166_v29 = vmul.f32 1.442695, %v2081_v34  ;;  %v2270_v60 = vsub.f32 %v8444_v24, %v1640_v33  ;;  %v5252_v14 = vld [vmem:[%s5926_s8 + $0x98] sm:$0xff]  ;;  %v8632_v35 = vpop.eup %4891  ;;  %v8637_v13 = vpop.f32.mrb[12].mxu0 }
 0x31c   : > { %4897 = vrcp.f32 %v2615_v16  ;;  %v2771_v59 = vmul.f32 %v5251_v8, %v2708_v7  ;;  %v2897_v31 = vmul.f32 %v5252_v14, %v2834_v55  ;;  %v3023_v0 = vmul.f32 %v8525_v54, %v8406_v43  ;;  %v5253_v55 = vld [vmem:[%s5933_s21 + $0x98] sm:$0xff]  ;;  %v4187_v49 = vpop.f32.mrb[13].mxu0  ;;  %v5254_v16 = vld [vmem:[%s5936_s0 + $0x98] sm:$0xff] }
 0x31d   : > { %v2521_v24 = vadd.f32 %v8624_v23, %v2458_v2  ;;  %4899 = vpow2.f32 %v2039_v57  ;;  %v2355_v33 = vmul.f32 1.442695, %v2270_v60  ;;  %v3212_v18 = vmul.f32 %v8525_v54, %v8415_v61  ;;  %v8642_v34 = vpop.eup %4893 }
 0x31e   : > { %4901 = vpow2.f32 %v2228_v4  ;;  %v2960_v7 = vadd.f32 %v2897_v31, %v2771_v59  ;;  %v3086_v48 = vmul.f32 %v5253_v55, %v3023_v0  ;;  %v2739_v43 = vmul.f32 %v8470_v36, %v8353_v15  ;;  %v5255_v4 = vld [vmem:[%s5918_s20 + $0x190] sm:$0xff]  ;;  %v5256_v59 = vld [vmem:[%s5926_s8 + $0x190] sm:$0xff]  ;;  %v8656_v0 = vpop.xlane.xlu1 %974  ;;  %v8664_v55 = vpop.xlane.xlu0 %912 }
 0x31f   : > { %v2584_v57 = vadd.f32 %v8632_v35, %v2521_v24  ;;  %4903 = vpow2.f32 %v2417_v58  ;;  %v3275_v2 = vmul.f32 %v5254_v16, %v3212_v18  ;;  %v2865_v61 = vmul.f32 %v8470_v36, %v8362_v40  ;;  %v9860_v58 = vld [vmem:[#allocation45_spill] sm:$0xff]  ;;  %v8658_v40 = vpop.f32.mrb[10].mxu1  ;;  %v9862_v24 = vld [vmem:[#allocation20_spill] sm:$0xff] }
 0x320   : > { %4905 = vpow2.f32 %v1788_v22  ;;  %v3149_v54 = vadd.f32 %v3086_v48, %v2960_v7  ;;  %v2802_v60 = vmul.f32 %v5255_v4, %v2739_v43  ;;  %v3054_v8 = vmul.f32 %v8470_v36, %v8376_v3  ;;  %v9861_v22 = vld [vmem:[#allocation46_spill] sm:$0xff]  ;;  %v4280_v48 = vpop.f32.mrb[11].mxu1  ;;  %v5258_v16 = vld [vmem:[%s5936_s0 + $0x190] sm:$0xff] }
 0x321   : > { %4907 = vrcp.f32 %v2584_v57  ;;  %v1546_v15 = vmax.f32 %v8374_v50, %v8399_v25  ;;  %v2928_v14 = vmul.f32 %v5256_v59, %v2865_v61  ;;  %v3243_v31 = vmul.f32 %v8470_v36, %v9860_v58  ;;  %v5257_v36 = vld [vmem:[%s5933_s21 + $0x190] sm:$0xff] }
 0x322   : > { %v1515_v18 = vmax.f32 %v9862_v24, %v9861_v22  ;;  %4909 = vpow2.f32 %v1977_v27  ;;  %v3338_v3 = vadd.f32 %v3275_v2, %v3149_v54  ;;  %v3647_v7 = vadd.f32 %v8200_v63, %v8468_v20  ;;  %v5260_v58 = vld [vmem:[%s5926_s8 + $0xa0] sm:$0xff] }
 0x323   : > { %4911 = vpow2.f32 %v2166_v29  ;;  %v2991_v43 = vadd.f32 %v2928_v14, %v2802_v60  ;;  %v3117_v49 = vmul.f32 %v5257_v36, %v3054_v8  ;;  %v1609_v57 = vmax.f32 %v1546_v15, %v8481_v56 }
 0x324   : > { %4913 = vpow2.f32 %v2355_v33  ;;  %4225 = vmatmul.mubr.f32.gmra.mrb[38].mxu0 %v3338_v3  ;;  %v3306_v61 = vmul.f32 %v5258_v16, %v3243_v31  ;;  %3820 = vst [vmem:[%s8233_s16 + $0x118] sm:$0xff] %v3647_v7  ;;  %v1578_v27 = vmax.f32 %v1515_v18, %v8483_v53  ;;  %v2709_v20 = vmul.f32 %v8564_v38, %v8448_v47  ;;  %v5259_v47 = vld [vmem:[%s5918_s20 + $0xa0] sm:$0xff]  ;;  %v5262_v18 = vld [vmem:[%s5936_s0 + $0xa0] sm:$0xff]  ;;  %v8696_v7 = vpop.xlane.xlu1 %1476  ;;  %v8707_v36 = vpop.xlane.xlu0 %1414 }
 0x325   : > { %v8673_v2 = vpop.eup %4895  ;;  %v3180_v29 = vadd.f32 %v3117_v49, %v2991_v43  ;;  %4227 = vmatprep.mubr.msk.f32.mxu0 %vm5593_vm0, %v9771_v39  ;;  %v2835_v33 = vmul.f32 %v8564_v38, %v8458_v26  ;;  %v3024_v54 = vmul.f32 %v8564_v38, %v8463_v1  ;;  %v3213_v4 = vmul.f32 %v8564_v38, %v8475_v51  ;;  %v5261_v51 = vld [vmem:[%s5933_s21 + $0xa0] sm:$0xff] }
 0x326   : > { %v8683_v60 = vpop.eup %4897  ;;  %v2772_v8 = vmul.f32 %v5259_v47, %v2709_v20  ;;  %v1672_v15 = vmax.f32 %v1609_v57, %v8572_v6  ;;  %v3497_v59 = vadd.f32 %v8200_v63, %v8535_v10  ;;  %v3652_v14 = vadd.f32 %v8200_v63, %v8559_v28 }
 0x327   : > { %v8691_v26 = vpop.eup %4899  ;;  %v3369_v1 = vadd.f32 %v3306_v61, %v3180_v29  ;;  %v2898_v31 = vmul.f32 %v5260_v58, %v2835_v33  ;;  %v3087_v38 = vmul.f32 %v5261_v51, %v3024_v54  ;;  %v3276_v3 = vmul.f32 %v5262_v18, %v3213_v4 }
 0x328   : > { %v8698_v48 = vpop.eup %4901  ;;  %v2490_v10 = vadd.f32 %v8691_v26, %v8673_v2  ;;  %v1735_v43 = vsub.f32 %v8374_v50, %v1672_v15  ;;  %v1924_v63 = vsub.f32 %v8399_v25, %v1672_v15  ;;  %v2113_v28 = vsub.f32 %v8481_v56, %v1672_v15  ;;  %3790 = vst [vmem:[%s8233_s16 + $0x28] sm:$0xff] %v3497_v59 }
 0x329   : > { %3821 = vst [vmem:[%s8233_s16 + $0x120] sm:$0xff] %v3652_v14  ;;  %v8709_v49 = vpop.eup %4903  ;;  %4318 = vmatmul.mubr.f32.gmra.mrb[36].mxu1 %v3369_v1  ;;  %v2961_v57 = vadd.f32 %v2898_v31, %v2772_v8  ;;  %v2302_v16 = vsub.f32 %v8572_v6, %v1672_v15  ;;  %v1641_v61 = vmax.f32 %v1578_v27, %v8574_v30  ;;  %v8724_v8 = vpop.xlane.xlu1 %1226 }
 0x32a   : > { %v2740_v20 = vmul.f32 %v8642_v34, %v8485_v62  ;;  %v8715_v50 = vpop.eup %4905  ;;  %v2553_v25 = vadd.f32 %v8698_v48, %v2490_v10  ;;  %v1852_v56 = vmul.f32 1.442695, %v1735_v43  ;;  %v2041_v29 = vmul.f32 1.442695, %v1924_v63  ;;  %4320 = vmatprep.mubr.msk.f32.mxu1 %vm5593_vm0, %v9771_v39  ;;  %v8731_v1 = vpop.xlane.xlu0 %1164 }
 0x32b   : > { %v2230_v33 = vmul.f32 1.442695, %v2113_v28  ;;  %v8720_v54 = vpop.eup %4907  ;;  %v3150_v4 = vadd.f32 %v3087_v38, %v2961_v57  ;;  %v2419_v47 = vmul.f32 1.442695, %v2302_v16  ;;  %v1704_v6 = vsub.f32 %v9862_v24, %v1641_v61  ;;  %v8733_v58 = vpop.f32.mrb[14].mxu0  ;;  %v5263_v28 = vld [vmem:[%s5918_s20 + $0x198] sm:$0xff] }
 0x32c   : > { %v1893_v27 = vsub.f32 %v9861_v22, %v1641_v61  ;;  %v8726_v62 = vpop.eup %4909  ;;  %v2616_v15 = vadd.f32 %v8709_v49, %v2553_v25  ;;  %4915 = vpow2.f32 %v1852_v56  ;;  %v2082_v59 = vsub.f32 %v8483_v53, %v1641_v61  ;;  %v4190_v38 = vpop.f32.mrb[15].mxu0  ;;  %v9864_v57 = vld [vmem:[#allocation47_spill] sm:$0xff] }
 0x32d   : > { %v2271_v14 = vsub.f32 %v8574_v30, %v1641_v61  ;;  %v8735_v31 = vpop.eup %4911  ;;  %v2459_v22 = vadd.f32 %v8726_v62, %v8715_v50  ;;  %v3339_v24 = vadd.f32 %v3276_v3, %v3150_v4  ;;  %4917 = vpow2.f32 %v2041_v29  ;;  %v9863_v30 = vld [vmem:[#allocation48_spill] sm:$0xff]  ;;  %v8749_v61 = vpop.xlane.xlu1 %724 }
 0x32e   : > { %v1790_v51 = vmul.f32 1.442695, %v1704_v6  ;;  %v8739_v18 = vpop.eup %4913  ;;  %4919 = vrcp.f32 %v2616_v15  ;;  %v1547_v53 = vmax.f32 %v8509_v5, %v8529_v46  ;;  %v1516_v10 = vmax.f32 %v9863_v30, %v8531_v44 }
 0x32f   : > { %v1979_v43 = vmul.f32 1.442695, %v1893_v27  ;;  %v2522_v63 = vadd.f32 %v8735_v31, %v2459_v22  ;;  %4228 = vmatmul.mubr.f32.gmra.mrb[40].mxu0 %v3339_v24  ;;  %4921 = vpow2.f32 %v2230_v33  ;;  %v2803_v3 = vmul.f32 %v5263_v28, %v2740_v20  ;;  %v8757_v33 = vpop.xlane.xlu0 %662  ;;  %v8759_v20 = vpop.f32.mrb[12].mxu1  ;;  %v5266_v24 = vld [vmem:[%s5936_s0 + $0x198] sm:$0xff] }
 0x330   : > { %v2866_v16 = vmul.f32 %v8642_v34, %v9864_v57  ;;  %4923 = vpow2.f32 %v2419_v47  ;;  %v2168_v25 = vmul.f32 1.442695, %v2082_v59  ;;  %v3055_v56 = vmul.f32 %v8642_v34, %v8515_v52  ;;  %4230 = vmatprep.mubr.msk.f32.mxu0 %vm5593_vm0, %v9771_v39  ;;  %v5264_v47 = vld [vmem:[%s5926_s8 + $0x198] sm:$0xff]  ;;  %v4283_v15 = vpop.f32.mrb[13].mxu1  ;;  %v5265_v52 = vld [vmem:[%s5933_s21 + $0x198] sm:$0xff] }
 0x331   : > { %v3244_v29 = vmul.f32 %v8642_v34, %v8537_v42  ;;  %v2585_v4 = vadd.f32 %v8739_v18, %v2522_v63  ;;  %4925 = vpow2.f32 %v1790_v51  ;;  %v2357_v6 = vmul.f32 1.442695, %v2271_v14  ;;  %v8770_v14 = vld [vmem:[%s9661_s6] ss:$0 sm:$0xff]  ;;  %v8780_v63 = vpop.xlane.xlu1 %976 }
 0x332   : > { %v2929_v27 = vmul.f32 %v5264_v47, %v2866_v16  ;;  %4927 = vpow2.f32 %v1979_v43  ;;  %v3118_v59 = vmul.f32 %v5265_v52, %v3055_v56  ;;  %v1610_v42 = vmax.f32 %v1547_v53, %v8602_v37  ;;  %v5270_v56 = vld [vmem:[%s5933_s21 + $0xa8] sm:$0xff]  ;;  %v5272_v47 = vld [vmem:[%s5918_s20 + $0x1a0] sm:$0xff] }
 0x333   : > { %v1579_v34 = vmax.f32 %v1516_v10, %v8609_v9  ;;  %4929 = vrcp.f32 %v2585_v4  ;;  %v3307_v38 = vmul.f32 %v5266_v24, %v3244_v29  ;;  %v3502_v51 = vadd.f32 %v8770_v14, %v8637_v13  ;;  %v5273_v24 = vld [vmem:[%s5926_s8 + $0x1a0] sm:$0xff] }
 0x334   : > { %v2992_v22 = vadd.f32 %v2929_v27, %v2803_v3  ;;  %4931 = vpow2.f32 %v2168_v25  ;;  %v2710_v53 = vmul.f32 %v8720_v54, %v8611_v45  ;;  %v2836_v10 = vmul.f32 %v8720_v54, %v8614_v11  ;;  %v8787_v45 = vpop.xlane.xlu0 %914  ;;  %v5268_v11 = vld [vmem:[%s5918_s20 + $0xa8] sm:$0xff] }
 0x335   : > { %v3025_v43 = vmul.f32 %v8720_v54, %v8624_v23  ;;  %4933 = vpow2.f32 %v2357_v6  ;;  %3791 = vst [vmem:[%s8233_s16 + $0x30] sm:$0xff] %v3502_v51  ;;  %v3214_v13 = vmul.f32 %v8720_v54, %v8632_v35  ;;  %v2741_v3 = vmul.f32 %v8683_v60, %v8576_v17  ;;  %v5269_v23 = vld [vmem:[%s5926_s8 + $0xa8] sm:$0xff] }
 0x336   : > { %v3181_v28 = vadd.f32 %v3118_v59, %v2992_v22  ;;  %v8789_v57 = vpop.eup %4915  ;;  %v2773_v16 = vmul.f32 %v5268_v11, %v2710_v53  ;;  %v2899_v25 = vmul.f32 %v5269_v23, %v2836_v10  ;;  %v2867_v4 = vmul.f32 %v8683_v60, %v8581_v12  ;;  %v5271_v54 = vld [vmem:[%s5936_s0 + $0xa8] sm:$0xff]  ;;  %v5274_v10 = vld [vmem:[%s5933_s21 + $0x1a0] sm:$0xff] }
 0x337   : > { %v3088_v29 = vmul.f32 %v5270_v56, %v3025_v43  ;;  %v8796_v6 = vpop.eup %4917  ;;  %v3277_v17 = vmul.f32 %v5271_v54, %v3214_v13  ;;  %v2804_v27 = vmul.f32 %v5272_v47, %v2741_v3  ;;  %v3056_v15 = vmul.f32 %v8683_v60, %v8595_v21 }
 0x338   : > { %v3370_v35 = vadd.f32 %v3307_v38, %v3181_v28  ;;  %v8802_v52 = vpop.eup %4919  ;;  %v2491_v59 = vadd.f32 %v8796_v6, %v8789_v57  ;;  %v2962_v22 = vadd.f32 %v2899_v25, %v2773_v16  ;;  %v2930_v12 = vmul.f32 %v5273_v24, %v2867_v4  ;;  %v8809_v38 = vpop.xlane.xlu1 %1478  ;;  %v5275_v16 = vld [vmem:[%s5936_s0 + $0x1a0] sm:$0xff] }
 0x339   : > { %v3245_v51 = vmul.f32 %v8683_v60, %v8604_v41  ;;  %v8811_v53 = vpop.eup %4921  ;;  %v3119_v43 = vmul.f32 %v5274_v10, %v3056_v15  ;;  %v1673_v21 = vmax.f32 %v1610_v42, %v8696_v7  ;;  %v3657_v28 = vadd.f32 %v8770_v14, %v8658_v40  ;;  %v8824_v25 = vpop.xlane.xlu0 %1416 }
 0x33a   : > { %4321 = vmatmul.mubr.f32.gmra.mrb[38].mxu1 %v3370_v35  ;;  %v1642_v13 = vmax.f32 %v1579_v34, %v8707_v36  ;;  %v8818_v3 = vpop.eup %4923  ;;  %v2554_v11 = vadd.f32 %v8811_v53, %v2491_v59  ;;  %v3151_v41 = vadd.f32 %v3088_v29, %v2962_v22  ;;  %v2993_v60 = vadd.f32 %v2930_v12, %v2804_v27  ;;  %v8826_v42 = vpop.f32.mrb[16].mxu0 }
 0x33b   : > { %4323 = vmatprep.mubr.msk.f32.mxu1 %vm5593_vm0, %v9771_v39  ;;  %v3308_v23 = vmul.f32 %v5275_v16, %v3245_v51  ;;  %v8828_v56 = vpop.eup %4925  ;;  %v1736_v40 = vsub.f32 %v8509_v5, %v1673_v21  ;;  %v1925_v34 = vsub.f32 %v8529_v46, %v1673_v21  ;;  %v2114_v4 = vsub.f32 %v8602_v37, %v1673_v21  ;;  %v4193_v54 = vpop.f32.mrb[17].mxu0 }
 0x33c   : > { %v2303_v35 = vsub.f32 %v8696_v7, %v1673_v21  ;;  %3822 = vst [vmem:[%s8233_s16 + $0x128] sm:$0xff] %v3657_v28  ;;  %v8835_v29 = vpop.eup %4927  ;;  %v2617_v47 = vadd.f32 %v8818_v3, %v2554_v11  ;;  %v3340_v27 = vadd.f32 %v3277_v17, %v3151_v41  ;;  %v3182_v15 = vadd.f32 %v3119_v43, %v2993_v60  ;;  %v8841_v37 = vpop.xlane.xlu1 %1228 }
 0x33d   : > { %v1705_v59 = vsub.f32 %v9863_v30, %v1642_v13  ;;  %v4930_v22 = vpop.eup %4929  ;;  %v2460_v5 = vadd.f32 %v8835_v29, %v8828_v56  ;;  %v1854_v24 = vmul.f32 1.442695, %v1736_v40  ;;  %v2043_v46 = vmul.f32 1.442695, %v1925_v34  ;;  %v8847_v43 = vpop.xlane.xlu0 %1166 }
 0x33e   : > { %v2232_v12 = vmul.f32 1.442695, %v2114_v4  ;;  %v8843_v7 = vpop.eup %4931  ;;  %4935 = vrcp.f32 %v2617_v47  ;;  %v1548_v51 = vmax.f32 %v8622_v19, %v8656_v0  ;;  %4231 = vmatmul.mubr.f32.gmra.mrb[42].mxu0 %v3340_v27  ;;  %v3371_v17 = vadd.f32 %v3308_v23, %v3182_v15 }
 0x33f   : > { %v2421_v10 = vmul.f32 1.442695, %v2303_v35  ;;  %v8849_v30 = vpop.eup %4933  ;;  %v2523_v21 = vadd.f32 %v8843_v7, %v2460_v5  ;;  %4937 = vpow2.f32 %v1854_v24  ;;  %v1894_v28 = vsub.f32 %v8531_v44, %v1642_v13  ;;  %4233 = vmatprep.mubr.msk.f32.mxu0 %vm5593_vm0, %v9771_v39 }
 0x340   : > { %v2083_v11 = vsub.f32 %v8609_v9, %v1642_v13  ;;  %v1517_v41 = vmax.f32 %v8630_v32, %v8664_v55  ;;  %4324 = vmatmul.mubr.f32.gmra.mrb[40].mxu1 %v3371_v17  ;;  %4939 = vpow2.f32 %v2043_v46  ;;  %v1792_v60 = vmul.f32 1.442695, %v1705_v59  ;;  %v8863_v9 = vpop.f32.mrb[14].mxu1  ;;  %v8871_v27 = vpop.xlane.xlu1 %726  ;;  %v5279_v17 = vld [vmem:[%s5918_s20 + $0x1a8] sm:$0xff] }
 0x341   : > { %v2272_v16 = vsub.f32 %v8707_v36, %v1642_v13  ;;  %v2586_v23 = vadd.f32 %v8849_v30, %v2523_v21  ;;  %4941 = vpow2.f32 %v2232_v12  ;;  %v1981_v40 = vmul.f32 1.442695, %v1894_v28  ;;  %4326 = vmatprep.mubr.msk.f32.mxu1 %vm5593_vm0, %v9771_v39  ;;  %v4286_v13 = vpop.f32.mrb[15].mxu1  ;;  %v8877_v5 = vpop.xlane.xlu0 %664  ;;  %v5278_v12 = vld [vmem:[%s5933_s21 + $0xb0] sm:$0xff]  ;;  %v5280_v21 = vld [vmem:[%s5926_s8 + $0x1a8] sm:$0xff] }
 0x342   : > { %v1611_v44 = vmax.f32 %v1548_v51, %v8724_v8  ;;  %4943 = vpow2.f32 %v2421_v10  ;;  %v2170_v34 = vmul.f32 1.442695, %v2083_v11  ;;  %v1580_v4 = vmax.f32 %v1517_v41, %v8731_v1  ;;  %v5282_v13 = vld [vmem:[%s5933_s21 + $0x1a8] sm:$0xff] }
 0x343   : > { %v3507_v36 = vadd.f32 %v8770_v14, %v8733_v58  ;;  %4945 = vrcp.f32 %v2586_v23  ;;  %v2359_v35 = vmul.f32 1.442695, %v2272_v16  ;;  %v3662_v54 = vadd.f32 %v8770_v14, %v8759_v20  ;;  %v5276_v20 = vld [vmem:[%s5918_s20 + $0xb0] sm:$0xff] }
 0x344   : > { %v2711_v47 = vmul.f32 %v4930_v22, %v8715_v50  ;;  %4947 = vpow2.f32 %v1792_v60  ;;  %v2837_v15 = vmul.f32 %v4930_v22, %v8726_v62  ;;  %v3026_v59 = vmul.f32 %v4930_v22, %v8735_v31 }
 0x345   : > { %3792 = vst [vmem:[%s8233_s16 + $0x38] sm:$0xff] %v3507_v36  ;;  %v3215_v58 = vmul.f32 %v4930_v22, %v8739_v18  ;;  %4949 = vpow2.f32 %v1981_v40  ;;  %3823 = vst [vmem:[%s8233_s16 + $0x130] sm:$0xff] %v3662_v54  ;;  %v2742_v24 = vmul.f32 %v8802_v52, %v8673_v2  ;;  %v2868_v46 = vmul.f32 %v8802_v52, %v8691_v26  ;;  %v5277_v18 = vld [vmem:[%s5926_s8 + $0xb0] sm:$0xff] }
 0x346   : > { %v2774_v50 = vmul.f32 %v5276_v20, %v2711_v47  ;;  %4951 = vpow2.f32 %v2170_v34  ;;  %v1549_v62 = vmax.f32 %v8749_v61, %v8780_v63  ;;  %v1518_v31 = vmax.f32 %v8757_v33, %v8787_v45  ;;  %v5281_v40 = vld [vmem:[%s5936_s0 + $0xb0] sm:$0xff]  ;;  %v8907_v54 = vpop.xlane.xlu1 %978 }
 0x347   : > { %v2900_v22 = vmul.f32 %v5277_v18, %v2837_v15  ;;  %v3089_v51 = vmul.f32 %v5278_v12, %v3026_v59  ;;  %v2805_v10 = vmul.f32 %v5279_v17, %v2742_v24  ;;  %v2931_v2 = vmul.f32 %v5280_v21, %v2868_v46  ;;  %v5283_v59 = vld [vmem:[%s5936_s0 + $0x1a8] sm:$0xff] }
 0x348   : > { %v3057_v26 = vmul.f32 %v8802_v52, %v8698_v48  ;;  %v8895_v28 = vpop.eup %4935  ;;  %v3246_v41 = vmul.f32 %v8802_v52, %v8709_v49  ;;  %v1674_v60 = vmax.f32 %v1611_v44, %v8809_v38  ;;  %v8901_v16 = vmax.f32 %v1580_v4, %v8824_v25  ;;  %v8914_v4 = vpop.xlane.xlu0 %916 }
 0x349   : > { %v2963_v11 = vadd.f32 %v2900_v22, %v2774_v50  ;;  %v8903_v23 = vpop.eup %4937  ;;  %4953 = vpow2.f32 %v2359_v35  ;;  %v3278_v34 = vmul.f32 %v5281_v40, %v3215_v58  ;;  %v2994_v36 = vadd.f32 %v2931_v2, %v2805_v10 }
 0x34a   : > { %v3120_v48 = vmul.f32 %v5282_v13, %v3057_v26  ;;  %v8909_v47 = vpop.eup %4939  ;;  %v3309_v49 = vmul.f32 %v5283_v59, %v3246_v41  ;;  %v1737_v52 = vsub.f32 %v8622_v19, %v1674_v60  ;;  %v1926_v44 = vsub.f32 %v8656_v0, %v1674_v60  ;;  %v8927_v2 = vpop.xlane.xlu1 %1480 }
 0x34b   : > { %v3152_v15 = vadd.f32 %v3089_v51, %v2963_v11  ;;  %v8916_v20 = vpop.eup %4941  ;;  %v2492_v35 = vadd.f32 %v8909_v47, %v8903_v23  ;;  %v2115_v50 = vsub.f32 %v8724_v8, %v1674_v60  ;;  %v2304_v24 = vsub.f32 %v8809_v38, %v1674_v60  ;;  %v8937_v41 = vpop.f32.mrb[18].mxu0 }
 0x34c   : > { %v3183_v58 = vadd.f32 %v3120_v48, %v2994_v36  ;;  %v8922_v46 = vpop.eup %4943  ;;  %v1856_v22 = vmul.f32 1.442695, %v1737_v52  ;;  %v2045_v12 = vmul.f32 1.442695, %v1926_v44  ;;  %v1706_v19 = vsub.f32 %v8630_v32, %v8901_v16  ;;  %v8935_v32 = vpop.xlane.xlu0 %1418 }
 0x34d   : > { %v3341_v18 = vadd.f32 %v3278_v34, %v3152_v15  ;;  %v4946_v0 = vpop.eup %4945  ;;  %v2555_v51 = vadd.f32 %v8916_v20, %v2492_v35  ;;  %v2234_v10 = vmul.f32 1.442695, %v2115_v50  ;;  %v2423_v21 = vmul.f32 1.442695, %v2304_v24 }
 0x34e   : > { %v3372_v17 = vadd.f32 %v3309_v49, %v3183_v58  ;;  %v8929_v26 = vpop.eup %4947  ;;  %4955 = vpow2.f32 %v1856_v22  ;;  %v1794_v8 = vmul.f32 1.442695, %v1706_v19  ;;  %v1895_v38 = vsub.f32 %v8664_v55, %v8901_v16  ;;  %v8967_v49 = vpop.xlane.xlu1 %1230  ;;  %v5284_v22 = vld [vmem:[%s5918_s20 + $0xb8] sm:$0xff] }
 0x34f   : > { %4234 = vmatmul.mubr.f32.gmra.mrb[44].mxu0 %v3341_v18  ;;  %v2084_v11 = vsub.f32 %v8731_v1, %v8901_v16  ;;  %v8939_v60 = vpop.eup %4949  ;;  %v2618_v40 = vadd.f32 %v8922_v46, %v2555_v51  ;;  %4957 = vpow2.f32 %v2045_v12  ;;  %v2273_v34 = vsub.f32 %v8824_v25, %v8901_v16  ;;  %v4196_v1 = vpop.f32.mrb[19].mxu0  ;;  %v5285_v51 = vld [vmem:[%s5926_s8 + $0xb8] sm:$0xff] }
 0x350   : > { %4327 = vmatmul.mubr.f32.gmra.mrb[42].mxu1 %v3372_v17  ;;  %v3512_v55 = vadd.f32 %v8770_v14, %v8826_v42  ;;  %4236 = vmatprep.mubr.msk.f32.mxu0 %vm5593_vm0, %v9771_v39  ;;  %v8948_v36 = vpop.eup %4951  ;;  %v2461_v13 = vadd.f32 %v8939_v60, %v8929_v26  ;;  %4959 = vpow2.f32 %v2234_v10  ;;  %v1983_v48 = vmul.f32 1.442695, %v1895_v38  ;;  %v8958_v25 = vpop.f32.mrb[16].mxu1  ;;  %v5288_v38 = vld [vmem:[%s5936_s0 + $0xb8] sm:$0xff] }
 0x351   : > { %v1612_v15 = vmax.f32 %v1549_v62, %v8841_v37  ;;  %4329 = vmatprep.mubr.msk.f32.mxu1 %vm5593_vm0, %v9771_v39  ;;  %4961 = vrcp.f32 %v2618_v40  ;;  %v2172_v42 = vmul.f32 1.442695, %v2084_v11  ;;  %v1581_v16 = vmax.f32 %v1518_v31, %v8847_v43  ;;  %v4289_v62 = vpop.f32.mrb[17].mxu1  ;;  %v8971_v58 = vpop.xlane.xlu0 %1168 }
 0x352   : > { %3793 = vst [vmem:[%s8233_s16 + $0x40] sm:$0xff] %v3512_v55  ;;  %v3667_v59 = vadd.f32 %v8770_v14, %v8863_v9  ;;  %v2524_v52 = vadd.f32 %v8948_v36, %v2461_v13  ;;  %4963 = vpow2.f32 %v2423_v21  ;;  %v2361_v44 = vmul.f32 1.442695, %v2273_v34 }
 0x353   : > { %v2712_v35 = vmul.f32 %v4946_v0, %v8828_v56  ;;  %v8973_v50 = vpop.eup %4953  ;;  %4965 = vpow2.f32 %v1794_v8  ;;  %v2838_v9 = vmul.f32 %v4946_v0, %v8835_v29  ;;  %v3027_v31 = vmul.f32 %v4946_v0, %v8843_v7  ;;  %v5286_v29 = vld [vmem:[%s5933_s21 + $0xb8] sm:$0xff] }
 0x354   : > { %3824 = vst [vmem:[%s8233_s16 + $0x138] sm:$0xff] %v3667_v59  ;;  %v3216_v24 = vmul.f32 %v4946_v0, %v8849_v30  ;;  %v2587_v18 = vadd.f32 %v8973_v50, %v2524_v52  ;;  %4967 = vpow2.f32 %v1983_v48  ;;  %v2743_v12 = vmul.f32 %v8895_v28, %v8789_v57  ;;  %v5287_v30 = vld [vmem:[%s5918_s20 + $0x1b0] sm:$0xff]  ;;  %v8992_v57 = vpop.xlane.xlu1 %728  ;;  %v5291_v52 = vld [vmem:[%s5936_s0 + $0x1b0] sm:$0xff] }
 0x355   : > { %v2775_v56 = vmul.f32 %v5284_v22, %v2712_v35  ;;  %4969 = vpow2.f32 %v2172_v42  ;;  %v1550_v19 = vmax.f32 %v8871_v27, %v8907_v54  ;;  %v2901_v17 = vmul.f32 %v5285_v51, %v2838_v9  ;;  %v8998_v55 = vpop.xlane.xlu0 %666  ;;  %v5290_v48 = vld [vmem:[%s5933_s21 + $0x1b0] sm:$0xff] }
 0x356   : > { %v3090_v7 = vmul.f32 %v5286_v29, %v3027_v31  ;;  %4971 = vrcp.f32 %v2587_v18  ;;  %v2806_v0 = vmul.f32 %v5287_v30, %v2743_v12  ;;  %v2869_v10 = vmul.f32 %v8895_v28, %v8796_v6  ;;  %v5289_v6 = vld [vmem:[%s5926_s8 + $0x1b0] sm:$0xff] }
 0x357   : > { %v3058_v21 = vmul.f32 %v8895_v28, %v8811_v53  ;;  %v2964_v8 = vadd.f32 %v2901_v17, %v2775_v56  ;;  %v3279_v11 = vmul.f32 %v5288_v38, %v3216_v24  ;;  %v3247_v40 = vmul.f32 %v8895_v28, %v8818_v3 }
 0x358   : > { %v1675_v34 = vmax.f32 %v1612_v15, %v8927_v2  ;;  %v9000_v1 = vpop.eup %4955  ;;  %4973 = vpow2.f32 %v2361_v44  ;;  %v2932_v13 = vmul.f32 %v5289_v6, %v2869_v10  ;;  %v1644_v42 = vmax.f32 %v1581_v16, %v8935_v32  ;;  %v9016_v16 = vpop.xlane.xlu1 %980 }
 0x359   : > { %v3121_v53 = vmul.f32 %v5290_v48, %v3058_v21  ;;  %v9005_v59 = vpop.eup %4957  ;;  %v3153_v62 = vadd.f32 %v3090_v7, %v2964_v8  ;;  %v3310_v35 = vmul.f32 %v5291_v52, %v3247_v40 }
 0x35a   : > { %v1738_v3 = vsub.f32 %v8749_v61, %v1675_v34  ;;  %v1927_v28 = vsub.f32 %v8780_v63, %v1675_v34  ;;  %v9010_v15 = vpop.eup %4959  ;;  %v2493_v44 = vadd.f32 %v9005_v59, %v9000_v1  ;;  %v2995_v9 = vadd.f32 %v2932_v13, %v2806_v0  ;;  %v9024_v30 = vpop.xlane.xlu0 %918 }
 0x35b   : > { %v2116_v31 = vsub.f32 %v8841_v37, %v1675_v34  ;;  %v2305_v24 = vsub.f32 %v8927_v2, %v1675_v34  ;;  %v9018_v18 = vpop.eup %4961  ;;  %v3342_v22 = vadd.f32 %v3279_v11, %v3153_v62  ;;  %v1707_v61 = vsub.f32 %v8757_v33, %v1644_v42  ;;  %v9030_v21 = vpop.f32.mrb[20].mxu0 }
 0x35c   : > { %v1858_v56 = vmul.f32 1.442695, %v1738_v3  ;;  %v2047_v12 = vmul.f32 1.442695, %v1927_v28  ;;  %v9021_v63 = vpop.eup %4963  ;;  %v2556_v51 = vadd.f32 %v9010_v15, %v2493_v44  ;;  %v3184_v17 = vadd.f32 %v3121_v53, %v2995_v9  ;;  %v4199_v40 = vpop.f32.mrb[21].mxu0 }
 0x35d   : > { %v2236_v29 = vmul.f32 1.442695, %v2116_v31  ;;  %v2425_v7 = vmul.f32 1.442695, %v2305_v24  ;;  %v9026_v37 = vpop.eup %4965  ;;  %4237 = vmatmul.mubr.f32.gmra.mrb[46].mxu0 %v3342_v22  ;;  %v1796_v2 = vmul.f32 1.442695, %v1707_v61  ;;  %v1896_v0 = vsub.f32 %v8787_v45, %v1644_v42  ;;  %v9044_v13 = vpop.xlane.xlu1 %1482 }
 0x35e   : > { %4975 = vpow2.f32 %v1858_v56  ;;  %v2085_v10 = vsub.f32 %v8847_v43, %v1644_v42  ;;  %v9032_v33 = vpop.eup %4967  ;;  %v2619_v8 = vadd.f32 %v9021_v63, %v2556_v51  ;;  %v3373_v38 = vadd.f32 %v3310_v35, %v3184_v17  ;;  %4239 = vmatprep.mubr.msk.f32.mxu0 %vm5593_vm0, %v9771_v39  ;;  %v9052_v62 = vpop.xlane.xlu0 %1420  ;;  %v5292_v22 = vld [vmem:[%s5918_s20 + $0xc0] sm:$0xff] }
 0x35f   : > { %4977 = vpow2.f32 %v2047_v12  ;;  %v2274_v11 = vsub.f32 %v8935_v32, %v1644_v42  ;;  %v9038_v34 = vpop.eup %4969  ;;  %v2462_v45 = vadd.f32 %v9032_v33, %v9026_v37  ;;  %v1519_v43 = vmax.f32 %v8877_v5, %v8914_v4  ;;  %v9069_v24 = vpop.f32.mrb[18].mxu1  ;;  %v5293_v12 = vld [vmem:[%s5926_s8 + $0xc0] sm:$0xff] }
 0x360   : > { %4979 = vpow2.f32 %v2236_v29  ;;  %v1985_v6 = vmul.f32 1.442695, %v1896_v0  ;;  %v4972_v48 = vpop.eup %4971  ;;  %4330 = vmatmul.mubr.f32.gmra.mrb[44].mxu1 %v3373_v38  ;;  %v2174_v32 = vmul.f32 1.442695, %v2085_v10  ;;  %v1613_v53 = vmax.f32 %v1550_v19, %v8967_v49  ;;  %v5296_v38 = vld [vmem:[%s5926_s8 + $0x1b8] sm:$0xff] }
 0x361   : > { %4981 = vrcp.f32 %v2619_v8  ;;  %v3517_v42 = vadd.f32 %v8770_v14, %v8937_v41  ;;  %v2525_v52 = vadd.f32 %v9038_v34, %v2462_v45  ;;  %v2363_v35 = vmul.f32 1.442695, %v2274_v11  ;;  %4332 = vmatprep.mubr.msk.f32.mxu1 %vm5593_vm0, %v9771_v39  ;;  %v9080_v29 = vpop.xlane.xlu1 %1232 }
 0x362   : > { %4983 = vpow2.f32 %v2425_v7  ;;  %v3672_v3 = vadd.f32 %v8770_v14, %v8958_v25  ;;  %v9059_v28 = vpop.eup %4973  ;;  %v1582_v19 = vmax.f32 %v1519_v43, %v8971_v58  ;;  %v2713_v41 = vmul.f32 %v4972_v48, %v8929_v26  ;;  %v9085_v10 = vpop.xlane.xlu0 %1170 }
 0x363   : > { %4985 = vpow2.f32 %v1796_v2  ;;  %3794 = vst [vmem:[%s8233_s16 + $0x48] sm:$0xff] %v3517_v42  ;;  %v2839_v44 = vmul.f32 %v4972_v48, %v8939_v60  ;;  %v2588_v9 = vadd.f32 %v9059_v28, %v2525_v52  ;;  %v3028_v25 = vmul.f32 %v4972_v48, %v8948_v36  ;;  %v4292_v60 = vpop.f32.mrb[19].mxu1  ;;  %v5294_v36 = vld [vmem:[%s5933_s21 + $0xc0] sm:$0xff]  ;;  %v5295_v2 = vld [vmem:[%s5918_s20 + $0x1b8] sm:$0xff] }
 0x364   : > { %4987 = vpow2.f32 %v1985_v6  ;;  %3825 = vst [vmem:[%s8233_s16 + $0x140] sm:$0xff] %v3672_v3  ;;  %v3217_v31 = vmul.f32 %v4972_v48, %v8973_v50  ;;  %v2776_v56 = vmul.f32 %v5292_v22, %v2713_v41  ;;  %v2744_v26 = vmul.f32 %v9018_v18, %v8903_v23  ;;  %v5297_v48 = vld [vmem:[%s5936_s0 + $0xc0] sm:$0xff] }
 0x365   : > { %4989 = vpow2.f32 %v2174_v32  ;;  %v2902_v61 = vmul.f32 %v5293_v12, %v2839_v44  ;;  %v1551_v51 = vmax.f32 %v8992_v57, %v9016_v16  ;;  %v3091_v17 = vmul.f32 %v5294_v36, %v3028_v25  ;;  %v5298_v32 = vld [vmem:[%s5933_s21 + $0x1b8] sm:$0xff] }
 0x366   : > { %4991 = vrcp.f32 %v2588_v9  ;;  %v2870_v50 = vmul.f32 %v9018_v18, %v8909_v47  ;;  %v2807_v0 = vmul.f32 %v5295_v2, %v2744_v26  ;;  %v3059_v23 = vmul.f32 %v9018_v18, %v8916_v20 }
 0x367   : > { %4993 = vpow2.f32 %v2363_v35  ;;  %v2965_v7 = vadd.f32 %v2902_v61, %v2776_v56  ;;  %v3248_v47 = vmul.f32 %v9018_v18, %v8922_v46  ;;  %v1676_v40 = vmax.f32 %v1613_v53, %v9044_v13  ;;  %v5299_v53 = vld [vmem:[%s5936_s0 + $0x1b8] sm:$0xff] }
 0x368   : > { %v9087_v8 = vpop.eup %4975  ;;  %v2933_v11 = vmul.f32 %v5296_v38, %v2870_v50  ;;  %v1645_v45 = vmax.f32 %v1582_v19, %v9052_v62  ;;  %v3280_v20 = vmul.f32 %v5297_v48, %v3217_v31  ;;  %v3122_v42 = vmul.f32 %v5298_v32, %v3059_v23  ;;  %v9116_v26 = vpop.xlane.xlu1 %730 }
 0x369   : > { %v9094_v43 = vpop.eup %4977  ;;  %v3154_v6 = vadd.f32 %v3091_v17, %v2965_v7  ;;  %v3522_v52 = vadd.f32 %v8770_v14, %v9030_v21  ;;  %v3311_v3 = vmul.f32 %v5299_v53, %v3248_v47  ;;  %v1739_v19 = vsub.f32 %v8871_v27, %v1676_v40  ;;  %v9123_v36 = vpop.xlane.xlu0 %668 }
 0x36a   : > { %v9100_v35 = vpop.eup %4979  ;;  %v2494_v46 = vadd.f32 %v9094_v43, %v9087_v8  ;;  %v2996_v18 = vadd.f32 %v2933_v11, %v2807_v0  ;;  %v1928_v9 = vsub.f32 %v8907_v54, %v1676_v40  ;;  %v2117_v25 = vsub.f32 %v8967_v49, %v1676_v40 }
 0x36b   : > { %v9106_v41 = vpop.eup %4981  ;;  %v3343_v44 = vadd.f32 %v3280_v20, %v3154_v6  ;;  %v2306_v31 = vsub.f32 %v9044_v13, %v1676_v40  ;;  %3795 = vst [vmem:[%s8233_s16 + $0x50] sm:$0xff] %v3522_v52  ;;  %v1860_v12 = vmul.f32 1.442695, %v1739_v19  ;;  %v1708_v61 = vsub.f32 %v8877_v5, %v1645_v45  ;;  %v5300_v19 = vld [vmem:[%s5918_s20 + $0xc8] sm:$0xff] }
 0x36c   : > { %v9112_v21 = vpop.eup %4983  ;;  %v2557_v22 = vadd.f32 %v9100_v35, %v2494_v46  ;;  %v3185_v56 = vadd.f32 %v3122_v42, %v2996_v18  ;;  %v1520_v54 = vmax.f32 %v8998_v55, %v9024_v30  ;;  %v2049_v49 = vmul.f32 1.442695, %v1928_v9  ;;  %v9138_v6 = vpop.xlane.xlu1 %982 }
 0x36d   : > { %v9118_v27 = vpop.eup %4985  ;;  %4240 = vmatmul.mubr.f32.gmra.mrb[48].mxu0 %v3343_v44  ;;  %v2238_v60 = vmul.f32 1.442695, %v2117_v25  ;;  %v1897_v13 = vsub.f32 %v8914_v4, %v1645_v45  ;;  %4995 = vpow2.f32 %v1860_v12  ;;  %v2427_v5 = vmul.f32 1.442695, %v2306_v31  ;;  %v3526_v48 = vpop.f32.mrb[22].mxu0 }
 0x36e   : > { %v9125_v17 = vpop.eup %4987  ;;  %v2620_v50 = vadd.f32 %v9112_v21, %v2557_v22  ;;  %v3374_v7 = vadd.f32 %v3311_v3, %v3185_v56  ;;  %4242 = vmatprep.mubr.msk.f32.mxu0 %vm5593_vm0, %v9771_v39  ;;  %4997 = vpow2.f32 %v2049_v49  ;;  %v1798_v23 = vmul.f32 1.442695, %v1708_v61  ;;  %v5301_v22 = vld [vmem:[%s5926_s8 + $0xc8] sm:$0xff]  ;;  %v5304_v49 = vld [vmem:[%s5918_s20 + $0x1c0] sm:$0xff] }
 0x36f   : > { %v9130_v2 = vpop.eup %4989  ;;  %v2463_v0 = vadd.f32 %v9125_v17, %v9118_v27  ;;  %v2086_v4 = vsub.f32 %v8971_v58, %v1645_v45  ;;  %v1987_v11 = vmul.f32 1.442695, %v1897_v13  ;;  %v2275_v47 = vsub.f32 %v9052_v62, %v1645_v45  ;;  %v9150_v62 = vpop.xlane.xlu0 %920 }
 0x370   : > { %v4992_v38 = vpop.eup %4991  ;;  %4999 = vrcp.f32 %v2620_v50  ;;  %4333 = vmatmul.mubr.f32.gmra.mrb[46].mxu1 %v3374_v7  ;;  %v3677_v40 = vadd.f32 %v8770_v14, %v9069_v24  ;;  %v1614_v58 = vmax.f32 %v1551_v51, %v9080_v29  ;;  %v1583_v42 = vmax.f32 %v1520_v54, %v9085_v10  ;;  %v4202_v24 = vpop.f32.mrb[23].mxu0  ;;  %v5303_v54 = vld [vmem:[%s5936_s0 + $0xc8] sm:$0xff]  ;;  %v5305_v50 = vld [vmem:[%s5926_s8 + $0x1c0] sm:$0xff] }
 0x371   : > { %v9140_v20 = vpop.eup %4993  ;;  %v2526_v32 = vadd.f32 %v9130_v2, %v2463_v0  ;;  %5001 = vpow2.f32 %v2238_v60  ;;  %4335 = vmatprep.mubr.msk.f32.mxu1 %vm5593_vm0, %v9771_v39  ;;  %v2176_v45 = vmul.f32 1.442695, %v2086_v4  ;;  %v2365_v52 = vmul.f32 1.442695, %v2275_v47  ;;  %v3681_v3 = vpop.f32.mrb[20].mxu1 }
 0x372   : > { %5003 = vpow2.f32 %v2427_v5  ;;  %3826 = vst [vmem:[%s8233_s16 + $0x148] sm:$0xff] %v3677_v40  ;;  %v2714_v46 = vmul.f32 %v4992_v38, %v9026_v37  ;;  %v2840_v51 = vmul.f32 %v4992_v38, %v9032_v33  ;;  %v3029_v53 = vmul.f32 %v4992_v38, %v9038_v34  ;;  %v1485_v37 = vpop.xlane.xlu1 %1484  ;;  %v4295_v31 = vpop.f32.mrb[21].mxu1  ;;  %v5302_v33 = vld [vmem:[%s5933_s21 + $0xc8] sm:$0xff] }
 0x373   : > { %v2589_v18 = vadd.f32 %v9140_v20, %v2526_v32  ;;  %5005 = vpow2.f32 %v1798_v23  ;;  %v3218_v9 = vmul.f32 %v4992_v38, %v9059_v28  ;;  %v2745_v25 = vmul.f32 %v9106_v41, %v9000_v1  ;;  %v9165_v61 = vpop.xlane.xlu0 %1422  ;;  %v5307_v32 = vld [vmem:[%s5936_s0 + $0x1c0] sm:$0xff] }
 0x374   : > { %5007 = vpow2.f32 %v1987_v11  ;;  %v2777_v44 = vmul.f32 %v5300_v19, %v2714_v46  ;;  %v2903_v56 = vmul.f32 %v5301_v22, %v2840_v51  ;;  %v3092_v34 = vmul.f32 %v5302_v33, %v3029_v53 }
 0x375   : > { %5009 = vrcp.f32 %v2589_v18  ;;  %v2871_v12 = vmul.f32 %v9106_v41, %v9005_v59  ;;  %v3281_v28 = vmul.f32 %v5303_v54, %v3218_v9  ;;  %v2808_v60 = vmul.f32 %v5304_v49, %v2745_v25  ;;  %v5306_v59 = vld [vmem:[%s5933_s21 + $0x1c0] sm:$0xff] }
 0x376   : > { %5011 = vpow2.f32 %v2176_v45  ;;  %v3060_v1 = vmul.f32 %v9106_v41, %v9010_v15  ;;  %v2966_v13 = vadd.f32 %v2903_v56, %v2777_v44  ;;  %v3249_v5 = vmul.f32 %v9106_v41, %v9021_v63 }
 0x377   : > { %5013 = vpow2.f32 %v2365_v52  ;;  %v2934_v7 = vmul.f32 %v5305_v50, %v2871_v12  ;;  %v9174_v0 = vpop.eup %4995  ;;  %v1677_v4 = vmax.f32 %v1614_v58, %v1485_v37  ;;  %v9178_v38 = vmax.f32 %v1583_v42, %v9165_v61 }
 0x378   : > { %v3123_v23 = vmul.f32 %v5306_v59, %v3060_v1  ;;  %v3527_v11 = vadd.f32 %v8770_v14, %v3526_v48  ;;  %v9181_v47 = vpop.eup %4997  ;;  %v3155_v15 = vadd.f32 %v3092_v34, %v2966_v13  ;;  %v3312_v24 = vmul.f32 %v5307_v32, %v3249_v5  ;;  %v9192_v52 = vpop.xlane.xlu1 %1234 }
 0x379   : > { %v2997_v40 = vadd.f32 %v2934_v7, %v2808_v60  ;;  %v3682_v63 = vadd.f32 %v8770_v14, %v3681_v3  ;;  %v2495_v45 = vadd.f32 %v9181_v47, %v9174_v0  ;;  %v1740_v58 = vsub.f32 %v8992_v57, %v1677_v4  ;;  %v9200_v19 = vpop.xlane.xlu0 %1172 }
 0x37a   : > { %v9185_v41 = vpop.eup %4999  ;;  %v1929_v42 = vsub.f32 %v9016_v16, %v1677_v4  ;;  %v2118_v48 = vsub.f32 %v9080_v29, %v1677_v4  ;;  %3796 = vst [vmem:[%s8233_s16 + $0x58] sm:$0xff] %v3527_v11  ;;  %v3344_v18 = vadd.f32 %v3281_v28, %v3155_v15  ;;  %v2307_v53 = vsub.f32 %v1485_v37, %v1677_v4 }
 0x37b   : > { %v9195_v46 = vpop.eup %5001  ;;  %v3186_v51 = vadd.f32 %v3123_v23, %v2997_v40  ;;  %v1709_v3 = vsub.f32 %v8998_v55, %v9178_v38  ;;  %3827 = vst [vmem:[%s8233_s16 + $0x150] sm:$0xff] %v3682_v63  ;;  %v1552_v16 = vmax.f32 %v9116_v26, %v9138_v6  ;;  %v1862_v29 = vmul.f32 1.442695, %v1740_v58 }
 0x37c   : > { %v9202_v44 = vpop.eup %5003  ;;  %v2558_v57 = vadd.f32 %v9195_v46, %v2495_v45  ;;  %v2051_v9 = vmul.f32 1.442695, %v1929_v42  ;;  %v1521_v37 = vmax.f32 %v9123_v36, %v9150_v62  ;;  %4243 = vmatmul.mubr.f32.gmra.mrb[50].mxu0 %v3344_v18  ;;  %v2240_v55 = vmul.f32 1.442695, %v2118_v48  ;;  %v9218_v54 = vpop.xlane.xlu1 %732 }
 0x37d   : > { %v9207_v25 = vpop.eup %5005  ;;  %v3375_v31 = vadd.f32 %v3312_v24, %v3186_v51  ;;  %v1898_v22 = vsub.f32 %v9024_v30, %v9178_v38  ;;  %5015 = vpow2.f32 %v1862_v29  ;;  %v2429_v34 = vmul.f32 1.442695, %v2307_v53  ;;  %4245 = vmatprep.mubr.msk.f32.mxu0 %vm5593_vm0, %v9771_v39  ;;  %v3531_v4 = vpop.f32.mrb[24].mxu0  ;;  %v5308_v24 = vld [vmem:[%s5918_s20 + $0xd0] sm:$0xff]  ;;  %v5312_v51 = vld [vmem:[%s5918_s20 + $0x1c8] sm:$0xff] }
 0x37e   : > { %v9213_v56 = vpop.eup %5007  ;;  %v2621_v33 = vadd.f32 %v9202_v44, %v2558_v57  ;;  %v2087_v12 = vsub.f32 %v9085_v10, %v9178_v38  ;;  %5017 = vpow2.f32 %v2051_v9  ;;  %v1800_v30 = vmul.f32 1.442695, %v1709_v3  ;;  %v9229_v7 = vpop.xlane.xlu0 %670 }
 0x37f   : > { %v5010_v28 = vpop.eup %5009  ;;  %v2464_v49 = vadd.f32 %v9213_v56, %v9207_v25  ;;  %4336 = vmatmul.mubr.f32.gmra.mrb[48].mxu1 %v3375_v31  ;;  %v2276_v60 = vsub.f32 %v9165_v61, %v9178_v38  ;;  %v1989_v13 = vmul.f32 1.442695, %v1898_v22  ;;  %v1615_v50 = vmax.f32 %v1552_v16, %v9192_v52  ;;  %v4205_v32 = vpop.f32.mrb[25].mxu0  ;;  %v5313_v31 = vld [vmem:[%s5926_s8 + $0x1c8] sm:$0xff] }
 0x380   : > { %v9226_v1 = vpop.eup %5011  ;;  %5019 = vrcp.f32 %v2621_v33  ;;  %v2178_v10 = vmul.f32 1.442695, %v2087_v12  ;;  %4338 = vmatprep.mubr.msk.f32.mxu1 %vm5593_vm0, %v9771_v39  ;;  %v2715_v61 = vmul.f32 %v5010_v28, %v9118_v27  ;;  %v2841_v23 = vmul.f32 %v5010_v28, %v9125_v17  ;;  %v9238_v38 = vpop.xlane.xlu1 %984 }
 0x381   : > { %v9233_v5 = vpop.eup %5013  ;;  %v2527_v59 = vadd.f32 %v9226_v1, %v2464_v49  ;;  %5021 = vpow2.f32 %v2240_v55  ;;  %v3030_v11 = vmul.f32 %v5010_v28, %v9130_v2  ;;  %v3219_v15 = vmul.f32 %v5010_v28, %v9140_v20  ;;  %v5309_v2 = vld [vmem:[%s5926_s8 + $0xd0] sm:$0xff]  ;;  %v5310_v20 = vld [vmem:[%s5933_s21 + $0xd0] sm:$0xff]  ;;  %v5314_v28 = vld [vmem:[%s5933_s21 + $0x1c8] sm:$0xff] }
 0x382   : > { %5023 = vpow2.f32 %v2429_v34  ;;  %v2746_v40 = vmul.f32 %v9185_v41, %v9087_v8  ;;  %v2367_v17 = vmul.f32 1.442695, %v2276_v60  ;;  %v2778_v63 = vmul.f32 %v5308_v24, %v2715_v61  ;;  %v9247_v58 = vpop.xlane.xlu0 %922  ;;  %v5311_v8 = vld [vmem:[%s5936_s0 + $0xd0] sm:$0xff] }
 0x383   : > { %v2590_v27 = vadd.f32 %v9233_v5, %v2527_v59  ;;  %5025 = vpow2.f32 %v1800_v30  ;;  %v1584_v45 = vmax.f32 %v1521_v37, %v9200_v19  ;;  %v2904_v42 = vmul.f32 %v5309_v2, %v2841_v23  ;;  %v3686_v37 = vpop.f32.mrb[22].mxu1 }
 0x384   : > { %5027 = vpow2.f32 %v1989_v13  ;;  %v3093_v48 = vmul.f32 %v5310_v20, %v3030_v11  ;;  %v3282_v18 = vmul.f32 %v5311_v8, %v3219_v15  ;;  %v2809_v53 = vmul.f32 %v5312_v51, %v2746_v40  ;;  %v1487_v9 = vpop.xlane.xlu1 %1486  ;;  %v4298_v34 = vpop.f32.mrb[23].mxu1 }
 0x385   : > { %5029 = vrcp.f32 %v2590_v27  ;;  %v2872_v3 = vmul.f32 %v9185_v41, %v9094_v43  ;;  %v2967_v57 = vadd.f32 %v2904_v42, %v2778_v63  ;;  %v3061_v16 = vmul.f32 %v9185_v41, %v9100_v35  ;;  %v5315_v35 = vld [vmem:[%s5936_s0 + $0x1c8] sm:$0xff] }
 0x386   : > { %5031 = vpow2.f32 %v2178_v10  ;;  %v3250_v29 = vmul.f32 %v9185_v41, %v9112_v21  ;;  %v1678_v22 = vmax.f32 %v1615_v50, %v1487_v9  ;;  %v3532_v33 = vadd.f32 %v8770_v14, %v3531_v4  ;;  %v1425_v60 = vpop.xlane.xlu0 %1424 }
 0x387   : > { %5033 = vpow2.f32 %v2367_v17  ;;  %v2935_v55 = vmul.f32 %v5313_v31, %v2872_v3  ;;  %v9261_v43 = vpop.eup %5015  ;;  %v3156_v12 = vadd.f32 %v3093_v48, %v2967_v57  ;;  %v3124_v49 = vmul.f32 %v5314_v28, %v3061_v16 }
 0x388   : > { %v3313_v30 = vmul.f32 %v5315_v35, %v3250_v29  ;;  %v3687_v21 = vadd.f32 %v8770_v14, %v3686_v37  ;;  %v9266_v41 = vpop.eup %5017  ;;  %v1741_v10 = vsub.f32 %v9116_v26, %v1678_v22  ;;  %v1930_v50 = vsub.f32 %v9138_v6, %v1678_v22  ;;  %3797 = vst [vmem:[%s8233_s16 + $0x60] sm:$0xff] %v3532_v33 }
 0x389   : > { %v2998_v13 = vadd.f32 %v2935_v55, %v2809_v53  ;;  %v2119_v59 = vsub.f32 %v9192_v52, %v1678_v22  ;;  %v2496_v23 = vadd.f32 %v9266_v41, %v9261_v43  ;;  %v3345_v4 = vadd.f32 %v3282_v18, %v3156_v12  ;;  %v5316_v55 = vld [vmem:[%s5918_s20 + $0xd8] sm:$0xff] }
 0x38a   : > { %v9272_v61 = vpop.eup %5019  ;;  %v2308_v11 = vsub.f32 %v1487_v9, %v1678_v22  ;;  %v1647_v15 = vmax.f32 %v1584_v45, %v1425_v60  ;;  %3828 = vst [vmem:[%s8233_s16 + $0x158] sm:$0xff] %v3687_v21  ;;  %v1864_v32 = vmul.f32 1.442695, %v1741_v10  ;;  %v2053_v27 = vmul.f32 1.442695, %v1930_v50  ;;  %v5319_v10 = vld [vmem:[%s5933_s21 + $0xd8] sm:$0xff] }
 0x38b   : > { %v9277_v14 = vpop.eup %5021  ;;  %v3187_v40 = vadd.f32 %v3124_v49, %v2998_v13  ;;  %v2242_v26 = vmul.f32 1.442695, %v2119_v59  ;;  %4246 = vmatmul.mubr.f32.gmra.mrb[52].mxu0 %v3345_v4  ;;  %v2747_v33 = vmul.f32 %v9272_v61, %v9174_v0  ;;  %v5317_v49 = vld [vmem:[%s5926_s8 + $0xd8] sm:$0xff]  ;;  %v2873_v0 = vmul.f32 %v9272_v61, %v9181_v47  ;;  %v5320_v4 = vld [vmem:[%s5926_s8 + $0x1d0] sm:$0xff] }
 0x38c   : > { %v9279_v17 = vpop.eup %5023  ;;  %v2559_v6 = vadd.f32 %v9277_v14, %v2496_v23  ;;  %v1710_v52 = vsub.f32 %v9123_v36, %v1647_v15  ;;  %v1899_v24 = vsub.f32 %v9150_v62, %v1647_v15  ;;  %5035 = vpow2.f32 %v1864_v32  ;;  %4248 = vmatprep.mubr.msk.f32.mxu0 %vm5593_vm0, %v9771_v39  ;;  %v9330_v47 = vld [vmem:[%s9661_s6] ss:$0 sm:$0xff] }
 0x38d   : > { %v9284_v63 = vpop.eup %5025  ;;  %v3376_v2 = vadd.f32 %v3313_v30, %v3187_v40  ;;  %v2431_v45 = vmul.f32 1.442695, %v2308_v11  ;;  %v2088_v42 = vsub.f32 %v9200_v19, %v1647_v15  ;;  %5037 = vpow2.f32 %v2053_v27  ;;  %v9294_v53 = vpop.xlane.xlu1 %1236  ;;  %v5318_v30 = vld [vmem:[%s5918_s20 + $0x1d0] sm:$0xff] }
 0x38e   : > { %v9289_v20 = vpop.eup %5027  ;;  %v2622_v48 = vadd.f32 %v9279_v17, %v2559_v6  ;;  %v1802_v8 = vmul.f32 1.442695, %v1710_v52  ;;  %5039 = vpow2.f32 %v2242_v26  ;;  %v1991_v62 = vmul.f32 1.442695, %v1899_v24  ;;  %v9296_v19 = vpop.xlane.xlu0 %1174  ;;  %v5322_v6 = vld [vmem:[%s5936_s0 + $0xd8] sm:$0xff] }
 0x38f   : > { %v5030_v18 = vpop.eup %5029  ;;  %v2465_v36 = vadd.f32 %v9289_v20, %v9284_v63  ;;  %4339 = vmatmul.mubr.f32.gmra.mrb[50].mxu1 %v3376_v2  ;;  %v2277_v51 = vsub.f32 %v1425_v60, %v1647_v15  ;;  %v2180_v57 = vmul.f32 1.442695, %v2088_v42  ;;  %v3536_v34 = vpop.f32.mrb[26].mxu0  ;;  %v2810_v60 = vmul.f32 %v5318_v30, %v2747_v33  ;;  %v5323_v2 = vld [vmem:[%s5933_s21 + $0x1d0] sm:$0xff] }
 0x390   : > { %v9298_v3 = vpop.eup %5031  ;;  %5041 = vrcp.f32 %v2622_v48  ;;  %4341 = vmatprep.mubr.msk.f32.mxu1 %vm5593_vm0, %v9771_v39  ;;  %v2716_v16 = vmul.f32 %v5030_v18, %v9207_v25  ;;  %v2842_v37 = vmul.f32 %v5030_v18, %v9213_v56  ;;  %v3031_v31 = vmul.f32 %v5030_v18, %v9226_v1  ;;  %v4208_v21 = vpop.f32.mrb[27].mxu0 }
 0x391   : > { %v9303_v29 = vpop.eup %5033  ;;  %v2528_v9 = vadd.f32 %v9298_v3, %v2465_v36  ;;  %5043 = vpow2.f32 %v2431_v45  ;;  %v2369_v25 = vmul.f32 1.442695, %v2277_v51  ;;  %v9311_v12 = vpop.xlane.xlu1 %734  ;;  %v3220_v56 = vmul.f32 %v5030_v18, %v9233_v5 }
 0x392   : > { %5045 = vpow2.f32 %v1802_v8  ;;  %v2779_v22 = vmul.f32 %v5316_v55, %v2716_v16  ;;  %v9313_v28 = vpop.xlane.xlu0 %672  ;;  %v2905_v35 = vmul.f32 %v5317_v49, %v2842_v37  ;;  %v3094_v50 = vmul.f32 %v5319_v10, %v3031_v31  ;;  %v3691_v23 = vpop.f32.mrb[24].mxu1 }
 0x393   : > { %5047 = vpow2.f32 %v1991_v62  ;;  %v2591_v1 = vadd.f32 %v9303_v29, %v2528_v9  ;;  %v3062_v59 = vmul.f32 %v9272_v61, %v9195_v46  ;;  %v2936_v11 = vmul.f32 %v5320_v4, %v2873_v0  ;;  %v4301_v32 = vpop.f32.mrb[25].mxu1  ;;  %v5325_v0 = vld [vmem:[%s5918_s20 + $0x1d8] sm:$0xff] }
 0x394   : > { %5049 = vpow2.f32 %v2180_v57  ;;  %v2968_v13 = vadd.f32 %v2905_v35, %v2779_v22  ;;  %v3251_v5 = vmul.f32 %v9272_v61, %v9202_v44  ;;  %v3537_v15 = vadd.f32 %v9330_v47, %v3536_v34  ;;  %v5324_v57 = vld [vmem:[%s5936_s0 + $0x1d0] sm:$0xff] }
 0x395   : > { %v3692_v40 = vadd.f32 %v9330_v47, %v3691_v23  ;;  %5051 = vpow2.f32 %v2369_v25  ;;  %v9336_v27 = vpop.xlane.xlu1 %986  ;;  %v3283_v44 = vmul.f32 %v5322_v6, %v3220_v56  ;;  %v2999_v24 = vadd.f32 %v2936_v11, %v2810_v60  ;;  %v5327_v23 = vld [vmem:[%s5933_s21 + $0x1d8] sm:$0xff]  ;;  %v5328_v11 = vld [vmem:[%s5936_s0 + $0x1d8] sm:$0xff] }
 0x396   : > { %v9334_v46 = vpop.eup %5035  ;;  %v3157_v26 = vadd.f32 %v3094_v50, %v2968_v13  ;;  %5053 = vrcp.f32 %v2591_v1  ;;  %v9341_v52 = vpop.xlane.xlu0 %924  ;;  %v3125_v45 = vmul.f32 %v5323_v2, %v3062_v59  ;;  %3798 = vst [vmem:[%s8233_s16 + $0x68] sm:$0xff] %v3537_v15  ;;  %v1553_v36 = vmax.f32 %v9218_v54, %v9238_v38  ;;  %v5326_v13 = vld [vmem:[%s5926_s8 + $0x1d8] sm:$0xff] }
 0x397   : > { %v9339_v61 = vpop.eup %5037  ;;  %3829 = vst [vmem:[%s8233_s16 + $0x160] sm:$0xff] %v3692_v40  ;;  %v1522_v62 = vmax.f32 %v9229_v7, %v9247_v58  ;;  %v3314_v16 = vmul.f32 %v5324_v57, %v3251_v5  ;;  %v1523_v56 = vmax.f32 %v9313_v28, %v9341_v52 }
 0x398   : > { %v9346_v42 = vpop.eup %5039  ;;  %v2497_v48 = vadd.f32 %v9339_v61, %v9334_v46  ;;  %v3346_v8 = vadd.f32 %v3283_v44, %v3157_v26  ;;  %v3188_v51 = vadd.f32 %v3125_v45, %v2999_v24  ;;  %v1616_v34 = vmax.f32 %v1553_v36, %v9294_v53 }
 0x39a   : > { %v5042_v18 = vpop.eup %5041  ;;  %v2560_v37 = vadd.f32 %v9346_v42, %v2497_v48  ;;  %4249 = vmatmul.mubr.f32.gmra.mrb[54].mxu0 %v3346_v8  ;;  %v3377_v25 = vadd.f32 %v3314_v16, %v3188_v51 }
 0x39b   : > { %v9355_v9 = vpop.eup %5043  ;;  %v2748_v31 = vmul.f32 %v5042_v18, %v9261_v43  ;;  %v2874_v55 = vmul.f32 %v5042_v18, %v9266_v41  ;;  %v3063_v22 = vmul.f32 %v5042_v18, %v9277_v14  ;;  %4251 = vmatprep.mubr.msk.f32.mxu0 %vm5593_vm0, %v9771_v39  ;;  %v3252_v49 = vmul.f32 %v5042_v18, %v9279_v17  ;;  %v1489_v1 = vpop.xlane.xlu1 %1488 }
 0x39c   : > { %v9361_v33 = vpop.eup %5045  ;;  %v2623_v43 = vadd.f32 %v9355_v9, %v2560_v37  ;;  %v1585_v41 = vmax.f32 %v1522_v62, %v9296_v19  ;;  %v1554_v14 = vmax.f32 %v9311_v12, %v9336_v27  ;;  %4342 = vmatmul.mubr.f32.gmra.mrb[52].mxu1 %v3377_v25  ;;  %v1679_v17 = vmax.f32 %v1616_v34, %v1489_v1  ;;  %v1427_v60 = vpop.xlane.xlu0 %1426 }
 0x39d   : > { %v9367_v35 = vpop.eup %5047  ;;  %v2811_v21 = vmul.f32 %v5325_v0, %v2748_v31  ;;  %v2937_v10 = vmul.f32 %v5326_v13, %v2874_v55  ;;  %4344 = vmatprep.mubr.msk.f32.mxu1 %vm5593_vm0, %v9771_v39  ;;  %v3126_v4 = vmul.f32 %v5327_v23, %v3063_v22  ;;  %v9385_v5 = vmul.f32 %v5328_v11, %v3252_v49  ;;  %v5330_v0 = vld [vmem:[%s5926_s8 + $0xe0] sm:$0xff] }
 0x39e   : > { %v2466_v30 = vadd.f32 %v9367_v35, %v9361_v33  ;;  %v9379_v50 = vpop.eup %5049  ;;  %5055 = vrcp.f32 %v2623_v43  ;;  %v1648_v59 = vmax.f32 %v1585_v41, %v1427_v60  ;;  %v1742_v40 = vsub.f32 %v9218_v54, %v1679_v17 }
 0x39f   : > { %v1931_v32 = vsub.f32 %v9238_v38, %v1679_v17  ;;  %v2120_v26 = vsub.f32 %v9294_v53, %v1679_v17  ;;  %v9391_v6 = vpop.eup %5051  ;;  %v2309_v44 = vsub.f32 %v1489_v1, %v1679_v17  ;;  %v3000_v54 = vadd.f32 %v2937_v10, %v2811_v21 }
 0x3a0   : > { %v2529_v15 = vadd.f32 %v9379_v50, %v2466_v30  ;;  %v1711_v24 = vsub.f32 %v9229_v7, %v1648_v59  ;;  %v1900_v2 = vsub.f32 %v9247_v58, %v1648_v59  ;;  %v2089_v45 = vsub.f32 %v9296_v19, %v1648_v59  ;;  %v5054_v48 = vpop.eup %5053  ;;  %v1239_v62 = vpop.xlane.xlu1 %1238  ;;  %v5329_v30 = vld [vmem:[%s5918_s20 + $0xe0] sm:$0xff] }
 0x3a1   : > { %v1866_v18 = vmul.f32 1.442695, %v1742_v40  ;;  %v2055_v36 = vmul.f32 1.442695, %v1931_v32  ;;  %v2244_v51 = vmul.f32 1.442695, %v2120_v26  ;;  %v2278_v53 = vsub.f32 %v1427_v60, %v1648_v59  ;;  %v1177_v16 = vpop.xlane.xlu0 %1176 }
 0x3a2   : > { %v2592_v8 = vadd.f32 %v9391_v6, %v2529_v15  ;;  %v2433_v38 = vmul.f32 1.442695, %v2309_v44  ;;  %v1804_v57 = vmul.f32 1.442695, %v1711_v24  ;;  %v1993_v37 = vmul.f32 1.442695, %v1900_v2 }
 0x3a3   : > { %v2182_v31 = vmul.f32 1.442695, %v2089_v45  ;;  %v1617_v7 = vmax.f32 %v1554_v14, %v1239_v62  ;;  %v3541_v58 = vpop.f32.mrb[28].mxu0  ;;  %v1586_v19 = vmax.f32 %v1523_v56, %v1177_v16  ;;  %v2717_v34 = vmul.f32 %v5054_v48, %v9284_v63  ;;  %v5331_v24 = vld [vmem:[%s5933_s21 + $0xe0] sm:$0xff] }
 0x3a4   : > { %5057 = vrcp.f32 %v2592_v8  ;;  %v3542_v55 = vadd.f32 %v9330_v47, %v3541_v58  ;;  %v4211_v22 = vpop.f32.mrb[29].mxu0  ;;  %v2371_v25 = vmul.f32 1.442695, %v2278_v53  ;;  %v1491_v49 = vpop.xlane.xlu1 %1490  ;;  %v2843_v43 = vmul.f32 %v5054_v48, %v9289_v20 }
 0x3a5   : > { %5059 = vpow2.f32 %v1866_v18  ;;  %v3032_v41 = vmul.f32 %v5054_v48, %v9298_v3  ;;  %v1680_v1 = vmax.f32 %v1617_v7, %v1491_v49  ;;  %v1429_v14 = vpop.xlane.xlu0 %1428  ;;  %v2780_v17 = vmul.f32 %v5329_v30, %v2717_v34  ;;  %v3696_v13 = vpop.f32.mrb[26].mxu1 }
 0x3a6   : > { %5061 = vpow2.f32 %v2055_v36  ;;  %3799 = vst [vmem:[%s8233_s16 + $0x70] sm:$0xff] %v3542_v55  ;;  %v3221_v56 = vmul.f32 %v5054_v48, %v9303_v29  ;;  %v1649_v60 = vmax.f32 %v1586_v19, %v1429_v14  ;;  %v2906_v21 = vmul.f32 %v5330_v0, %v2843_v43  ;;  %v4304_v23 = vpop.f32.mrb[27].mxu1  ;;  %v5334_v19 = vld [vmem:[%s5926_s8 + $0xe8] sm:$0xff] }
 0x3a7   : > { %5063 = vpow2.f32 %v2244_v51  ;;  %v3189_v63 = vadd.f32 %v3126_v4, %v3000_v54  ;;  %v1743_v20 = vsub.f32 %v9311_v12, %v1680_v1  ;;  %v1932_v3 = vsub.f32 %v9336_v27, %v1680_v1  ;;  %v5332_v54 = vld [vmem:[%s5936_s0 + $0xe0] sm:$0xff] }
 0x3a8   : > { %5065 = vpow2.f32 %v2433_v38  ;;  %v9405_v10 = vpop.eup %5055  ;;  %v2121_v59 = vsub.f32 %v1239_v62, %v1680_v1  ;;  %v2310_v11 = vsub.f32 %v1491_v49, %v1680_v1  ;;  %v1712_v29 = vsub.f32 %v9313_v28, %v1649_v60 }
 0x3a9   : > { %5067 = vpow2.f32 %v1804_v57  ;;  %v1901_v15 = vsub.f32 %v9341_v52, %v1649_v60  ;;  %v1868_v40 = vmul.f32 1.442695, %v1743_v20  ;;  %v2057_v4 = vmul.f32 1.442695, %v1932_v3 }
 0x3aa   : > { %5069 = vpow2.f32 %v1993_v37  ;;  %v2246_v32 = vmul.f32 1.442695, %v2121_v59  ;;  %v2435_v26 = vmul.f32 1.442695, %v2310_v11  ;;  %v1806_v44 = vmul.f32 1.442695, %v1712_v29 }
 0x3ab   : > { %5071 = vpow2.f32 %v2182_v31  ;;  %v3095_v12 = vmul.f32 %v5331_v24, %v3032_v41  ;;  %v1995_v27 = vmul.f32 1.442695, %v1901_v15  ;;  %v2090_v2 = vsub.f32 %v1177_v16, %v1649_v60  ;;  %v5338_v59 = vld [vmem:[%s5926_s8 + $0x1e0] sm:$0xff]  ;;  %v5339_v24 = vld [vmem:[%s5933_s21 + $0x1e0] sm:$0xff] }
 0x3ac   : > { %5073 = vpow2.f32 %v2371_v25  ;;  %v2969_v45 = vadd.f32 %v2906_v21, %v2780_v17  ;;  %v2279_v28 = vsub.f32 %v1429_v14, %v1649_v60  ;;  %v3378_v52 = vadd.f32 %v9385_v5, %v3189_v63  ;;  %v5335_v25 = vld [vmem:[%s5933_s21 + $0xe8] sm:$0xff]  ;;  %v5336_v14 = vld [vmem:[%s5936_s0 + $0xe8] sm:$0xff] }
 0x3ad   : > { %5075 = vpow2.f32 %v1868_v40  ;;  %v3697_v8 = vadd.f32 %v9330_v47, %v3696_v13  ;;  %v2184_v36 = vmul.f32 1.442695, %v2090_v2  ;;  %v3284_v51 = vmul.f32 %v5332_v54, %v3221_v56  ;;  %v5337_v13 = vld [vmem:[%s5918_s20 + $0x1e0] sm:$0xff] }
 0x3ae   : > { %v5058_v48 = vpop.eup %5057  ;;  %5077 = vpow2.f32 %v2057_v4  ;;  %v3158_v62 = vadd.f32 %v3095_v12, %v2969_v45  ;;  %4345 = vmatmul.mubr.f32.gmra.mrb[54].mxu1 %v3378_v52  ;;  %v2875_v17 = vmul.f32 %v9405_v10, %v9339_v61  ;;  %v3064_v56 = vmul.f32 %v9405_v10, %v9346_v42 }
 0x3af   : > { %v9414_v18 = vpop.eup %5059  ;;  %5079 = vpow2.f32 %v2246_v32  ;;  %3830 = vst [vmem:[%s8233_s16 + $0x168] sm:$0xff] %v3697_v8  ;;  %v2718_v57 = vmul.f32 %v5058_v48, %v9361_v33  ;;  %v2844_v5 = vmul.f32 %v5058_v48, %v9367_v35  ;;  %v3033_v53 = vmul.f32 %v5058_v48, %v9379_v50  ;;  %4347 = vmatprep.mubr.msk.f32.mxu1 %vm5593_vm0, %v9771_v39  ;;  %v5333_v35 = vld [vmem:[%s5918_s20 + $0xe8] sm:$0xff] }
 0x3b0   : > { %v9417_v38 = vpop.eup %5061  ;;  %5081 = vpow2.f32 %v2435_v26  ;;  %v3347_v31 = vadd.f32 %v3284_v51, %v3158_v62  ;;  %v3222_v7 = vmul.f32 %v5058_v48, %v9391_v6  ;;  %v2373_v33 = vmul.f32 1.442695, %v2279_v28  ;;  %v5340_v48 = vld [vmem:[%s5936_s0 + $0x1e0] sm:$0xff] }
 0x3b1   : > { %v9423_v16 = vpop.eup %5063  ;;  %v2498_v37 = vadd.f32 %v9417_v38, %v9414_v18  ;;  %5083 = vpow2.f32 %v1806_v44  ;;  %v2781_v50 = vmul.f32 %v5333_v35, %v2718_v57  ;;  %v2907_v55 = vmul.f32 %v5334_v19, %v2844_v5  ;;  %v3546_v41 = vpop.f32.mrb[30].mxu0  ;;  %v5341_v19 = vld [vmem:[%s5918_s20 + $0x1e8] sm:$0xff] }
 0x3b2   : > { %v9430_v58 = vpop.eup %5065  ;;  %5085 = vpow2.f32 %v1995_v27  ;;  %4252 = vmatmul.mubr.f32.gmra.mrb[56].mxu0 %v3347_v31  ;;  %v3096_v49 = vmul.f32 %v5335_v25, %v3033_v53  ;;  %v2749_v6 = vmul.f32 %v9405_v10, %v9334_v46  ;;  %v3285_v30 = vmul.f32 %v5336_v14, %v3222_v7  ;;  %v4214_v63 = vpop.f32.mrb[31].mxu0 }
 0x3b3   : > { %v9434_v22 = vpop.eup %5067  ;;  %v2561_v34 = vadd.f32 %v9423_v16, %v2498_v37  ;;  %5087 = vpow2.f32 %v2184_v36  ;;  %4254 = vmatprep.mubr.msk.f32.mxu0 %vm5593_vm0, %v9771_v39  ;;  %v2970_v1 = vadd.f32 %v2907_v55, %v2781_v50  ;;  %v3547_v21 = vadd.f32 %v9330_v47, %v3546_v41 }
 0x3b4   : > { %v9440_v43 = vpop.eup %5069  ;;  %v2812_v20 = vmul.f32 %v5337_v13, %v2749_v6  ;;  %5089 = vpow2.f32 %v2373_v33  ;;  %v2938_v23 = vmul.f32 %v5338_v59, %v2875_v17  ;;  %v3253_v42 = vmul.f32 %v9405_v10, %v9355_v9  ;;  %v5343_v17 = vld [vmem:[%s5933_s21 + $0x1e8] sm:$0xff] }
 0x3b5   : > { %v9449_v60 = vpop.eup %5071  ;;  %v2624_v46 = vadd.f32 %v9430_v58, %v2561_v34  ;;  %v2467_v0 = vadd.f32 %v9440_v43, %v9434_v22  ;;  %v3159_v61 = vadd.f32 %v3096_v49, %v2970_v1  ;;  %3800 = vst [vmem:[%s8233_s16 + $0x78] sm:$0xff] %v3547_v21  ;;  %v3701_v15 = vpop.f32.mrb[28].mxu1  ;;  %v3127_v12 = vmul.f32 %v5339_v24, %v3064_v56  ;;  %v5342_v34 = vld [vmem:[%s5926_s8 + $0x1e8] sm:$0xff]  ;;  %v5345_v21 = vld [vmem:[%s5926_s8 + $0xf0] sm:$0xff]  ;;  %v5349_v24 = vld [vmem:[%s5918_s20 + $0x1f0] sm:$0xff] }
 0x3b6   : > { %v5074_v3 = vpop.eup %5073  ;;  %v3702_v4 = vadd.f32 %v9330_v47, %v3701_v15  ;;  %v4307_v26 = vpop.f32.mrb[29].mxu1  ;;  %v3001_v44 = vadd.f32 %v2938_v23, %v2812_v20  ;;  %v3316_v28 = vmul.f32 %v5340_v48, %v3253_v42  ;;  %v5348_v42 = vld [vmem:[%s5936_s0 + $0xf0] sm:$0xff] }
 0x3b7   : > { %v9459_v11 = vpop.eup %5075  ;;  %5091 = vrcp.f32 %v2624_v46  ;;  %v2530_v29 = vadd.f32 %v9449_v60, %v2467_v0  ;;  %v3348_v32 = vadd.f32 %v3285_v30, %v3159_v61  ;;  %v5344_v46 = vld [vmem:[%s5918_s20 + $0xf0] sm:$0xff] }
 0x3b8   : > { %v9463_v40 = vpop.eup %5077  ;;  %3831 = vst [vmem:[%s8233_s16 + $0x170] sm:$0xff] %v3702_v4  ;;  %v3190_v45 = vadd.f32 %v3127_v12, %v3001_v44  ;;  %v5347_v61 = vld [vmem:[%s5933_s21 + $0xf0] sm:$0xff] }
 0x3b9   : > { %v9467_v27 = vpop.eup %5079  ;;  %v2593_v9 = vadd.f32 %v5074_v3, %v2530_v29  ;;  %v2499_v10 = vadd.f32 %v9463_v40, %v9459_v11  ;;  %4255 = vmatmul.mubr.f32.gmra.mrb[58].mxu0 %v3348_v32 }
 0x3ba   : > { %v9471_v2 = vpop.eup %5081  ;;  %4257 = vmatprep.mubr.msk.f32.mxu0 %vm5593_vm0, %v9771_v39  ;;  %v3379_v62 = vadd.f32 %v3316_v28, %v3190_v45 }
 0x3bb   : > { %v9475_v52 = vpop.eup %5083  ;;  %5093 = vrcp.f32 %v2593_v9  ;;  %v2562_v8 = vadd.f32 %v9467_v27, %v2499_v10  ;;  %v5350_v9 = vld [vmem:[%s5926_s8 + $0x1f0] sm:$0xff] }
 0x3bc   : > { %v9480_v36 = vpop.eup %5085  ;;  %4348 = vmatmul.mubr.f32.gmra.mrb[56].mxu1 %v3379_v62  ;;  %v5351_v62 = vld [vmem:[%s5933_s21 + $0x1f0] sm:$0xff] }
 0x3bd   : > { %v9482_v54 = vpop.eup %5087  ;;  %v2625_v51 = vadd.f32 %v9471_v2, %v2562_v8  ;;  %v2468_v57 = vadd.f32 %v9480_v36, %v9475_v52  ;;  %4350 = vmatprep.mubr.msk.f32.mxu1 %vm5593_vm0, %v9771_v39 }
 0x3be   : > { %v9490_v53 = vpop.eup %5089 }
 0x3bf   : > { %5095 = vrcp.f32 %v2625_v51  ;;  %v2531_v5 = vadd.f32 %v9482_v54, %v2468_v57  ;;  %v5352_v57 = vld [vmem:[%s5918_s20 + $0xf8] sm:$0xff]  ;;  %s3849_s20 = scalar_lea.sflag [#allocation4], %s5911_s22 }
 0x3c1   : > { %v5092_v37 = vpop.eup %5091  ;;  %v2594_v31 = vadd.f32 %v9490_v53, %v2531_v5  ;;  %v5353_v5 = vld [vmem:[%s5926_s8 + $0xf8] sm:$0xff]  ;;  %s3856_s8 = smul.u32 (%p9865_p12), 63, %s5659_s28 }
 0x3c2   : > { %v2750_v7 = vmul.f32 %v5092_v37, %v9414_v18  ;;  %v2876_v33 = vmul.f32 %v5092_v37, %v9417_v38  ;;  %v3065_v35 = vmul.f32 %v5092_v37, %v9423_v16  ;;  %v3551_v50 = vpop.f32.mrb[32].mxu0  ;;  %v3254_v18 = vmul.f32 %v5092_v37, %v9430_v58  ;;  %v5346_v58 = vld [vmem:[%s5936_s0 + $0x1e8] sm:$0xff] }
 0x3c3   : > { %5097 = vrcp.f32 %v2594_v31  ;;  %v3552_v6 = vadd.f32 %v9330_v47, %v3551_v50  ;;  %v4217_v41 = vpop.f32.mrb[33].mxu0 }
 0x3c4   : > { %v2813_v55 = vmul.f32 %v5341_v19, %v2750_v7  ;;  %v2939_v25 = vmul.f32 %v5342_v34, %v2876_v33  ;;  %v3128_v56 = vmul.f32 %v5343_v17, %v3065_v35  ;;  %v5354_v7 = vld [vmem:[%s5936_s0 + $0x1f0] sm:$0xff] }
 0x3c5   : > { %v5094_v49 = vpop.eup %5093  ;;  %3801 = vst [vmem:[%s8233_s16 + $0x80] sm:$0xff] %v3552_v6 }
 0x3c6   : > { %v2719_v38 = vmul.f32 %v5094_v49, %v9434_v22  ;;  %v2845_v1 = vmul.f32 %v5094_v49, %v9440_v43  ;;  %v3034_v16 = vmul.f32 %v5094_v49, %v9449_v60  ;;  %v3223_v14 = vmul.f32 %v5094_v49, %v5074_v3 }
 0x3c7   : > { %v3002_v30 = vadd.f32 %v2939_v25, %v2813_v55  ;;  %v3317_v22 = vmul.f32 %v5346_v58, %v3254_v18  ;;  %v5356_v55 = vld [vmem:[%s5936_s0 + $0xf8] sm:$0xff] }
 0x3c8   : > { %v2782_v0 = vmul.f32 %v5344_v46, %v2719_v38  ;;  %v2908_v63 = vmul.f32 %v5345_v21, %v2845_v1  ;;  %v3097_v59 = vmul.f32 %v5347_v61, %v3034_v16  ;;  %v3286_v29 = vmul.f32 %v5348_v42, %v3223_v14 }
 0x3c9   : > { %v5096_v13 = vpop.eup %5095  ;;  %v3191_v20 = vadd.f32 %v3128_v56, %v3002_v30  ;;  %v3706_v23 = vpop.f32.mrb[30].mxu1 }
 0x3ca   : > { %v2971_v43 = vadd.f32 %v2908_v63, %v2782_v0  ;;  %v2751_v60 = vmul.f32 %v5096_v13, %v9459_v11  ;;  %v2877_v3 = vmul.f32 %v5096_v13, %v9463_v40  ;;  %v3066_v4 = vmul.f32 %v5096_v13, %v9467_v27  ;;  %v4310_v44 = vpop.f32.mrb[31].mxu1 }
 0x3cb   : > { %v3380_v15 = vadd.f32 %v3317_v22, %v3191_v20  ;;  %v3707_v32 = vadd.f32 %v9330_v47, %v3706_v23  ;;  %v3255_v40 = vmul.f32 %v5096_v13, %v9471_v2 }
 0x3cc   : > { %v3160_v26 = vadd.f32 %v3097_v59, %v2971_v43  ;;  %v2814_v12 = vmul.f32 %v5349_v24, %v2751_v60  ;;  %v2940_v10 = vmul.f32 %v5350_v9, %v2877_v3  ;;  %v3129_v51 = vmul.f32 %v5351_v62, %v3066_v4 }
 0x3cd   : > { %v5098_v11 = vpop.eup %5097  ;;  %4351 = vmatmul.mubr.f32.gmra.mrb[58].mxu1 %v3380_v15  ;;  %3832 = vst [vmem:[%s8233_s16 + $0x178] sm:$0xff] %v3707_v32 }
 0x3ce   : > { %v3349_v45 = vadd.f32 %v3286_v29, %v3160_v26  ;;  %4353 = vmatprep.mubr.msk.f32.mxu1 %vm5593_vm0, %v9771_v39  ;;  %v2720_v27 = vmul.f32 %v5098_v11, %v9475_v52  ;;  %v2846_v48 = vmul.f32 %v5098_v11, %v9480_v36  ;;  %v3035_v28 = vmul.f32 %v5098_v11, %v9482_v54  ;;  %v5355_v54 = vld [vmem:[%s5933_s21 + $0xf8] sm:$0xff]  ;;  %s3857_s21 = ssub.s32 (%p9865_p12), 125, %s3856_s8 }
 0x3cf   : > { %v3003_v8 = vadd.f32 %v2940_v10, %v2814_v12  ;;  %v3224_v31 = vmul.f32 %v5098_v11, %v9490_v53  ;;  %v3318_v36 = vmul.f32 %v5354_v7, %v3255_v40  ;;  %p3858_p3 = scmp.lt.s32.totalorder (%p9865_p12), %s3857_s21, 63 }
 0x3d0   : > { %4258 = vmatmul.mubr.f32.gmra.mrb[60].mxu0 %v3349_v45  ;;  %v2783_v2 = vmul.f32 %v5352_v57, %v2720_v27  ;;  %v2909_v37 = vmul.f32 %v5353_v5, %v2846_v48  ;;  %v3098_v35 = vmul.f32 %v5355_v54, %v3035_v28 }
 0x3d1   : > { %4260 = vmatprep.mubr.msk.f32.mxu0 %vm5593_vm0, %v9771_v39  ;;  %v3192_v52 = vadd.f32 %v3129_v51, %v3003_v8  ;;  %v3287_v34 = vmul.f32 %v5356_v55, %v3224_v31 }
 0x3d2   : > { %v2972_v33 = vadd.f32 %v2909_v37, %v2783_v2 }
 0x3d3   : > { %v3381_v50 = vadd.f32 %v3318_v36, %v3192_v52 }
 0x3d4   : > { %v3161_v19 = vadd.f32 %v3098_v35, %v2972_v33 }
 0x3d5   : > { %4354 = vmatmul.mubr.f32.gmra.mrb[60].mxu1 %v3381_v50 }
 0x3d6   : > { %v3350_v25 = vadd.f32 %v3287_v34, %v3161_v19  ;;  %v3556_v53 = vpop.f32.mrb[34].mxu0 }
 0x3d7   : > { %v3557_v39 = vadd.f32 %v9330_v47, %v3556_v53  ;;  %v4220_v49 = vpop.f32.mrb[35].mxu0 }
 0x3d8   : > { %4261 = vmatmul.mubr.f32.gmra.mrb[62].mxu0 %v3350_v25  ;;  %v3711_v6 = vpop.f32.mrb[32].mxu1 }
 0x3d9   : > { %3802 = vst [vmem:[%s8233_s16 + $0x88] sm:$0xff] %v3557_v39  ;;  %v3712_v41 = vadd.f32 %v9330_v47, %v3711_v6  ;;  %v4313_v18 = vpop.f32.mrb[33].mxu1 }
 0x3db   : > { %3833 = vst [vmem:[%s8233_s16 + $0x180] sm:$0xff] %v3712_v41 }
 0x3e6   : > { %v3561_v38 = vpop.f32.mrb[36].mxu0 }
 0x3e7   : > { %v3562_v1 = vadd.f32 %v9330_v47, %v3561_v38  ;;  %v4223_v16 = vpop.f32.mrb[37].mxu0 }
 0x3e9   : > { %3803 = vst [vmem:[%s8233_s16 + $0x90] sm:$0xff] %v3562_v1 }
 0x3ed   : > { %v3716_v14 = vpop.f32.mrb[34].mxu1 }
 0x3ee   : > { %v3717_v30 = vadd.f32 %v9330_v47, %v3716_v14  ;;  %v4316_v17 = vpop.f32.mrb[35].mxu1 }
 0x3f0   : > { %3834 = vst [vmem:[%s8233_s16 + $0x188] sm:$0xff] %v3717_v30 }
 0x3f7   : > { %v3566_v56 = vpop.f32.mrb[38].mxu0 }
 0x3f8   : > { %v3567_v46 = vadd.f32 %v9330_v47, %v3566_v56  ;;  %v4226_v0 = vpop.f32.mrb[39].mxu0 }
 0x3fa   : > { %3804 = vst [vmem:[%s8233_s16 + $0x98] sm:$0xff] %v3567_v46 }
 0x3fc   : > { %v3721_v21 = vpop.f32.mrb[36].mxu1 }
 0x3fd   : > { %v3722_v63 = vadd.f32 %v9330_v47, %v3721_v21  ;;  %v4319_v13 = vpop.f32.mrb[37].mxu1 }
 0x3ff   : > { %3835 = vst [vmem:[%s8233_s16 + $0x190] sm:$0xff] %v3722_v63 }
 0x402   : > { %v3571_v20 = vpop.f32.mrb[40].mxu0 }
 0x403   : > { %v3572_v58 = vadd.f32 %v9330_v47, %v3571_v20  ;;  %v4229_v22 = vpop.f32.mrb[41].mxu0 }
 0x405   : > { %3805 = vst [vmem:[%s8233_s16 + $0xa0] sm:$0xff] %v3572_v58 }
 0x40d   : > { %v3726_v43 = vpop.f32.mrb[38].mxu1 }
 0x40e   : > { %v3727_v61 = vadd.f32 %v9330_v47, %v3726_v43  ;;  %v4322_v59 = vpop.f32.mrb[39].mxu1 }
 0x410   : > { %3836 = vst [vmem:[%s8233_s16 + $0x198] sm:$0xff] %v3727_v61 }
 0x411   : > { %v3576_v60 = vpop.f32.mrb[42].mxu0 }
 0x412   : > { %v3577_v3 = vadd.f32 %v9330_v47, %v3576_v60  ;;  %v4232_v23 = vpop.f32.mrb[43].mxu0 }
 0x413   : > { %v3731_v42 = vpop.f32.mrb[40].mxu1 }
 0x414   : > { %3806 = vst [vmem:[%s8233_s16 + $0xa8] sm:$0xff] %v3577_v3  ;;  %v3732_v29 = vadd.f32 %v9330_v47, %v3731_v42  ;;  %v4325_v15 = vpop.f32.mrb[41].mxu1 }
 0x416   : > { %3837 = vst [vmem:[%s8233_s16 + $0x1a0] sm:$0xff] %v3732_v29 }
 0x422   : > { %v3581_v4 = vpop.f32.mrb[44].mxu0 }
 0x423   : > { %v3582_v32 = vadd.f32 %v9330_v47, %v3581_v4  ;;  %v3736_v26 = vpop.f32.mrb[42].mxu1  ;;  %v4235_v44 = vpop.f32.mrb[45].mxu0 }
 0x424   : > { %v3737_v24 = vadd.f32 %v9330_v47, %v3736_v26  ;;  %v4328_v12 = vpop.f32.mrb[43].mxu1 }
 0x425   : > { %3807 = vst [vmem:[%s8233_s16 + $0xb0] sm:$0xff] %v3582_v32 }
 0x426   : > { %3838 = vst [vmem:[%s8233_s16 + $0x1a8] sm:$0xff] %v3737_v24 }
 0x430   : > { %v3586_v9 = vpop.f32.mrb[46].mxu0 }
 0x431   : > { %v3587_v10 = vadd.f32 %v9330_v47, %v3586_v9  ;;  %v4238_v11 = vpop.f32.mrb[47].mxu0 }
 0x433   : > { %3808 = vst [vmem:[%s8233_s16 + $0xb8] sm:$0xff] %v3587_v10  ;;  %v3741_v40 = vpop.f32.mrb[44].mxu1 }
 0x434   : > { %v3742_v45 = vadd.f32 %v9330_v47, %v3741_v40  ;;  %v4331_v27 = vpop.f32.mrb[45].mxu1 }
 0x436   : > { %3839 = vst [vmem:[%s8233_s16 + $0x1b0] sm:$0xff] %v3742_v45 }
 0x440   : > { %v3591_v48 = vpop.f32.mrb[48].mxu0 }
 0x441   : > { %v3592_v28 = vadd.f32 %v9330_v47, %v3591_v48  ;;  %v4241_v8 = vpop.f32.mrb[49].mxu0 }
 0x443   : > { %3809 = vst [vmem:[%s8233_s16 + $0xc0] sm:$0xff] %v3592_v28  ;;  %v3746_v62 = vpop.f32.mrb[46].mxu1 }
 0x444   : > { %v3747_v51 = vadd.f32 %v9330_v47, %v3746_v62  ;;  %v4334_v57 = vpop.f32.mrb[47].mxu1 }
 0x446   : > { %3840 = vst [vmem:[%s8233_s16 + $0x1b8] sm:$0xff] %v3747_v51 }
 0x44f   : > { %v3596_v2 = vpop.f32.mrb[50].mxu0 }
 0x450   : > { %v3597_v5 = vadd.f32 %v9330_v47, %v3596_v2  ;;  %v4244_v37 = vpop.f32.mrb[51].mxu0 }
 0x452   : > { %v3751_v31 = vpop.f32.mrb[48].mxu1  ;;  %3810 = vst [vmem:[%s8233_s16 + $0xc8] sm:$0xff] %v3597_v5 }
 0x453   : > { %v3752_v52 = vadd.f32 %v9330_v47, %v3751_v31  ;;  %v4337_v7 = vpop.f32.mrb[49].mxu1 }
 0x455   : > { %3841 = vst [vmem:[%s8233_s16 + $0x1c0] sm:$0xff] %v3752_v52 }
 0x45e   : > { %v3601_v36 = vpop.f32.mrb[52].mxu0 }
 0x45f   : > { %v3602_v33 = vadd.f32 %v9330_v47, %v3601_v36  ;;  %v4247_v54 = vpop.f32.mrb[53].mxu0 }
 0x461   : > { %3811 = vst [vmem:[%s8233_s16 + $0xd0] sm:$0xff] %v3602_v33 }
 0x462   : > { %v3756_v35 = vpop.f32.mrb[50].mxu1 }
 0x463   : > { %v3757_v50 = vadd.f32 %v9330_v47, %v3756_v35  ;;  %v4340_v19 = vpop.f32.mrb[51].mxu1 }
 0x465   : > { %3842 = vst [vmem:[%s8233_s16 + $0x1c8] sm:$0xff] %v3757_v50 }
 0x46d   : > { %v3606_v55 = vpop.f32.mrb[54].mxu0 }
 0x46e   : > { %v3607_v34 = vadd.f32 %v9330_v47, %v3606_v55  ;;  %v4250_v25 = vpop.f32.mrb[55].mxu0 }
 0x46f   : > { %v3761_v53 = vpop.f32.mrb[52].mxu1 }
 0x470   : > { %3812 = vst [vmem:[%s8233_s16 + $0xd8] sm:$0xff] %v3607_v34  ;;  %v3762_v39 = vadd.f32 %v9330_v47, %v3761_v53  ;;  %v4343_v49 = vpop.f32.mrb[53].mxu1 }
 0x472   : > { %3843 = vst [vmem:[%s8233_s16 + $0x1d0] sm:$0xff] %v3762_v39 }
 0x481   : > { %v3766_v6 = vpop.f32.mrb[54].mxu1 }
 0x482   : > { %v3767_v41 = vadd.f32 %v9330_v47, %v3766_v6  ;;  %v4346_v18 = vpop.f32.mrb[55].mxu1 }
 0x484   : > { %3844 = vst [vmem:[%s8233_s16 + $0x1d8] sm:$0xff] %v3767_v41 }
 0x485   : > { %v3611_v38 = vpop.f32.mrb[56].mxu0 }
 0x486   : > { %v3612_v1 = vadd.f32 %v9330_v47, %v3611_v38  ;;  %v4253_v16 = vpop.f32.mrb[57].mxu0 }
 0x488   : > { %3813 = vst [vmem:[%s8233_s16 + $0xe0] sm:$0xff] %v3612_v1 }
 0x48c   : > { %v3616_v14 = vpop.f32.mrb[58].mxu0 }
 0x48d   : > { %v3617_v30 = vadd.f32 %v9330_v47, %v3616_v14  ;;  %v4256_v17 = vpop.f32.mrb[59].mxu0 }
 0x48f   : > { %3814 = vst [vmem:[%s8233_s16 + $0xe8] sm:$0xff] %v3617_v30  ;;  %v3771_v56 = vpop.f32.mrb[56].mxu1 }
 0x490   : > { %v3772_v46 = vadd.f32 %v9330_v47, %v3771_v56  ;;  %v4349_v0 = vpop.f32.mrb[57].mxu1 }
 0x492   : > { %3845 = vst [vmem:[%s8233_s16 + $0x1e0] sm:$0xff] %v3772_v46 }
 0x4a0   : > { %v3776_v21 = vpop.f32.mrb[58].mxu1 }
 0x4a1   : > { %v3777_v63 = vadd.f32 %v9330_v47, %v3776_v21  ;;  %v4352_v13 = vpop.f32.mrb[59].mxu1 }
 0x4a3   : > { %v3621_v20 = vpop.f32.mrb[60].mxu0  ;;  %3846 = vst [vmem:[%s8233_s16 + $0x1e8] sm:$0xff] %v3777_v63 }
 0x4a4   : > { %v3622_v58 = vadd.f32 %v9330_v47, %v3621_v20  ;;  %v4259_v22 = vpop.f32.mrb[61].mxu0 }
 0x4a6   : > { %3815 = vst [vmem:[%s8233_s16 + $0xf0] sm:$0xff] %v3622_v58 }
 0x4a8   : > { %v3781_v43 = vpop.f32.mrb[60].mxu1  ;;  %3855 = sbr.rel (!%p9865_p12) target bundleno = 1227 (0x4cb), region = 72 }
 0x4a9   : > { %v3782_v61 = vadd.f32 %v9330_v47, %v3781_v43  ;;  %v4355_v59 = vpop.f32.mrb[61].mxu1 }
 0x4ab   : > { %v3626_v60 = vpop.f32.mrb[62].mxu0  ;;  %3847 = vst [vmem:[%s8233_s16 + $0x1f0] sm:$0xff] %v3782_v61 }
 0x4ac   : > { %v3627_v3 = vadd.f32 %v9330_v47, %v3626_v60  ;;  %v4262_v23 = vpop.f32.mrb[63].mxu0 }
 0x4ae   : > { %3816 = vst [vmem:[%s8233_s16 + $0xf8] sm:$0xff] %v3627_v3 }
 0x4af   : > { %s9881_s21 = smov (!%p3858_p3, %s3857_s21), 63 }
 0x4b0   : > { %s9596_s0 = sshll.u32 %s9881_s21, 7 }
 0x4b1   : > { %s3862_s17 = ssub.s32 8064, %s9596_s0 }
 0x4b2   : > { %3863 = vsyncadd %s3849_s20, %s3862_s17  ;;  %p4045_p13 = scmp.ne.s32.totalorder %s9596_s0, 0  ;;  %s4055_s13 = smul.u32 8064, %s5659_s28 }
 0x4b3   : > { %s3868_s19 = sshll.u32 %s8233_s16, 4  ;;  %s5595_s29 = smov [#allocation11]   ;;  %s9609_s19 = int_to_ptr.vmem [resolvable:$true] %s3868_s19 }
 0x4b4   : > { %s9607_s23 = scalar_lea.hbm %s9662_s7, %s4055_s13  ;;  %s5497_s10 = scalar_lea.vmem %s9609_s19, %s9596_s0 }
 0x4b5   : > { %p5498_p2 = scmp.ne.s32.totalorder %s9609_s19, %s5497_s10  ;;  %s5501_s18 = sshll.u32 %s5595_s29, 4  ;;  %s5502_s18 = int_to_ptr.vmem [resolvable:$false] %s5501_s18 }
 0x4b6   : > { %s5503_s28 = scalar_lea.vmem %s5502_s18, 16128  ;;  %p5504_p9 = scmp.lt.s32.totalorder %s9609_s19, %s5502_s18 }
 0x4b7   : > { %p5499_p7 = pnand %p5498_p2, %p4045_p13  ;;  %p5505_p4 = scmp.lt.s32.totalorder %s5503_s28, %s5497_s10 }
 0x4b9   : > { %p5500_p8 = pneg %p5499_p7  ;;  %p5506_p10 = por %p5505_p4, %p5504_p9 }
 0x4bb   : > { %p5507_p1 = pnand %p5506_p10, %p5500_p8 }
 0x4bd   : > { %5510 = shalt.err (!%p5507_p1)
}
 0x4be   : > { %s5511_s16 = scalar_lea.hbm %s9607_s23, %s9596_s0  ;;  %s5515_s9 = scalar_lea.hbm %s9662_s7, 16000 }
 0x4bf   : > { %p5512_p5 = scmp.ne.s32.totalorder %s9607_s23, %s5511_s16  ;;  %p5516_p12 = scmp.lt.u32.totalorder %s9607_s23, %s9662_s7 }
 0x4c0   : > { %p5517_p3 = scmp.lt.u32.totalorder %s5515_s9, %s5511_s16  ;;  %p5519_p7 = scmp.lt.u32.totalorder %s5511_s16, %s9607_s23 }
 0x4c1   : > { %p5513_p6 = pnand %p5512_p5, %p4045_p13 }
 0x4c2   : > { %p5518_p2 = por %p5517_p3, %p5516_p12 }
 0x4c3   : > { %p5514_p11 = pneg %p5513_p6 }
 0x4c4   : > { %p5520_p8 = por %p5519_p7, %p5518_p2 }
 0x4c6   : > { %p5521_p9 = pnand %p5520_p8, %p5514_p11 }
 0x4c8   : > { %5524 = shalt.err (!%p5521_p9)
}
 0x4c9   : > { %s5596_s17 = smov 128   ;;  %s5597_s13 = smov 8  }
 0x4ca   : > { %3874 = dma.vmem_to_hbm [thread:$0]  (%p4045_p13), %s9609_s19, %s9596_s0, %s9607_s23, %s3849_s20, %s5596_s17, %s5596_s17, %s5597_s13  }
 0x4cb PF: > { %s3883_s5 = sand.u32 1, %s5563_s24   ;;  %p9866_p4 = scmp.ne.s32.totalorder %s9707_s14, 0 }
 0x4cc   : > { %s3884_s15 = scalar_lea.sflag [#allocation4], %s3883_s5 }
 0x4cd   : > { %p4415_p10 = pnand %p4019_p0, %p9866_p4 }
 0x4cf   : > { %5558 = dma.done.wait (!%p4415_p10), %s3884_s15, 8064  }
 0x4d0   : > { %5560 = vsyncadd (!%p4415_p10), %s3884_s15, 4294959232  ;;  %s9867_s10 = sld [smem:[#allocation17_spill]]  ;;  %p26_p1 = scmp.ge.s32.totalorder %s5663_s30, 4  }
 0x4d1   : > { %s9868_s24 = smov %s5567_s25  ;;  %s9869_s25 = smov %s5571_s26 }
 0x4d2   : > { %s9871_s27 = smov %s5663_s30  ;;  %28 = sbr.rel (!%p26_p1) target bundleno = 12 (0xc), region = 134 }
 0x4d6   : > { %s9870_s26 = smov %s9867_s10 }
 0x4d9   :  { %3889 = vsyncpa [#allocation3], 1 }
 0x4da   :  { %3891 = vsyncpa [#allocation3 + $0x1], 1 }
 0x4db   :  { %3892 = vsyncpa [#allocation6], 1 }
 0x4dc   :  { %3894 = vsyncpa [#allocation6 + $0x1], 1 }
 0x4dd   :  { %3895 = vsyncpa [#allocation9], 1 }
 0x4de   :  { %3897 = vsyncpa [#allocation9 + $0x1], 1 }
 0x4df   :  { %3898 = vsyncpa [#allocation4], 1 }
 0x4e0   :  { %3900 = vsyncpa [#allocation4 + $0x1], 1 }

</bundles_post_ra>
